<compile_context>
chip_gen: v6e
topology: v6e:2x2x1
jax: 0.10.0
libtpu: 0.0.40
codegen_flags: <defaults>
</compile_context>

<pallas_src>
import functools

import jax
import jax.numpy as jnp
from jax.experimental import pallas as pl
from jax.experimental.pallas import tpu as pltpu

_EPS = 1e-5
_LANES = 128


def _round_up(x, m):
    return (x + m - 1) // m * m


def _pad_last(a, target):
    """Zero-pad the last dim of `a` up to `target` (wrapper-side layout plumbing)."""
    pad = target - a.shape[-1]
    if pad == 0:
        return a
    return jnp.pad(a, [(0, 0)] * (a.ndim - 1) + [(0, pad)])


def _bn_maybe_relu(y, g, b, *, relu):
    """Training-mode BatchNorm over rows of a (M, C) matrix, optional ReLU.

    Single-pass statistics; gamma*rsqrt(var+eps) folded into one per-channel
    scale and shift so normalization is one multiply-add per element.
    Lane-padded channels have gamma = beta = 0 and therefore stay exactly zero.
    """
    m = jnp.float32(y.shape[0])
    s = jnp.sum(y, axis=0, keepdims=True)            # (1, C)
    ss = jnp.sum(y * y, axis=0, keepdims=True)       # (1, C)
    mean = s / m
    var = ss / m - mean * mean                       # biased variance (PyTorch training fwd)
    scale = g * jax.lax.rsqrt(var + _EPS)            # EUP
    shift = b - mean * scale
    out = y * scale + shift
    return jnp.maximum(out, 0.0) if relu else out


def _residual_kernel(use_1x1conv, n, h, w,
                     col1_ref, xs_ref, w1_ref, w2_ref,
                     g1_ref, bt1_ref, g2_ref, bt2_ref, *rest):
    if use_1x1conv:
        w3_ref, b3_ref, out_ref, ypad_ref = rest
    else:
        out_ref, ypad_ref = rest

    cp = out_ref.shape[-1]                 # lane-padded channel count (multiple of 128)
    m = n * h * w

    # --- conv1 as ONE im2col matmul (contraction 9*Cin, lane-dense N=cp). -----
    y1 = jnp.dot(col1_ref[...], w1_ref[...], preferred_element_type=jnp.float32)
    y1 = _bn_maybe_relu(y1, g1_ref[...], bt1_ref[...], relu=True)      # (M, cp)

    # --- zero-padded conv1 output: zero only the 4 border strips, write the
    #     interior exactly once.  With cp=128 these are full-lane stores. ------
    zrow = jnp.zeros((n, 1, w + 2, cp), jnp.float32)
    zcol = jnp.zeros((n, h, 1, cp), jnp.float32)
    ypad_ref[:, 0:1, :, :] = zrow
    ypad_ref[:, h + 1:h + 2, :, :] = zrow
    ypad_ref[:, 1:h + 1, 0:1, :] = zcol
    ypad_ref[:, 1:h + 1, w + 1:w + 2, :] = zcol
    ypad_ref[:, 1:h + 1, 1:w + 1, :] = y1.reshape(n, h, w, cp)

    # --- conv2 im2col assembled in-register: 9 tap loads concatenated on the
    #     lane axis at 128-aligned offsets (no col2 scratch ref, no explicit
    #     store+reload round trip), then ONE matmul with contraction 9*cp. -----
    taps = [ypad_ref[:, dy:dy + h, dx:dx + w, :]
            for dy in range(3) for dx in range(3)]
    col2 = jnp.concatenate(taps, axis=-1).reshape(m, 9 * cp)
    y2 = jnp.dot(col2, w2_ref[...], preferred_element_type=jnp.float32)
    y2 = _bn_maybe_relu(y2, g2_ref[...], bt2_ref[...], relu=False)

    # --- shortcut: 1x1 projection or plain identity, chosen at trace time. ----
    if use_1x1conv:
        sc = jnp.dot(xs_ref[...], w3_ref[...],
                     preferred_element_type=jnp.float32) + b3_ref[...]
    else:
        sc = xs_ref[...]

    out_ref[...] = jnp.maximum(y2 + sc, 0.0)           # full-lane (cp) store


def residual_forward(x_nchw, params, use_1x1conv):
    """Pallas implementation of Residual.forward (strides=1)."""
    x = jnp.transpose(x_nchw, (0, 2, 3, 1)).astype(jnp.float32)        # NCHW -> NHWC
    n, h, w, cin = x.shape
    cout = params["w1"].shape[-1]
    m = n * h * w
    cp = _round_up(cout, _LANES)                                       # lane-dense channels

    # im2col for conv1 + flat shortcut input: pure layout plumbing done by XLA.
    xpad = jnp.pad(x, ((0, 0), (1, 1), (1, 1), (0, 0)))
    col1 = jnp.concatenate(
        [xpad[:, dy:dy + h, dx:dx + w, :] for dy in range(3) for dx in range(3)],
        axis=-1).reshape(m, 9 * cin)                                   # (M, 9*Cin)
    xs = x.reshape(m, cin)                                             # (M, Cin)

    # Lane-dense weight / BN-parameter padding (zeros in padded channels).
    w1 = _pad_last(params["w1"], cp).reshape(9 * cin, cp)              # (9*Cin, cp)
    w2 = jnp.zeros((3, 3, cp, cp), jnp.float32)
    w2 = w2.at[:, :, :cout, :cout].set(params["w2"]).reshape(9 * cp, cp)
    g1, bt1 = _pad_last(params["g1"], cp), _pad_last(params["bt1"], cp)
    g2, bt2 = _pad_last(params["g2"], cp), _pad_last(params["bt2"], cp)

    if use_1x1conv:
        args = [col1, xs, w1, w2, g1, bt1, g2, bt2,
                _pad_last(params["w3"], cp), _pad_last(params["b3"], cp)]
    else:
        # Identity shortcut: feed the lane-padded flat input directly.
        args = [col1, _pad_last(xs, cp), w1, w2, g1, bt1, g2, bt2]

    vmem = pl.BlockSpec(memory_space=pltpu.MemorySpace.VMEM)
    kernel = functools.partial(_residual_kernel, use_1x1conv, n, h, w)
    out2d = pl.pallas_call(
        kernel,
        out_shape=jax.ShapeDtypeStruct((m, cp), jnp.float32),          # lane-dense slab
        in_specs=[vmem] * len(args),
        out_specs=vmem,
        scratch_shapes=[
            pltpu.VMEM((n, h + 2, w + 2, cp), jnp.float32),            # zero-padded conv1 output
        ],
        compiler_params=pltpu.CompilerParams(vmem_limit_bytes=32 * 1024 * 1024),
    )(*args)

    out = out2d[:, :cout].reshape(n, h, w, cout)                       # drop lane padding
    return jnp.transpose(out, (0, 3, 1, 2))                            # -> NCHW


def residual_reference(x_nchw, params, use_1x1conv):
    """Pure-JAX reference (same semantics, incl. the conv biases) for verification."""
    x = jnp.transpose(x_nchw, (0, 2, 3, 1)).astype(jnp.float32)
    cin = x.shape[-1]
    cout = params["w1"].shape[-1]

    def conv(inp, wgt, b, padding):
        y = jax.lax.conv_general_dilated(
            inp, wgt, window_strides=(1, 1), padding=padding,
            dimension_numbers=("NHWC", "HWIO", "NHWC"))
        return y + b[0]

    def bn(y, g, b):
        mu = jnp.mean(y, axis=(0, 1, 2), keepdims=True)
        var = jnp.mean((y - mu) ** 2, axis=(0, 1, 2), keepdims=True)
        return (y - mu) / jnp.sqrt(var + _EPS) * g[0] + b[0]

    y = jax.nn.relu(bn(conv(x, params["w1"], params["b1"], "SAME"),
                       params["g1"], params["bt1"]))
    y = bn(conv(y, params["w2"], params["b2"], "SAME"),
           params["g2"], params["bt2"])
    if use_1x1conv:
        sc = conv(x, params["w3"].reshape(1, 1, cin, cout), params["b3"], "VALID")
    else:
        sc = x
    return jnp.transpose(jax.nn.relu(y + sc), (0, 3, 1, 2))


def make_params(key, input_channels, num_channels, use_1x1conv):
    """Deterministic synthetic parameters matching the module's __init__ shapes."""
    ks = jax.random.split(key, 6)
    p = {
        # conv weights stored HWIO (== PyTorch OIHW transposed to (3,3,Cin,Cout))
        "w1": jax.random.normal(ks[0], (3, 3, input_channels, num_channels), jnp.float32) * 0.1,
        "b1": jax.random.normal(ks[1], (1, num_channels), jnp.float32) * 0.1,
        "w2": jax.random.normal(ks[2], (3, 3, num_channels, num_channels), jnp.float32) * 0.1,
        "b2": jax.random.normal(ks[3], (1, num_channels), jnp.float32) * 0.1,
        # BatchNorm affine params at PyTorch default init (gamma=1, beta=0).
        "g1": jnp.ones((1, num_channels), jnp.float32),
        "bt1": jnp.zeros((1, num_channels), jnp.float32),
        "g2": jnp.ones((1, num_channels), jnp.float32),
        "bt2": jnp.zeros((1, num_channels), jnp.float32),
    }
    if use_1x1conv:
        p["w3"] = jax.random.normal(ks[4], (input_channels, num_channels), jnp.float32) * 0.1
        p["b3"] = jax.random.normal(ks[5], (1, num_channels), jnp.float32) * 0.1
    return p


if __name__ == "__main__":
    key = jax.random.PRNGKey(0)
    k_x, k_p1, k_p2 = jax.random.split(key, 3)

    # Config 1: projection shortcut (use_1x1conv=True), Cin != Cout.
    x = jax.random.normal(k_x, (2, 4, 16, 16), jnp.float32)            # NCHW
    params = make_params(k_p1, input_channels=4, num_channels=8, use_1x1conv=True)
    out = jax.block_until_ready(residual_forward(x, params, use_1x1conv=True))
    ref = residual_reference(x, params, use_1x1conv=True)
    assert out.shape == (2, 8, 16, 16)
    assert jnp.allclose(out, ref, rtol=1e-4, atol=1e-4), "mismatch (1x1conv case)"

    # Config 2: identity shortcut (use_1x1conv=False), Cin == Cout.
    params2 = make_params(k_p2, input_channels=4, num_channels=4, use_1x1conv=False)
    out2 = jax.block_until_ready(residual_forward(x, params2, use_1x1conv=False))
    ref2 = residual_reference(x, params2, use_1x1conv=False)
    assert out2.shape == (2, 4, 16, 16)
    assert jnp.allclose(out2, ref2, rtol=1e-4, atol=1e-4), "mismatch (identity case)"

    print("KERNEL_OK")
</pallas_src>

<mosaic_0001>
module attributes {stable_mosaic.version = 11 : i64} {
  func.func @_residual_kernel(%arg0: memref<512x36xf32, #tpu.memory_space<vmem>>, %arg1: memref<512x4xf32, #tpu.memory_space<vmem>>, %arg2: memref<36x128xf32, #tpu.memory_space<vmem>>, %arg3: memref<1152x128xf32, #tpu.memory_space<vmem>>, %arg4: memref<1x128xf32, #tpu.memory_space<vmem>>, %arg5: memref<1x128xf32, #tpu.memory_space<vmem>>, %arg6: memref<1x128xf32, #tpu.memory_space<vmem>>, %arg7: memref<1x128xf32, #tpu.memory_space<vmem>>, %arg8: memref<4x128xf32, #tpu.memory_space<vmem>>, %arg9: memref<1x128xf32, #tpu.memory_space<vmem>>, %arg10: memref<512x128xf32, #tpu.memory_space<vmem>>, %arg11: memref<2x18x18x128xf32, #tpu.memory_space<vmem>>) attributes {dimension_semantics = [], scalar_prefetch = 0 : i64, scratch_operands = 1 : i64, tpu.core_type = #tpu.core_type<tc>} {
    %c0 = arith.constant 0 : index
    %c0_0 = arith.constant 0 : index
    %0 = vector.load %arg0[%c0, %c0_0] : memref<512x36xf32, #tpu.memory_space<vmem>>, vector<512x36xf32>
    %c0_1 = arith.constant 0 : index
    %c0_2 = arith.constant 0 : index
    %1 = vector.load %arg2[%c0_1, %c0_2] : memref<36x128xf32, #tpu.memory_space<vmem>>, vector<36x128xf32>
    %cst = arith.constant dense<0.000000e+00> : vector<512x128xf32>
    %2 = tpu.matmul %0, %1, %cst {dimension_numbers = #tpu.dot_dimension_numbers<[1], [0], [0], [1], [0, 0, 1, 1], [], []>} : vector<512x36xf32>, vector<36x128xf32>, vector<512x128xf32> -> vector<512x128xf32>
    %c0_3 = arith.constant 0 : index
    %c0_4 = arith.constant 0 : index
    %3 = vector.load %arg4[%c0_3, %c0_4] : memref<1x128xf32, #tpu.memory_space<vmem>>, vector<1x128xf32>
    %c0_5 = arith.constant 0 : index
    %c0_6 = arith.constant 0 : index
    %4 = vector.load %arg5[%c0_5, %c0_6] : memref<1x128xf32, #tpu.memory_space<vmem>>, vector<1x128xf32>
    %cst_7 = arith.constant dense<0.000000e+00> : vector<128xf32>
    %5 = vector.multi_reduction <add>, %2, %cst_7 [0] : vector<512x128xf32> to vector<128xf32>
    %6 = vector.shape_cast %5 : vector<128xf32> to vector<1x128xf32>
    %7 = arith.mulf %2, %2 : vector<512x128xf32>
    %cst_8 = arith.constant dense<0.000000e+00> : vector<128xf32>
    %8 = vector.multi_reduction <add>, %7, %cst_8 [0] : vector<512x128xf32> to vector<128xf32>
    %9 = vector.shape_cast %8 : vector<128xf32> to vector<1x128xf32>
    %cst_9 = arith.constant 5.120000e+02 : f32
    %10 = vector.broadcast %cst_9 : f32 to vector<1x128xf32>
    %11 = arith.divf %6, %10 : vector<1x128xf32>
    %cst_10 = arith.constant 5.120000e+02 : f32
    %12 = vector.broadcast %cst_10 : f32 to vector<1x128xf32>
    %13 = arith.divf %9, %12 : vector<1x128xf32>
    %14 = arith.mulf %11, %11 : vector<1x128xf32>
    %15 = arith.subf %13, %14 : vector<1x128xf32>
    %cst_11 = arith.constant 9.99999974E-6 : f32
    %16 = vector.broadcast %cst_11 : f32 to vector<1x128xf32>
    %17 = arith.addf %15, %16 : vector<1x128xf32>
    %18 = math.rsqrt %17 : vector<1x128xf32>
    %19 = arith.mulf %3, %18 : vector<1x128xf32>
    %20 = arith.mulf %11, %19 : vector<1x128xf32>
    %21 = arith.subf %4, %20 : vector<1x128xf32>
    %22 = vector.broadcast %19 : vector<1x128xf32> to vector<512x128xf32>
    %23 = arith.mulf %2, %22 : vector<512x128xf32>
    %24 = vector.broadcast %21 : vector<1x128xf32> to vector<512x128xf32>
    %25 = arith.addf %23, %24 : vector<512x128xf32>
    %cst_12 = arith.constant 0.000000e+00 : f32
    %26 = vector.broadcast %cst_12 : f32 to vector<512x128xf32>
    %27 = arith.maximumf %25, %26 : vector<512x128xf32>
    %cst_13 = arith.constant 0.000000e+00 : f32
    %28 = vector.broadcast %cst_13 : f32 to vector<2x1x18x128xf32>
    %cst_14 = arith.constant 0.000000e+00 : f32
    %29 = vector.broadcast %cst_14 : f32 to vector<2x16x1x128xf32>
    %c0_15 = arith.constant 0 : index
    %c0_16 = arith.constant 0 : index
    %c0_17 = arith.constant 0 : index
    %c0_18 = arith.constant 0 : index
    %30 = vector.load %arg11[%c0_15, %c0_16, %c0_17, %c0_18] : memref<2x18x18x128xf32, #tpu.memory_space<vmem>>, vector<2x1x18x128xf32>
    tpu.vector_store %arg11[%c0_15, %c0_16, %c0_17, %c0_18], %28 {strides = array<i32>} : memref<2x18x18x128xf32, #tpu.memory_space<vmem>>, vector<2x1x18x128xf32>,
    %c0_19 = arith.constant 0 : index
    %c17 = arith.constant 17 : index
    %c0_20 = arith.constant 0 : index
    %c0_21 = arith.constant 0 : index
    %31 = vector.load %arg11[%c0_19, %c17, %c0_20, %c0_21] : memref<2x18x18x128xf32, #tpu.memory_space<vmem>>, vector<2x1x18x128xf32>
    tpu.vector_store %arg11[%c0_19, %c17, %c0_20, %c0_21], %28 {strides = array<i32>} : memref<2x18x18x128xf32, #tpu.memory_space<vmem>>, vector<2x1x18x128xf32>,
    %c0_22 = arith.constant 0 : index
    %c1 = arith.constant 1 : index
    %c0_23 = arith.constant 0 : index
    %c0_24 = arith.constant 0 : index
    %32 = vector.load %arg11[%c0_22, %c1, %c0_23, %c0_24] : memref<2x18x18x128xf32, #tpu.memory_space<vmem>>, vector<2x16x1x128xf32>
    tpu.vector_store %arg11[%c0_22, %c1, %c0_23, %c0_24], %29 {strides = array<i32>} : memref<2x18x18x128xf32, #tpu.memory_space<vmem>>, vector<2x16x1x128xf32>,
    %c0_25 = arith.constant 0 : index
    %c1_26 = arith.constant 1 : index
    %c17_27 = arith.constant 17 : index
    %c0_28 = arith.constant 0 : index
    %33 = vector.load %arg11[%c0_25, %c1_26, %c17_27, %c0_28] : memref<2x18x18x128xf32, #tpu.memory_space<vmem>>, vector<2x16x1x128xf32>
    tpu.vector_store %arg11[%c0_25, %c1_26, %c17_27, %c0_28], %29 {strides = array<i32>} : memref<2x18x18x128xf32, #tpu.memory_space<vmem>>, vector<2x16x1x128xf32>,
    %34 = vector.shape_cast %27 : vector<512x128xf32> to vector<2x16x16x128xf32>
    %c0_29 = arith.constant 0 : index
    %c1_30 = arith.constant 1 : index
    %c1_31 = arith.constant 1 : index
    %c0_32 = arith.constant 0 : index
    %35 = vector.load %arg11[%c0_29, %c1_30, %c1_31, %c0_32] : memref<2x18x18x128xf32, #tpu.memory_space<vmem>>, vector<2x16x16x128xf32>
    tpu.vector_store %arg11[%c0_29, %c1_30, %c1_31, %c0_32], %34 {strides = array<i32>} : memref<2x18x18x128xf32, #tpu.memory_space<vmem>>, vector<2x16x16x128xf32>,
    %c0_33 = arith.constant 0 : index
    %c0_34 = arith.constant 0 : index
    %c0_35 = arith.constant 0 : index
    %c0_36 = arith.constant 0 : index
    %36 = vector.load %arg11[%c0_33, %c0_34, %c0_35, %c0_36] : memref<2x18x18x128xf32, #tpu.memory_space<vmem>>, vector<2x16x16x128xf32>
    %c0_37 = arith.constant 0 : index
    %c0_38 = arith.constant 0 : index
    %c1_39 = arith.constant 1 : index
    %c0_40 = arith.constant 0 : index
    %37 = vector.load %arg11[%c0_37, %c0_38, %c1_39, %c0_40] : memref<2x18x18x128xf32, #tpu.memory_space<vmem>>, vector<2x16x16x128xf32>
    %c0_41 = arith.constant 0 : index
    %c0_42 = arith.constant 0 : index
    %c2 = arith.constant 2 : index
    %c0_43 = arith.constant 0 : index
    %38 = vector.load %arg11[%c0_41, %c0_42, %c2, %c0_43] : memref<2x18x18x128xf32, #tpu.memory_space<vmem>>, vector<2x16x16x128xf32>
    %c0_44 = arith.constant 0 : index
    %c1_45 = arith.constant 1 : index
    %c0_46 = arith.constant 0 : index
    %c0_47 = arith.constant 0 : index
    %39 = vector.load %arg11[%c0_44, %c1_45, %c0_46, %c0_47] : memref<2x18x18x128xf32, #tpu.memory_space<vmem>>, vector<2x16x16x128xf32>
    %c0_48 = arith.constant 0 : index
    %c1_49 = arith.constant 1 : index
    %c1_50 = arith.constant 1 : index
    %c0_51 = arith.constant 0 : index
    %40 = vector.load %arg11[%c0_48, %c1_49, %c1_50, %c0_51] : memref<2x18x18x128xf32, #tpu.memory_space<vmem>>, vector<2x16x16x128xf32>
    %c0_52 = arith.constant 0 : index
    %c1_53 = arith.constant 1 : index
    %c2_54 = arith.constant 2 : index
    %c0_55 = arith.constant 0 : index
    %41 = vector.load %arg11[%c0_52, %c1_53, %c2_54, %c0_55] : memref<2x18x18x128xf32, #tpu.memory_space<vmem>>, vector<2x16x16x128xf32>
    %c0_56 = arith.constant 0 : index
    %c2_57 = arith.constant 2 : index
    %c0_58 = arith.constant 0 : index
    %c0_59 = arith.constant 0 : index
    %42 = vector.load %arg11[%c0_56, %c2_57, %c0_58, %c0_59] : memref<2x18x18x128xf32, #tpu.memory_space<vmem>>, vector<2x16x16x128xf32>
    %c0_60 = arith.constant 0 : index
    %c2_61 = arith.constant 2 : index
    %c1_62 = arith.constant 1 : index
    %c0_63 = arith.constant 0 : index
    %43 = vector.load %arg11[%c0_60, %c2_61, %c1_62, %c0_63] : memref<2x18x18x128xf32, #tpu.memory_space<vmem>>, vector<2x16x16x128xf32>
    %c0_64 = arith.constant 0 : index
    %c2_65 = arith.constant 2 : index
    %c2_66 = arith.constant 2 : index
    %c0_67 = arith.constant 0 : index
    %44 = vector.load %arg11[%c0_64, %c2_65, %c2_66, %c0_67] : memref<2x18x18x128xf32, #tpu.memory_space<vmem>>, vector<2x16x16x128xf32>
    %45 = tpu.concatenate %36, %37, %38, %39, %40, %41, %42, %43, %44 in 3 : vector<2x16x16x128xf32>, vector<2x16x16x128xf32>, vector<2x16x16x128xf32>, vector<2x16x16x128xf32>, vector<2x16x16x128xf32>, vector<2x16x16x128xf32>, vector<2x16x16x128xf32>, vector<2x16x16x128xf32>, vector<2x16x16x128xf32> -> vector<2x16x16x1152xf32>
    %46 = vector.shape_cast %45 : vector<2x16x16x1152xf32> to vector<512x1152xf32>
    %c0_68 = arith.constant 0 : index
    %c0_69 = arith.constant 0 : index
    %47 = vector.load %arg3[%c0_68, %c0_69] : memref<1152x128xf32, #tpu.memory_space<vmem>>, vector<1152x128xf32>
    %cst_70 = arith.constant dense<0.000000e+00> : vector<512x128xf32>
    %48 = tpu.matmul %46, %47, %cst_70 {dimension_numbers = #tpu.dot_dimension_numbers<[1], [0], [0], [1], [0, 0, 1, 1], [], []>} : vector<512x1152xf32>, vector<1152x128xf32>, vector<512x128xf32> -> vector<512x128xf32>
    %c0_71 = arith.constant 0 : index
    %c0_72 = arith.constant 0 : index
    %49 = vector.load %arg6[%c0_71, %c0_72] : memref<1x128xf32, #tpu.memory_space<vmem>>, vector<1x128xf32>
    %c0_73 = arith.constant 0 : index
    %c0_74 = arith.constant 0 : index
    %50 = vector.load %arg7[%c0_73, %c0_74] : memref<1x128xf32, #tpu.memory_space<vmem>>, vector<1x128xf32>
    %cst_75 = arith.constant dense<0.000000e+00> : vector<128xf32>
    %51 = vector.multi_reduction <add>, %48, %cst_75 [0] : vector<512x128xf32> to vector<128xf32>
    %52 = vector.shape_cast %51 : vector<128xf32> to vector<1x128xf32>
    %53 = arith.mulf %48, %48 : vector<512x128xf32>
    %cst_76 = arith.constant dense<0.000000e+00> : vector<128xf32>
    %54 = vector.multi_reduction <add>, %53, %cst_76 [0] : vector<512x128xf32> to vector<128xf32>
    %55 = vector.shape_cast %54 : vector<128xf32> to vector<1x128xf32>
    %cst_77 = arith.constant 5.120000e+02 : f32
    %56 = vector.broadcast %cst_77 : f32 to vector<1x128xf32>
    %57 = arith.divf %52, %56 : vector<1x128xf32>
    %cst_78 = arith.constant 5.120000e+02 : f32
    %58 = vector.broadcast %cst_78 : f32 to vector<1x128xf32>
    %59 = arith.divf %55, %58 : vector<1x128xf32>
    %60 = arith.mulf %57, %57 : vector<1x128xf32>
    %61 = arith.subf %59, %60 : vector<1x128xf32>
    %cst_79 = arith.constant 9.99999974E-6 : f32
    %62 = vector.broadcast %cst_79 : f32 to vector<1x128xf32>
    %63 = arith.addf %61, %62 : vector<1x128xf32>
    %64 = math.rsqrt %63 : vector<1x128xf32>
    %65 = arith.mulf %49, %64 : vector<1x128xf32>
    %66 = arith.mulf %57, %65 : vector<1x128xf32>
    %67 = arith.subf %50, %66 : vector<1x128xf32>
    %68 = vector.broadcast %65 : vector<1x128xf32> to vector<512x128xf32>
    %69 = arith.mulf %48, %68 : vector<512x128xf32>
    %70 = vector.broadcast %67 : vector<1x128xf32> to vector<512x128xf32>
    %71 = arith.addf %69, %70 : vector<512x128xf32>
    %c0_80 = arith.constant 0 : index
    %c0_81 = arith.constant 0 : index
    %72 = vector.load %arg1[%c0_80, %c0_81] : memref<512x4xf32, #tpu.memory_space<vmem>>, vector<512x4xf32>
    %c0_82 = arith.constant 0 : index
    %c0_83 = arith.constant 0 : index
    %73 = vector.load %arg8[%c0_82, %c0_83] : memref<4x128xf32, #tpu.memory_space<vmem>>, vector<4x128xf32>
    %cst_84 = arith.constant dense<0.000000e+00> : vector<512x128xf32>
    %74 = tpu.matmul %72, %73, %cst_84 {dimension_numbers = #tpu.dot_dimension_numbers<[1], [0], [0], [1], [0, 0, 1, 1], [], []>} : vector<512x4xf32>, vector<4x128xf32>, vector<512x128xf32> -> vector<512x128xf32>
    %c0_85 = arith.constant 0 : index
    %c0_86 = arith.constant 0 : index
    %75 = vector.load %arg9[%c0_85, %c0_86] : memref<1x128xf32, #tpu.memory_space<vmem>>, vector<1x128xf32>
    %76 = vector.broadcast %75 : vector<1x128xf32> to vector<512x128xf32>
    %77 = arith.addf %74, %76 : vector<512x128xf32>
    %78 = arith.addf %71, %77 : vector<512x128xf32>
    %cst_87 = arith.constant 0.000000e+00 : f32
    %79 = vector.broadcast %cst_87 : f32 to vector<512x128xf32>
    %80 = arith.maximumf %78, %79 : vector<512x128xf32>
    %c0_88 = arith.constant 0 : index
    %c0_89 = arith.constant 0 : index
    %81 = vector.load %arg10[%c0_88, %c0_89] : memref<512x128xf32, #tpu.memory_space<vmem>>, vector<512x128xf32>
    tpu.vector_store %arg10[%c0_88, %c0_89], %80 {strides = array<i32>} : memref<512x128xf32, #tpu.memory_space<vmem>>, vector<512x128xf32>,
    return
  }
}

</mosaic_0001>

<bundles_post_ra>
// kernel: tpu_custom_call.1
= control target key start
LH: loop header
LB: loop body
LE: loop exit
PB: predicated region body
PF: predicated region fallthrough
CT: control target
= control target key end

     0   :  { %vm298_vm0 = vcmask 1043456   ;;  %vm105_vm1 = vcmask 293888   ;;  %s9776_s0 = inlined_call_operand.vmem [shape: f32[512,36], index: 0, kind: input, shape index: {}]   ;;  %s9777_s1 = inlined_call_operand.vmem [shape: f32[512,4], index: 1, kind: input, shape index: {}]   ;;  %s9778_s2 = inlined_call_operand.vmem [shape: f32[36,128], index: 2, kind: input, shape index: {}]   ;;  %s9779_s3 = inlined_call_operand.vmem [shape: f32[1152,128], index: 3, kind: input, shape index: {}]   ;;  %s9780_s4 = inlined_call_operand.vmem [shape: f32[1,128], index: 4, kind: input, shape index: {}]   ;;  %s9781_s5 = inlined_call_operand.vmem [shape: f32[1,128], index: 5, kind: input, shape index: {}]   ;;  %s9782_s6 = inlined_call_operand.vmem [shape: f32[1,128], index: 6, kind: input, shape index: {}]   ;;  %s9783_s7 = inlined_call_operand.vmem [shape: f32[1,128], index: 7, kind: input, shape index: {}]   ;;  %s9784_s8 = inlined_call_operand.vmem [shape: f32[4,128], index: 8, kind: input, shape index: {}]   ;;  %s9785_s9 = inlined_call_operand.vmem [shape: f32[1,128], index: 9, kind: input, shape index: {}]   ;;  %s9786_s10 = inlined_call_operand.hbm [shape: f32[512,128], index: 10, kind: output, shape index: {}]  }
   0x1   :  { %v104_v0 = vld [vmem:[%s9778_s2 + $0x20] sm:$0xf]  ;;  %v103_v1 = vld [vmem:[%s9778_s2 + $0x18] sm:$0xff]  ;;  %v102_v3 = vld [vmem:[%s9778_s2 + $0x10] sm:$0xff] }
   0x2   :  { %5452 = vmatprep.subr.msk.mxu0 %vm298_vm0, %v104_v0  ;;  %v36_v2 = vld [vmem:[%s9776_s0] sm:$0xff]  ;;  %5784 = vmatprep.subr.msk.mxu1 %vm298_vm0, %v104_v0  ;;  %v101_v4 = vld [vmem:[%s9778_s2 + $0x8] sm:$0xff]  ;;  %v38_v7 = vld [vmem:[%s9776_s0 + $0x10] sm:$0xff] }
   0x3   :  { %5453 = vmatpush3.msk.msra.mxu0 %vm298_vm0, %v104_v0  ;;  %5462 = vmatprep.mubr.msk.f32.mxu0 %vm105_vm1, %v36_v2  ;;  %v100_v5 = vld [vmem:[%s9778_s2] sm:$0xff]  ;;  %v37_v6 = vld [vmem:[%s9776_s0 + $0x8] sm:$0xff]  ;;  %v39_v8 = vld [vmem:[%s9776_s0 + $0x18] sm:$0xff] }
   0x4   :  { %5454 = vmatprep.subr.mxu0 %v103_v1  ;;  %5789 = vmatpush3.msk.msra.mxu1 %vm298_vm0, %v104_v0  ;;  %v68_v9 = vld [vmem:[%s9776_s0 + $0x100] sm:$0xff]  ;;  %v69_v10 = vld [vmem:[%s9776_s0 + $0x108] sm:$0xff]  ;;  %v70_v12 = vld [vmem:[%s9776_s0 + $0x110] sm:$0xff] }
   0x5   :  { %5455 = vmatpush3.msra.mxu0 %v103_v1  ;;  %5785 = vmatprep.subr.mxu1 %v103_v1  ;;  %v40_v11 = vld [vmem:[%s9776_s0 + $0x20] sm:$0xff]  ;;  %v71_v13 = vld [vmem:[%s9776_s0 + $0x118] sm:$0xff]  ;;  %v41_v14 = vld [vmem:[%s9776_s0 + $0x28] sm:$0xff] }
   0x6   :  { %5456 = vmatprep.subr.mxu0 %v102_v3  ;;  %5790 = vmatpush3.msra.mxu1 %v103_v1  ;;  %v72_v15 = vld [vmem:[%s9776_s0 + $0x120] sm:$0xff]  ;;  %v42_v16 = vld [vmem:[%s9776_s0 + $0x30] sm:$0xff]  ;;  %v73_v17 = vld [vmem:[%s9776_s0 + $0x128] sm:$0xff] }
   0x7   :  { %5457 = vmatpush3.msra.mxu0 %v102_v3  ;;  %5786 = vmatprep.subr.mxu1 %v102_v3  ;;  %v43_v18 = vld [vmem:[%s9776_s0 + $0x38] sm:$0xff]  ;;  %v74_v19 = vld [vmem:[%s9776_s0 + $0x130] sm:$0xff]  ;;  %v44_v20 = vld [vmem:[%s9776_s0 + $0x40] sm:$0xff] }
   0x8   :  { %5458 = vmatprep.subr.mxu0 %v101_v4  ;;  %5791 = vmatpush3.msra.mxu1 %v102_v3  ;;  %v75_v21 = vld [vmem:[%s9776_s0 + $0x138] sm:$0xff] }
   0x9   :  { %5459 = vmatpush3.msra.mxu0 %v101_v4  ;;  %5787 = vmatprep.subr.mxu1 %v101_v4 }
   0xa   :  { %5460 = vmatprep.subr.mxu0 %v100_v5  ;;  %5792 = vmatpush3.msra.mxu1 %v101_v4 }
   0xb   :  { %5461 = vmatpush3.msra.mxu0 %v100_v5  ;;  %5788 = vmatprep.subr.mxu1 %v100_v5 }
   0xc   :  { %5463 = vmatmul.mubr.msk.f32.vlgmr.msra.gmra.mxu0 %vm105_vm1, %v37_v6  ;;  %5793 = vmatpush3.msra.mxu1 %v100_v5 }
   0xd   :  { %5465 = vmatprep.mubr.msk.f32.mxu0 %vm105_vm1, %v38_v7  ;;  %5510 = vmatprep.mubr.msk.f32.mxu1 %vm105_vm1, %v68_v9 }
   0xe   :  { %5511 = vmatmul.mubr.msk.f32.vlgmr.msra.gmra.mxu1 %vm105_vm1, %v69_v10 }
   0xf   :  { %5513 = vmatprep.mubr.msk.f32.mxu1 %vm105_vm1, %v70_v12 }
  0x10   :  { %5466 = vmatmul.mubr.msk.f32.gmra.mxu0 %vm105_vm1, %v39_v8 }
  0x11   :  { %5468 = vmatprep.mubr.msk.f32.mxu0 %vm105_vm1, %v40_v11 }
  0x12   :  { %5514 = vmatmul.mubr.msk.f32.gmra.mxu1 %vm105_vm1, %v71_v13 }
  0x13   :  { %5516 = vmatprep.mubr.msk.f32.mxu1 %vm105_vm1, %v72_v15 }
  0x14   :  { %5469 = vmatmul.mubr.msk.f32.gmra.mxu0 %vm105_vm1, %v41_v14 }
  0x15   :  { %5471 = vmatprep.mubr.msk.f32.mxu0 %vm105_vm1, %v42_v16 }
  0x16   :  { %5517 = vmatmul.mubr.msk.f32.gmra.mxu1 %vm105_vm1, %v73_v17 }
  0x17   :  { %5519 = vmatprep.mubr.msk.f32.mxu1 %vm105_vm1, %v74_v19 }
  0x18   :  { %5472 = vmatmul.mubr.msk.f32.gmra.mxu0 %vm105_vm1, %v43_v18 }
  0x19   :  { %15 = vsyncpa [#allocation4], 0  ;;  %5474 = vmatprep.mubr.msk.f32.mxu0 %vm105_vm1, %v44_v20  ;;  %v45_v22 = vld [vmem:[%s9776_s0 + $0x48] sm:$0xff]  ;;  %v76_v23 = vld [vmem:[%s9776_s0 + $0x140] sm:$0xff]  ;;  %v5829_v5 = vmov 0.0   ;;  %vm4318_vm2 = vcmask 31744  }
  0x1a   :  { %v46_v24 = vld [vmem:[%s9776_s0 + $0x50] sm:$0xff]  ;;  %5520 = vmatmul.mubr.msk.f32.gmra.mxu1 %vm105_vm1, %v75_v21  ;;  %v77_v25 = vld [vmem:[%s9776_s0 + $0x148] sm:$0xff]  ;;  %v47_v26 = vld [vmem:[%s9776_s0 + $0x58] sm:$0xff]  ;;  %1968 = vmatprep.subr.mxu1 %v5829_v5  ;;  %1105 = vst [vmem:[#allocation2] sm:$0xff] %v5829_v5 }
  0x1b   :  { %5522 = vmatprep.mubr.msk.f32.mxu1 %vm105_vm1, %v76_v23  ;;  %v78_v27 = vld [vmem:[%s9776_s0 + $0x150] sm:$0xff]  ;;  %v48_v28 = vld [vmem:[%s9776_s0 + $0x60] sm:$0xff]  ;;  %v79_v29 = vld [vmem:[%s9776_s0 + $0x158] sm:$0xff]  ;;  %1106 = vst [vmem:[#allocation2 + $0x8] sm:$0xff] %v5829_v5  ;;  %2353 = vmatprep.subr.mxu0 %v5829_v5 }
  0x1c   :  { %5475 = vmatmul.mubr.msk.f32.gmra.mxu0 %vm105_vm1, %v45_v22  ;;  %v49_v30 = vld [vmem:[%s9776_s0 + $0x68] sm:$0xff]  ;;  %v80_v31 = vld [vmem:[%s9776_s0 + $0x160] sm:$0xff]  ;;  %v50_v32 = vld [vmem:[%s9776_s0 + $0x70] sm:$0xff]  ;;  %1107 = vst [vmem:[#allocation2 + $0x10] sm:$0x3] %v5829_v5 }
  0x1d   :  { %5477 = vmatprep.mubr.msk.f32.mxu0 %vm105_vm1, %v46_v24  ;;  %v81_v33 = vld [vmem:[%s9776_s0 + $0x168] sm:$0xff]  ;;  %v51_v34 = vld [vmem:[%s9776_s0 + $0x78] sm:$0xff]  ;;  %v82_v35 = vld [vmem:[%s9776_s0 + $0x170] sm:$0xff]  ;;  %1108 = vst [vmem:[#allocation2 + $0x1b0] sm:$0xff] %v5829_v5 }
  0x1e   :  { %5523 = vmatmul.mubr.msk.f32.gmra.mxu1 %vm105_vm1, %v77_v25  ;;  %v52_v36 = vld [vmem:[%s9776_s0 + $0x80] sm:$0xff]  ;;  %v83_v37 = vld [vmem:[%s9776_s0 + $0x178] sm:$0xff]  ;;  %v53_v38 = vld [vmem:[%s9776_s0 + $0x88] sm:$0xff]  ;;  %1109 = vst [vmem:[#allocation2 + $0x1b8] sm:$0xff] %v5829_v5 }
  0x1f   :  { %5525 = vmatprep.mubr.msk.f32.mxu1 %vm105_vm1, %v78_v27  ;;  %v84_v39 = vld [vmem:[%s9776_s0 + $0x180] sm:$0xff]  ;;  %v54_v40 = vld [vmem:[%s9776_s0 + $0x90] sm:$0xff]  ;;  %v85_v41 = vld [vmem:[%s9776_s0 + $0x188] sm:$0xff]  ;;  %1110 = vst [vmem:[#allocation2 + $0x1c0] sm:$0x3] %v5829_v5 }
  0x20   :  { %5478 = vmatmul.mubr.msk.f32.gmra.mxu0 %vm105_vm1, %v47_v26  ;;  %v55_v42 = vld [vmem:[%s9776_s0 + $0x98] sm:$0xff]  ;;  %v86_v43 = vld [vmem:[%s9776_s0 + $0x190] sm:$0xff]  ;;  %v56_v44 = vld [vmem:[%s9776_s0 + $0xa0] sm:$0xff]  ;;  %1112 = vst [vmem:[#allocation2 + $0x198] sm:$0xff] %v5829_v5 }
  0x21   :  { %5480 = vmatprep.mubr.msk.f32.mxu0 %vm105_vm1, %v48_v28  ;;  %v87_v45 = vld [vmem:[%s9776_s0 + $0x198] sm:$0xff]  ;;  %v57_v46 = vld [vmem:[%s9776_s0 + $0xa8] sm:$0xff]  ;;  %v88_v47 = vld [vmem:[%s9776_s0 + $0x1a0] sm:$0xff]  ;;  %1113 = vst [vmem:[#allocation2 + $0x1a0] sm:$0xff] %v5829_v5 }
  0x22   :  { %5526 = vmatmul.mubr.msk.f32.gmra.mxu1 %vm105_vm1, %v79_v29  ;;  %v58_v48 = vld [vmem:[%s9776_s0 + $0xb0] sm:$0xff]  ;;  %v89_v49 = vld [vmem:[%s9776_s0 + $0x1a8] sm:$0xff]  ;;  %v59_v50 = vld [vmem:[%s9776_s0 + $0xb8] sm:$0xff]  ;;  %1114 = vst [vmem:[#allocation2 + $0x1a8] sm:$0x3] %v5829_v5 }
  0x23   :  { %5528 = vmatprep.mubr.msk.f32.mxu1 %vm105_vm1, %v80_v31  ;;  %v90_v51 = vld [vmem:[%s9776_s0 + $0x1b0] sm:$0xff]  ;;  %v60_v52 = vld [vmem:[%s9776_s0 + $0xc0] sm:$0xff]  ;;  %v91_v53 = vld [vmem:[%s9776_s0 + $0x1b8] sm:$0xff]  ;;  %1115 = vst [vmem:[#allocation2 + $0x348] sm:$0xff] %v5829_v5 }
  0x24   :  { %5481 = vmatmul.mubr.msk.f32.gmra.mxu0 %vm105_vm1, %v49_v30  ;;  %v61_v54 = vld [vmem:[%s9776_s0 + $0xc8] sm:$0xff]  ;;  %v92_v55 = vld [vmem:[%s9776_s0 + $0x1c0] sm:$0xff]  ;;  %v62_v56 = vld [vmem:[%s9776_s0 + $0xd0] sm:$0xff]  ;;  %1116 = vst [vmem:[#allocation2 + $0x350] sm:$0xff] %v5829_v5 }
  0x25   :  { %5483 = vmatprep.mubr.msk.f32.mxu0 %vm105_vm1, %v50_v32  ;;  %v93_v57 = vld [vmem:[%s9776_s0 + $0x1c8] sm:$0xff]  ;;  %v63_v58 = vld [vmem:[%s9776_s0 + $0xd8] sm:$0xff]  ;;  %v94_v59 = vld [vmem:[%s9776_s0 + $0x1d0] sm:$0xff]  ;;  %1117 = vst [vmem:[#allocation2 + $0x358] sm:$0x3] %v5829_v5 }
  0x26   :  { %5529 = vmatmul.mubr.msk.f32.gmra.mxu1 %vm105_vm1, %v81_v33  ;;  %v64_v60 = vld [vmem:[%s9776_s0 + $0xe0] sm:$0xff]  ;;  %v95_v61 = vld [vmem:[%s9776_s0 + $0x1d8] sm:$0xff]  ;;  %v65_v62 = vld [vmem:[%s9776_s0 + $0xe8] sm:$0xff]  ;;  %1119 = vst [vmem:[#allocation2 + $0x18] sm:$0x1] %v5829_v5 }
  0x27   :  { %5531 = vmatprep.mubr.msk.f32.mxu1 %vm105_vm1, %v82_v35  ;;  %v96_v63 = vld [vmem:[%s9776_s0 + $0x1e0] sm:$0xff]  ;;  %v66_v0 = vld [vmem:[%s9776_s0 + $0xf0] sm:$0xff]  ;;  %v97_v1 = vld [vmem:[%s9776_s0 + $0x1e8] sm:$0xff]  ;;  %1120 = vst [vmem:[#allocation2 + $0x30] sm:$0x1] %v5829_v5 }
  0x28   :  { %5484 = vmatmul.mubr.msk.f32.gmra.mxu0 %vm105_vm1, %v51_v34  ;;  %v67_v2 = vld [vmem:[%s9776_s0 + $0xf8] sm:$0xff]  ;;  %v98_v3 = vld [vmem:[%s9776_s0 + $0x1f0] sm:$0xff]  ;;  %1121 = vst [vmem:[#allocation2 + $0x48] sm:$0x1] %v5829_v5  ;;  %1122 = vst [vmem:[#allocation2 + $0x60] sm:$0x1] %v5829_v5 }
  0x29   :  { %5486 = vmatprep.mubr.msk.f32.mxu0 %vm105_vm1, %v52_v36  ;;  %v99_v4 = vld [vmem:[%s9776_s0 + $0x1f8] sm:$0xff]  ;;  %1123 = vst [vmem:[#allocation2 + $0x78] sm:$0x1] %v5829_v5  ;;  %1124 = vst [vmem:[#allocation2 + $0x90] sm:$0x1] %v5829_v5  ;;  %v1838_v7 = vld [vmem:[%s9779_s3 + $0x70] sm:$0xff] }
  0x2a   :  { %5532 = vmatmul.mubr.msk.f32.gmra.mxu1 %vm105_vm1, %v83_v37  ;;  %1125 = vst [vmem:[#allocation2 + $0xa8] sm:$0x1] %v5829_v5  ;;  %1126 = vst [vmem:[#allocation2 + $0xc0] sm:$0x1] %v5829_v5  ;;  %v1839_v6 = vld [vmem:[%s9779_s3 + $0x78] sm:$0xff]  ;;  %v1837_v8 = vld [vmem:[%s9779_s3 + $0x68] sm:$0xff] }
  0x2b   :  { %5534 = vmatprep.mubr.msk.f32.mxu1 %vm105_vm1, %v84_v39  ;;  %1127 = vst [vmem:[#allocation2 + $0xd8] sm:$0x1] %v5829_v5  ;;  %1128 = vst [vmem:[#allocation2 + $0xf0] sm:$0x1] %v5829_v5  ;;  %1969 = vmatpush1.msra.mxu1 %v1839_v6  ;;  %v1836_v9 = vld [vmem:[%s9779_s3 + $0x60] sm:$0xff]  ;;  %v1835_v10 = vld [vmem:[%s9779_s3 + $0x58] sm:$0xff] }
  0x2c   :  { %5487 = vmatmul.mubr.msk.f32.gmra.mxu0 %vm105_vm1, %v53_v38  ;;  %1129 = vst [vmem:[#allocation2 + $0x108] sm:$0x1] %v5829_v5  ;;  %1130 = vst [vmem:[#allocation2 + $0x120] sm:$0x1] %v5829_v5  ;;  %1970 = vmatprep.subr.mxu1 %v5829_v5  ;;  %v1834_v11 = vld [vmem:[%s9779_s3 + $0x50] sm:$0xff]  ;;  %v1871_v12 = vld [vmem:[%s9779_s3 + $0x178] sm:$0xff] }
  0x2d   :  { %5489 = vmatprep.mubr.msk.f32.mxu0 %vm105_vm1, %v54_v40  ;;  %1131 = vst [vmem:[#allocation2 + $0x138] sm:$0x1] %v5829_v5  ;;  %1132 = vst [vmem:[#allocation2 + $0x150] sm:$0x1] %v5829_v5  ;;  %1971 = vmatpush1.msra.mxu1 %v1838_v7 }
  0x2e   :  { %5535 = vmatmul.mubr.msk.f32.gmra.mxu1 %vm105_vm1, %v85_v41  ;;  %1133 = vst [vmem:[#allocation2 + $0x168] sm:$0x1] %v5829_v5  ;;  %1134 = vst [vmem:[#allocation2 + $0x180] sm:$0x1] %v5829_v5  ;;  %1972 = vmatprep.subr.mxu1 %v5829_v5 }
  0x2f   :  { %5537 = vmatprep.mubr.msk.f32.mxu1 %vm105_vm1, %v86_v43  ;;  %1135 = vst [vmem:[#allocation2 + $0x1c8] sm:$0x1] %v5829_v5  ;;  %1136 = vst [vmem:[#allocation2 + $0x1e0] sm:$0x1] %v5829_v5  ;;  %1973 = vmatpush1.msra.mxu1 %v1837_v8 }
  0x30   :  { %5490 = vmatmul.mubr.msk.f32.gmra.mxu0 %vm105_vm1, %v55_v42  ;;  %1137 = vst [vmem:[#allocation2 + $0x1f8] sm:$0x1] %v5829_v5  ;;  %1138 = vst [vmem:[#allocation2 + $0x210] sm:$0x1] %v5829_v5  ;;  %1974 = vmatprep.subr.mxu1 %v5829_v5 }
  0x31   :  { %5492 = vmatprep.mubr.msk.f32.mxu0 %vm105_vm1, %v56_v44  ;;  %1139 = vst [vmem:[#allocation2 + $0x228] sm:$0x1] %v5829_v5  ;;  %1140 = vst [vmem:[#allocation2 + $0x240] sm:$0x1] %v5829_v5  ;;  %1975 = vmatpush1.msra.mxu1 %v1836_v9 }
  0x32   :  { %5538 = vmatmul.mubr.msk.f32.gmra.mxu1 %vm105_vm1, %v87_v45  ;;  %1141 = vst [vmem:[#allocation2 + $0x258] sm:$0x1] %v5829_v5  ;;  %1142 = vst [vmem:[#allocation2 + $0x270] sm:$0x1] %v5829_v5  ;;  %1976 = vmatprep.subr.mxu1 %v5829_v5 }
  0x33   :  { %5540 = vmatprep.mubr.msk.f32.mxu1 %vm105_vm1, %v88_v47  ;;  %1143 = vst [vmem:[#allocation2 + $0x288] sm:$0x1] %v5829_v5  ;;  %1144 = vst [vmem:[#allocation2 + $0x2a0] sm:$0x1] %v5829_v5  ;;  %1977 = vmatpush1.msra.mxu1 %v1835_v10 }
  0x34   :  { %5493 = vmatmul.mubr.msk.f32.gmra.mxu0 %vm105_vm1, %v57_v46  ;;  %1145 = vst [vmem:[#allocation2 + $0x2b8] sm:$0x1] %v5829_v5  ;;  %1146 = vst [vmem:[#allocation2 + $0x2d0] sm:$0x1] %v5829_v5  ;;  %1978 = vmatprep.subr.mxu1 %v5829_v5 }
  0x35   :  { %5495 = vmatprep.mubr.msk.f32.mxu0 %vm105_vm1, %v58_v48  ;;  %1147 = vst [vmem:[#allocation2 + $0x2e8] sm:$0x1] %v5829_v5  ;;  %1148 = vst [vmem:[#allocation2 + $0x300] sm:$0x1] %v5829_v5  ;;  %1979 = vmatpush1.msra.mxu1 %v1834_v11 }
  0x36   :  { %5541 = vmatmul.mubr.msk.f32.gmra.mxu1 %vm105_vm1, %v89_v49  ;;  %1149 = vst [vmem:[#allocation2 + $0x318] sm:$0x1] %v5829_v5  ;;  %1150 = vst [vmem:[#allocation2 + $0x330] sm:$0x1] %v5829_v5  ;;  %1980 = vmatprep.subr.mxu1 %v5829_v5 }
  0x37   :  { %5543 = vmatprep.mubr.msk.f32.mxu1 %vm105_vm1, %v90_v51  ;;  %1151 = vst [vmem:[#allocation2 + $0x29] sm:$0x1] %v5829_v5  ;;  %1152 = vst [vmem:[#allocation2 + $0x41] sm:$0x1] %v5829_v5  ;;  %2354 = vmatpush1.msra.mxu0 %v1871_v12 }
  0x38   :  { %5496 = vmatmul.mubr.msk.f32.gmra.mxu0 %vm105_vm1, %v59_v50  ;;  %1153 = vst [vmem:[#allocation2 + $0x59] sm:$0x1] %v5829_v5  ;;  %1154 = vst [vmem:[#allocation2 + $0x71] sm:$0x1] %v5829_v5  ;;  %2355 = vmatprep.subr.mxu0 %v5829_v5 }
  0x39   :  { %5498 = vmatprep.mubr.msk.f32.mxu0 %vm105_vm1, %v60_v52  ;;  %1155 = vst [vmem:[#allocation2 + $0x89] sm:$0x1] %v5829_v5  ;;  %1156 = vst [vmem:[#allocation2 + $0xa1] sm:$0x1] %v5829_v5 }
  0x3a   :  { %5544 = vmatmul.mubr.msk.f32.gmra.mxu1 %vm105_vm1, %v91_v53  ;;  %1157 = vst [vmem:[#allocation2 + $0xb9] sm:$0x1] %v5829_v5  ;;  %1158 = vst [vmem:[#allocation2 + $0xd1] sm:$0x1] %v5829_v5 }
  0x3b   :  { %5546 = vmatprep.mubr.msk.f32.mxu1 %vm105_vm1, %v92_v55  ;;  %1159 = vst [vmem:[#allocation2 + $0xe9] sm:$0x1] %v5829_v5  ;;  %1160 = vst [vmem:[#allocation2 + $0x101] sm:$0x1] %v5829_v5 }
  0x3c   :  { %5499 = vmatmul.mubr.msk.f32.gmra.mxu0 %vm105_vm1, %v61_v54  ;;  %1161 = vst [vmem:[#allocation2 + $0x119] sm:$0x1] %v5829_v5  ;;  %1162 = vst [vmem:[#allocation2 + $0x131] sm:$0x1] %v5829_v5 }
  0x3d   :  { %5501 = vmatprep.mubr.msk.f32.mxu0 %vm105_vm1, %v62_v56  ;;  %1163 = vst [vmem:[#allocation2 + $0x149] sm:$0x1] %v5829_v5  ;;  %1164 = vst [vmem:[#allocation2 + $0x161] sm:$0x1] %v5829_v5 }
  0x3e   :  { %5547 = vmatmul.mubr.msk.f32.gmra.mxu1 %vm105_vm1, %v93_v57  ;;  %1165 = vst [vmem:[#allocation2 + $0x179] sm:$0x1] %v5829_v5  ;;  %1166 = vst [vmem:[#allocation2 + $0x191] sm:$0x1] %v5829_v5 }
  0x3f   :  { %5549 = vmatprep.mubr.msk.f32.mxu1 %vm105_vm1, %v94_v59  ;;  %1167 = vst [vmem:[#allocation2 + $0x1d9] sm:$0x1] %v5829_v5  ;;  %1168 = vst [vmem:[#allocation2 + $0x1f1] sm:$0x1] %v5829_v5 }
  0x40   :  { %5502 = vmatmul.mubr.msk.f32.gmra.mxu0 %vm105_vm1, %v63_v58  ;;  %1169 = vst [vmem:[#allocation2 + $0x209] sm:$0x1] %v5829_v5  ;;  %1170 = vst [vmem:[#allocation2 + $0x221] sm:$0x1] %v5829_v5 }
  0x41   :  { %5504 = vmatprep.mubr.msk.f32.mxu0 %vm105_vm1, %v64_v60  ;;  %1171 = vst [vmem:[#allocation2 + $0x239] sm:$0x1] %v5829_v5  ;;  %1172 = vst [vmem:[#allocation2 + $0x251] sm:$0x1] %v5829_v5 }
  0x42   :  { %5550 = vmatmul.mubr.msk.f32.gmra.mxu1 %vm105_vm1, %v95_v61  ;;  %1173 = vst [vmem:[#allocation2 + $0x269] sm:$0x1] %v5829_v5  ;;  %1174 = vst [vmem:[#allocation2 + $0x281] sm:$0x1] %v5829_v5 }
  0x43   :  { %5552 = vmatprep.mubr.msk.f32.mxu1 %vm105_vm1, %v96_v63  ;;  %1175 = vst [vmem:[#allocation2 + $0x299] sm:$0x1] %v5829_v5  ;;  %1176 = vst [vmem:[#allocation2 + $0x2b1] sm:$0x1] %v5829_v5 }
  0x44   :  { %5505 = vmatmul.mubr.msk.f32.gmra.mxu0 %vm105_vm1, %v65_v62  ;;  %1177 = vst [vmem:[#allocation2 + $0x2c9] sm:$0x1] %v5829_v5  ;;  %1178 = vst [vmem:[#allocation2 + $0x2e1] sm:$0x1] %v5829_v5 }
  0x45   :  { %5507 = vmatprep.mubr.msk.f32.mxu0 %vm105_vm1, %v66_v0  ;;  %1179 = vst [vmem:[#allocation2 + $0x2f9] sm:$0x1] %v5829_v5  ;;  %1180 = vst [vmem:[#allocation2 + $0x311] sm:$0x1] %v5829_v5 }
  0x46   :  { %5553 = vmatmul.mubr.msk.f32.gmra.mxu1 %vm105_vm1, %v97_v1  ;;  %1181 = vst [vmem:[#allocation2 + $0x329] sm:$0x1] %v5829_v5  ;;  %1182 = vst [vmem:[#allocation2 + $0x341] sm:$0x1] %v5829_v5 }
  0x47   :  { %5555 = vmatprep.mubr.msk.f32.mxu1 %vm105_vm1, %v98_v3 }
  0x48   :  { %5508 = vmatmul.mubr.msk.f32.gmra.mxu0 %vm105_vm1, %v67_v2 }
  0x4a   :  { %5556 = vmatmul.mubr.msk.f32.gmra.mxu1 %vm105_vm1, %v99_v4 }
  0xcc   :  { %v6269_v13 = vpop.f32.mrf.mxu0 }
  0xcd   :  { %v759_v18 = vmul.f32 %v6269_v13, %v6269_v13 }
  0xce   :  { %v6271_v14 = vpop.f32.mrf.mxu0  ;;  %v6275_v16 = vpop.f32.mrf.mxu1 }
  0xcf   :  { %v758_v15 = vmul.f32 %v6271_v14, %v6271_v14  ;;  %v689_v19 = vadd.f32 %v6269_v13, %v6271_v14 }
  0xd0   :  { %v6277_v17 = vpop.f32.mrf.mxu0  ;;  %v6283_v20 = vpop.f32.mrf.mxu1 }
  0xd1   :  { %v822_v22 = vadd.f32 %v759_v18, %v758_v15  ;;  %v761_v27 = vmul.f32 %v6277_v17, %v6277_v17 }
  0xd2   :  { %v6285_v21 = vpop.f32.mrf.mxu0  ;;  %v6292_v26 = vpop.f32.mrf.mxu1 }
  0xd3   :  { %v690_v23 = vadd.f32 %v689_v19, %v6285_v21  ;;  %v760_v24 = vmul.f32 %v6285_v21, %v6285_v21 }
  0xd4   :  { %v6290_v25 = vpop.f32.mrf.mxu0  ;;  %v6304_v35 = vpop.f32.mrf.mxu1 }
  0xd5   :  { %v691_v28 = vadd.f32 %v6277_v17, %v690_v23  ;;  %v823_v29 = vadd.f32 %v822_v22, %v760_v24  ;;  %v763_v36 = vmul.f32 %v6290_v25, %v6290_v25 }
  0xd6   :  { %v6297_v30 = vpop.f32.mrf.mxu0  ;;  %v6316_v44 = vpop.f32.mrf.mxu1 }
  0xd7   :  { %v824_v31 = vadd.f32 %v823_v29, %v761_v27  ;;  %v692_v32 = vadd.f32 %v691_v28, %v6297_v30  ;;  %v762_v33 = vmul.f32 %v6297_v30, %v6297_v30  ;;  %9887 = vst [vmem:[#allocation6_spill] sm:$0xff] %v6316_v44 }
  0xd8   :  { %v6302_v34 = vpop.f32.mrf.mxu0  ;;  %v6328_v53 = vpop.f32.mrf.mxu1 }
  0xd9   :  { %v825_v37 = vadd.f32 %v824_v31, %v762_v33  ;;  %v693_v38 = vadd.f32 %v6290_v25, %v692_v32  ;;  %v765_v45 = vmul.f32 %v6302_v34, %v6302_v34  ;;  %v1833_v31 = vld [vmem:[%s9779_s3 + $0x48] sm:$0xff] }
  0xda   :  { %v6309_v39 = vpop.f32.mrf.mxu0  ;;  %v6340_v62 = vpop.f32.mrf.mxu1  ;;  %1981 = vmatpush1.msra.mxu1 %v1833_v31 }
  0xdb   :  { %v694_v40 = vadd.f32 %v693_v38, %v6309_v39  ;;  %v764_v41 = vmul.f32 %v6309_v39, %v6309_v39  ;;  %v826_v42 = vadd.f32 %v825_v37, %v763_v36  ;;  %9888 = vst [vmem:[#allocation7_spill] sm:$0xff] %v6340_v62  ;;  %1982 = vmatprep.subr.mxu1 %v5829_v5 }
  0xdc   :  { %v6314_v43 = vpop.f32.mrf.mxu0  ;;  %v6352_v8 = vpop.f32.mrf.mxu1 }
  0xdd   :  { %v827_v46 = vadd.f32 %v826_v42, %v764_v41  ;;  %v695_v47 = vadd.f32 %v6302_v34, %v694_v40  ;;  %v767_v54 = vmul.f32 %v6314_v43, %v6314_v43  ;;  %9889 = vst [vmem:[#allocation8_spill] sm:$0xff] %v6352_v8  ;;  %v1832_v40 = vld [vmem:[%s9779_s3 + $0x40] sm:$0xff] }
  0xde   :  { %v6321_v48 = vpop.f32.mrf.mxu0  ;;  %v6364_v23 = vpop.f32.mrf.mxu1  ;;  %1983 = vmatpush1.msra.mxu1 %v1832_v40 }
  0xdf   :  { %v696_v49 = vadd.f32 %v695_v47, %v6321_v48  ;;  %v766_v50 = vmul.f32 %v6321_v48, %v6321_v48  ;;  %v828_v51 = vadd.f32 %v827_v46, %v765_v45  ;;  %v1870_v47 = vld [vmem:[%s9779_s3 + $0x170] sm:$0xff]  ;;  %1984 = vmatprep.subr.mxu1 %v5829_v5 }
  0xe0   :  { %v6326_v52 = vpop.f32.mrf.mxu0  ;;  %v6379_v38 = vpop.f32.mrf.mxu1  ;;  %2356 = vmatpush1.msra.mxu0 %v1870_v47  ;;  %v1865_v47 = vld [vmem:[%s9779_s3 + $0x148] sm:$0xff] }
  0xe1   :  { %v829_v55 = vadd.f32 %v828_v51, %v766_v50  ;;  %v697_v56 = vadd.f32 %v6314_v43, %v696_v49  ;;  %v769_v63 = vmul.f32 %v6326_v52, %v6326_v52  ;;  %9890 = vst [vmem:[#allocation9_spill] sm:$0xff] %v6379_v38  ;;  %v1831_v49 = vld [vmem:[%s9779_s3 + $0x38] sm:$0xff]  ;;  %2357 = vmatprep.subr.mxu0 %v5829_v5 }
  0xe2   :  { %v6333_v57 = vpop.f32.mrf.mxu0  ;;  %1985 = vmatpush1.msra.mxu1 %v1831_v49  ;;  %v1826_v49 = vld [vmem:[%s9779_s3 + $0x10] sm:$0xff] }
  0xe3   :  { %v698_v58 = vadd.f32 %v697_v56, %v6333_v57  ;;  %v768_v59 = vmul.f32 %v6333_v57, %v6333_v57  ;;  %v830_v60 = vadd.f32 %v829_v55, %v767_v54  ;;  %v6402_v56 = vpop.f32.mrf.mxu1  ;;  %1986 = vmatprep.subr.mxu1 %v5829_v5 }
  0xe4   :  { %v6338_v61 = vpop.f32.mrf.mxu0 }
  0xe5   :  { %v831_v0 = vadd.f32 %v830_v60, %v768_v59  ;;  %v699_v1 = vadd.f32 %v6326_v52, %v698_v58  ;;  %v771_v9 = vmul.f32 %v6338_v61, %v6338_v61  ;;  %v1869_v58 = vld [vmem:[%s9779_s3 + $0x168] sm:$0xff]  ;;  %v1830_v59 = vld [vmem:[%s9779_s3 + $0x30] sm:$0xff] }
  0xe6   :  { %v6345_v2 = vpop.f32.mrf.mxu0  ;;  %2358 = vmatpush1.msra.mxu0 %v1869_v58  ;;  %1987 = vmatpush1.msra.mxu1 %v1830_v59  ;;  %v1864_v59 = vld [vmem:[%s9779_s3 + $0x140] sm:$0xff] }
  0xe7   :  { %v700_v3 = vadd.f32 %v699_v1, %v6345_v2  ;;  %v770_v4 = vmul.f32 %v6345_v2, %v6345_v2  ;;  %v832_v6 = vadd.f32 %v831_v0, %v769_v63  ;;  %2359 = vmatprep.subr.mxu0 %v5829_v5  ;;  %1988 = vmatprep.subr.mxu1 %v5829_v5 }
  0xe8   :  { %v6350_v7 = vpop.f32.mrf.mxu0 }
  0xe9   :  { %v833_v10 = vadd.f32 %v832_v6, %v770_v4  ;;  %v701_v11 = vadd.f32 %v6338_v61, %v700_v3  ;;  %v773_v24 = vmul.f32 %v6350_v7, %v6350_v7  ;;  %v1868_v3 = vld [vmem:[%s9779_s3 + $0x160] sm:$0xff]  ;;  %v1829_v4 = vld [vmem:[%s9779_s3 + $0x28] sm:$0xff] }
  0xea   :  { %v6357_v12 = vpop.f32.mrf.mxu0  ;;  %2360 = vmatpush1.msra.mxu0 %v1868_v3  ;;  %1989 = vmatpush1.msra.mxu1 %v1829_v4 }
  0xeb   :  { %v702_v15 = vadd.f32 %v701_v11, %v6357_v12  ;;  %v772_v18 = vmul.f32 %v6357_v12, %v6357_v12  ;;  %v834_v19 = vadd.f32 %v833_v10, %v771_v9  ;;  %2361 = vmatprep.subr.mxu0 %v5829_v5  ;;  %1990 = vmatprep.subr.mxu1 %v5829_v5 }
  0xec   :  { %v6362_v22 = vpop.f32.mrf.mxu0 }
  0xed   :  { %v835_v27 = vadd.f32 %v834_v19, %v772_v18  ;;  %v703_v28 = vadd.f32 %v6350_v7, %v702_v15  ;;  %v775_v41 = vmul.f32 %v6362_v22, %v6362_v22  ;;  %v6430_v15 = vpop.f32.mrf.mxu1  ;;  %v1867_v18 = vld [vmem:[%s9779_s3 + $0x158] sm:$0xff]  ;;  %v1828_v19 = vld [vmem:[%s9779_s3 + $0x20] sm:$0xff] }
  0xee   :  { %v6369_v29 = vpop.f32.mrf.mxu0  ;;  %2362 = vmatpush1.msra.mxu0 %v1867_v18  ;;  %1991 = vmatpush1.msra.mxu1 %v1828_v19 }
  0xef   :  { %v704_v32 = vadd.f32 %v703_v28, %v6369_v29  ;;  %v774_v33 = vmul.f32 %v6369_v29, %v6369_v29  ;;  %v836_v36 = vadd.f32 %v835_v27, %v773_v24  ;;  %2363 = vmatprep.subr.mxu0 %v5829_v5  ;;  %1992 = vmatprep.subr.mxu1 %v5829_v5 }
  0xf0   :  { %v6377_v37 = vpop.f32.mrf.mxu0 }
  0xf1   :  { %v837_v42 = vadd.f32 %v836_v36, %v774_v33  ;;  %v705_v45 = vadd.f32 %v6362_v22, %v704_v32  ;;  %v777_v60 = vmul.f32 %v6377_v37, %v6377_v37  ;;  %v1866_v32 = vld [vmem:[%s9779_s3 + $0x150] sm:$0xff]  ;;  %v1827_v33 = vld [vmem:[%s9779_s3 + $0x18] sm:$0xff] }
  0xf2   :  { %v6388_v46 = vpop.f32.mrf.mxu0  ;;  %2364 = vmatpush1.msra.mxu0 %v1866_v32  ;;  %1993 = vmatpush1.msra.mxu1 %v1827_v33  ;;  %v1855_v32 = vld [vmem:[%s9779_s3 + $0xf8] sm:$0xff] }
  0xf3   :  { %v706_v50 = vadd.f32 %v705_v45, %v6388_v46  ;;  %v776_v51 = vmul.f32 %v6388_v46, %v6388_v46  ;;  %v838_v54 = vadd.f32 %v837_v42, %v775_v41  ;;  %v6458_v45 = vpop.f32.mrf.mxu1  ;;  %2365 = vmatprep.subr.mxu0 %v5829_v5  ;;  %1994 = vmatprep.subr.mxu1 %v5829_v5 }
  0xf4   :  { %v6400_v55 = vpop.f32.mrf.mxu0  ;;  %9891 = vst [vmem:[#allocation10_spill] sm:$0xff] %v6458_v45  ;;  %2366 = vmatpush1.msra.mxu0 %v1865_v47  ;;  %1995 = vmatpush1.msra.mxu1 %v1826_v49  ;;  %v1861_v49 = vld [vmem:[%s9779_s3 + $0x128] sm:$0xff] }
  0xf5   :  { %v839_v63 = vadd.f32 %v838_v54, %v776_v51  ;;  %v707_v0 = vadd.f32 %v6377_v37, %v706_v50  ;;  %v779_v24 = vmul.f32 %v6400_v55, %v6400_v55  ;;  %2367 = vmatprep.subr.mxu0 %v5829_v5  ;;  %1996 = vmatprep.subr.mxu1 %v5829_v5 }
  0xf6   :  { %v6415_v1 = vpop.f32.mrf.mxu0  ;;  %2368 = vmatpush1.msra.mxu0 %v1864_v59 }
  0xf7   :  { %v708_v6 = vadd.f32 %v707_v0, %v6415_v1  ;;  %v778_v9 = vmul.f32 %v6415_v1, %v6415_v1  ;;  %v840_v10 = vadd.f32 %v839_v63, %v777_v60  ;;  %v1825_v60 = vld [vmem:[%s9779_s3 + $0x8] sm:$0xff]  ;;  %2369 = vmatprep.subr.mxu0 %v5829_v5 }
  0xf8   :  { %v6428_v11 = vpop.f32.mrf.mxu0  ;;  %1997 = vmatpush1.msra.mxu1 %v1825_v60 }
  0xf9   :  { %v841_v27 = vadd.f32 %v840_v10, %v778_v9  ;;  %v709_v28 = vadd.f32 %v6400_v55, %v708_v6  ;;  %v781_v50 = vmul.f32 %v6428_v11, %v6428_v11  ;;  %v6486_v6 = vpop.f32.mrf.mxu1  ;;  %v1863_v9 = vld [vmem:[%s9779_s3 + $0x138] sm:$0xff]  ;;  %1998 = vmatprep.subr.mxu1 %v5829_v5  ;;  %v1824_v10 = vld [vmem:[%s9779_s3] sm:$0xff] }
  0xfa   :  { %v6443_v31 = vpop.f32.mrf.mxu0  ;;  %9892 = vst [vmem:[#allocation11_spill] sm:$0xff] %v6486_v6  ;;  %2370 = vmatpush1.msra.mxu0 %v1863_v9  ;;  %1999 = vmatpush1.msra.mxu1 %v1824_v10 }
  0xfb   :  { %v710_v36 = vadd.f32 %v709_v28, %v6443_v31  ;;  %v780_v40 = vmul.f32 %v6443_v31, %v6443_v31  ;;  %v842_v41 = vadd.f32 %v841_v27, %v779_v24  ;;  %2371 = vmatprep.subr.mxu0 %v5829_v5  ;;  %v1862_v28 = vld [vmem:[%s9779_s3 + $0x130] sm:$0xff]  ;;  %2000 = vmatprep.subr.mxu1 %v5829_v5  ;;  %v6514_v47 = vpop.f32.mrf.mxu1 }
  0xfc   :  { %v6456_v42 = vpop.f32.mrf.mxu0  ;;  %2372 = vmatpush1.msra.mxu0 %v1862_v28  ;;  %2001 = vmatpush2.msra.mxu1 %v1855_v32  ;;  %9893 = vst [vmem:[#allocation12_spill] sm:$0xff] %v6514_v47  ;;  %v1852_v28 = vld [vmem:[%s9779_s3 + $0xe0] sm:$0xff] }
  0xfd   :  { %v843_v51 = vadd.f32 %v842_v41, %v780_v40  ;;  %v711_v54 = vadd.f32 %v6428_v11, %v710_v36  ;;  %v783_v18 = vmul.f32 %v6456_v42, %v6456_v42  ;;  %2373 = vmatprep.subr.mxu0 %v5829_v5  ;;  %2002 = vmatprep.subr.mxu1 %v5829_v5 }
  0xfe   :  { %v6471_v58 = vpop.f32.mrf.mxu0  ;;  %2374 = vmatpush1.msra.mxu0 %v1861_v49  ;;  %v1858_v49 = vld [vmem:[%s9779_s3 + $0x110] sm:$0xff] }
  0xff   :  { %v712_v63 = vadd.f32 %v711_v54, %v6471_v58  ;;  %v782_v0 = vmul.f32 %v6471_v58, %v6471_v58  ;;  %v844_v3 = vadd.f32 %v843_v51, %v781_v50  ;;  %v1854_v50 = vld [vmem:[%s9779_s3 + $0xf0] sm:$0xff]  ;;  %2375 = vmatprep.subr.mxu0 %v5829_v5 }
 0x100   :  { %v6484_v4 = vpop.f32.mrf.mxu0  ;;  %2003 = vmatpush2.msra.mxu1 %v1854_v50  ;;  %v1851_v50 = vld [vmem:[%s9779_s3 + $0xd8] sm:$0xff] }
 0x101   :  { %v845_v19 = vadd.f32 %v844_v3, %v782_v0  ;;  %v713_v24 = vadd.f32 %v6456_v42, %v712_v63  ;;  %v785_v51 = vmul.f32 %v6484_v4, %v6484_v4  ;;  %v1860_v63 = vld [vmem:[%s9779_s3 + $0x120] sm:$0xff]  ;;  %2004 = vmatprep.subr.mxu1 %v5829_v5  ;;  %v1853_v0 = vld [vmem:[%s9779_s3 + $0xe8] sm:$0xff] }
 0x102   :  { %v6499_v27 = vpop.f32.mrf.mxu0  ;;  %2376 = vmatpush1.msra.mxu0 %v1860_v63  ;;  %2005 = vmatpush2.msra.mxu1 %v1853_v0  ;;  %v1857_v0 = vld [vmem:[%s9779_s3 + $0x108] sm:$0xff] }
 0x103   :  { %v714_v33 = vadd.f32 %v713_v24, %v6499_v27  ;;  %v784_v36 = vmul.f32 %v6499_v27, %v6499_v27  ;;  %v846_v40 = vadd.f32 %v845_v19, %v783_v18  ;;  %v6542_v19 = vpop.f32.mrf.mxu1  ;;  %2377 = vmatprep.subr.mxu0 %v5829_v5  ;;  %v1859_v24 = vld [vmem:[%s9779_s3 + $0x118] sm:$0xff]  ;;  %2006 = vmatprep.subr.mxu1 %v5829_v5 }
 0x104   :  { %v6512_v41 = vpop.f32.mrf.mxu0  ;;  %9894 = vst [vmem:[#allocation13_spill] sm:$0xff] %v6542_v19  ;;  %2378 = vmatpush1.msra.mxu0 %v1859_v24  ;;  %2007 = vmatpush2.msra.mxu1 %v1852_v28  ;;  %v1856_v28 = vld [vmem:[%s9779_s3 + $0x100] sm:$0xff] }
 0x105   :  { %v847_v54 = vadd.f32 %v846_v40, %v784_v36  ;;  %v715_v59 = vadd.f32 %v6484_v4, %v714_v33  ;;  %v787_v32 = vmul.f32 %v6512_v41, %v6512_v41  ;;  %2379 = vmatprep.subr.mxu0 %v5829_v5  ;;  %2008 = vmatprep.subr.mxu1 %v5829_v5  ;;  %v6568_v63 = vpop.f32.mrf.mxu1 }
 0x106   :  { %v6527_v60 = vpop.f32.mrf.mxu0  ;;  %2380 = vmatpush1.msra.mxu0 %v1858_v49  ;;  %2009 = vmatpush2.msra.mxu1 %v1851_v50 }
 0x107   :  { %v716_v3 = vadd.f32 %v715_v59, %v6527_v60  ;;  %v786_v9 = vmul.f32 %v6527_v60, %v6527_v60  ;;  %v848_v10 = vadd.f32 %v847_v54, %v785_v51  ;;  %2381 = vmatprep.subr.mxu0 %v5829_v5  ;;  %2010 = vmatprep.subr.mxu1 %v5829_v5  ;;  %v6592_v50 = vpop.f32.mrf.mxu1 }
 0x108   :  { %v6540_v18 = vpop.f32.mrf.mxu0  ;;  %2382 = vmatpush1.msra.mxu0 %v1857_v0  ;;  %9895 = vst [vmem:[#allocation14_spill] sm:$0xff] %v6592_v50 }
 0x109   :  { %v849_v33 = vadd.f32 %v848_v10, %v786_v9  ;;  %v717_v36 = vadd.f32 %v6512_v41, %v716_v3  ;;  %v1850_v3 = vld [vmem:[%s9779_s3 + $0xd0] sm:$0xff]  ;;  %v789_v9 = vmul.f32 %v6540_v18, %v6540_v18  ;;  %2383 = vmatprep.subr.mxu0 %v5829_v5 }
 0x10a   :  { %v6555_v40 = vpop.f32.mrf.mxu0  ;;  %2011 = vmatpush2.msra.mxu1 %v1850_v3  ;;  %2384 = vmatpush1.msra.mxu0 %v1856_v28  ;;  %v792_v28 = vmul.f32 %v6304_v35, %v6304_v35 }
 0x10b   :  { %v718_v51 = vadd.f32 %v717_v36, %v6555_v40  ;;  %v788_v54 = vmul.f32 %v6555_v40, %v6555_v40  ;;  %v850_v59 = vadd.f32 %v849_v33, %v787_v32  ;;  %2012 = vmatprep.subr.mxu1 %v5829_v5  ;;  %v1849_v32 = vld [vmem:[%s9779_s3 + $0xc8] sm:$0xff]  ;;  %v790_v36 = vmul.f32 %v6283_v20, %v6283_v20 }
 0x10c   :  { %2013 = vmatpush2.msra.mxu1 %v1849_v32  ;;  %2385 = vmatprep.subr.mxu0 %v5829_v5 }
 0x10d   :  { %v851_v10 = vadd.f32 %v850_v59, %v788_v54  ;;  %v719_v24 = vadd.f32 %v6540_v18, %v718_v51  ;;  %v1887_v51 = vld [vmem:[%s9779_s3 + $0x1f8] sm:$0xff]  ;;  %2014 = vmatprep.subr.mxu1 %v5829_v5  ;;  %v1848_v54 = vld [vmem:[%s9779_s3 + $0xc0] sm:$0xff]  ;;  %v791_v59 = vmul.f32 %v6275_v16, %v6275_v16 }
 0x10e   :  { %2386 = vmatpush2.msra.mxu0 %v1887_v51  ;;  %2015 = vmatpush2.msra.mxu1 %v1848_v54  ;;  %v793_v51 = vmul.f32 %v6292_v26, %v6292_v26 }
 0x10f   :  { %v720_v33 = vadd.f32 %v719_v24, %v6283_v20  ;;  %v852_v49 = vadd.f32 %v851_v10, %v789_v9  ;;  %2387 = vmatprep.subr.mxu0 %v5829_v5  ;;  %v1886_v9 = vld [vmem:[%s9779_s3 + $0x1f0] sm:$0xff]  ;;  %2016 = vmatprep.subr.mxu1 %v5829_v5  ;;  %v1847_v10 = vld [vmem:[%s9779_s3 + $0xb8] sm:$0xff] }
 0x110   :  { %2388 = vmatpush2.msra.mxu0 %v1886_v9  ;;  %2017 = vmatpush2.msra.mxu1 %v1847_v10  ;;  %v794_v10 = vmul.f32 %v6328_v53, %v6328_v53 }
 0x111   :  { %v853_v0 = vadd.f32 %v852_v49, %v790_v36  ;;  %v721_v3 = vadd.f32 %v6275_v16, %v720_v33  ;;  %v6616_v33 = vpop.f32.mrf.mxu1  ;;  %2389 = vmatprep.subr.mxu0 %v5829_v5  ;;  %v1885_v36 = vld [vmem:[%s9779_s3 + $0x1e8] sm:$0xff]  ;;  %2018 = vmatprep.subr.mxu1 %v5829_v5  ;;  %v1846_v49 = vld [vmem:[%s9779_s3 + $0xb0] sm:$0xff] }
 0x112   :  { %9896 = vst [vmem:[#allocation15_spill] sm:$0xff] %v6616_v33  ;;  %2390 = vmatpush2.msra.mxu0 %v1885_v36  ;;  %2019 = vmatpush2.msra.mxu1 %v1846_v49  ;;  %v1844_v36 = vld [vmem:[%s9779_s3 + $0xa0] sm:$0xff]  ;;  %v795_v49 = vmul.f32 %v6316_v44, %v6316_v44 }
 0x113   :  { %v722_v24 = vadd.f32 %v721_v3, %v6304_v35  ;;  %v854_v32 = vadd.f32 %v853_v0, %v791_v59  ;;  %2391 = vmatprep.subr.mxu0 %v5829_v5  ;;  %v1884_v0 = vld [vmem:[%s9779_s3 + $0x1e0] sm:$0xff]  ;;  %2020 = vmatprep.subr.mxu1 %v5829_v5  ;;  %v1845_v3 = vld [vmem:[%s9779_s3 + $0xa8] sm:$0xff] }
 0x114   :  { %2392 = vmatpush2.msra.mxu0 %v1884_v0  ;;  %2021 = vmatpush2.msra.mxu1 %v1845_v3  ;;  %v1843_v0 = vld [vmem:[%s9779_s3 + $0x98] sm:$0xff] }
 0x115   :  { %v855_v54 = vadd.f32 %v854_v32, %v792_v28  ;;  %v723_v59 = vadd.f32 %v6292_v26, %v722_v24  ;;  %v6640_v28 = vpop.f32.mrf.mxu1  ;;  %2393 = vmatprep.subr.mxu0 %v5829_v5  ;;  %v1883_v32 = vld [vmem:[%s9779_s3 + $0x1d8] sm:$0xff]  ;;  %2022 = vmatprep.subr.mxu1 %v5829_v5 }
 0x116   :  { %2394 = vmatpush2.msra.mxu0 %v1883_v32  ;;  %2023 = vmatpush2.msra.mxu1 %v1844_v36  ;;  %v1881_v32 = vld [vmem:[%s9779_s3 + $0x1c8] sm:$0xff]  ;;  %v1842_v36 = vld [vmem:[%s9779_s3 + $0x90] sm:$0xff] }
 0x117   :  { %v724_v9 = vadd.f32 %v723_v59, %v6328_v53  ;;  %v856_v24 = vadd.f32 %v855_v54, %v793_v51  ;;  %2395 = vmatprep.subr.mxu0 %v5829_v5  ;;  %v1882_v59 = vld [vmem:[%s9779_s3 + $0x1d0] sm:$0xff]  ;;  %2024 = vmatprep.subr.mxu1 %v5829_v5 }
 0x118   :  { %2396 = vmatpush2.msra.mxu0 %v1882_v59  ;;  %2025 = vmatpush2.msra.mxu1 %v1843_v0  ;;  %v1880_v59 = vld [vmem:[%s9779_s3 + $0x1c0] sm:$0xff]  ;;  %v1841_v0 = vld [vmem:[%s9779_s3 + $0x88] sm:$0xff] }
 0x119   :  { %v857_v51 = vadd.f32 %v856_v24, %v794_v10  ;;  %v725_v54 = vadd.f32 %v6316_v44, %v724_v9  ;;  %v796_v10 = vmul.f32 %v6352_v8, %v6352_v8  ;;  %v6664_v24 = vpop.f32.mrf.mxu1  ;;  %2397 = vmatprep.subr.mxu0 %v5829_v5  ;;  %2026 = vmatprep.subr.mxu1 %v5829_v5 }
 0x11a   :  { %2398 = vmatpush2.msra.mxu0 %v1881_v32  ;;  %2027 = vmatpush2.msra.mxu1 %v1842_v36  ;;  %v1879_v32 = vld [vmem:[%s9779_s3 + $0x1b8] sm:$0xff]  ;;  %v1840_v36 = vld [vmem:[%s9779_s3 + $0x80] sm:$0xff] }
 0x11b   :  { %v726_v3 = vadd.f32 %v725_v54, %v6352_v8  ;;  %v858_v9 = vadd.f32 %v857_v51, %v795_v49  ;;  %v797_v54 = vmul.f32 %v6340_v62, %v6340_v62  ;;  %2399 = vmatprep.subr.mxu0 %v5829_v5  ;;  %2028 = vmatprep.subr.mxu1 %v5829_v5 }
 0x11c   :  { %2400 = vmatpush2.msra.mxu0 %v1880_v59  ;;  %2029 = vmatpush2.msra.mxu1 %v1841_v0  ;;  %v1878_v0 = vld [vmem:[%s9779_s3 + $0x1b0] sm:$0xff] }
 0x11d   :  { %v859_v49 = vadd.f32 %v858_v9, %v796_v10  ;;  %v727_v51 = vadd.f32 %v6340_v62, %v726_v3  ;;  %v798_v10 = vmul.f32 %v6379_v38, %v6379_v38  ;;  %v6688_v9 = vpop.f32.mrf.mxu1  ;;  %2401 = vmatprep.subr.mxu0 %v5829_v5  ;;  %2030 = vmatprep.subr.mxu1 %v5829_v5 }
 0x11e   :  { %9897 = vst [vmem:[#allocation16_spill] sm:$0xff] %v6688_v9  ;;  %2402 = vmatpush2.msra.mxu0 %v1879_v32  ;;  %2031 = vmatpush2.msra.mxu1 %v1840_v36  ;;  %v800_v62 = vmul.f32 %v6430_v15, %v6430_v15  ;;  %v801_v32 = vmul.f32 %v6402_v56, %v6402_v56 }
 0x11f   :  { %v728_v8 = vadd.f32 %v727_v51, %v6379_v38  ;;  %v860_v3 = vadd.f32 %v859_v49, %v797_v54  ;;  %v1311_v51 = vld [vmem:[#allocation2 + $0x1] sm:$0xff]  ;;  %v799_v54 = vmul.f32 %v6364_v23, %v6364_v23  ;;  %2403 = vmatprep.subr.mxu0 %v5829_v5  ;;  %2738 = vmatprep.subr.mxu1 %v5829_v5 }
 0x120   :  { %2032 = vmatprep.mubr.f32.mxu1 %v1311_v51  ;;  %2404 = vmatpush2.msra.mxu0 %v1878_v0 }
 0x121   :  { %v861_v49 = vadd.f32 %v860_v3, %v798_v10  ;;  %v729_v59 = vadd.f32 %v6364_v23, %v728_v8  ;;  %2033 = vmatmul.mubr.f32.vlgmr.msra.gmra.mxu1 %v5829_v5  ;;  %v6709_v10 = vpop.f32.mrf.mxu1  ;;  %2405 = vmatprep.subr.mxu0 %v5829_v5  ;;  %v1877_v8 = vld [vmem:[%s9779_s3 + $0x1a8] sm:$0xff] }
 0x122   :  { %9898 = vst [vmem:[#allocation17_spill] sm:$0xff] %v6709_v10  ;;  %v1312_v3 = vld [vmem:[#allocation2 + $0x9] sm:$0xff]  ;;  %2406 = vmatpush2.msra.mxu0 %v1877_v8 }
 0x123   :  { %v730_v38 = vadd.f32 %v729_v59, %v6430_v15  ;;  %v862_v44 = vadd.f32 %v861_v49, %v799_v54  ;;  %2037 = vmatprep.mubr.f32.mxu1 %v1312_v3  ;;  %2407 = vmatprep.subr.mxu0 %v5829_v5  ;;  %v1876_v54 = vld [vmem:[%s9779_s3 + $0x1a0] sm:$0xff]  ;;  %v802_v59 = vmul.f32 %v6486_v6, %v6486_v6  ;;  %v1874_v8 = vld [vmem:[%s9779_s3 + $0x190] sm:$0xff] }
 0x124   :  { %2408 = vmatpush2.msra.mxu0 %v1876_v54  ;;  %v803_v3 = vmul.f32 %v6458_v45, %v6458_v45  ;;  %v1901_v54 = vld [vmem:[%s9779_s3 + $0x268] sm:$0xff] }
 0x125   :  { %v863_v36 = vadd.f32 %v862_v44, %v800_v62  ;;  %v731_v51 = vadd.f32 %v6402_v56, %v730_v38  ;;  %v1903_v44 = vld [vmem:[%s9779_s3 + $0x278] sm:$0xff]  ;;  %2038 = vmatmul.mubr.f32.gmra.mxu1 %v5829_v5  ;;  %v6733_v38 = vpop.f32.mrf.mxu1  ;;  %2409 = vmatprep.subr.mxu0 %v5829_v5 }
 0x126   :  { %v1875_v62 = vld [vmem:[%s9779_s3 + $0x198] sm:$0xff]  ;;  %2739 = vmatpush1.msra.mxu1 %v1903_v44  ;;  %v1873_v44 = vld [vmem:[%s9779_s3 + $0x188] sm:$0xff] }
 0x127   :  { %v732_v49 = vadd.f32 %v731_v51, %v6486_v6  ;;  %v864_v0 = vadd.f32 %v863_v36, %v801_v32  ;;  %2410 = vmatpush2.msra.mxu0 %v1875_v62  ;;  %2740 = vmatprep.subr.mxu1 %v5829_v5  ;;  %v1902_v51 = vld [vmem:[%s9779_s3 + $0x270] sm:$0xff]  ;;  %v6757_v62 = vpop.f32.mrf.mxu1 }
 0x128   :  { %2411 = vmatprep.subr.mxu0 %v5829_v5  ;;  %2741 = vmatpush1.msra.mxu1 %v1902_v51  ;;  %9899 = vst [vmem:[#allocation18_spill] sm:$0xff] %v6757_v62  ;;  %v805_v51 = vmul.f32 %v6514_v47, %v6514_v47 }
 0x129   :  { %v865_v32 = vadd.f32 %v864_v0, %v802_v59  ;;  %v733_v36 = vadd.f32 %v6458_v45, %v732_v49  ;;  %v804_v59 = vmul.f32 %v6542_v19, %v6542_v19  ;;  %2412 = vmatpush2.msra.mxu0 %v1874_v8  ;;  %2742 = vmatprep.subr.mxu1 %v5829_v5  ;;  %v1872_v45 = vld [vmem:[%s9779_s3 + $0x180] sm:$0xff] }
 0x12a   :  { %2413 = vmatprep.subr.mxu0 %v5829_v5  ;;  %2743 = vmatpush1.msra.mxu1 %v1901_v54  ;;  %v1900_v54 = vld [vmem:[%s9779_s3 + $0x260] sm:$0xff] }
 0x12b   :  { %v734_v49 = vadd.f32 %v733_v36, %v6542_v19  ;;  %v866_v0 = vadd.f32 %v865_v32, %v803_v3  ;;  %2414 = vmatpush2.msra.mxu0 %v1873_v44  ;;  %2744 = vmatprep.subr.mxu1 %v5829_v5  ;;  %v806_v3 = vmul.f32 %v6592_v50, %v6592_v50  ;;  %v6771_v19 = vpop.f32.mrf.mxu1 }
 0x12c   :  { %2415 = vmatprep.subr.mxu0 %v5829_v5  ;;  %9900 = vst [vmem:[#allocation19_spill] sm:$0xff] %v6771_v19  ;;  %v807_v44 = vmul.f32 %v6568_v63, %v6568_v63  ;;  %2745 = vmatpush1.msra.mxu1 %v1900_v54 }
 0x12d   :  { %v867_v36 = vadd.f32 %v866_v0, %v804_v59  ;;  %v735_v6 = vadd.f32 %v6514_v47, %v734_v49  ;;  %2416 = vmatpush2.msra.mxu0 %v1872_v45  ;;  %2746 = vmatprep.subr.mxu1 %v5829_v5  ;;  %v808_v45 = vmul.f32 %v6640_v28, %v6640_v28 }
 0x12e   :  { %3123 = vmatprep.subr.mxu0 %v5829_v5 }
 0x12f   :  { %v736_v8 = vadd.f32 %v735_v6, %v6592_v50  ;;  %v868_v32 = vadd.f32 %v867_v36, %v805_v51  ;;  %v6784_v51 = vpop.f32.mrf.mxu1  ;;  %v809_v36 = vmul.f32 %v6616_v33, %v6616_v33 }
 0x130   :  { %9901 = vst [vmem:[#allocation20_spill] sm:$0xff] %v6784_v51 }
 0x131   :  { %v869_v49 = vadd.f32 %v868_v32, %v806_v3  ;;  %v737_v59 = vadd.f32 %v6568_v63, %v736_v8  ;;  %v810_v8 = vmul.f32 %v6688_v9, %v6688_v9  ;;  %v6792_v54 = vpop.f32.mrf.mxu1 }
 0x132   :  { %9902 = vst [vmem:[#allocation21_spill] sm:$0xff] %v6792_v54 }
 0x133   :  { %v738_v6 = vadd.f32 %v737_v59, %v6640_v28  ;;  %v870_v0 = vadd.f32 %v869_v49, %v807_v44  ;;  %v1899_v44 = vld [vmem:[%s9779_s3 + $0x258] sm:$0xff]  ;;  %v811_v49 = vmul.f32 %v6664_v24, %v6664_v24 }
 0x134   :  { %2747 = vmatpush1.msra.mxu1 %v1899_v44  ;;  %v1898_v44 = vld [vmem:[%s9779_s3 + $0x250] sm:$0xff] }
 0x135   :  { %v871_v50 = vadd.f32 %v870_v0, %v808_v45  ;;  %v739_v47 = vadd.f32 %v6616_v33, %v738_v6  ;;  %2748 = vmatprep.subr.mxu1 %v5829_v5  ;;  %v6804_v0 = vpop.f32.mrf.mxu1 }
 0x136   :  { %9903 = vst [vmem:[#allocation22_spill] sm:$0xff] %v6804_v0  ;;  %2749 = vmatpush1.msra.mxu1 %v1898_v44 }
 0x137   :  { %v740_v3 = vadd.f32 %v739_v47, %v6688_v9  ;;  %v872_v32 = vadd.f32 %v871_v50, %v809_v36  ;;  %v812_v50 = vmul.f32 %v6733_v38, %v6733_v38  ;;  %v813_v36 = vmul.f32 %v6709_v10, %v6709_v10 }
 0x139   :  { %v873_v59 = vadd.f32 %v872_v32, %v810_v8  ;;  %v741_v45 = vadd.f32 %v6664_v24, %v740_v3  ;;  %v814_v3 = vmul.f32 %v6771_v19, %v6771_v19  ;;  %v6812_v32 = vpop.f32.mrf.mxu1 }
 0x13a   :  { %9904 = vst [vmem:[#allocation23_spill] sm:$0xff] %v6812_v32 }
 0x13b   :  { %v742_v47 = vadd.f32 %v741_v45, %v6733_v38  ;;  %v874_v6 = vadd.f32 %v873_v59, %v811_v49  ;;  %v815_v49 = vmul.f32 %v6757_v62, %v6757_v62 }
 0x13d   :  { %v875_v9 = vadd.f32 %v874_v6, %v812_v50  ;;  %v743_v33 = vadd.f32 %v6709_v10, %v742_v47  ;;  %v6820_v47 = vld [vmem:[#allocation2] sm:$0xff]  ;;  %v6826_v6 = vpop.f32.mrf.mxu1 }
 0x13e   :  { %2750 = vmatprep.subr.mxu1 %v6820_v47 }
 0x13f   :  { %v744_v8 = vadd.f32 %v743_v33, %v6771_v19  ;;  %v876_v5 = vadd.f32 %v875_v9, %v813_v36  ;;  %v816_v9 = vmul.f32 %v6792_v54, %v6792_v54  ;;  %v817_v36 = vmul.f32 %v6784_v51, %v6784_v51 }
 0x141   :  { %v877_v59 = vadd.f32 %v876_v5, %v814_v3  ;;  %v745_v45 = vadd.f32 %v6757_v62, %v744_v8  ;;  %v818_v5 = vmul.f32 %v6812_v32, %v6812_v32  ;;  %v678_v62 = vpop.f32.mrf.mxu1 }
 0x143   :  { %v746_v33 = vadd.f32 %v745_v45, %v6792_v54  ;;  %v878_v50 = vadd.f32 %v877_v59, %v815_v49  ;;  %v1897_v45 = vld [vmem:[%s9779_s3 + $0x248] sm:$0xff]  ;;  %v819_v49 = vmul.f32 %v6804_v0, %v6804_v0 }
 0x144   :  { %2751 = vmatpush1.msra.mxu1 %v1897_v45 }
 0x145   :  { %v879_v19 = vadd.f32 %v878_v50, %v816_v9  ;;  %v747_v3 = vadd.f32 %v6784_v51, %v746_v33  ;;  %2752 = vmatprep.subr.mxu1 %v6820_v47  ;;  %v820_v9 = vmul.f32 %v678_v62, %v678_v62 }
 0x147   :  { %v748_v8 = vadd.f32 %v747_v3, %v6812_v32  ;;  %v880_v44 = vadd.f32 %v879_v19, %v817_v36  ;;  %v821_v19 = vmul.f32 %v6826_v6, %v6826_v6 }
 0x149   :  { %v881_v59 = vadd.f32 %v880_v44, %v818_v5  ;;  %v749_v54 = vadd.f32 %v6804_v0, %v748_v8  ;;  %v1896_v5 = vld [vmem:[%s9779_s3 + $0x240] sm:$0xff] }
 0x14a   :  { %2753 = vmatpush1.msra.mxu1 %v1896_v5 }
 0x14b   :  { %v750_v33 = vadd.f32 %v749_v54, %v678_v62  ;;  %v882_v50 = vadd.f32 %v881_v59, %v819_v49  ;;  %2754 = vmatprep.subr.mxu1 %v6820_v47 }
 0x14d   :  { %v751_v36 = vadd.f32 %v6826_v6, %v750_v33  ;;  %v883_v3 = vadd.f32 %v882_v50, %v820_v9  ;;  %v1895_v33 = vld [vmem:[%s9779_s3 + $0x238] sm:$0xff] }
 0x14e   :  { %2755 = vmatpush1.msra.mxu1 %v1895_v33 }
 0x14f   :  { %v752_v32 = vrot.slane %v751_v36, 4  ;;  %v884_v51 = vadd.f32 %v883_v3, %v821_v19  ;;  %2756 = vmatprep.subr.mxu1 %v6820_v47 }
 0x151   :  { %v753_v44 = vadd.f32 %v752_v32, %v751_v36  ;;  %v885_v8 = vrot.slane %v884_v51, 4 }
 0x153   :  { %v754_v54 = vrot.slane %v753_v44, 2  ;;  %v886_v45 = vadd.f32 %v885_v8, %v884_v51  ;;  %v1894_v51 = vld [vmem:[%s9779_s3 + $0x230] sm:$0xff]  ;;  %v902_v8 = vlaneseq }
 0x154   :  { %2757 = vmatpush1.msra.mxu1 %v1894_v51 }
 0x155   :  { %v755_v49 = vadd.f32 %v754_v54, %v753_v44  ;;  %v887_v59 = vrot.slane %v886_v45, 2  ;;  %2758 = vmatprep.subr.mxu1 %v6820_v47  ;;  %v687_v54 = vld [vmem:[%s9780_s4] sm:$0x1] }
 0x157   :  { %v756_v0 = vrot.slane %v755_v49, 1  ;;  %v888_v10 = vadd.f32 %v887_v59, %v886_v45  ;;  %v1892_v59 = vld [vmem:[%s9779_s3 + $0x220] sm:$0xff] }
 0x159   :  { %v757_v9 = vadd.f32 %v756_v0, %v755_v49  ;;  %v889_v50 = vrot.slane %v888_v10, 1  ;;  %v1893_v0 = vld [vmem:[%s9779_s3 + $0x228] sm:$0xff] }
 0x15a   :  { %2759 = vmatpush1.msra.mxu1 %v1893_v0 }
 0x15b   :  { %v890_v32 = vadd.f32 %v889_v50, %v888_v10  ;;  %v892_v19 = vmul.f32 0.001953125, %v757_v9  ;;  %2760 = vmatprep.subr.mxu1 %v6820_v47  ;;  %v903_v10 = vshrl.u32 %v902_v8, 7  ;;  %v688_v9 = vld [vmem:[%s9781_s5] sm:$0x1] }
 0x15c   :  { %2761 = vmatpush1.msra.mxu1 %v1892_v59  ;;  %v9907_v59 = vld [vmem:[#allocation8_spill] sm:$0xff] }
 0x15d   :  { %v893_v36 = vmul.f32 0.001953125, %v890_v32  ;;  %v894_v3 = vmul.f32 %v892_v19, %v892_v19  ;;  %v6863_v45 = vsub.s32 0, %v903_v10  ;;  %2762 = vmatprep.subr.mxu1 %v6820_v47 }
 0x15f   :  { %v895_v5 = vsub.f32 %v893_v36, %v894_v3  ;;  %9905 = vst [vmem:[#allocation24_spill] sm:$0xff] %v6863_v45 }
 0x161   :  { %v896_v44 = vadd.f32 1e-05, %v895_v5 }
 0x163   :  { %5798 = vrsqrt.f32 %v896_v44 }
 0x170   :  { %v5799_v49 = vpop.eup %5798 }
 0x171   :  { %v898_v33 = vmul.f32 %v5799_v49, %v687_v54  ;;  %v9906_v49 = vld [vmem:[#allocation6_spill] sm:$0xff] }
 0x173   :  { %v899_v50 = vmul.f32 %v898_v33, %v892_v19  ;;  %v6873_v32 = vrot.slane %v898_v33, %v6863_v45  ;;  %v9908_v33 = vld [vmem:[#allocation7_spill] sm:$0xff] }
 0x175   :  { %v900_v36 = vsub.f32 %v688_v9, %v899_v50  ;;  %v969_v3 = vmul.f32 %v6873_v32, %v678_v62  ;;  %v6878_v5 = vmul.f32 %v6873_v32, %v6271_v14  ;;  %v6882_v51 = vmul.f32 %v6269_v13, %v6873_v32  ;;  %v9909_v9 = vld [vmem:[#allocation9_spill] sm:$0xff] }
 0x176   :  { %v6886_v44 = vmul.f32 %v6873_v32, %v6285_v21  ;;  %v6890_v19 = vmul.f32 %v6277_v17, %v6873_v32  ;;  %v6894_v8 = vmul.f32 %v6873_v32, %v6297_v30  ;;  %v6898_v14 = vmul.f32 %v6290_v25, %v6873_v32 }
 0x177   :  { %v6901_v62 = vrot.slane %v900_v36, %v6863_v45  ;;  %v6905_v13 = vmul.f32 %v6873_v32, %v6309_v39  ;;  %v6909_v21 = vmul.f32 %v6302_v34, %v6873_v32  ;;  %v6913_v17 = vmul.f32 %v6873_v32, %v6321_v48  ;;  %v1891_v48 = vld [vmem:[%s9779_s3 + $0x218] sm:$0xff]  ;;  %v1890_v36 = vld [vmem:[%s9779_s3 + $0x210] sm:$0xff] }
 0x178   :  { %v6917_v30 = vmul.f32 %v6314_v43, %v6873_v32  ;;  %v6921_v25 = vmul.f32 %v6873_v32, %v6333_v57  ;;  %v6925_v39 = vmul.f32 %v6326_v52, %v6873_v32  ;;  %v6929_v34 = vmul.f32 %v6873_v32, %v6345_v2  ;;  %2763 = vmatpush1.msra.mxu1 %v1891_v48  ;;  %v9910_v48 = vld [vmem:[#allocation11_spill] sm:$0xff] }
 0x179   :  { %v1039_v0 = vadd.f32 %v6901_v62, %v969_v3  ;;  %v6937_v43 = vmul.f32 %v6338_v61, %v6873_v32  ;;  %v6941_v57 = vmul.f32 %v6873_v32, %v6357_v12  ;;  %v6945_v52 = vmul.f32 %v6350_v7, %v6873_v32  ;;  %2764 = vmatprep.subr.mxu1 %v6820_v47 }
 0x17a   :  { %v6949_v2 = vmul.f32 %v6873_v32, %v6369_v29  ;;  %v6953_v10 = vmul.f32 %v6362_v22, %v6873_v32  ;;  %v6957_v61 = vmul.f32 %v6873_v32, %v6388_v46  ;;  %v6961_v12 = vmul.f32 %v6377_v37, %v6873_v32  ;;  %2765 = vmatpush1.msra.mxu1 %v1890_v36  ;;  %v9917_v36 = vld [vmem:[#allocation15_spill] sm:$0xff] }
 0x17b   :  { %v1103_v7 = vmax.f32 %v1039_v0, 0.0  ;;  %v6966_v54 = vmul.f32 %v6873_v32, %v6415_v1  ;;  %v6970_v29 = vmul.f32 %v6400_v55, %v6873_v32  ;;  %v6974_v22 = vmul.f32 %v6873_v32, %v6443_v31  ;;  %2766 = vmatprep.subr.mxu1 %v6820_v47 }
 0x17c   :  { %v6978_v46 = vmul.f32 %v6428_v11, %v6873_v32  ;;  %v6982_v37 = vmul.f32 %v6873_v32, %v6471_v58  ;;  %v6986_v1 = vmul.f32 %v6456_v42, %v6873_v32  ;;  %v6990_v55 = vmul.f32 %v6873_v32, %v6499_v27 }
 0x17d   :  { %1245 = vst [vmem:[#allocation2 + $0x331] sm:$0xff] %v1103_v7  ;;  %v6994_v31 = vmul.f32 %v6484_v4, %v6873_v32  ;;  %v6998_v11 = vmul.f32 %v6873_v32, %v6527_v60  ;;  %v7002_v58 = vmul.f32 %v6512_v41, %v6873_v32  ;;  %v7006_v42 = vmul.f32 %v6873_v32, %v6555_v40  ;;  %v9911_v7 = vld [vmem:[#allocation10_spill] sm:$0xff] }
 0x17e   :  { %v7010_v27 = vmul.f32 %v6540_v18, %v6873_v32  ;;  %v7014_v4 = vmul.f32 %v6873_v32, %v6283_v20  ;;  %v7018_v60 = vmul.f32 %v6275_v16, %v6873_v32  ;;  %v7022_v41 = vmul.f32 %v6873_v32, %v6304_v35 }
 0x17f   :  { %v7026_v40 = vmul.f32 %v6292_v26, %v6873_v32  ;;  %v7030_v18 = vmul.f32 %v6873_v32, %v6328_v53  ;;  %v7034_v20 = vmul.f32 %v9906_v49, %v6873_v32  ;;  %v7038_v16 = vmul.f32 %v6873_v32, %v9907_v59  ;;  %v9912_v49 = vld [vmem:[#allocation13_spill] sm:$0xff]  ;;  %v9913_v59 = vld [vmem:[#allocation12_spill] sm:$0xff] }
 0x180   :  { %v7042_v35 = vmul.f32 %v9908_v33, %v6873_v32  ;;  %v7046_v26 = vmul.f32 %v6873_v32, %v9909_v9  ;;  %v7050_v53 = vmul.f32 %v6364_v23, %v6873_v32  ;;  %v7054_v50 = vmul.f32 %v6873_v32, %v6430_v15  ;;  %v9914_v9 = vld [vmem:[#allocation14_spill] sm:$0xff] }
 0x181   :  { %v7061_v3 = vmul.f32 %v6402_v56, %v6873_v32  ;;  %v7065_v0 = vmul.f32 %v6873_v32, %v9910_v48  ;;  %v7069_v23 = vmul.f32 %v9911_v7, %v6873_v32  ;;  %v7073_v15 = vmul.f32 %v6873_v32, %v9912_v49 }
 0x182   :  { %v7077_v33 = vmul.f32 %v9913_v59, %v6873_v32  ;;  %v7081_v56 = vmul.f32 %v6873_v32, %v9914_v9  ;;  %v7085_v48 = vmul.f32 %v6568_v63, %v6873_v32  ;;  %v7089_v7 = vmul.f32 %v6873_v32, %v6640_v28  ;;  %v9919_v59 = vld [vmem:[#allocation16_spill] sm:$0xff]  ;;  %v9923_v28 = vld [vmem:[#allocation17_spill] sm:$0xff] }
 0x183   :  { %v7094_v49 = vmul.f32 %v9917_v36, %v6873_v32  ;;  %v7098_v45 = vmul.f32 %v6873_v32, %v9919_v59  ;;  %v7102_v9 = vmul.f32 %v6664_v24, %v6873_v32  ;;  %v7106_v63 = vmul.f32 %v6873_v32, %v6733_v38 }
 0x184   :  { %9915 = vst [vmem:[#allocation6_spill] sm:$0xff] %v7085_v48  ;;  %9916 = vst [vmem:[#allocation8_spill] sm:$0xff] %v7089_v7  ;;  %v7110_v7 = vmul.f32 %v9923_v28, %v6873_v32  ;;  %v9925_v48 = vld [vmem:[#allocation19_spill] sm:$0xff] }
 0x185   :  { %9918 = vst [vmem:[#allocation7_spill] sm:$0xff] %v7094_v49  ;;  %9920 = vst [vmem:[#allocation9_spill] sm:$0xff] %v7098_v45  ;;  %v7114_v36 = vmul.f32 %v6873_v32, %v9925_v48  ;;  %v9926_v49 = vld [vmem:[#allocation18_spill] sm:$0xff]  ;;  %v9927_v45 = vld [vmem:[#allocation21_spill] sm:$0xff] }
 0x186   :  { %9921 = vst [vmem:[#allocation11_spill] sm:$0xff] %v7102_v9  ;;  %9922 = vst [vmem:[#allocation10_spill] sm:$0xff] %v7106_v63  ;;  %v7118_v59 = vmul.f32 %v9926_v49, %v6873_v32  ;;  %v7122_v24 = vmul.f32 %v6873_v32, %v9927_v45  ;;  %v9928_v9 = vld [vmem:[#allocation20_spill] sm:$0xff]  ;;  %v9929_v63 = vld [vmem:[#allocation23_spill] sm:$0xff]  ;;  %v7138_v49 = vmul.f32 %v6826_v6, %v6873_v32 }
 0x187   :  { %9924 = vst [vmem:[#allocation13_spill] sm:$0xff] %v7110_v7  ;;  %v7126_v38 = vmul.f32 %v9928_v9, %v6873_v32  ;;  %v7130_v28 = vmul.f32 %v6873_v32, %v9929_v63  ;;  %v9930_v7 = vld [vmem:[#allocation22_spill] sm:$0xff]  ;;  %v7142_v45 = vadd.f32 %v6901_v62, %v6878_v5  ;;  %v7146_v9 = vadd.f32 %v6901_v62, %v6882_v51 }
 0x188   :  { %v7134_v48 = vmul.f32 %v9930_v7, %v6873_v32  ;;  %v7150_v63 = vadd.f32 %v6901_v62, %v6886_v44  ;;  %v7154_v7 = vadd.f32 %v6901_v62, %v6890_v19  ;;  %v7158_v6 = vadd.f32 %v6901_v62, %v6894_v8 }
 0x189   :  { %v7162_v32 = vadd.f32 %v6901_v62, %v6898_v14  ;;  %v7166_v5 = vadd.f32 %v6901_v62, %v6905_v13  ;;  %v7170_v51 = vadd.f32 %v6901_v62, %v6909_v21  ;;  %v7174_v44 = vadd.f32 %v6901_v62, %v6913_v17  ;;  %v1889_v13 = vld [vmem:[%s9779_s3 + $0x208] sm:$0xff] }
 0x18a   :  { %v7178_v19 = vadd.f32 %v6901_v62, %v6917_v30  ;;  %v7182_v8 = vadd.f32 %v6901_v62, %v6921_v25  ;;  %v7186_v14 = vadd.f32 %v6901_v62, %v6925_v39  ;;  %v7193_v21 = vadd.f32 %v6901_v62, %v6929_v34  ;;  %2767 = vmatpush1.msra.mxu1 %v1889_v13 }
 0x18b   :  { %v7197_v17 = vadd.f32 %v6901_v62, %v6937_v43  ;;  %v7201_v30 = vadd.f32 %v6901_v62, %v6941_v57  ;;  %v7205_v25 = vadd.f32 %v6901_v62, %v6945_v52  ;;  %v7209_v39 = vadd.f32 %v6901_v62, %v6949_v2  ;;  %2768 = vmatprep.subr.mxu1 %v6820_v47 }
 0x18c   :  { %v7213_v34 = vadd.f32 %v6901_v62, %v6953_v10  ;;  %v7217_v43 = vadd.f32 %v6901_v62, %v6957_v61  ;;  %v7221_v57 = vadd.f32 %v6901_v62, %v6961_v12  ;;  %v7226_v52 = vadd.f32 %v6901_v62, %v6966_v54 }
 0x18d   :  { %v7230_v2 = vadd.f32 %v6901_v62, %v6970_v29  ;;  %v7234_v10 = vadd.f32 %v6901_v62, %v6974_v22  ;;  %v7238_v61 = vadd.f32 %v6901_v62, %v6978_v46  ;;  %v7242_v12 = vadd.f32 %v6901_v62, %v6982_v37 }
 0x18e   :  { %v7246_v54 = vadd.f32 %v6901_v62, %v6986_v1  ;;  %v7250_v29 = vadd.f32 %v6901_v62, %v6990_v55  ;;  %v7254_v22 = vadd.f32 %v6901_v62, %v6994_v31  ;;  %v7258_v46 = vadd.f32 %v6901_v62, %v6998_v11 }
 0x18f   :  { %v7262_v37 = vadd.f32 %v6901_v62, %v7002_v58  ;;  %v7266_v1 = vadd.f32 %v6901_v62, %v7006_v42  ;;  %v7270_v55 = vadd.f32 %v6901_v62, %v7010_v27  ;;  %v7274_v31 = vadd.f32 %v6901_v62, %v7014_v4 }
 0x190   :  { %v7278_v11 = vadd.f32 %v6901_v62, %v7018_v60  ;;  %v7282_v58 = vadd.f32 %v6901_v62, %v7022_v41  ;;  %v7286_v42 = vadd.f32 %v6901_v62, %v7026_v40  ;;  %v7290_v27 = vadd.f32 %v6901_v62, %v7030_v18 }
 0x191   :  { %v7294_v4 = vadd.f32 %v6901_v62, %v7034_v20  ;;  %v7298_v60 = vadd.f32 %v6901_v62, %v7038_v16  ;;  %v7302_v41 = vadd.f32 %v6901_v62, %v7042_v35  ;;  %v7306_v40 = vadd.f32 %v6901_v62, %v7046_v26  ;;  %v1888_v35 = vld [vmem:[%s9779_s3 + $0x200] sm:$0xff] }
 0x192   :  { %v7310_v18 = vadd.f32 %v6901_v62, %v7050_v53  ;;  %v7314_v20 = vadd.f32 %v6901_v62, %v7054_v50  ;;  %v7318_v16 = vadd.f32 %v6901_v62, %v7061_v3  ;;  %v7325_v26 = vadd.f32 %v6901_v62, %v7065_v0  ;;  %2769 = vmatpush1.msra.mxu1 %v1888_v35 }
 0x193   :  { %v7329_v53 = vadd.f32 %v6901_v62, %v7069_v23  ;;  %v7333_v50 = vadd.f32 %v6901_v62, %v7073_v15  ;;  %v7337_v3 = vadd.f32 %v6901_v62, %v7077_v33  ;;  %v7341_v13 = vadd.f32 %v6901_v62, %v7081_v56  ;;  %2770 = vmatprep.subr.mxu1 %v6820_v47  ;;  %v9940_v33 = vld [vmem:[#allocation9_spill] sm:$0xff]  ;;  %v9941_v56 = vld [vmem:[#allocation11_spill] sm:$0xff] }
 0x194   :  { %9931 = vst [vmem:[#allocation12_spill] sm:$0xff] %v7318_v16  ;;  %9932 = vst [vmem:[#allocation14_spill] sm:$0xff] %v7325_v26  ;;  %v9935_v16 = vld [vmem:[#allocation6_spill] sm:$0xff]  ;;  %v9937_v26 = vld [vmem:[#allocation8_spill] sm:$0xff]  ;;  %v7358_v35 = vadd.f32 %v6901_v62, %v9940_v33  ;;  %v7378_v33 = vadd.f32 %v6901_v62, %v7118_v59  ;;  %v7398_v59 = vadd.f32 %v6901_v62, %v7138_v49  ;;  %v1073_v49 = vmax.f32 %v7274_v31, 0.0 }
 0x195   :  { %9933 = vst [vmem:[#allocation15_spill] sm:$0xff] %v7329_v53  ;;  %9934 = vst [vmem:[#allocation16_spill] sm:$0xff] %v7341_v13  ;;  %v7345_v0 = vadd.f32 %v6901_v62, %v9935_v16  ;;  %v7349_v23 = vadd.f32 %v6901_v62, %v9937_v26  ;;  %v9939_v53 = vld [vmem:[#allocation7_spill] sm:$0xff]  ;;  %v7362_v13 = vadd.f32 %v6901_v62, %v9941_v56  ;;  %v9942_v16 = vld [vmem:[#allocation10_spill] sm:$0xff]  ;;  %v1077_v31 = vmax.f32 %v7290_v27, 0.0 }
 0x196   :  { %v7353_v15 = vadd.f32 %v6901_v62, %v9939_v53  ;;  %v9943_v26 = vld [vmem:[#allocation13_spill] sm:$0xff]  ;;  %v7374_v53 = vadd.f32 %v6901_v62, %v7114_v36  ;;  %9944 = vst [vmem:[#allocation18_spill] sm:$0xff] %v7378_v33  ;;  %v7382_v56 = vadd.f32 %v6901_v62, %v7122_v24  ;;  %v7394_v36 = vadd.f32 %v6901_v62, %v7134_v48 }
 0x197   :  { %9936 = vst [vmem:[#allocation17_spill] sm:$0xff] %v7345_v0  ;;  %9938 = vst [vmem:[#allocation19_spill] sm:$0xff] %v7349_v23  ;;  %v7366_v0 = vadd.f32 %v6901_v62, %v9942_v16  ;;  %v7370_v23 = vadd.f32 %v6901_v62, %v9943_v26  ;;  %v7386_v16 = vadd.f32 %v6901_v62, %v7126_v38  ;;  %v1041_v33 = vmax.f32 %v7142_v45, 0.0 }
 0x198   :  { %9945 = vst [vmem:[#allocation21_spill] sm:$0xff] %v7382_v56  ;;  %v7390_v26 = vadd.f32 %v6901_v62, %v7130_v28  ;;  %9948 = vst [vmem:[#allocation22_spill] sm:$0xff] %v7394_v36  ;;  %v9807_v24 = vmax.f32 %v7146_v9, 0.0  ;;  %v9809_v56 = vmax.f32 %v7150_v63, 0.0  ;;  %v9812_v28 = vmax.f32 %v7162_v32, 0.0 }
 0x199   :  { %9946 = vst [vmem:[#allocation20_spill] sm:$0xff] %v7386_v16  ;;  %v9808_v16 = vmax.f32 %v7158_v6, 0.0  ;;  %v9811_v36 = vmax.f32 %v7174_v44, 0.0  ;;  %1183 = vst [vmem:[#allocation2 + $0x19] sm:$0xff] %v1041_v33  ;;  %2042 = vmatprep.mubr.f32.mxu1 %v1041_v33  ;;  %v9813_v62 = vmax.f32 %v7178_v19, 0.0  ;;  %v9949_v48 = vmax.f32 %v7154_v7, 0.0 }
 0x19a   :  { %9947 = vst [vmem:[#allocation23_spill] sm:$0xff] %v7390_v26  ;;  %v9810_v26 = vmax.f32 %v7166_v5, 0.0  ;;  %1184 = vst [vmem:[#allocation2 + $0x21] sm:$0xff] %v9807_v24  ;;  %v1919_v33 = vld [vmem:[%s9779_s3 + $0x2f8] sm:$0xff]  ;;  %v9815_v45 = vmax.f32 %v7197_v17, 0.0  ;;  %v9814_v38 = vmax.f32 %v7201_v30, 0.0 }
 0x19b   :  { %1185 = vst [vmem:[#allocation2 + $0x31] sm:$0xff] %v9809_v56  ;;  %1186 = vst [vmem:[#allocation2 + $0x39] sm:$0xff] %v9949_v48  ;;  %v9950_v48 = vmax.f32 %v7170_v51, 0.0  ;;  %2771 = vmatpush2.msra.mxu1 %v1919_v33  ;;  %v9816_v56 = vmax.f32 %v7217_v43, 0.0  ;;  %v9820_v33 = vmax.f32 %v7230_v2, 0.0  ;;  %v1072_v24 = vmax.f32 %v7270_v55, 0.0 }
 0x19c   :  { %1187 = vst [vmem:[#allocation2 + $0x49] sm:$0xff] %v9808_v16  ;;  %1188 = vst [vmem:[#allocation2 + $0x51] sm:$0xff] %v9812_v28  ;;  %v9821_v16 = vmax.f32 %v7213_v34, 0.0  ;;  %2772 = vmatprep.subr.mxu1 %v6820_v47  ;;  %v9817_v28 = vmax.f32 %v7234_v10, 0.0  ;;  %v1076_v55 = vmax.f32 %v7286_v42, 0.0  ;;  %v1079_v42 = vmax.f32 %v7298_v60, 0.0 }
 0x19d   :  { %1189 = vst [vmem:[#allocation2 + $0x61] sm:$0xff] %v9810_v26  ;;  %1190 = vst [vmem:[#allocation2 + $0x69] sm:$0xff] %v9950_v48  ;;  %v9951_v26 = vmax.f32 %v7182_v8, 0.0  ;;  %v9952_v48 = vmax.f32 %v7186_v14, 0.0  ;;  %v1080_v27 = vmax.f32 %v7302_v41, 0.0  ;;  %v9964_v60 = vmax.f32 %v7146_v9, 0.0 }
 0x19e   :  { %1191 = vst [vmem:[#allocation2 + $0x79] sm:$0xff] %v9811_v36  ;;  %1192 = vst [vmem:[#allocation2 + $0x81] sm:$0xff] %v9813_v62  ;;  %v9953_v36 = vmax.f32 %v7193_v21, 0.0  ;;  %v9819_v62 = vmax.f32 %v7250_v29, 0.0  ;;  %v1376_v9 = vld [vmem:[#allocation2 + $0xa] sm:$0xff] }
 0x19f   :  { %1193 = vst [vmem:[#allocation2 + $0x91] sm:$0xff] %v9951_v26  ;;  %1194 = vst [vmem:[#allocation2 + $0x99] sm:$0xff] %v9952_v48  ;;  %v9954_v26 = vmax.f32 %v7205_v25, 0.0  ;;  %v9818_v48 = vmax.f32 %v7246_v54, 0.0 }
 0x1a0   :  { %1195 = vst [vmem:[#allocation2 + $0xa9] sm:$0xff] %v9953_v36  ;;  %1196 = vst [vmem:[#allocation2 + $0xb1] sm:$0xff] %v9815_v45  ;;  %v9955_v36 = vmax.f32 %v7209_v39, 0.0  ;;  %v1071_v45 = vmax.f32 %v7266_v1, 0.0  ;;  %v1075_v1 = vmax.f32 %v7282_v58, 0.0  ;;  %v1078_v58 = vmax.f32 %v7294_v4, 0.0 }
 0x1a1   :  { %1197 = vst [vmem:[#allocation2 + $0xc1] sm:$0xff] %v9814_v38  ;;  %1198 = vst [vmem:[#allocation2 + $0xc9] sm:$0xff] %v9954_v26  ;;  %v9956_v38 = vmax.f32 %v7221_v57, 0.0  ;;  %v9957_v26 = vmax.f32 %v7226_v52, 0.0  ;;  %v1440_v41 = vld [vmem:[#allocation2 + $0x20] sm:$0xff] }
 0x1a2   :  { %1199 = vst [vmem:[#allocation2 + $0xd9] sm:$0xff] %v9955_v36  ;;  %1200 = vst [vmem:[#allocation2 + $0xe1] sm:$0xff] %v9821_v16  ;;  %v1070_v36 = vmax.f32 %v7262_v37, 0.0  ;;  %v1074_v37 = vmax.f32 %v7278_v11, 0.0  ;;  %v1935_v11 = vld [vmem:[%s9779_s3 + $0x378] sm:$0xff]  ;;  %v9963_v16 = vld [vmem:[#allocation14_spill] sm:$0xff] }
 0x1a3   :  { %1201 = vst [vmem:[#allocation2 + $0xf1] sm:$0xff] %v9816_v56  ;;  %1202 = vst [vmem:[#allocation2 + $0xf9] sm:$0xff] %v9956_v38  ;;  %v9958_v56 = vmax.f32 %v7238_v61, 0.0  ;;  %v9959_v38 = vmax.f32 %v7242_v12, 0.0  ;;  %v1085_v4 = vmax.f32 %v9963_v16, 0.0  ;;  %v9966_v16 = vld [vmem:[#allocation16_spill] sm:$0xff] }
 0x1a4   :  { %1203 = vst [vmem:[#allocation2 + $0x109] sm:$0xff] %v9957_v26  ;;  %1204 = vst [vmem:[#allocation2 + $0x111] sm:$0xff] %v9820_v33  ;;  %v1375_v26 = vld [vmem:[#allocation2 + $0x2] sm:$0xff] }
 0x1a5   :  { %1205 = vst [vmem:[#allocation2 + $0x121] sm:$0xff] %v9817_v28  ;;  %1206 = vst [vmem:[#allocation2 + $0x129] sm:$0xff] %v9958_v56  ;;  %v9960_v56 = vmax.f32 %v7254_v22, 0.0  ;;  %v1439_v28 = vld [vmem:[#allocation2 + $0x18] sm:$0xff] }
 0x1a6   :  { %1207 = vst [vmem:[#allocation2 + $0x139] sm:$0xff] %v9959_v38  ;;  %1208 = vst [vmem:[#allocation2 + $0x141] sm:$0xff] %v9818_v48  ;;  %v9961_v38 = vmax.f32 %v7258_v46, 0.0  ;;  %v1081_v48 = vmax.f32 %v7306_v40, 0.0  ;;  %2417 = vmatprep.mubr.f32.mxu0 %v1439_v28  ;;  %2043 = vmatmul.mubr.f32.gmra.mxu1 %v1439_v28  ;;  %v1934_v40 = vld [vmem:[%s9779_s3 + $0x370] sm:$0xff]  ;;  %v1088_v28 = vmax.f32 %v7337_v3, 0.0 }
 0x1a7   :  { %1209 = vst [vmem:[#allocation2 + $0x151] sm:$0xff] %v9819_v62  ;;  %1210 = vst [vmem:[#allocation2 + $0x159] sm:$0xff] %v9960_v56  ;;  %v1082_v56 = vmax.f32 %v7310_v18, 0.0  ;;  %v9962_v62 = vld [vmem:[#allocation12_spill] sm:$0xff]  ;;  %2418 = vmatmul.mubr.f32.vlgmr.msra.gmra.mxu0 %v1375_v26  ;;  %2047 = vmatprep.mubr.f32.mxu1 %v9964_v60  ;;  %v9965_v18 = vld [vmem:[#allocation15_spill] sm:$0xff]  ;;  %v1095_v3 = vmax.f32 %v7366_v0, 0.0 }
 0x1a8   :  { %1211 = vst [vmem:[#allocation2 + $0x169] sm:$0xff] %v9961_v38  ;;  %1212 = vst [vmem:[#allocation2 + $0x171] sm:$0xff] %v1070_v36  ;;  %v1083_v38 = vmax.f32 %v7314_v20, 0.0  ;;  %v1084_v33 = vmax.f32 %v9962_v62, 0.0  ;;  %v1087_v20 = vmax.f32 %v7333_v50, 0.0  ;;  %v1089_v62 = vmax.f32 %v9966_v16, 0.0  ;;  %2422 = vmatprep.mubr.f32.mxu0 %v1440_v41  ;;  %3124 = vmatpush1.msra.mxu0 %v1935_v11 }
 0x1a9   :  { %1213 = vst [vmem:[#allocation2 + $0x181] sm:$0xff] %v1071_v45  ;;  %1214 = vst [vmem:[#allocation2 + $0x189] sm:$0xff] %v1072_v24  ;;  %v1086_v24 = vmax.f32 %v9965_v18, 0.0  ;;  %v9968_v36 = vld [vmem:[#allocation19_spill] sm:$0xff]  ;;  %3125 = vmatprep.subr.mxu0 %v6820_v47  ;;  %v1094_v50 = vmax.f32 %v7362_v13, 0.0  ;;  %v9971_v11 = vld [vmem:[#allocation20_spill] sm:$0xff] }
 0x1aa   :  { %1215 = vst [vmem:[#allocation2 + $0x1c9] sm:$0xff] %v1073_v49  ;;  %1216 = vst [vmem:[#allocation2 + $0x1d1] sm:$0xff] %v1074_v37  ;;  %v9967_v49 = vld [vmem:[#allocation17_spill] sm:$0xff]  ;;  %v1091_v26 = vmax.f32 %v9968_v36, 0.0  ;;  %v1092_v37 = vmax.f32 %v7353_v15, 0.0  ;;  %2048 = vmatmul.mubr.f32.gmra.mxu1 %v1440_v41  ;;  %3126 = vmatpush1.msra.mxu0 %v1934_v40  ;;  %v1933_v15 = vld [vmem:[%s9779_s3 + $0x368] sm:$0xff] }
 0x1ab   :  { %1217 = vst [vmem:[#allocation2 + $0x1e1] sm:$0xff] %v1075_v1  ;;  %1218 = vst [vmem:[#allocation2 + $0x1e9] sm:$0xff] %v1076_v55  ;;  %v1090_v45 = vmax.f32 %v9967_v49, 0.0  ;;  %v1093_v1 = vmax.f32 %v7358_v35, 0.0  ;;  %v1097_v55 = vmax.f32 %v7374_v53, 0.0  ;;  %v9969_v35 = vld [vmem:[#allocation18_spill] sm:$0xff]  ;;  %2423 = vmatmul.mubr.f32.gmra.mxu0 %v1376_v9  ;;  %3127 = vmatprep.subr.mxu0 %v6820_v47 }
 0x1ac   :  { %1219 = vst [vmem:[#allocation2 + $0x1f9] sm:$0xff] %v1077_v31  ;;  %1220 = vst [vmem:[#allocation2 + $0x201] sm:$0xff] %v1078_v58  ;;  %v9970_v31 = vld [vmem:[#allocation21_spill] sm:$0xff]  ;;  %v1100_v0 = vmax.f32 %v9971_v11, 0.0  ;;  %v9972_v58 = vld [vmem:[#allocation23_spill] sm:$0xff]  ;;  %v9973_v53 = vmax.f32 %v7150_v63, 0.0  ;;  %3128 = vmatpush1.msra.mxu0 %v1933_v15 }
 0x1ad   :  { %1221 = vst [vmem:[#allocation2 + $0x211] sm:$0xff] %v1079_v42  ;;  %1222 = vst [vmem:[#allocation2 + $0x219] sm:$0xff] %v1080_v27  ;;  %v1099_v13 = vmax.f32 %v9970_v31, 0.0  ;;  %v1441_v42 = vld [vmem:[#allocation2 + $0x30] sm:$0xff]  ;;  %v9974_v27 = vld [vmem:[#allocation22_spill] sm:$0xff]  ;;  %3129 = vmatprep.subr.mxu0 %v6820_v47  ;;  %v9977_v16 = vmax.f32 %v7162_v32, 0.0 }
 0x1ae   :  { %1223 = vst [vmem:[#allocation2 + $0x229] sm:$0xff] %v1081_v48  ;;  %1224 = vst [vmem:[#allocation2 + $0x231] sm:$0xff] %v1082_v56  ;;  %v1096_v48 = vmax.f32 %v7370_v23, 0.0  ;;  %v1101_v23 = vmax.f32 %v9972_v58, 0.0  ;;  %2052 = vmatprep.mubr.f32.mxu1 %v9973_v53  ;;  %v1102_v56 = vmax.f32 %v9974_v27, 0.0  ;;  %2427 = vmatprep.mubr.f32.mxu0 %v1441_v42  ;;  %v1932_v63 = vld [vmem:[%s9779_s3 + $0x360] sm:$0xff] }
 0x1af   :  { %1225 = vst [vmem:[#allocation2 + $0x241] sm:$0xff] %v1083_v38  ;;  %1226 = vst [vmem:[#allocation2 + $0x249] sm:$0xff] %v1084_v33  ;;  %v1098_v33 = vmax.f32 %v9969_v35, 0.0  ;;  %v1104_v38 = vmax.f32 %v7398_v59, 0.0  ;;  %2053 = vmatmul.mubr.f32.gmra.mxu1 %v1441_v42  ;;  %v1377_v59 = vld [vmem:[#allocation2 + $0x1a] sm:$0xff]  ;;  %3130 = vmatpush1.msra.mxu0 %v1932_v63  ;;  %v1378_v40 = vld [vmem:[#allocation2 + $0x22] sm:$0xff] }
 0x1b0   :  { %1227 = vst [vmem:[#allocation2 + $0x259] sm:$0xff] %v1085_v4  ;;  %1228 = vst [vmem:[#allocation2 + $0x261] sm:$0xff] %v1086_v24  ;;  %2428 = vmatmul.mubr.f32.gmra.mxu0 %v1377_v59  ;;  %v9975_v4 = vmax.f32 %v7154_v7, 0.0  ;;  %v1442_v60 = vld [vmem:[#allocation2 + $0x38] sm:$0xff]  ;;  %3131 = vmatprep.subr.mxu0 %v6820_v47  ;;  %v1930_v18 = vld [vmem:[%s9779_s3 + $0x350] sm:$0xff]  ;;  %v9976_v7 = vmax.f32 %v7158_v6, 0.0 }
 0x1b1   :  { %1229 = vst [vmem:[#allocation2 + $0x271] sm:$0xff] %v1087_v20  ;;  %1230 = vst [vmem:[#allocation2 + $0x279] sm:$0xff] %v1088_v28  ;;  %v1931_v41 = vld [vmem:[%s9779_s3 + $0x358] sm:$0xff]  ;;  %2432 = vmatprep.mubr.f32.mxu0 %v1442_v60  ;;  %v1443_v24 = vld [vmem:[#allocation2 + $0x48] sm:$0xff]  ;;  %v9978_v32 = vmax.f32 %v7166_v5, 0.0  ;;  %v9979_v5 = vmax.f32 %v7170_v51, 0.0 }
 0x1b2   :  { %1231 = vst [vmem:[#allocation2 + $0x289] sm:$0xff] %v1089_v62  ;;  %1232 = vst [vmem:[#allocation2 + $0x291] sm:$0xff] %v1090_v45  ;;  %2057 = vmatprep.mubr.f32.mxu1 %v9975_v4  ;;  %3132 = vmatpush1.msra.mxu0 %v1931_v41  ;;  %v1929_v20 = vld [vmem:[%s9779_s3 + $0x348] sm:$0xff]  ;;  %v1379_v28 = vld [vmem:[#allocation2 + $0x32] sm:$0xff]  ;;  %v9980_v51 = vmax.f32 %v7174_v44, 0.0 }
 0x1b3   :  { %1233 = vst [vmem:[#allocation2 + $0x2a1] sm:$0xff] %v1091_v26  ;;  %1234 = vst [vmem:[#allocation2 + $0x2a9] sm:$0xff] %v1092_v37  ;;  %2058 = vmatmul.mubr.f32.gmra.mxu1 %v1442_v60  ;;  %3133 = vmatprep.subr.mxu0 %v6820_v47  ;;  %v1444_v62 = vld [vmem:[#allocation2 + $0x50] sm:$0xff]  ;;  %v1928_v6 = vld [vmem:[%s9779_s3 + $0x340] sm:$0xff] }
 0x1b4   :  { %1235 = vst [vmem:[#allocation2 + $0x2b9] sm:$0xff] %v1093_v1  ;;  %1236 = vst [vmem:[#allocation2 + $0x2c1] sm:$0xff] %v1094_v50  ;;  %2433 = vmatmul.mubr.f32.gmra.mxu0 %v1378_v40  ;;  %2062 = vmatprep.mubr.f32.mxu1 %v9976_v7  ;;  %v1380_v9 = vld [vmem:[#allocation2 + $0x3a] sm:$0xff]  ;;  %v1926_v36 = vld [vmem:[%s9779_s3 + $0x330] sm:$0xff] }
 0x1b5   :  { %1237 = vst [vmem:[#allocation2 + $0x2d1] sm:$0xff] %v1095_v3  ;;  %1238 = vst [vmem:[#allocation2 + $0x2d9] sm:$0xff] %v1096_v48  ;;  %2437 = vmatprep.mubr.f32.mxu0 %v1443_v24  ;;  %3134 = vmatpush1.msra.mxu0 %v1930_v18  ;;  %v1927_v49 = vld [vmem:[%s9779_s3 + $0x338] sm:$0xff]  ;;  %v1445_v45 = vld [vmem:[#allocation2 + $0x60] sm:$0xff] }
 0x1b6   :  { %1239 = vst [vmem:[#allocation2 + $0x2e9] sm:$0xff] %v1097_v55  ;;  %1240 = vst [vmem:[#allocation2 + $0x2f1] sm:$0xff] %v1098_v33  ;;  %3135 = vmatprep.subr.mxu0 %v6820_v47  ;;  %v1381_v26 = vld [vmem:[#allocation2 + $0x4a] sm:$0xff]  ;;  %v1382_v3 = vld [vmem:[#allocation2 + $0x52] sm:$0xff]  ;;  %v9981_v33 = vmax.f32 %v7178_v19, 0.0  ;;  %v9982_v19 = vmax.f32 %v7182_v8, 0.0 }
 0x1b7   :  { %1241 = vst [vmem:[#allocation2 + $0x301] sm:$0xff] %v1099_v13  ;;  %1242 = vst [vmem:[#allocation2 + $0x309] sm:$0xff] %v1100_v0  ;;  %2063 = vmatmul.mubr.f32.gmra.mxu1 %v1443_v24  ;;  %3136 = vmatpush1.msra.mxu0 %v1929_v20  ;;  %v1918_v37 = vld [vmem:[%s9779_s3 + $0x2f0] sm:$0xff]  ;;  %v1446_v1 = vld [vmem:[#allocation2 + $0x68] sm:$0xff]  ;;  %v9983_v8 = vmax.f32 %v7186_v14, 0.0  ;;  %v9984_v14 = vmax.f32 %v7193_v21, 0.0 }
 0x1b8   :  { %1243 = vst [vmem:[#allocation2 + $0x319] sm:$0xff] %v1101_v23  ;;  %1244 = vst [vmem:[#allocation2 + $0x321] sm:$0xff] %v1102_v56  ;;  %2438 = vmatmul.mubr.f32.gmra.mxu0 %v1379_v28  ;;  %2067 = vmatprep.mubr.f32.mxu1 %v9977_v16  ;;  %v1925_v50 = vld [vmem:[%s9779_s3 + $0x328] sm:$0xff]  ;;  %v1924_v48 = vld [vmem:[%s9779_s3 + $0x320] sm:$0xff]  ;;  %v9985_v21 = vmax.f32 %v7197_v17, 0.0  ;;  %v9986_v17 = vmax.f32 %v7201_v30, 0.0 }
 0x1b9   :  { %1246 = vst [vmem:[#allocation2 + $0x339] sm:$0xff] %v1104_v38  ;;  %2442 = vmatprep.mubr.f32.mxu0 %v1444_v62  ;;  %3137 = vmatprep.subr.mxu0 %v6820_v47  ;;  %v1447_v55 = vld [vmem:[#allocation2 + $0x78] sm:$0xff]  ;;  %v1917_v15 = vld [vmem:[%s9779_s3 + $0x2e8] sm:$0xff]  ;;  %v1448_v31 = vld [vmem:[#allocation2 + $0x80] sm:$0xff]  ;;  %v9987_v16 = vmax.f32 %v7205_v25, 0.0  ;;  %v9988_v25 = vmax.f32 %v7209_v39, 0.0 }
 0x1ba   :  { %3138 = vmatpush1.msra.mxu0 %v1928_v6  ;;  %2773 = vmatpush2.msra.mxu1 %v1918_v37  ;;  %v1383_v35 = vld [vmem:[#allocation2 + $0x62] sm:$0xff]  ;;  %v1923_v44 = vld [vmem:[%s9779_s3 + $0x318] sm:$0xff]  ;;  %v1384_v11 = vld [vmem:[#allocation2 + $0x6a] sm:$0xff] }
 0x1bb   :  { %2068 = vmatmul.mubr.f32.gmra.mxu1 %v1444_v62  ;;  %3139 = vmatprep.subr.mxu0 %v6820_v47  ;;  %v1916_v13 = vld [vmem:[%s9779_s3 + $0x2e0] sm:$0xff]  ;;  %v1922_v0 = vld [vmem:[%s9779_s3 + $0x310] sm:$0xff]  ;;  %v1915_v23 = vld [vmem:[%s9779_s3 + $0x2d8] sm:$0xff] }
 0x1bc   :  { %2443 = vmatmul.mubr.f32.gmra.mxu0 %v1380_v9  ;;  %2072 = vmatprep.mubr.f32.mxu1 %v9978_v32  ;;  %v1449_v58 = vld [vmem:[#allocation2 + $0x90] sm:$0xff]  ;;  %v1385_v53 = vld [vmem:[#allocation2 + $0x7a] sm:$0xff]  ;;  %v1921_v42 = vld [vmem:[%s9779_s3 + $0x308] sm:$0xff] }
 0x1bd   :  { %2447 = vmatprep.mubr.f32.mxu0 %v1445_v45  ;;  %3140 = vmatpush1.msra.mxu0 %v1927_v49  ;;  %v1450_v27 = vld [vmem:[#allocation2 + $0x98] sm:$0xff]  ;;  %v1914_v56 = vld [vmem:[%s9779_s3 + $0x2d0] sm:$0xff]  ;;  %v1386_v38 = vld [vmem:[#allocation2 + $0x82] sm:$0xff] }
 0x1be   :  { %3141 = vmatprep.subr.mxu0 %v6820_v47  ;;  %2774 = vmatprep.subr.mxu1 %v6820_v47  ;;  %v1920_v63 = vld [vmem:[%s9779_s3 + $0x300] sm:$0xff]  ;;  %v1451_v59 = vld [vmem:[#allocation2 + $0xa8] sm:$0xff]  ;;  %v1387_v60 = vld [vmem:[#allocation2 + $0x92] sm:$0xff] }
 0x1bf   :  { %2073 = vmatmul.mubr.f32.gmra.mxu1 %v1445_v45  ;;  %3142 = vmatpush1.msra.mxu0 %v1926_v36  ;;  %v1913_v4 = vld [vmem:[%s9779_s3 + $0x2c8] sm:$0xff]  ;;  %v1951_v41 = vld [vmem:[%s9779_s3 + $0x3f8] sm:$0xff]  ;;  %v1452_v40 = vld [vmem:[#allocation2 + $0xb0] sm:$0xff]  ;;  %v9989_v45 = vmax.f32 %v7213_v34, 0.0  ;;  %v9990_v34 = vmax.f32 %v7217_v43, 0.0 }
 0x1c0   :  { %2448 = vmatmul.mubr.f32.gmra.mxu0 %v1381_v26  ;;  %2077 = vmatprep.mubr.f32.mxu1 %v9979_v5  ;;  %v1912_v18 = vld [vmem:[%s9779_s3 + $0x2c0] sm:$0xff]  ;;  %v1950_v24 = vld [vmem:[%s9779_s3 + $0x3f0] sm:$0xff]  ;;  %v1454_v62 = vld [vmem:[#allocation2 + $0xc8] sm:$0xff] }
 0x1c1   :  { %2452 = vmatprep.mubr.f32.mxu0 %v1446_v1  ;;  %3143 = vmatprep.subr.mxu0 %v6820_v47  ;;  %v1388_v7 = vld [vmem:[#allocation2 + $0x9a] sm:$0xff]  ;;  %v1389_v28 = vld [vmem:[#allocation2 + $0xaa] sm:$0xff]  ;;  %v1391_v32 = vld [vmem:[#allocation2 + $0xc2] sm:$0xff] }
 0x1c2   :  { %3144 = vmatpush1.msra.mxu0 %v1925_v50  ;;  %2775 = vmatpush2.msra.mxu1 %v1917_v15  ;;  %v1453_v20 = vld [vmem:[#allocation2 + $0xc0] sm:$0xff]  ;;  %v1911_v30 = vld [vmem:[%s9779_s3 + $0x2b8] sm:$0xff]  ;;  %v1949_v6 = vld [vmem:[%s9779_s3 + $0x3e8] sm:$0xff] }
 0x1c3   :  { %2078 = vmatmul.mubr.f32.gmra.mxu1 %v1446_v1  ;;  %3145 = vmatprep.subr.mxu0 %v6820_v47  ;;  %v7659_v9 = vld [vmem:[#allocation2] sm:$0xff]  ;;  %v1455_v49 = vld [vmem:[#allocation2 + $0xd8] sm:$0xff]  ;;  %v1910_v26 = vld [vmem:[%s9779_s3 + $0x2b0] sm:$0xff] }
 0x1c4   :  { %2453 = vmatmul.mubr.f32.gmra.mxu0 %v1382_v3  ;;  %2082 = vmatprep.mubr.f32.mxu1 %v9980_v51  ;;  %v1456_v36 = vld [vmem:[#allocation2 + $0xe0] sm:$0xff]  ;;  %v1392_v39 = vld [vmem:[#allocation2 + $0xca] sm:$0xff]  ;;  %v9991_v51 = vmax.f32 %v7221_v57, 0.0  ;;  %v9992_v57 = vmax.f32 %v7226_v52, 0.0 }
 0x1c5   :  { %2457 = vmatprep.mubr.f32.mxu0 %v1447_v55  ;;  %3146 = vmatpush1.msra.mxu0 %v1924_v48  ;;  %v1948_v37 = vld [vmem:[%s9779_s3 + $0x3e0] sm:$0xff]  ;;  %v1457_v1 = vld [vmem:[#allocation2 + $0xf0] sm:$0xff]  ;;  %v1909_v43 = vld [vmem:[%s9779_s3 + $0x2a8] sm:$0xff] }
 0x1c6   :  { %3147 = vmatprep.subr.mxu0 %v6820_v47  ;;  %2776 = vmatprep.subr.mxu1 %v6820_v47  ;;  %v1393_v3 = vld [vmem:[#allocation2 + $0xda] sm:$0xff]  ;;  %v1946_v52 = vld [vmem:[%s9779_s3 + $0x3d0] sm:$0xff] }
 0x1c7   :  { %2083 = vmatmul.mubr.f32.gmra.mxu1 %v1447_v55  ;;  %3148 = vmatpush1.msra.mxu0 %v1923_v44  ;;  %v1458_v55 = vld [vmem:[#allocation2 + $0xf8] sm:$0xff]  ;;  %v1394_v44 = vld [vmem:[#allocation2 + $0xe2] sm:$0xff] }
 0x1c8   :  { %2458 = vmatmul.mubr.f32.gmra.mxu0 %v1383_v35  ;;  %2087 = vmatprep.mubr.f32.mxu1 %v9981_v33  ;;  %v1947_v35 = vld [vmem:[%s9779_s3 + $0x3d8] sm:$0xff]  ;;  %v1459_v33 = vld [vmem:[#allocation2 + $0x108] sm:$0xff] }
 0x1c9   :  { %2462 = vmatprep.mubr.f32.mxu0 %v1448_v31  ;;  %3149 = vmatprep.subr.mxu0 %v6820_v47 }
 0x1ca   :  { %2777 = vmatpush2.msra.mxu1 %v1916_v13  ;;  %3150 = vmatpush1.msra.mxu0 %v1922_v0  ;;  %v9993_v13 = vmax.f32 %v7230_v2, 0.0  ;;  %v1908_v0 = vld [vmem:[%s9779_s3 + $0x2a0] sm:$0xff]  ;;  %v9994_v2 = vmax.f32 %v7234_v10, 0.0  ;;  %v1945_v10 = vld [vmem:[%s9779_s3 + $0x3c8] sm:$0xff] }
 0x1cb   :  { %2088 = vmatmul.mubr.f32.gmra.mxu1 %v1448_v31  ;;  %2778 = vmatprep.subr.mxu1 %v6820_v47  ;;  %v1395_v31 = vld [vmem:[#allocation2 + $0xf2] sm:$0xff] }
 0x1cc   :  { %2463 = vmatmul.mubr.f32.gmra.mxu0 %v1384_v11  ;;  %2092 = vmatprep.mubr.f32.mxu1 %v9982_v19  ;;  %v1460_v11 = vld [vmem:[#allocation2 + $0x110] sm:$0xff]  ;;  %v1396_v19 = vld [vmem:[#allocation2 + $0xfa] sm:$0xff] }
 0x1cd   :  { %2467 = vmatprep.mubr.f32.mxu0 %v1449_v58  ;;  %3151 = vmatprep.subr.mxu0 %v6820_v47 }
 0x1ce   :  { %2779 = vmatpush2.msra.mxu1 %v1915_v23  ;;  %3152 = vmatpush1.msra.mxu0 %v1921_v42  ;;  %v1397_v23 = vld [vmem:[#allocation2 + $0x10a] sm:$0xff] }
 0x1cf   :  { %2093 = vmatmul.mubr.f32.gmra.mxu1 %v1449_v58  ;;  %2780 = vmatprep.subr.mxu1 %v6820_v47  ;;  %v1461_v58 = vld [vmem:[#allocation2 + $0x120] sm:$0xff]  ;;  %v1462_v42 = vld [vmem:[#allocation2 + $0x128] sm:$0xff] }
 0x1d0   :  { %2468 = vmatmul.mubr.f32.gmra.mxu0 %v1385_v53  ;;  %2097 = vmatprep.mubr.f32.mxu1 %v9983_v8  ;;  %v9995_v53 = vmax.f32 %v7238_v61, 0.0  ;;  %v1907_v8 = vld [vmem:[%s9779_s3 + $0x298] sm:$0xff]  ;;  %v9996_v61 = vmax.f32 %v7242_v12, 0.0  ;;  %v1944_v12 = vld [vmem:[%s9779_s3 + $0x3c0] sm:$0xff] }
 0x1d1   :  { %2472 = vmatprep.mubr.f32.mxu0 %v1450_v27  ;;  %3153 = vmatprep.subr.mxu0 %v6820_v47 }
 0x1d2   :  { %2781 = vmatpush2.msra.mxu1 %v1914_v56  ;;  %3154 = vmatpush1.msra.mxu0 %v1920_v63  ;;  %v1463_v56 = vld [vmem:[#allocation2 + $0x138] sm:$0xff]  ;;  %v9997_v63 = vmax.f32 %v7246_v54, 0.0  ;;  %v9998_v54 = vmax.f32 %v7250_v29, 0.0 }
 0x1d3   :  { %2098 = vmatmul.mubr.f32.gmra.mxu1 %v1450_v27  ;;  %2782 = vmatprep.subr.mxu1 %v6820_v47  ;;  %v1398_v27 = vld [vmem:[#allocation2 + $0x112] sm:$0xff] }
 0x1d4   :  { %2473 = vmatmul.mubr.f32.gmra.mxu0 %v1386_v38  ;;  %2102 = vmatprep.mubr.f32.mxu1 %v9984_v14  ;;  %v1399_v38 = vld [vmem:[#allocation2 + $0x122] sm:$0xff]  ;;  %v1943_v29 = vld [vmem:[%s9779_s3 + $0x3b8] sm:$0xff] }
 0x1d5   :  { %2477 = vmatprep.mubr.f32.mxu0 %v1451_v59  ;;  %3155 = vmatprep.subr.mxu0 %v6820_v47  ;;  %v1464_v14 = vld [vmem:[#allocation2 + $0x140] sm:$0xff] }
 0x1d6   :  { %2783 = vmatpush2.msra.mxu1 %v1913_v4  ;;  %3156 = vmatpush2.msra.mxu0 %v1951_v41  ;;  %v1400_v4 = vld [vmem:[#allocation2 + $0x12a] sm:$0xff]  ;;  %v1401_v41 = vld [vmem:[#allocation2 + $0x13a] sm:$0xff] }
 0x1d7   :  { %2103 = vmatmul.mubr.f32.gmra.mxu1 %v1451_v59  ;;  %2784 = vmatprep.subr.mxu1 %v6820_v47  ;;  %v1906_v59 = vld [vmem:[%s9779_s3 + $0x290] sm:$0xff] }
 0x1d8   :  { %2478 = vmatmul.mubr.f32.gmra.mxu0 %v1387_v60  ;;  %2107 = vmatprep.mubr.f32.mxu1 %v9985_v21  ;;  %v1465_v60 = vld [vmem:[#allocation2 + $0x150] sm:$0xff]  ;;  %v9999_v21 = vmax.f32 %v7254_v22, 0.0  ;;  %v10000_v22 = vmax.f32 %v7258_v46, 0.0 }
 0x1d9   :  { %2482 = vmatprep.mubr.f32.mxu0 %v1452_v40  ;;  %3157 = vmatprep.subr.mxu0 %v6820_v47  ;;  %v1942_v46 = vld [vmem:[%s9779_s3 + $0x3b0] sm:$0xff] }
 0x1da   :  { %2785 = vmatpush2.msra.mxu1 %v1912_v18  ;;  %3158 = vmatpush2.msra.mxu0 %v1950_v24  ;;  %v1905_v18 = vld [vmem:[%s9779_s3 + $0x288] sm:$0xff] }
 0x1db   :  { %2108 = vmatmul.mubr.f32.gmra.mxu1 %v1452_v40  ;;  %2786 = vmatprep.subr.mxu1 %v6820_v47  ;;  %v1466_v40 = vld [vmem:[#allocation2 + $0x158] sm:$0xff]  ;;  %v1467_v24 = vld [vmem:[#allocation2 + $0x168] sm:$0xff] }
 0x1dc   :  { %2483 = vmatmul.mubr.f32.gmra.mxu0 %v1388_v7  ;;  %2112 = vmatprep.mubr.f32.mxu1 %v9986_v17  ;;  %v1402_v7 = vld [vmem:[#allocation2 + $0x142] sm:$0xff]  ;;  %v1403_v17 = vld [vmem:[#allocation2 + $0x152] sm:$0xff] }
 0x1dd   :  { %2487 = vmatprep.mubr.f32.mxu0 %v1453_v20  ;;  %3159 = vmatprep.subr.mxu0 %v6820_v47  ;;  %v1390_v47 = vld [vmem:[#allocation2 + $0xb2] sm:$0xff] }
 0x1de   :  { %2787 = vmatpush2.msra.mxu1 %v1911_v30  ;;  %3160 = vmatpush2.msra.mxu0 %v1949_v6  ;;  %v1404_v30 = vld [vmem:[#allocation2 + $0x15a] sm:$0xff] }
 0x1df   :  { %2113 = vmatmul.mubr.f32.gmra.mxu1 %v1453_v20  ;;  %2788 = vmatprep.subr.mxu1 %v7659_v9  ;;  %v1342_v20 = vld [vmem:[#allocation2 + $0x171] sm:$0xff]  ;;  %v1469_v6 = vld [vmem:[#allocation2 + $0x180] sm:$0xff] }
 0x1e0   :  { %2488 = vmatmul.mubr.f32.gmra.mxu0 %v1389_v28  ;;  %2117 = vmatprep.mubr.f32.mxu1 %v9987_v16  ;;  %v1468_v28 = vld [vmem:[#allocation2 + $0x170] sm:$0xff] }
 0x1e1   :  { %2492 = vmatprep.mubr.f32.mxu0 %v1454_v62  ;;  %3161 = vmatprep.subr.mxu0 %v7659_v9  ;;  %v7673_v5 = vpop.f32.mrf.mxu1  ;;  %v1343_v16 = vld [vmem:[#allocation2 + $0x1b1] sm:$0xff] }
 0x1e2   :  { %2789 = vmatpush2.msra.mxu1 %v1910_v26  ;;  %3162 = vmatpush2.msra.mxu0 %v1948_v37  ;;  %v1939_v26 = vld [vmem:[%s9779_s3 + $0x398] sm:$0xff] }
 0x1e3   :  { %2118 = vmatmul.mubr.f32.gmra.mxu1 %v1454_v62  ;;  %2790 = vmatprep.subr.mxu1 %v7659_v9  ;;  %v2036_v50 = vpop.f32.mrf.mxu1  ;;  %v1904_v62 = vld [vmem:[%s9779_s3 + $0x280] sm:$0xff]  ;;  %v1406_v37 = vld [vmem:[#allocation2 + $0x172] sm:$0xff] }
 0x1e4   :  { %2493 = vmatmul.mubr.f32.gmra.mxu0 %v1390_v47  ;;  %2122 = vmatprep.mubr.f32.mxu1 %v9988_v25  ;;  %v1344_v47 = vld [vmem:[#allocation2 + $0x1b9] sm:$0xff]  ;;  %v1941_v25 = vld [vmem:[%s9779_s3 + $0x3a8] sm:$0xff] }
 0x1e5   :  { %2497 = vmatprep.mubr.f32.mxu0 %v1455_v49  ;;  %3163 = vmatprep.subr.mxu0 %v7659_v9  ;;  %v7679_v48 = vpop.f32.mrf.mxu1  ;;  %v1407_v50 = vld [vmem:[#allocation2 + $0x1b2] sm:$0xff] }
 0x1e6   :  { %2791 = vmatpush2.msra.mxu1 %v1909_v43  ;;  %3164 = vmatpush2.msra.mxu0 %v1947_v35  ;;  %v1408_v43 = vld [vmem:[#allocation2 + $0x1ba] sm:$0xff] }
 0x1e7   :  { %2123 = vmatmul.mubr.f32.gmra.mxu1 %v1455_v49  ;;  %v2041_v15 = vpop.f32.mrf.mxu1  ;;  %2792 = vmatprep.subr.mxu1 %v7659_v9  ;;  %v1940_v49 = vld [vmem:[%s9779_s3 + $0x3a0] sm:$0xff] }
 0x1e8   :  { %2498 = vmatmul.mubr.f32.gmra.mxu0 %v1391_v32  ;;  %2127 = vmatprep.mubr.f32.mxu1 %v9989_v45  ;;  %v1405_v32 = vld [vmem:[#allocation2 + $0x16a] sm:$0xff]  ;;  %v7759_v45 = vld [vmem:[%s9779_s3 + $0x478] sm:$0xff]  ;;  %v1936_v15 = vld [vmem:[%s9779_s3 + $0x380] sm:$0xff] }
 0x1e9   :  { %2502 = vmatprep.mubr.f32.mxu0 %v1456_v36  ;;  %3165 = vmatprep.subr.mxu0 %v7659_v9  ;;  %v1347_v35 = vld [vmem:[#allocation2 + $0x1e1] sm:$0xff] }
 0x1ea   :  { %2793 = vmatpush2.msra.mxu1 %v1908_v0  ;;  %3166 = vmatpush2.msra.mxu0 %v1946_v52  ;;  %v1411_v0 = vld [vmem:[#allocation2 + $0x1e2] sm:$0xff] }
 0x1eb   :  { %2128 = vmatmul.mubr.f32.gmra.mxu1 %v1456_v36  ;;  %2794 = vmatprep.subr.mxu1 %v7659_v9  ;;  %v1470_v36 = vld [vmem:[#allocation2 + $0x188] sm:$0xff] }
 0x1ec   :  { %2503 = vmatmul.mubr.f32.gmra.mxu0 %v1392_v39  ;;  %2132 = vmatprep.mubr.f32.mxu1 %v9990_v34  ;;  %v1345_v39 = vld [vmem:[#allocation2 + $0x1c9] sm:$0xff]  ;;  %v1350_v52 = vld [vmem:[#allocation2 + $0x201] sm:$0xff] }
 0x1ed   :  { %2507 = vmatprep.mubr.f32.mxu0 %v1457_v1  ;;  %3167 = vmatprep.subr.mxu0 %v7659_v9  ;;  %v1938_v34 = vld [vmem:[%s9779_s3 + $0x390] sm:$0xff] }
 0x1ee   :  { %2795 = vmatpush2.msra.mxu1 %v1907_v8  ;;  %3168 = vmatpush2.msra.mxu0 %v1945_v10  ;;  %v1478_v8 = vld [vmem:[#allocation2 + $0x218] sm:$0xff]  ;;  %v1414_v10 = vld [vmem:[#allocation2 + $0x202] sm:$0xff] }
 0x1ef   :  { %2133 = vmatmul.mubr.f32.gmra.mxu1 %v1457_v1  ;;  %2796 = vmatprep.subr.mxu1 %v7659_v9  ;;  %v1471_v1 = vld [vmem:[#allocation2 + $0x1c8] sm:$0xff] }
 0x1f0   :  { %2508 = vmatmul.mubr.f32.gmra.mxu0 %v1393_v3  ;;  %2137 = vmatprep.mubr.f32.mxu1 %v9991_v51  ;;  %v1937_v3 = vld [vmem:[%s9779_s3 + $0x388] sm:$0xff]  ;;  %v1346_v51 = vld [vmem:[#allocation2 + $0x1d1] sm:$0xff] }
 0x1f1   :  { %2512 = vmatprep.mubr.f32.mxu0 %v1458_v55  ;;  %3169 = vmatprep.subr.mxu0 %v7659_v9 }
 0x1f2   :  { %2797 = vmatpush2.msra.mxu1 %v1906_v59  ;;  %3170 = vmatpush2.msra.mxu0 %v1944_v12  ;;  %v1355_v59 = vld [vmem:[#allocation2 + $0x241] sm:$0xff] }
 0x1f3   :  { %2138 = vmatmul.mubr.f32.gmra.mxu1 %v1458_v55  ;;  %2798 = vmatprep.subr.mxu1 %v7659_v9  ;;  %v1472_v55 = vld [vmem:[#allocation2 + $0x1d0] sm:$0xff]  ;;  %v1481_v12 = vld [vmem:[#allocation2 + $0x240] sm:$0xff] }
 0x1f4   :  { %2513 = vmatmul.mubr.f32.gmra.mxu0 %v1394_v44  ;;  %2142 = vmatprep.mubr.f32.mxu1 %v9992_v57  ;;  %v1473_v44 = vld [vmem:[#allocation2 + $0x1e0] sm:$0xff]  ;;  %v1409_v57 = vld [vmem:[#allocation2 + $0x1ca] sm:$0xff] }
 0x1f5   :  { %2517 = vmatprep.mubr.f32.mxu0 %v1459_v33  ;;  %3171 = vmatprep.subr.mxu0 %v7659_v9 }
 0x1f6   :  { %2799 = vmatpush2.msra.mxu1 %v1905_v18  ;;  %3172 = vmatpush2.msra.mxu0 %v1943_v29  ;;  %v1483_v18 = vld [vmem:[#allocation2 + $0x258] sm:$0xff]  ;;  %v1419_v29 = vld [vmem:[#allocation2 + $0x242] sm:$0xff] }
 0x1f7   :  { %2143 = vmatmul.mubr.f32.gmra.mxu1 %v1459_v33  ;;  %2800 = vmatprep.subr.mxu1 %v7659_v9  ;;  %v1348_v33 = vld [vmem:[#allocation2 + $0x1e9] sm:$0xff] }
 0x1f8   :  { %2518 = vmatmul.mubr.f32.gmra.mxu0 %v1395_v31  ;;  %2147 = vmatprep.mubr.f32.mxu1 %v9993_v13  ;;  %v1474_v31 = vld [vmem:[#allocation2 + $0x1e8] sm:$0xff]  ;;  %v1410_v13 = vld [vmem:[#allocation2 + $0x1d2] sm:$0xff] }
 0x1f9   :  { %2522 = vmatprep.mubr.f32.mxu0 %v1460_v11  ;;  %3173 = vmatprep.subr.mxu0 %v7659_v9 }
 0x1fa   :  { %2801 = vmatpush2.msra.mxu1 %v1904_v62  ;;  %3174 = vmatpush2.msra.mxu0 %v1942_v46  ;;  %v1486_v62 = vld [vmem:[#allocation2 + $0x278] sm:$0xff]  ;;  %v1422_v46 = vld [vmem:[#allocation2 + $0x262] sm:$0xff] }
 0x1fb   :  { %2148 = vmatmul.mubr.f32.gmra.mxu1 %v1460_v11  ;;  %3175 = vmatprep.subr.mxu0 %v7659_v9  ;;  %v1349_v11 = vld [vmem:[#allocation2 + $0x1f9] sm:$0xff] }
 0x1fc   :  { %2523 = vmatmul.mubr.f32.gmra.mxu0 %v1396_v19  ;;  %2152 = vmatprep.mubr.f32.mxu1 %v9994_v2  ;;  %v1476_v19 = vld [vmem:[#allocation2 + $0x200] sm:$0xff]  ;;  %v1412_v2 = vld [vmem:[#allocation2 + $0x1ea] sm:$0xff] }
 0x1fd   :  { %2527 = vmatprep.mubr.f32.mxu0 %v1461_v58  ;;  %3176 = vmatpush2.msra.mxu0 %v1941_v25  ;;  %v1423_v25 = vld [vmem:[#allocation2 + $0x272] sm:$0xff] }
 0x1fe   :  { %3177 = vmatprep.subr.mxu0 %v7659_v9  ;;  %5558 = vmatprep.subr.mxu1 %v7759_v45 }
 0x1ff   :  { %2153 = vmatmul.mubr.f32.gmra.mxu1 %v1461_v58  ;;  %3178 = vmatpush2.msra.mxu0 %v1940_v49  ;;  %v1351_v58 = vld [vmem:[#allocation2 + $0x211] sm:$0xff] }
 0x200   :  { %2528 = vmatmul.mubr.f32.gmra.mxu0 %v1397_v23  ;;  %2157 = vmatprep.mubr.f32.mxu1 %v9995_v53  ;;  %v1477_v23 = vld [vmem:[#allocation2 + $0x210] sm:$0xff]  ;;  %v1413_v53 = vld [vmem:[#allocation2 + $0x1fa] sm:$0xff] }
 0x201   :  { %2532 = vmatprep.mubr.f32.mxu0 %v1462_v42  ;;  %3179 = vmatprep.subr.mxu0 %v7659_v9  ;;  %v1362_v49 = vld [vmem:[#allocation2 + $0x291] sm:$0xff] }
 0x202   :  { %3180 = vmatpush2.msra.mxu0 %v1939_v26 }
 0x203   :  { %2158 = vmatmul.mubr.f32.gmra.mxu1 %v1462_v42  ;;  %3181 = vmatprep.subr.mxu0 %v7659_v9  ;;  %v1352_v42 = vld [vmem:[#allocation2 + $0x219] sm:$0xff] }
 0x204   :  { %2533 = vmatmul.mubr.f32.gmra.mxu0 %v1398_v27  ;;  %2162 = vmatprep.mubr.f32.mxu1 %v9996_v61  ;;  %v1353_v27 = vld [vmem:[#allocation2 + $0x229] sm:$0xff] }
 0x205   :  { %2537 = vmatprep.mubr.f32.mxu0 %v1463_v56  ;;  %3182 = vmatpush2.msra.mxu0 %v1938_v34  ;;  %v1479_v61 = vld [vmem:[#allocation2 + $0x228] sm:$0xff]  ;;  %v1424_v34 = vld [vmem:[#allocation2 + $0x27a] sm:$0xff] }
 0x206   :  { %3183 = vmatprep.subr.mxu0 %v7659_v9 }
 0x207   :  { %2163 = vmatmul.mubr.f32.gmra.mxu1 %v1463_v56  ;;  %3184 = vmatpush2.msra.mxu0 %v1937_v3  ;;  %v1415_v56 = vld [vmem:[#allocation2 + $0x212] sm:$0xff]  ;;  %v1489_v3 = vld [vmem:[#allocation2 + $0x2a0] sm:$0xff] }
 0x208   :  { %2538 = vmatmul.mubr.f32.gmra.mxu0 %v1399_v38  ;;  %2167 = vmatprep.mubr.f32.mxu1 %v9997_v63  ;;  %v1354_v38 = vld [vmem:[#allocation2 + $0x231] sm:$0xff] }
 0x209   :  { %2542 = vmatprep.mubr.f32.mxu0 %v1464_v14  ;;  %3185 = vmatprep.subr.mxu0 %v7659_v9  ;;  %v1480_v63 = vld [vmem:[#allocation2 + $0x230] sm:$0xff] }
 0x20a   :  { %3186 = vmatpush2.msra.mxu0 %v1936_v15 }
 0x20b   :  { %2168 = vmatmul.mubr.f32.gmra.mxu1 %v1464_v14  ;;  %v1416_v14 = vld [vmem:[#allocation2 + $0x21a] sm:$0xff] }
 0x20c   :  { %2543 = vmatmul.mubr.f32.gmra.mxu0 %v1400_v4  ;;  %2172 = vmatprep.mubr.f32.mxu1 %v9998_v54  ;;  %v7782_v4 = vld [vmem:[%s9784_s8] sm:$0xf]  ;;  %v1417_v54 = vld [vmem:[#allocation2 + $0x22a] sm:$0xff] }
 0x20d   :  { %2547 = vmatprep.mubr.f32.mxu0 %v1465_v60  ;;  %5686 = vmatprep.subr.msk.mxu0 %vm298_vm0, %v7782_v4 }
 0x20f   :  { %2173 = vmatmul.mubr.f32.gmra.mxu1 %v1465_v60  ;;  %v1356_v60 = vld [vmem:[#allocation2 + $0x249] sm:$0xff] }
 0x210   :  { %2548 = vmatmul.mubr.f32.gmra.mxu0 %v1401_v41  ;;  %2177 = vmatprep.mubr.f32.mxu1 %v9999_v21  ;;  %v1482_v41 = vld [vmem:[#allocation2 + $0x248] sm:$0xff]  ;;  %v1418_v21 = vld [vmem:[#allocation2 + $0x232] sm:$0xff] }
 0x211   :  { %2552 = vmatprep.mubr.f32.mxu0 %v1466_v40 }
 0x213   :  { %2178 = vmatmul.mubr.f32.gmra.mxu1 %v1466_v40  ;;  %v1357_v40 = vld [vmem:[#allocation2 + $0x259] sm:$0xff] }
 0x214   :  { %2553 = vmatmul.mubr.f32.gmra.mxu0 %v1402_v7  ;;  %2182 = vmatprep.mubr.f32.mxu1 %v10000_v22  ;;  %v1358_v7 = vld [vmem:[#allocation2 + $0x261] sm:$0xff] }
 0x215   :  { %2557 = vmatprep.mubr.f32.mxu0 %v1467_v24  ;;  %v1484_v22 = vld [vmem:[#allocation2 + $0x260] sm:$0xff] }
 0x217   :  { %2183 = vmatmul.mubr.f32.gmra.mxu1 %v1467_v24  ;;  %v1420_v24 = vld [vmem:[#allocation2 + $0x24a] sm:$0xff] }
 0x218   :  { %2558 = vmatmul.mubr.f32.gmra.mxu0 %v1403_v17  ;;  %2187 = vmatprep.mubr.f32.mxu1 %v1342_v20  ;;  %v1359_v17 = vld [vmem:[#allocation2 + $0x271] sm:$0xff] }
 0x219   :  { %2562 = vmatprep.mubr.f32.mxu0 %v1468_v28  ;;  %v1485_v20 = vld [vmem:[#allocation2 + $0x270] sm:$0xff] }
 0x21b   :  { %2188 = vmatmul.mubr.f32.gmra.mxu1 %v1468_v28  ;;  %v1421_v28 = vld [vmem:[#allocation2 + $0x25a] sm:$0xff] }
 0x21c   :  { %2563 = vmatmul.mubr.f32.gmra.mxu0 %v1404_v30  ;;  %2192 = vmatprep.mubr.f32.mxu1 %v1343_v16  ;;  %v1360_v16 = vld [vmem:[#allocation2 + $0x279] sm:$0xff]  ;;  %v1361_v30 = vld [vmem:[#allocation2 + $0x289] sm:$0xff] }
 0x21d   :  { %2567 = vmatprep.mubr.f32.mxu0 %v1469_v6  ;;  %v1487_v6 = vld [vmem:[#allocation2 + $0x288] sm:$0xff] }
 0x21f   :  { %2193 = vmatmul.mubr.f32.gmra.mxu1 %v7659_v9 }
 0x220   :  { %2568 = vmatmul.mubr.f32.gmra.mxu0 %v1405_v32  ;;  %2197 = vmatprep.mubr.f32.mxu1 %v1344_v47 }
 0x221   :  { %2572 = vmatprep.mubr.f32.mxu0 %v1470_v36  ;;  %v1488_v36 = vld [vmem:[#allocation2 + $0x290] sm:$0xff] }
 0x223   :  { %2198 = vmatmul.mubr.f32.gmra.mxu1 %v7659_v9  ;;  %v1475_v9 = vld [vmem:[#allocation2 + $0x1f8] sm:$0xff] }
 0x224   :  { %2573 = vmatmul.mubr.f32.gmra.mxu0 %v1406_v37  ;;  %2202 = vmatprep.mubr.f32.mxu1 %v1345_v39 }
 0x225   :  { %2577 = vmatprep.mubr.f32.mxu0 %v1471_v1 }
 0x227   :  { %2203 = vmatmul.mubr.f32.gmra.mxu1 %v1471_v1  ;;  %v1363_v1 = vld [vmem:[#allocation2 + $0x2a1] sm:$0xff] }
 0x228   :  { %2578 = vmatmul.mubr.f32.gmra.mxu0 %v1407_v50  ;;  %2207 = vmatprep.mubr.f32.mxu1 %v1346_v51 }
 0x229   :  { %2582 = vmatprep.mubr.f32.mxu0 %v1472_v55 }
 0x22b   :  { %2208 = vmatmul.mubr.f32.gmra.mxu1 %v1472_v55 }
 0x22c   :  { %2583 = vmatmul.mubr.f32.gmra.mxu0 %v1408_v43  ;;  %2212 = vmatprep.mubr.f32.mxu1 %v1347_v35  ;;  %v1425_v43 = vld [vmem:[#allocation2 + $0x28a] sm:$0xff] }
 0x22d   :  { %2587 = vmatprep.mubr.f32.mxu0 %v1473_v44  ;;  %v1364_v35 = vld [vmem:[#allocation2 + $0x2a9] sm:$0xff] }
 0x22f   :  { %2213 = vmatmul.mubr.f32.gmra.mxu1 %v1473_v44 }
 0x230   :  { %2588 = vmatmul.mubr.f32.gmra.mxu0 %v1409_v57  ;;  %2217 = vmatprep.mubr.f32.mxu1 %v1348_v33  ;;  %v1490_v57 = vld [vmem:[#allocation2 + $0x2a8] sm:$0xff] }
 0x231   :  { %2592 = vmatprep.mubr.f32.mxu0 %v1474_v31 }
 0x233   :  { %2218 = vmatmul.mubr.f32.gmra.mxu1 %v1474_v31 }
 0x234   :  { %2593 = vmatmul.mubr.f32.gmra.mxu0 %v1410_v13  ;;  %2222 = vmatprep.mubr.f32.mxu1 %v1349_v11 }
 0x235   :  { %2597 = vmatprep.mubr.f32.mxu0 %v1475_v9 }
 0x237   :  { %2223 = vmatmul.mubr.f32.gmra.mxu1 %v1475_v9  ;;  %v1426_v9 = vld [vmem:[#allocation2 + $0x292] sm:$0xff] }
 0x238   :  { %2598 = vmatmul.mubr.f32.gmra.mxu0 %v1411_v0  ;;  %2227 = vmatprep.mubr.f32.mxu1 %v1350_v52  ;;  %v1365_v0 = vld [vmem:[#allocation2 + $0x2b9] sm:$0xff] }
 0x239   :  { %2602 = vmatprep.mubr.f32.mxu0 %v1476_v19 }
 0x23b   :  { %2228 = vmatmul.mubr.f32.gmra.mxu1 %v1476_v19  ;;  %v1491_v19 = vld [vmem:[#allocation2 + $0x2b8] sm:$0xff] }
 0x23c   :  { %2603 = vmatmul.mubr.f32.gmra.mxu0 %v1412_v2  ;;  %2232 = vmatprep.mubr.f32.mxu1 %v1351_v58 }
 0x23d   :  { %2607 = vmatprep.mubr.f32.mxu0 %v1477_v23 }
 0x23f   :  { %2233 = vmatmul.mubr.f32.gmra.mxu1 %v1477_v23 }
 0x240   :  { %2608 = vmatmul.mubr.f32.gmra.mxu0 %v1413_v53  ;;  %2237 = vmatprep.mubr.f32.mxu1 %v1352_v42  ;;  %v1427_v42 = vld [vmem:[#allocation2 + $0x2a2] sm:$0xff] }
 0x241   :  { %2612 = vmatprep.mubr.f32.mxu0 %v1478_v8 }
 0x243   :  { %2238 = vmatmul.mubr.f32.gmra.mxu1 %v1478_v8  ;;  %v1366_v8 = vld [vmem:[#allocation2 + $0x2c1] sm:$0xff] }
 0x244   :  { %2613 = vmatmul.mubr.f32.gmra.mxu0 %v1414_v10  ;;  %2242 = vmatprep.mubr.f32.mxu1 %v1353_v27  ;;  %v1492_v27 = vld [vmem:[#allocation2 + $0x2c0] sm:$0xff] }
 0x245   :  { %2617 = vmatprep.mubr.f32.mxu0 %v1479_v61 }
 0x247   :  { %2243 = vmatmul.mubr.f32.gmra.mxu1 %v1479_v61 }
 0x248   :  { %2618 = vmatmul.mubr.f32.gmra.mxu0 %v1415_v56  ;;  %2247 = vmatprep.mubr.f32.mxu1 %v1354_v38 }
 0x249   :  { %2622 = vmatprep.mubr.f32.mxu0 %v1480_v63 }
 0x24b   :  { %2248 = vmatmul.mubr.f32.gmra.mxu1 %v1480_v63 }
 0x24c   :  { %2623 = vmatmul.mubr.f32.gmra.mxu0 %v1416_v14  ;;  %2252 = vmatprep.mubr.f32.mxu1 %v1355_v59  ;;  %v1428_v14 = vld [vmem:[#allocation2 + $0x2aa] sm:$0xff] }
 0x24d   :  { %2627 = vmatprep.mubr.f32.mxu0 %v1481_v12  ;;  %v1367_v59 = vld [vmem:[#allocation2 + $0x2d1] sm:$0xff] }
 0x24f   :  { %2253 = vmatmul.mubr.f32.gmra.mxu1 %v1481_v12 }
 0x250   :  { %2628 = vmatmul.mubr.f32.gmra.mxu0 %v1417_v54  ;;  %2257 = vmatprep.mubr.f32.mxu1 %v1356_v60  ;;  %v1493_v54 = vld [vmem:[#allocation2 + $0x2d0] sm:$0xff] }
 0x251   :  { %2632 = vmatprep.mubr.f32.mxu0 %v1482_v41 }
 0x253   :  { %2258 = vmatmul.mubr.f32.gmra.mxu1 %v1482_v41 }
 0x254   :  { %2633 = vmatmul.mubr.f32.gmra.mxu0 %v1418_v21  ;;  %2262 = vmatprep.mubr.f32.mxu1 %v1357_v40 }
 0x255   :  { %2637 = vmatprep.mubr.f32.mxu0 %v1483_v18 }
 0x257   :  { %2263 = vmatmul.mubr.f32.gmra.mxu1 %v1483_v18  ;;  %v1429_v18 = vld [vmem:[#allocation2 + $0x2ba] sm:$0xff] }
 0x258   :  { %2638 = vmatmul.mubr.f32.gmra.mxu0 %v1419_v29  ;;  %2267 = vmatprep.mubr.f32.mxu1 %v1358_v7  ;;  %v1368_v29 = vld [vmem:[#allocation2 + $0x2d9] sm:$0xff] }
 0x259   :  { %2642 = vmatprep.mubr.f32.mxu0 %v1484_v22 }
 0x25b   :  { %2268 = vmatmul.mubr.f32.gmra.mxu1 %v1484_v22  ;;  %v1494_v22 = vld [vmem:[#allocation2 + $0x2d8] sm:$0xff] }
 0x25c   :  { %2643 = vmatmul.mubr.f32.gmra.mxu0 %v1420_v24  ;;  %2272 = vmatprep.mubr.f32.mxu1 %v1359_v17 }
 0x25d   :  { %2647 = vmatprep.mubr.f32.mxu0 %v1485_v20 }
 0x25f   :  { %2273 = vmatmul.mubr.f32.gmra.mxu1 %v1485_v20 }
 0x260   :  { %2648 = vmatmul.mubr.f32.gmra.mxu0 %v1421_v28  ;;  %2277 = vmatprep.mubr.f32.mxu1 %v1360_v16  ;;  %v1430_v16 = vld [vmem:[#allocation2 + $0x2c2] sm:$0xff] }
 0x261   :  { %2652 = vmatprep.mubr.f32.mxu0 %v1486_v62 }
 0x263   :  { %2278 = vmatmul.mubr.f32.gmra.mxu1 %v1486_v62  ;;  %v1369_v62 = vld [vmem:[#allocation2 + $0x2e9] sm:$0xff] }
 0x264   :  { %2653 = vmatmul.mubr.f32.gmra.mxu0 %v1422_v46  ;;  %2282 = vmatprep.mubr.f32.mxu1 %v1361_v30  ;;  %v1495_v30 = vld [vmem:[#allocation2 + $0x2e8] sm:$0xff] }
 0x265   :  { %2657 = vmatprep.mubr.f32.mxu0 %v1487_v6 }
 0x266   :  { %v2044_v47 = vpop.f32.mrf.mxu1 }
 0x267   :  { %2283 = vmatmul.mubr.f32.gmra.mxu1 %v1487_v6  ;;  %v7786_v32 = vpop.f32.mrf.mxu0 }
 0x268   :  { %2658 = vmatmul.mubr.f32.gmra.mxu0 %v1423_v25  ;;  %2287 = vmatprep.mubr.f32.mxu1 %v1362_v49  ;;  %v2046_v26 = vpop.f32.mrf.mxu1 }
 0x269   :  { %2662 = vmatprep.mubr.f32.mxu0 %v1488_v36  ;;  %v2421_v37 = vpop.f32.mrf.mxu0  ;;  %v1370_v26 = vld [vmem:[#allocation2 + $0x2f1] sm:$0xff] }
 0x26a   :  { %v2049_v39 = vpop.f32.mrf.mxu1 }
 0x26b   :  { %2288 = vmatmul.mubr.f32.gmra.mxu1 %v1488_v36  ;;  %v7788_v50 = vpop.f32.mrf.mxu0  ;;  %v1431_v36 = vld [vmem:[#allocation2 + $0x2d2] sm:$0xff] }
 0x26c   :  { %2663 = vmatmul.mubr.f32.gmra.mxu0 %v1424_v34  ;;  %2292 = vmatprep.mubr.f32.mxu1 %v1363_v1  ;;  %v2051_v51 = vpop.f32.mrf.mxu1 }
 0x26d   :  { %2667 = vmatprep.mubr.f32.mxu0 %v1489_v3  ;;  %v2426_v55 = vpop.f32.mrf.mxu0 }
 0x26e   :  { %v1432_v55 = vld [vmem:[#allocation2 + $0x2da] sm:$0xff] }
 0x26f   :  { %v2054_v15 = vpop.f32.mrf.mxu1  ;;  %2293 = vmatmul.mubr.f32.gmra.mxu1 %v1489_v3 }
 0x270   :  { %v2429_v44 = vpop.f32.mrf.mxu0  ;;  %2668 = vmatmul.mubr.f32.gmra.mxu0 %v1425_v43  ;;  %2297 = vmatprep.mubr.f32.mxu1 %v1364_v35  ;;  %v1497_v35 = vld [vmem:[#allocation2 + $0x300] sm:$0xff] }
 0x271   :  { %v7790_v33 = vadd.f32 %v2429_v44, %v2044_v47  ;;  %2672 = vmatprep.mubr.f32.mxu0 %v1490_v57  ;;  %v2056_v31 = vpop.f32.mrf.mxu1 }
 0x272   :  { %v2431_v13 = vpop.f32.mrf.mxu0 }
 0x273   :  { %v2059_v11 = vpop.f32.mrf.mxu1  ;;  %2298 = vmatmul.mubr.f32.gmra.mxu1 %v1490_v57 }
 0x274   :  { %v2434_v52 = vpop.f32.mrf.mxu0  ;;  %2673 = vmatmul.mubr.f32.gmra.mxu0 %v1426_v9  ;;  %2302 = vmatprep.mubr.f32.mxu1 %v1365_v0  ;;  %v1372_v9 = vld [vmem:[#allocation2 + $0x309] sm:$0xff] }
 0x275   :  { %v7792_v2 = vadd.f32 %v2434_v52, %v2049_v39  ;;  %2677 = vmatprep.mubr.f32.mxu0 %v1491_v19  ;;  %v2061_v58 = vpop.f32.mrf.mxu1  ;;  %v1496_v39 = vld [vmem:[#allocation2 + $0x2f0] sm:$0xff]  ;;  %v1498_v52 = vld [vmem:[#allocation2 + $0x308] sm:$0xff] }
 0x276   :  { %v2436_v23 = vpop.f32.mrf.mxu0 }
 0x277   :  { %v2064_v53 = vpop.f32.mrf.mxu1  ;;  %2303 = vmatmul.mubr.f32.gmra.mxu1 %v1491_v19 }
 0x278   :  { %v2439_v10 = vpop.f32.mrf.mxu0  ;;  %2678 = vmatmul.mubr.f32.gmra.mxu0 %v1427_v42  ;;  %2307 = vmatprep.mubr.f32.mxu1 %v1366_v8  ;;  %v1434_v42 = vld [vmem:[#allocation2 + $0x2f2] sm:$0xff] }
 0x279   :  { %v7794_v61 = vadd.f32 %v2439_v10, %v2054_v15  ;;  %2682 = vmatprep.mubr.f32.mxu0 %v1492_v27  ;;  %v2066_v56 = vpop.f32.mrf.mxu1  ;;  %v1371_v15 = vld [vmem:[#allocation2 + $0x301] sm:$0xff]  ;;  %v1373_v8 = vld [vmem:[#allocation2 + $0x319] sm:$0xff] }
 0x27a   :  { %v2441_v38 = vpop.f32.mrf.mxu0 }
 0x27b   :  { %v2069_v63 = vpop.f32.mrf.mxu1  ;;  %2308 = vmatmul.mubr.f32.gmra.mxu1 %v1492_v27  ;;  %v1499_v27 = vld [vmem:[#allocation2 + $0x318] sm:$0xff] }
 0x27c   :  { %v2444_v12 = vpop.f32.mrf.mxu0  ;;  %2683 = vmatmul.mubr.f32.gmra.mxu0 %v1428_v14  ;;  %2312 = vmatprep.mubr.f32.mxu1 %v1367_v59  ;;  %v1435_v59 = vld [vmem:[#allocation2 + $0x302] sm:$0xff] }
 0x27d   :  { %v7796_v60 = vadd.f32 %v2444_v12, %v2059_v11  ;;  %2687 = vmatprep.mubr.f32.mxu0 %v1493_v54  ;;  %v2071_v41 = vpop.f32.mrf.mxu1  ;;  %v1433_v11 = vld [vmem:[#allocation2 + $0x2ea] sm:$0xff]  ;;  %v1374_v12 = vld [vmem:[#allocation2 + $0x321] sm:$0xff] }
 0x27e   :  { %v2446_v21 = vpop.f32.mrf.mxu0  ;;  %v1500_v41 = vld [vmem:[#allocation2 + $0x320] sm:$0xff] }
 0x27f   :  { %v2074_v40 = vpop.f32.mrf.mxu1  ;;  %2313 = vmatmul.mubr.f32.gmra.mxu1 %v1493_v54 }
 0x280   :  { %v2449_v7 = vpop.f32.mrf.mxu0  ;;  %2688 = vmatmul.mubr.f32.gmra.mxu0 %v1429_v18  ;;  %2317 = vmatprep.mubr.f32.mxu1 %v1368_v29 }
 0x281   :  { %v7798_v24 = vadd.f32 %v2449_v7, %v2064_v53  ;;  %2692 = vmatprep.mubr.f32.mxu0 %v1494_v22  ;;  %v2076_v17 = vpop.f32.mrf.mxu1  ;;  %v1436_v7 = vld [vmem:[#allocation2 + $0x30a] sm:$0xff] }
 0x282   :  { %v2451_v20 = vpop.f32.mrf.mxu0 }
 0x283   :  { %v2079_v28 = vpop.f32.mrf.mxu1  ;;  %2318 = vmatmul.mubr.f32.gmra.mxu1 %v1494_v22  ;;  %v1567_v22 = vld [vmem:[#allocation2 + $0x1a] sm:$0xff]  ;;  %v1501_v20 = vld [vmem:[#allocation2 + $0x330] sm:$0xff] }
 0x284   :  { %v2454_v46 = vpop.f32.mrf.mxu0  ;;  %2693 = vmatmul.mubr.f32.gmra.mxu0 %v1430_v16  ;;  %2322 = vmatprep.mubr.f32.mxu1 %v1369_v62 }
 0x285   :  { %v7800_v6 = vadd.f32 %v2454_v46, %v2069_v63  ;;  %2697 = vmatprep.mubr.f32.mxu0 %v1495_v30  ;;  %v2081_v47 = vpop.f32.mrf.mxu1  ;;  %v1503_v46 = vld [vmem:[#allocation2 + $0x19] sm:$0xff] }
 0x286   :  { %v2456_v25 = vpop.f32.mrf.mxu0  ;;  %v1437_v47 = vld [vmem:[#allocation2 + $0x31a] sm:$0xff] }
 0x287   :  { %v2084_v49 = vpop.f32.mrf.mxu1  ;;  %2323 = vmatmul.mubr.f32.gmra.mxu1 %v1495_v30  ;;  %v1966_v25 = vld [vmem:[%s9779_s3 + $0x470] sm:$0xff] }
 0x288   :  { %v2459_v37 = vpop.f32.mrf.mxu0  ;;  %2698 = vmatmul.mubr.f32.gmra.mxu0 %v1431_v36  ;;  %2327 = vmatprep.mubr.f32.mxu1 %v1370_v26  ;;  %v1502_v36 = vld [vmem:[#allocation2 + $0x338] sm:$0xff]  ;;  %v1568_v26 = vld [vmem:[#allocation2 + $0x22] sm:$0xff] }
 0x289   :  { %v7802_v34 = vadd.f32 %v2459_v37, %v2074_v40  ;;  %2702 = vmatprep.mubr.f32.mxu0 %v1496_v39  ;;  %v2086_v1 = vpop.f32.mrf.mxu1 }
 0x28a   :  { %v2461_v3 = vpop.f32.mrf.mxu0 }
 0x28b   :  { %v2089_v51 = vpop.f32.mrf.mxu1  ;;  %2328 = vmatmul.mubr.f32.gmra.mxu1 %v1496_v39  ;;  %v1504_v3 = vld [vmem:[#allocation2 + $0x21] sm:$0xff] }
 0x28c   :  { %v2464_v43 = vpop.f32.mrf.mxu0  ;;  %2703 = vmatmul.mubr.f32.gmra.mxu0 %v1432_v55  ;;  %2332 = vmatprep.mubr.f32.mxu1 %v1371_v15  ;;  %v1438_v55 = vld [vmem:[#allocation2 + $0x322] sm:$0xff]  ;;  %v1569_v15 = vld [vmem:[#allocation2 + $0x32] sm:$0xff] }
 0x28d   :  { %v7804_v44 = vadd.f32 %v2464_v43, %v2079_v28  ;;  %2707 = vmatprep.mubr.f32.mxu0 %v1497_v35  ;;  %v2091_v57 = vpop.f32.mrf.mxu1  ;;  %v1965_v43 = vld [vmem:[%s9779_s3 + $0x468] sm:$0xff] }
 0x28e   :  { %v2466_v31 = vpop.f32.mrf.mxu0 }
 0x28f   :  { %v2094_v13 = vpop.f32.mrf.mxu1  ;;  %2333 = vmatmul.mubr.f32.gmra.mxu1 %v1497_v35 }
 0x290   :  { %v2469_v0 = vpop.f32.mrf.mxu0  ;;  %2708 = vmatmul.mubr.f32.gmra.mxu0 %v1433_v11  ;;  %2337 = vmatprep.mubr.f32.mxu1 %v1372_v9  ;;  %v1632_v9 = vld [vmem:[#allocation2 + $0x30] sm:$0xff] }
 0x291   :  { %v7806_v19 = vadd.f32 %v2469_v0, %v2084_v49  ;;  %2712 = vmatprep.mubr.f32.mxu0 %v1498_v52  ;;  %v2096_v58 = vpop.f32.mrf.mxu1  ;;  %v1570_v0 = vld [vmem:[#allocation2 + $0x3a] sm:$0xff] }
 0x292   :  { %v2471_v23 = vpop.f32.mrf.mxu0 }
 0x293   :  { %v2099_v53 = vpop.f32.mrf.mxu1  ;;  %2338 = vmatmul.mubr.f32.gmra.mxu1 %v1498_v52  ;;  %v1964_v52 = vld [vmem:[%s9779_s3 + $0x460] sm:$0xff] }
 0x294   :  { %v2474_v10 = vpop.f32.mrf.mxu0  ;;  %2713 = vmatmul.mubr.f32.gmra.mxu0 %v1434_v42  ;;  %2342 = vmatprep.mubr.f32.mxu1 %v1373_v8  ;;  %v1697_v23 = vld [vmem:[#allocation2 + $0x39] sm:$0xff] }
 0x295   :  { %v7808_v56 = vadd.f32 %v2474_v10, %v2089_v51  ;;  %2717 = vmatprep.mubr.f32.mxu0 %v1499_v27  ;;  %v2101_v38 = vpop.f32.mrf.mxu1 }
 0x296   :  { %v2476_v63 = vpop.f32.mrf.mxu0  ;;  %v1571_v38 = vld [vmem:[#allocation2 + $0x4a] sm:$0xff] }
 0x297   :  { %v2104_v14 = vpop.f32.mrf.mxu1  ;;  %2343 = vmatmul.mubr.f32.gmra.mxu1 %v1499_v27  ;;  %v1633_v27 = vld [vmem:[#allocation2 + $0x38] sm:$0xff] }
 0x298   :  { %v2479_v54 = vpop.f32.mrf.mxu0  ;;  %2718 = vmatmul.mubr.f32.gmra.mxu0 %v1435_v59  ;;  %2347 = vmatprep.mubr.f32.mxu1 %v1374_v12  ;;  %v1963_v63 = vld [vmem:[%s9779_s3 + $0x458] sm:$0xff]  ;;  %v1698_v59 = vld [vmem:[#allocation2 + $0x49] sm:$0xff] }
 0x299   :  { %v7810_v21 = vadd.f32 %v2479_v54, %v2094_v13  ;;  %2722 = vmatprep.mubr.f32.mxu0 %v1500_v41  ;;  %v2106_v40 = vpop.f32.mrf.mxu1 }
 0x29a   :  { %v2481_v18 = vpop.f32.mrf.mxu0  ;;  %v1634_v40 = vld [vmem:[#allocation2 + $0x48] sm:$0xff] }
 0x29b   :  { %v2109_v29 = vpop.f32.mrf.mxu1  ;;  %2348 = vmatmul.mubr.f32.gmra.mxu1 %v1500_v41  ;;  %v1572_v18 = vld [vmem:[#allocation2 + $0x52] sm:$0xff] }
 0x29c   :  { %v2484_v17 = vpop.f32.mrf.mxu0  ;;  %2723 = vmatmul.mubr.f32.gmra.mxu0 %v1436_v7  ;;  %2802 = vmatprep.mubr.f32.mxu1 %v1567_v22  ;;  %v1699_v22 = vld [vmem:[#allocation2 + $0x51] sm:$0xff] }
 0x29d   :  { %v7812_v28 = vadd.f32 %v2484_v17, %v2099_v53  ;;  %2727 = vmatprep.mubr.f32.mxu0 %v1501_v20  ;;  %v2111_v16 = vpop.f32.mrf.mxu1 }
 0x29e   :  { %v2486_v62 = vpop.f32.mrf.mxu0 }
 0x29f   :  { %v2114_v30 = vpop.f32.mrf.mxu1  ;;  %2803 = vmatmul.mubr.f32.vlgmr.msra.gmra.mxu1 %v1503_v46  ;;  %v1635_v46 = vld [vmem:[#allocation2 + $0x50] sm:$0xff] }
 0x2a0   :  { %v2489_v49 = vpop.f32.mrf.mxu0  ;;  %2728 = vmatmul.mubr.f32.gmra.mxu0 %v1437_v47  ;;  %5559 = vmatpush3.msra.mxu1 %v7759_v45  ;;  %v1696_v45 = vld [vmem:[#allocation2 + $0x31] sm:$0xff]  ;;  %v1961_v47 = vld [vmem:[%s9779_s3 + $0x448] sm:$0xff] }
 0x2a1   :  { %v7818_v37 = vadd.f32 %v2489_v49, %v2104_v14  ;;  %2732 = vmatprep.mubr.f32.mxu0 %v1502_v36  ;;  %2807 = vmatprep.mubr.f32.mxu1 %v1568_v26  ;;  %v2116_v39 = vpop.f32.mrf.mxu1  ;;  %v1700_v49 = vld [vmem:[#allocation2 + $0x61] sm:$0xff] }
 0x2a2   :  { %v2491_v1 = vpop.f32.mrf.mxu0  ;;  %5560 = vmatprep.subr.mxu1 %v1966_v25 }
 0x2a3   :  { %v2119_v51 = vpop.f32.mrf.mxu1  ;;  %2808 = vmatmul.mubr.f32.gmra.mxu1 %v1504_v3  ;;  %v1636_v3 = vld [vmem:[#allocation2 + $0x60] sm:$0xff] }
 0x2a4   :  { %v2494_v35 = vpop.f32.mrf.mxu0  ;;  %2733 = vmatmul.mubr.f32.gmra.mxu0 %v1438_v55  ;;  %2812 = vmatprep.mubr.f32.mxu1 %v1569_v15  ;;  %v1960_v55 = vld [vmem:[%s9779_s3 + $0x440] sm:$0xff] }
 0x2a5   :  { %v7823_v57 = vadd.f32 %v2494_v35, %v2109_v29  ;;  %3187 = vmatprep.mubr.f32.mxu0 %v1696_v45  ;;  %v2121_v31 = vpop.f32.mrf.mxu1  ;;  %5561 = vmatpush3.msra.mxu1 %v1966_v25  ;;  %v1962_v29 = vld [vmem:[%s9779_s3 + $0x450] sm:$0xff] }
 0x2a6   :  { %v2496_v13 = vpop.f32.mrf.mxu0  ;;  %5562 = vmatprep.subr.mxu1 %v1965_v43 }
 0x2a7   :  { %v2124_v11 = vpop.f32.mrf.mxu1  ;;  %2813 = vmatmul.mubr.f32.gmra.mxu1 %v1696_v45 }
 0x2a8   :  { %v2499_v58 = vpop.f32.mrf.mxu0  ;;  %3188 = vmatmul.mubr.f32.vlgmr.msra.gmra.mxu0 %v1632_v9  ;;  %2817 = vmatprep.mubr.f32.mxu1 %v1570_v0  ;;  %v1575_v9 = vld [vmem:[#allocation2 + $0x7a] sm:$0xff] }
 0x2a9   :  { %v7828_v53 = vadd.f32 %v2499_v58, %v2114_v30  ;;  %3192 = vmatprep.mubr.f32.mxu0 %v1697_v23  ;;  %v2126_v42 = vpop.f32.mrf.mxu1  ;;  %5563 = vmatpush3.msra.mxu1 %v1965_v43  ;;  %v1573_v30 = vld [vmem:[#allocation2 + $0x62] sm:$0xff]  ;;  %v1959_v0 = vld [vmem:[%s9779_s3 + $0x438] sm:$0xff] }
 0x2aa   :  { %v2501_v8 = vpop.f32.mrf.mxu0  ;;  %5564 = vmatprep.subr.mxu1 %v1964_v52  ;;  %5687 = vmatpush3.msk.msra.mxu0 %vm298_vm0, %v7782_v4  ;;  %v1701_v43 = vld [vmem:[#allocation2 + $0x69] sm:$0xff]  ;;  %v1702_v58 = vld [vmem:[#allocation2 + $0x79] sm:$0xff] }
 0x2ab   :  { %v2129_v10 = vpop.f32.mrf.mxu1  ;;  %2818 = vmatmul.mubr.f32.gmra.mxu1 %v1697_v23 }
 0x2ac   :  { %v2504_v14 = vpop.f32.mrf.mxu0  ;;  %3193 = vmatmul.mubr.f32.gmra.mxu0 %v1633_v27  ;;  %2822 = vmatprep.mubr.f32.mxu1 %v1571_v38  ;;  %v1638_v27 = vld [vmem:[#allocation2 + $0x78] sm:$0xff]  ;;  %v1576_v38 = vld [vmem:[#allocation2 + $0x82] sm:$0xff] }
 0x2ad   :  { %v7835_v12 = vadd.f32 %v2504_v14, %v2119_v51  ;;  %3197 = vmatprep.mubr.f32.mxu0 %v1698_v59  ;;  %v2131_v54 = vpop.f32.mrf.mxu1  ;;  %5565 = vmatpush3.msra.mxu1 %v1964_v52  ;;  %v1574_v51 = vld [vmem:[#allocation2 + $0x6a] sm:$0xff] }
 0x2ae   :  { %v2506_v41 = vpop.f32.mrf.mxu0  ;;  %5566 = vmatprep.subr.mxu1 %v1963_v63 }
 0x2af   :  { %v2134_v4 = vpop.f32.mrf.mxu1  ;;  %2823 = vmatmul.mubr.f32.gmra.mxu1 %v1698_v59  ;;  %v1703_v59 = vld [vmem:[#allocation2 + $0x81] sm:$0xff] }
 0x2b0   :  { %v2509_v7 = vpop.f32.mrf.mxu0  ;;  %3198 = vmatmul.mubr.f32.gmra.mxu0 %v1634_v40  ;;  %2827 = vmatprep.mubr.f32.mxu1 %v1572_v18  ;;  %v1639_v18 = vld [vmem:[#allocation2 + $0x80] sm:$0xff] }
 0x2b1   :  { %v7840_v17 = vadd.f32 %v2509_v7, %v2124_v11  ;;  %3202 = vmatprep.mubr.f32.mxu0 %v1699_v22  ;;  %v2136_v20 = vpop.f32.mrf.mxu1  ;;  %5567 = vmatpush3.msra.mxu1 %v1963_v63  ;;  %v1637_v11 = vld [vmem:[#allocation2 + $0x68] sm:$0xff]  ;;  %v1958_v63 = vld [vmem:[%s9779_s3 + $0x430] sm:$0xff] }
 0x2b2   :  { %v2511_v16 = vpop.f32.mrf.mxu0  ;;  %5568 = vmatprep.subr.mxu1 %v1962_v29  ;;  %v1957_v7 = vld [vmem:[%s9779_s3 + $0x428] sm:$0xff]  ;;  %v1704_v20 = vld [vmem:[#allocation2 + $0x91] sm:$0xff] }
 0x2b3   :  { %v2139_v62 = vpop.f32.mrf.mxu1  ;;  %2828 = vmatmul.mubr.f32.gmra.mxu1 %v1699_v22 }
 0x2b4   :  { %v2514_v25 = vpop.f32.mrf.mxu0  ;;  %3203 = vmatmul.mubr.f32.gmra.mxu0 %v1635_v46  ;;  %2832 = vmatprep.mubr.f32.mxu1 %v1573_v30 }
 0x2b5   :  { %v7845_v36 = vadd.f32 %v2514_v25, %v2129_v10  ;;  %3207 = vmatprep.mubr.f32.mxu0 %v1700_v49  ;;  %v2141_v26 = vpop.f32.mrf.mxu1  ;;  %5569 = vmatpush3.msra.mxu1 %v1962_v29  ;;  %v1577_v29 = vld [vmem:[#allocation2 + $0x92] sm:$0xff]  ;;  %v1578_v25 = vld [vmem:[#allocation2 + $0x9a] sm:$0xff] }
 0x2b6   :  { %v2516_v39 = vpop.f32.mrf.mxu0  ;;  %5570 = vmatprep.subr.mxu1 %v1961_v47  ;;  %v1705_v26 = vld [vmem:[#allocation2 + $0x99] sm:$0xff] }
 0x2b7   :  { %v2144_v1 = vpop.f32.mrf.mxu1  ;;  %2833 = vmatmul.mubr.f32.gmra.mxu1 %v1700_v49 }
 0x2b8   :  { %v2519_v15 = vpop.f32.mrf.mxu0  ;;  %3208 = vmatmul.mubr.f32.gmra.mxu0 %v1636_v3  ;;  %2837 = vmatprep.mubr.f32.mxu1 %v1574_v51 }
 0x2b9   :  { %v7850_v35 = vadd.f32 %v2519_v15, %v2134_v4  ;;  %3212 = vmatprep.mubr.f32.mxu0 %v1701_v43  ;;  %v2146_v45 = vpop.f32.mrf.mxu1  ;;  %5571 = vmatpush3.msra.mxu1 %v1961_v47  ;;  %v1640_v47 = vld [vmem:[#allocation2 + $0x90] sm:$0xff] }
 0x2ba   :  { %v2521_v31 = vpop.f32.mrf.mxu0  ;;  %5572 = vmatprep.subr.mxu1 %v1960_v55  ;;  %v1579_v15 = vld [vmem:[#allocation2 + $0xaa] sm:$0xff] }
 0x2bb   :  { %v2149_v13 = vpop.f32.mrf.mxu1  ;;  %2838 = vmatmul.mubr.f32.gmra.mxu1 %v1701_v43  ;;  %v1706_v45 = vld [vmem:[#allocation2 + $0xa9] sm:$0xff] }
 0x2bc   :  { %v2524_v52 = vpop.f32.mrf.mxu0  ;;  %3213 = vmatmul.mubr.f32.gmra.mxu0 %v1637_v11  ;;  %2842 = vmatprep.mubr.f32.mxu1 %v1575_v9  ;;  %v1956_v9 = vld [vmem:[%s9779_s3 + $0x420] sm:$0xff] }
 0x2bd   :  { %v7855_v23 = vadd.f32 %v2524_v52, %v2139_v62  ;;  %3217 = vmatprep.mubr.f32.mxu0 %v1702_v58  ;;  %v2151_v42 = vpop.f32.mrf.mxu1  ;;  %5573 = vmatpush3.msra.mxu1 %v1960_v55  ;;  %v1641_v55 = vld [vmem:[#allocation2 + $0x98] sm:$0xff]  ;;  %v1642_v52 = vld [vmem:[#allocation2 + $0xa8] sm:$0xff] }
 0x2be   :  { %v2526_v8 = vpop.f32.mrf.mxu0  ;;  %5574 = vmatprep.subr.mxu1 %v1959_v0 }
 0x2bf   :  { %v2154_v10 = vpop.f32.mrf.mxu1  ;;  %2843 = vmatmul.mubr.f32.gmra.mxu1 %v1702_v58  ;;  %v1580_v58 = vld [vmem:[#allocation2 + $0xb2] sm:$0xff] }
 0x2c0   :  { %v2529_v14 = vpop.f32.mrf.mxu0  ;;  %3218 = vmatmul.mubr.f32.gmra.mxu0 %v1638_v27  ;;  %2847 = vmatprep.mubr.f32.mxu1 %v1576_v38  ;;  %v1707_v8 = vld [vmem:[#allocation2 + $0xb1] sm:$0xff] }
 0x2c1   :  { %v7860_v54 = vadd.f32 %v2529_v14, %v2144_v1  ;;  %3222 = vmatprep.mubr.f32.mxu0 %v1703_v59  ;;  %v2156_v41 = vpop.f32.mrf.mxu1  ;;  %5575 = vmatpush3.msra.mxu1 %v1959_v0  ;;  %v1643_v14 = vld [vmem:[#allocation2 + $0xb0] sm:$0xff] }
 0x2c2   :  { %v2531_v4 = vpop.f32.mrf.mxu0  ;;  %5576 = vmatprep.subr.mxu1 %v1958_v63 }
 0x2c3   :  { %v2159_v40 = vpop.f32.mrf.mxu1  ;;  %2848 = vmatmul.mubr.f32.gmra.mxu1 %v1703_v59  ;;  %v1581_v59 = vld [vmem:[#allocation2 + $0xc2] sm:$0xff] }
 0x2c4   :  { %v2534_v22 = vpop.f32.mrf.mxu0  ;;  %3223 = vmatmul.mubr.f32.gmra.mxu0 %v1639_v18  ;;  %2852 = vmatprep.mubr.f32.mxu1 %v1577_v29  ;;  %v1708_v4 = vld [vmem:[#allocation2 + $0xc1] sm:$0xff] }
 0x2c5   :  { %v7865_v16 = vadd.f32 %v2534_v22, %v2149_v13  ;;  %3227 = vmatprep.mubr.f32.mxu0 %v1704_v20  ;;  %v2161_v62 = vpop.f32.mrf.mxu1  ;;  %5577 = vmatpush3.msra.mxu1 %v1958_v63  ;;  %v1644_v22 = vld [vmem:[#allocation2 + $0xc0] sm:$0xff] }
 0x2c6   :  { %v2536_v46 = vpop.f32.mrf.mxu0  ;;  %5578 = vmatprep.subr.mxu1 %v1957_v7 }
 0x2c7   :  { %v2164_v30 = vpop.f32.mrf.mxu1  ;;  %2853 = vmatmul.mubr.f32.gmra.mxu1 %v1704_v20  ;;  %v1582_v20 = vld [vmem:[#allocation2 + $0xca] sm:$0xff] }
 0x2c8   :  { %v2539_v49 = vpop.f32.mrf.mxu0  ;;  %3228 = vmatmul.mubr.f32.gmra.mxu0 %v1640_v47  ;;  %2857 = vmatprep.mubr.f32.mxu1 %v1578_v25  ;;  %v1709_v46 = vld [vmem:[#allocation2 + $0xc9] sm:$0xff] }
 0x2c9   :  { %v7867_v39 = vadd.f32 %v2539_v49, %v2154_v10  ;;  %3232 = vmatprep.mubr.f32.mxu0 %v1705_v26  ;;  %v2166_v1 = vpop.f32.mrf.mxu1  ;;  %5579 = vmatpush3.msra.mxu1 %v1957_v7 }
 0x2ca   :  { %v2541_v3 = vpop.f32.mrf.mxu0  ;;  %5580 = vmatprep.subr.mxu1 %v1956_v9  ;;  %v1583_v1 = vld [vmem:[#allocation2 + $0xda] sm:$0xff] }
 0x2cb   :  { %v2169_v51 = vpop.f32.mrf.mxu1  ;;  %2858 = vmatmul.mubr.f32.gmra.mxu1 %v1705_v26  ;;  %v1645_v26 = vld [vmem:[#allocation2 + $0xc8] sm:$0xff] }
 0x2cc   :  { %v2544_v43 = vpop.f32.mrf.mxu0  ;;  %3233 = vmatmul.mubr.f32.gmra.mxu0 %v1641_v55  ;;  %2862 = vmatprep.mubr.f32.mxu1 %v1579_v15 }
 0x2cd   :  { %v7869_v31 = vadd.f32 %v2544_v43, %v2159_v40  ;;  %3237 = vmatprep.mubr.f32.mxu0 %v1706_v45  ;;  %v2171_v13 = vpop.f32.mrf.mxu1  ;;  %5581 = vmatpush3.msra.mxu1 %v1956_v9  ;;  %v1584_v9 = vld [vmem:[#allocation2 + $0xe2] sm:$0xff] }
 0x2ce   :  { %v2546_v11 = vpop.f32.mrf.mxu0 }
 0x2cf   :  { %v2174_v0 = vpop.f32.mrf.mxu1  ;;  %2863 = vmatmul.mubr.f32.gmra.mxu1 %v1706_v45  ;;  %v1955_v45 = vld [vmem:[%s9779_s3 + $0x418] sm:$0xff] }
 0x2d0   :  { %v2549_v42 = vpop.f32.mrf.mxu0  ;;  %3238 = vmatmul.mubr.f32.gmra.mxu0 %v1642_v52  ;;  %2867 = vmatprep.mubr.f32.mxu1 %v1580_v58  ;;  %v1646_v11 = vld [vmem:[#allocation2 + $0xd8] sm:$0xff]  ;;  %v1711_v52 = vld [vmem:[#allocation2 + $0xe1] sm:$0xff] }
 0x2d1   :  { %v7874_v10 = vadd.f32 %v2549_v42, %v2164_v30  ;;  %3242 = vmatprep.mubr.f32.mxu0 %v1707_v8  ;;  %v2176_v27 = vpop.f32.mrf.mxu1  ;;  %5582 = vmatprep.subr.mxu1 %v1955_v45 }
 0x2d2   :  { %v2551_v38 = vpop.f32.mrf.mxu0  ;;  %5583 = vmatpush3.msra.mxu1 %v1955_v45 }
 0x2d3   :  { %v2179_v63 = vpop.f32.mrf.mxu1  ;;  %2868 = vmatmul.mubr.f32.gmra.mxu1 %v1707_v8  ;;  %v1647_v38 = vld [vmem:[#allocation2 + $0xe0] sm:$0xff] }
 0x2d4   :  { %v2554_v41 = vpop.f32.mrf.mxu0  ;;  %3243 = vmatmul.mubr.f32.gmra.mxu0 %v1643_v14  ;;  %2872 = vmatprep.mubr.f32.mxu1 %v1581_v59  ;;  %v1712_v59 = vld [vmem:[#allocation2 + $0xf1] sm:$0xff] }
 0x2d5   :  { %v7876_v40 = vadd.f32 %v2554_v41, %v2169_v51  ;;  %3247 = vmatprep.mubr.f32.mxu0 %v1708_v4  ;;  %v2181_v18 = vpop.f32.mrf.mxu1  ;;  %v1710_v51 = vld [vmem:[#allocation2 + $0xd9] sm:$0xff] }
 0x2d6   :  { %v2556_v29 = vpop.f32.mrf.mxu0 }
 0x2d7   :  { %v2184_v7 = vpop.f32.mrf.mxu1  ;;  %2873 = vmatmul.mubr.f32.gmra.mxu1 %v1708_v4 }
 0x2d8   :  { %v2559_v62 = vpop.f32.mrf.mxu0  ;;  %3248 = vmatmul.mubr.f32.gmra.mxu0 %v1644_v22  ;;  %2877 = vmatprep.mubr.f32.mxu1 %v1582_v20  ;;  %v1586_v22 = vld [vmem:[#allocation2 + $0xfa] sm:$0xff] }
 0x2d9   :  { %v7878_v30 = vadd.f32 %v2559_v62, %v2174_v0  ;;  %3252 = vmatprep.mubr.f32.mxu0 %v1709_v46  ;;  %v2186_v47 = vpop.f32.mrf.mxu1  ;;  %v1713_v62 = vld [vmem:[#allocation2 + $0xf9] sm:$0xff] }
 0x2da   :  { %v2561_v25 = vpop.f32.mrf.mxu0 }
 0x2db   :  { %v2189_v49 = vpop.f32.mrf.mxu1  ;;  %2878 = vmatmul.mubr.f32.gmra.mxu1 %v1709_v46 }
 0x2dc   :  { %v2564_v3 = vpop.f32.mrf.mxu0  ;;  %3253 = vmatmul.mubr.f32.gmra.mxu0 %v1645_v26  ;;  %2882 = vmatprep.mubr.f32.mxu1 %v1583_v1  ;;  %v1587_v1 = vld [vmem:[#allocation2 + $0x10a] sm:$0xff] }
 0x2dd   :  { %v7880_v55 = vadd.f32 %v2564_v3, %v2179_v63  ;;  %3257 = vmatprep.mubr.f32.mxu0 %v1710_v51  ;;  %v2191_v15 = vpop.f32.mrf.mxu1  ;;  %v1585_v63 = vld [vmem:[#allocation2 + $0xf2] sm:$0xff] }
 0x2de   :  { %v2566_v43 = vpop.f32.mrf.mxu0 }
 0x2df   :  { %v2194_v13 = vpop.f32.mrf.mxu1  ;;  %2883 = vmatmul.mubr.f32.gmra.mxu1 %v1710_v51  ;;  %v1714_v51 = vld [vmem:[#allocation2 + $0x109] sm:$0xff] }
 0x2e0   :  { %v2569_v0 = vpop.f32.mrf.mxu0  ;;  %3258 = vmatmul.mubr.f32.gmra.mxu0 %v1646_v11  ;;  %2887 = vmatprep.mubr.f32.mxu1 %v1584_v9  ;;  %v1650_v9 = vld [vmem:[#allocation2 + $0x108] sm:$0xff] }
 0x2e1   :  { %v7885_v58 = vadd.f32 %v2569_v0, %v2184_v7  ;;  %3262 = vmatprep.mubr.f32.mxu0 %v1711_v52  ;;  %v2196_v42 = vpop.f32.mrf.mxu1  ;;  %v1648_v7 = vld [vmem:[#allocation2 + $0xf0] sm:$0xff] }
 0x2e2   :  { %v2571_v8 = vpop.f32.mrf.mxu0  ;;  %v1588_v0 = vld [vmem:[#allocation2 + $0x112] sm:$0xff] }
 0x2e3   :  { %v2199_v27 = vpop.f32.mrf.mxu1  ;;  %2888 = vmatmul.mubr.f32.gmra.mxu1 %v1711_v52  ;;  %v1715_v42 = vld [vmem:[#allocation2 + $0x111] sm:$0xff] }
 0x2e4   :  { %v2574_v14 = vpop.f32.mrf.mxu0  ;;  %3263 = vmatmul.mubr.f32.gmra.mxu0 %v1647_v38  ;;  %2892 = vmatprep.mubr.f32.mxu1 %v1585_v63 }
 0x2e5   :  { %v7887_v41 = vadd.f32 %v2574_v14, %v2189_v49  ;;  %3267 = vmatprep.mubr.f32.mxu0 %v1712_v59  ;;  %v2201_v4 = vpop.f32.mrf.mxu1  ;;  %v1649_v49 = vld [vmem:[#allocation2 + $0xf8] sm:$0xff]  ;;  %v1651_v14 = vld [vmem:[#allocation2 + $0x110] sm:$0xff] }
 0x2e6   :  { %v2576_v18 = vpop.f32.mrf.mxu0 }
 0x2e7   :  { %v2204_v29 = vpop.f32.mrf.mxu1  ;;  %2893 = vmatmul.mubr.f32.gmra.mxu1 %v1712_v59  ;;  %v1589_v59 = vld [vmem:[#allocation2 + $0x122] sm:$0xff] }
 0x2e8   :  { %v2579_v20 = vpop.f32.mrf.mxu0  ;;  %3268 = vmatmul.mubr.f32.gmra.mxu0 %v1648_v7  ;;  %2897 = vmatprep.mubr.f32.mxu1 %v1586_v22  ;;  %v1716_v18 = vld [vmem:[#allocation2 + $0x121] sm:$0xff] }
 0x2e9   :  { %v7889_v46 = vadd.f32 %v2579_v20, %v2194_v13  ;;  %3272 = vmatprep.mubr.f32.mxu0 %v1713_v62  ;;  %v2206_v47 = vpop.f32.mrf.mxu1  ;;  %v1954_v13 = vld [vmem:[%s9779_s3 + $0x410] sm:$0xff] }
 0x2ea   :  { %v2581_v25 = vpop.f32.mrf.mxu0  ;;  %5584 = vmatprep.subr.mxu1 %v1954_v13  ;;  %v1590_v47 = vld [vmem:[#allocation2 + $0x12a] sm:$0xff] }
 0x2eb   :  { %v2209_v26 = vpop.f32.mrf.mxu1  ;;  %2898 = vmatmul.mubr.f32.gmra.mxu1 %v1713_v62 }
 0x2ec   :  { %v2584_v3 = vpop.f32.mrf.mxu0  ;;  %3273 = vmatmul.mubr.f32.gmra.mxu0 %v1649_v49  ;;  %2902 = vmatprep.mubr.f32.mxu1 %v1587_v1  ;;  %v1717_v49 = vld [vmem:[#allocation2 + $0x129] sm:$0xff] }
 0x2ed   :  { %v7891_v15 = vadd.f32 %v2584_v3, %v2199_v27  ;;  %3277 = vmatprep.mubr.f32.mxu0 %v1714_v51  ;;  %v2211_v43 = vpop.f32.mrf.mxu1  ;;  %5585 = vmatpush3.msra.mxu1 %v1954_v13 }
 0x2ee   :  { %v2586_v45 = vpop.f32.mrf.mxu0 }
 0x2ef   :  { %v2214_v11 = vpop.f32.mrf.mxu1  ;;  %2903 = vmatmul.mubr.f32.gmra.mxu1 %v1714_v51  ;;  %v1591_v45 = vld [vmem:[#allocation2 + $0x13a] sm:$0xff] }
 0x2f0   :  { %v2589_v52 = vpop.f32.mrf.mxu0  ;;  %3278 = vmatmul.mubr.f32.gmra.mxu0 %v1650_v9  ;;  %2907 = vmatprep.mubr.f32.mxu1 %v1588_v0  ;;  %v1718_v9 = vld [vmem:[#allocation2 + $0x139] sm:$0xff] }
 0x2f1   :  { %v7896_v8 = vadd.f32 %v2589_v52, %v2204_v29  ;;  %3282 = vmatprep.mubr.f32.mxu0 %v1715_v42  ;;  %v2216_v27 = vpop.f32.mrf.mxu1  ;;  %v1652_v29 = vld [vmem:[#allocation2 + $0x120] sm:$0xff] }
 0x2f2   :  { %v2591_v38 = vpop.f32.mrf.mxu0 }
 0x2f3   :  { %v2219_v63 = vpop.f32.mrf.mxu1  ;;  %2908 = vmatmul.mubr.f32.gmra.mxu1 %v1715_v42  ;;  %v1654_v38 = vld [vmem:[#allocation2 + $0x138] sm:$0xff] }
 0x2f4   :  { %v2594_v4 = vpop.f32.mrf.mxu0  ;;  %3283 = vmatmul.mubr.f32.gmra.mxu0 %v1651_v14  ;;  %2912 = vmatprep.mubr.f32.mxu1 %v1589_v59  ;;  %v1592_v14 = vld [vmem:[#allocation2 + $0x142] sm:$0xff] }
 0x2f5   :  { %v7898_v7 = vadd.f32 %v2594_v4, %v2209_v26  ;;  %3287 = vmatprep.mubr.f32.mxu0 %v1716_v18  ;;  %v2221_v22 = vpop.f32.mrf.mxu1  ;;  %v1653_v26 = vld [vmem:[#allocation2 + $0x128] sm:$0xff] }
 0x2f6   :  { %v2596_v20 = vpop.f32.mrf.mxu0  ;;  %v1719_v4 = vld [vmem:[#allocation2 + $0x141] sm:$0xff] }
 0x2f7   :  { %v2224_v62 = vpop.f32.mrf.mxu1  ;;  %2913 = vmatmul.mubr.f32.gmra.mxu1 %v1716_v18 }
 0x2f8   :  { %v2599_v25 = vpop.f32.mrf.mxu0  ;;  %3288 = vmatmul.mubr.f32.gmra.mxu0 %v1652_v29  ;;  %2917 = vmatprep.mubr.f32.mxu1 %v1590_v47  ;;  %v1655_v29 = vld [vmem:[#allocation2 + $0x140] sm:$0xff]  ;;  %v1593_v47 = vld [vmem:[#allocation2 + $0x152] sm:$0xff] }
 0x2f9   :  { %v7900_v1 = vadd.f32 %v2599_v25, %v2214_v11  ;;  %3292 = vmatprep.mubr.f32.mxu0 %v1717_v49  ;;  %v2226_v3 = vpop.f32.mrf.mxu1  ;;  %v1953_v11 = vld [vmem:[%s9779_s3 + $0x408] sm:$0xff] }
 0x2fa   :  { %v2601_v51 = vpop.f32.mrf.mxu0  ;;  %5586 = vmatprep.subr.mxu1 %v1953_v11 }
 0x2fb   :  { %v2229_v43 = vpop.f32.mrf.mxu1  ;;  %2918 = vmatmul.mubr.f32.gmra.mxu1 %v1717_v49  ;;  %v1720_v49 = vld [vmem:[#allocation2 + $0x151] sm:$0xff] }
 0x2fc   :  { %v2604_v13 = vpop.f32.mrf.mxu0  ;;  %3293 = vmatmul.mubr.f32.gmra.mxu0 %v1653_v26  ;;  %2922 = vmatprep.mubr.f32.mxu1 %v1591_v45 }
 0x2fd   :  { %v7902_v0 = vadd.f32 %v2604_v13, %v2219_v63  ;;  %3297 = vmatprep.mubr.f32.mxu0 %v1718_v9  ;;  %v2231_v52 = vpop.f32.mrf.mxu1  ;;  %5587 = vmatpush3.msra.mxu1 %v1953_v11  ;;  %v1594_v13 = vld [vmem:[#allocation2 + $0x15a] sm:$0xff] }
 0x2fe   :  { %v2606_v42 = vpop.f32.mrf.mxu0  ;;  %v1721_v52 = vld [vmem:[#allocation2 + $0x159] sm:$0xff] }
 0x2ff   :  { %v2234_v27 = vpop.f32.mrf.mxu1  ;;  %2923 = vmatmul.mubr.f32.gmra.mxu1 %v1718_v9 }
 0x300   :  { %v2609_v59 = vpop.f32.mrf.mxu0  ;;  %3298 = vmatmul.mubr.f32.gmra.mxu0 %v1654_v38  ;;  %2927 = vmatprep.mubr.f32.mxu1 %v1592_v14 }
 0x301   :  { %v7907_v18 = vadd.f32 %v2609_v59, %v2224_v62  ;;  %3302 = vmatprep.mubr.f32.mxu0 %v1719_v4  ;;  %v2236_v63 = vpop.f32.mrf.mxu1  ;;  %v1656_v62 = vld [vmem:[#allocation2 + $0x150] sm:$0xff] }
 0x302   :  { %v2611_v22 = vpop.f32.mrf.mxu0  ;;  %v1595_v59 = vld [vmem:[#allocation2 + $0x16a] sm:$0xff] }
 0x303   :  { %v2239_v20 = vpop.f32.mrf.mxu1  ;;  %2928 = vmatmul.mubr.f32.gmra.mxu1 %v1719_v4  ;;  %v1722_v63 = vld [vmem:[#allocation2 + $0x169] sm:$0xff] }
 0x304   :  { %v2614_v25 = vpop.f32.mrf.mxu0  ;;  %3303 = vmatmul.mubr.f32.gmra.mxu0 %v1655_v29  ;;  %2932 = vmatprep.mubr.f32.mxu1 %v1593_v47 }
 0x305   :  { %v7909_v3 = vadd.f32 %v2614_v25, %v2229_v43  ;;  %3307 = vmatprep.mubr.f32.mxu0 %v1720_v49  ;;  %v2241_v51 = vpop.f32.mrf.mxu1  ;;  %v1657_v43 = vld [vmem:[#allocation2 + $0x158] sm:$0xff] }
 0x306   :  { %v2616_v26 = vpop.f32.mrf.mxu0  ;;  %v1596_v51 = vld [vmem:[#allocation2 + $0x172] sm:$0xff] }
 0x307   :  { %v2244_v45 = vpop.f32.mrf.mxu1  ;;  %2933 = vmatmul.mubr.f32.gmra.mxu1 %v1720_v49  ;;  %v1658_v49 = vld [vmem:[#allocation2 + $0x168] sm:$0xff] }
 0x308   :  { %v2619_v9 = vpop.f32.mrf.mxu0  ;;  %3308 = vmatmul.mubr.f32.gmra.mxu0 %v1656_v62  ;;  %2937 = vmatprep.mubr.f32.mxu1 %v1594_v13  ;;  %v1723_v62 = vld [vmem:[#allocation2 + $0x171] sm:$0xff] }
 0x309   :  { %v7911_v42 = vadd.f32 %v2619_v9, %v2234_v27  ;;  %3312 = vmatprep.mubr.f32.mxu0 %v1721_v52  ;;  %v2246_v11 = vpop.f32.mrf.mxu1  ;;  %v1952_v27 = vld [vmem:[%s9779_s3 + $0x400] sm:$0xff] }
 0x30a   :  { %v2621_v38 = vpop.f32.mrf.mxu0  ;;  %5588 = vmatprep.subr.mxu1 %v1952_v27  ;;  %v1659_v11 = vld [vmem:[#allocation2 + $0x170] sm:$0xff] }
 0x30b   :  { %v2249_v14 = vpop.f32.mrf.mxu1  ;;  %2938 = vmatmul.mubr.f32.gmra.mxu1 %v1721_v52  ;;  %v1597_v38 = vld [vmem:[#allocation2 + $0x182] sm:$0xff] }
 0x30c   :  { %v2624_v4 = vpop.f32.mrf.mxu0  ;;  %3313 = vmatmul.mubr.f32.gmra.mxu0 %v1657_v43  ;;  %2942 = vmatprep.mubr.f32.mxu1 %v1595_v59  ;;  %v1724_v59 = vld [vmem:[#allocation2 + $0x181] sm:$0xff] }
 0x30d   :  { %v7913_v22 = vadd.f32 %v2624_v4, %v2239_v20  ;;  %3317 = vmatprep.mubr.f32.mxu0 %v1722_v63  ;;  %v2251_v29 = vpop.f32.mrf.mxu1  ;;  %5589 = vmatpush3.msra.mxu1 %v1952_v27  ;;  %v1725_v27 = vld [vmem:[#allocation2 + $0x189] sm:$0xff] }
 0x30e   :  { %v2626_v47 = vpop.f32.mrf.mxu0 }
 0x30f   :  { %v2254_v25 = vpop.f32.mrf.mxu1  ;;  %2943 = vmatmul.mubr.f32.gmra.mxu1 %v1722_v63 }
 0x310   :  { %v2629_v26 = vpop.f32.mrf.mxu0  ;;  %3318 = vmatmul.mubr.f32.gmra.mxu0 %v1658_v49  ;;  %2947 = vmatprep.mubr.f32.mxu1 %v1596_v51  ;;  %v1598_v49 = vld [vmem:[#allocation2 + $0x18a] sm:$0xff] }
 0x311   :  { %v7918_v13 = vadd.f32 %v2629_v26, %v2244_v45  ;;  %3322 = vmatprep.mubr.f32.mxu0 %v1723_v62  ;;  %v2256_v20 = vpop.f32.mrf.mxu1  ;;  %v1660_v45 = vld [vmem:[#allocation2 + $0x180] sm:$0xff] }
 0x312   :  { %v2631_v9 = vpop.f32.mrf.mxu0 }
 0x313   :  { %v2259_v52 = vpop.f32.mrf.mxu1  ;;  %2948 = vmatmul.mubr.f32.gmra.mxu1 %v1723_v62  ;;  %v1726_v9 = vld [vmem:[#allocation2 + $0x199] sm:$0xff] }
 0x314   :  { %v2634_v43 = vpop.f32.mrf.mxu0  ;;  %3323 = vmatmul.mubr.f32.gmra.mxu0 %v1659_v11  ;;  %2952 = vmatprep.mubr.f32.mxu1 %v1597_v38  ;;  %v1599_v38 = vld [vmem:[#allocation2 + $0x1ca] sm:$0xff] }
 0x315   :  { %v7920_v4 = vadd.f32 %v2634_v43, %v2249_v14  ;;  %3327 = vmatprep.mubr.f32.mxu0 %v1724_v59  ;;  %v2261_v63 = vpop.f32.mrf.mxu1  ;;  %v1661_v14 = vld [vmem:[#allocation2 + $0x188] sm:$0xff] }
 0x316   :  { %v2636_v29 = vpop.f32.mrf.mxu0 }
 0x317   :  { %v2264_v47 = vpop.f32.mrf.mxu1  ;;  %2953 = vmatmul.mubr.f32.gmra.mxu1 %v1724_v59 }
 0x318   :  { %v2639_v51 = vpop.f32.mrf.mxu0  ;;  %3328 = vmatmul.mubr.f32.gmra.mxu0 %v1660_v45  ;;  %2957 = vmatprep.mubr.f32.mxu1 %v1598_v49  ;;  %v1535_v45 = vld [vmem:[#allocation2 + $0x1c9] sm:$0xff]  ;;  %v1727_v49 = vld [vmem:[#allocation2 + $0x1a1] sm:$0xff] }
 0x319   :  { %v7922_v26 = vadd.f32 %v2639_v51, %v2254_v25  ;;  %3332 = vmatprep.mubr.f32.mxu0 %v1725_v27  ;;  %v2266_v62 = vpop.f32.mrf.mxu1  ;;  %v1600_v51 = vld [vmem:[#allocation2 + $0x1d2] sm:$0xff] }
 0x31a   :  { %v2641_v20 = vpop.f32.mrf.mxu0 }
 0x31b   :  { %10001 = vst [vmem:[#allocation6_spill] sm:$0xff] %v7922_v26  ;;  %v2269_v11 = vpop.f32.mrf.mxu1  ;;  %2958 = vmatmul.mubr.f32.gmra.mxu1 %v1725_v27  ;;  %v7926_v20 = vld [vmem:[#allocation2] sm:$0xff] }
 0x31c   :  { %v2644_v43 = vpop.f32.mrf.mxu0  ;;  %3333 = vmatmul.mubr.f32.gmra.mxu0 %v1661_v14  ;;  %2962 = vmatprep.mubr.f32.mxu1 %v1599_v38  ;;  %v1536_v38 = vld [vmem:[#allocation2 + $0x1d1] sm:$0xff] }
 0x31d   :  { %v7924_v59 = vadd.f32 %v2644_v43, %v2259_v52  ;;  %v2271_v63 = vpop.f32.mrf.mxu1  ;;  %3337 = vmatprep.mubr.f32.mxu0 %v1726_v9  ;;  %v1601_v9 = vld [vmem:[#allocation2 + $0x1e2] sm:$0xff] }
 0x31e   :  { %v2646_v29 = vpop.f32.mrf.mxu0 }
 0x31f   :  { %10002 = vst [vmem:[#allocation8_spill] sm:$0xff] %v7924_v59  ;;  %v2274_v25 = vpop.f32.mrf.mxu1  ;;  %2963 = vmatmul.mubr.f32.gmra.mxu1 %v1535_v45  ;;  %v1728_v29 = vld [vmem:[#allocation2 + $0x1e1] sm:$0xff] }
 0x320   :  { %v2649_v62 = vpop.f32.mrf.mxu0  ;;  %3338 = vmatmul.mubr.f32.gmra.mxu0 %v7926_v20  ;;  %2967 = vmatprep.mubr.f32.mxu1 %v1600_v51 }
 0x321   :  { %v7929_v27 = vadd.f32 %v2649_v62, %v2264_v47  ;;  %v2276_v14 = vpop.f32.mrf.mxu1  ;;  %3342 = vmatprep.mubr.f32.mxu0 %v1727_v49  ;;  %v1664_v47 = vld [vmem:[#allocation2 + $0x1e0] sm:$0xff]  ;;  %v1602_v62 = vld [vmem:[#allocation2 + $0x1ea] sm:$0xff] }
 0x322   :  { %v2651_v52 = vpop.f32.mrf.mxu0  ;;  %v1729_v14 = vld [vmem:[#allocation2 + $0x1e9] sm:$0xff] }
 0x323   :  { %10003 = vst [vmem:[#allocation7_spill] sm:$0xff] %v7929_v27  ;;  %v2279_v43 = vpop.f32.mrf.mxu1  ;;  %2968 = vmatmul.mubr.f32.gmra.mxu1 %v1536_v38 }
 0x324   :  { %v2654_v63 = vpop.f32.mrf.mxu0  ;;  %3343 = vmatmul.mubr.f32.gmra.mxu0 %v7926_v20  ;;  %2972 = vmatprep.mubr.f32.mxu1 %v1601_v9 }
 0x325   :  { %v7932_v45 = vadd.f32 %v2654_v63, %v2269_v11  ;;  %3347 = vmatprep.mubr.f32.mxu0 %v1728_v29  ;;  %v2281_v59 = vpop.f32.mrf.mxu1  ;;  %v1665_v11 = vld [vmem:[#allocation2 + $0x1e8] sm:$0xff]  ;;  %v1603_v63 = vld [vmem:[#allocation2 + $0x1fa] sm:$0xff] }
 0x326   :  { %v2656_v26 = vpop.f32.mrf.mxu0 }
 0x327   :  { %10004 = vst [vmem:[#allocation9_spill] sm:$0xff] %v7932_v45  ;;  %v2284_v51 = vpop.f32.mrf.mxu1  ;;  %2973 = vmatmul.mubr.f32.gmra.mxu1 %v1728_v29  ;;  %v1730_v26 = vld [vmem:[#allocation2 + $0x1f9] sm:$0xff] }
 0x328   :  { %v2659_v49 = vpop.f32.mrf.mxu0  ;;  %3348 = vmatmul.mubr.f32.gmra.mxu0 %v1664_v47  ;;  %2977 = vmatprep.mubr.f32.mxu1 %v1602_v62 }
 0x329   :  { %v7934_v52 = vadd.f32 %v2659_v49, %v2274_v25  ;;  %3352 = vmatprep.mubr.f32.mxu0 %v1729_v14  ;;  %v2286_v38 = vpop.f32.mrf.mxu1  ;;  %v1666_v25 = vld [vmem:[#allocation2 + $0x1f8] sm:$0xff]  ;;  %v1604_v49 = vld [vmem:[#allocation2 + $0x202] sm:$0xff] }
 0x32a   :  { %v2661_v27 = vpop.f32.mrf.mxu0 }
 0x32b   :  { %10005 = vst [vmem:[#allocation11_spill] sm:$0xff] %v7934_v52  ;;  %v2289_v9 = vpop.f32.mrf.mxu1  ;;  %2978 = vmatmul.mubr.f32.gmra.mxu1 %v1729_v14  ;;  %v1731_v27 = vld [vmem:[#allocation2 + $0x201] sm:$0xff] }
 0x32c   :  { %v2664_v45 = vpop.f32.mrf.mxu0  ;;  %3353 = vmatmul.mubr.f32.gmra.mxu0 %v1665_v11  ;;  %2982 = vmatprep.mubr.f32.mxu1 %v1603_v63 }
 0x32d   :  { %v7936_v59 = vadd.f32 %v2664_v45, %v2279_v43  ;;  %3357 = vmatprep.mubr.f32.mxu0 %v1730_v26  ;;  %v2291_v29 = vpop.f32.mrf.mxu1  ;;  %v1667_v43 = vld [vmem:[#allocation2 + $0x200] sm:$0xff]  ;;  %v1605_v45 = vld [vmem:[#allocation2 + $0x212] sm:$0xff] }
 0x32e   :  { %v2666_v47 = vpop.f32.mrf.mxu0  ;;  %v1732_v29 = vld [vmem:[#allocation2 + $0x211] sm:$0xff] }
 0x32f   :  { %10006 = vst [vmem:[#allocation10_spill] sm:$0xff] %v7936_v59  ;;  %v2294_v62 = vpop.f32.mrf.mxu1  ;;  %2983 = vmatmul.mubr.f32.gmra.mxu1 %v1730_v26 }
 0x330   :  { %v2669_v52 = vpop.f32.mrf.mxu0  ;;  %3358 = vmatmul.mubr.f32.gmra.mxu0 %v1666_v25  ;;  %2987 = vmatprep.mubr.f32.mxu1 %v1604_v49 }
 0x331   :  { %v7938_v14 = vadd.f32 %v2669_v52, %v2284_v51  ;;  %3362 = vmatprep.mubr.f32.mxu0 %v1731_v27  ;;  %v2296_v38 = vpop.f32.mrf.mxu1  ;;  %v1668_v51 = vld [vmem:[#allocation2 + $0x210] sm:$0xff]  ;;  %v1606_v52 = vld [vmem:[#allocation2 + $0x21a] sm:$0xff] }
 0x332   :  { %v2671_v11 = vpop.f32.mrf.mxu0  ;;  %v1733_v38 = vld [vmem:[#allocation2 + $0x219] sm:$0xff] }
 0x333   :  { %10007 = vst [vmem:[#allocation13_spill] sm:$0xff] %v7938_v14  ;;  %v2299_v63 = vpop.f32.mrf.mxu1  ;;  %2988 = vmatmul.mubr.f32.gmra.mxu1 %v1731_v27 }
 0x334   :  { %v2674_v59 = vpop.f32.mrf.mxu0  ;;  %3363 = vmatmul.mubr.f32.gmra.mxu0 %v1667_v43  ;;  %2992 = vmatprep.mubr.f32.mxu1 %v1605_v45 }
 0x335   :  { %v7940_v26 = vadd.f32 %v2674_v59, %v2289_v9  ;;  %3367 = vmatprep.mubr.f32.mxu0 %v1732_v29  ;;  %v2301_v47 = vpop.f32.mrf.mxu1  ;;  %v1669_v9 = vld [vmem:[#allocation2 + $0x218] sm:$0xff]  ;;  %v1607_v59 = vld [vmem:[#allocation2 + $0x22a] sm:$0xff] }
 0x336   :  { %v2676_v25 = vpop.f32.mrf.mxu0  ;;  %v1734_v47 = vld [vmem:[#allocation2 + $0x229] sm:$0xff] }
 0x337   :  { %10008 = vst [vmem:[#allocation12_spill] sm:$0xff] %v7940_v26  ;;  %v2304_v49 = vpop.f32.mrf.mxu1  ;;  %2993 = vmatmul.mubr.f32.gmra.mxu1 %v1732_v29 }
 0x338   :  { %v2679_v14 = vpop.f32.mrf.mxu0  ;;  %3368 = vmatmul.mubr.f32.gmra.mxu0 %v1668_v51  ;;  %2997 = vmatprep.mubr.f32.mxu1 %v1606_v52 }
 0x339   :  { %v7942_v27 = vadd.f32 %v2679_v14, %v2294_v62  ;;  %3372 = vmatprep.mubr.f32.mxu0 %v1733_v38  ;;  %v2306_v11 = vpop.f32.mrf.mxu1  ;;  %v1670_v62 = vld [vmem:[#allocation2 + $0x228] sm:$0xff]  ;;  %v1608_v14 = vld [vmem:[#allocation2 + $0x232] sm:$0xff] }
 0x33a   :  { %v2681_v43 = vpop.f32.mrf.mxu0  ;;  %v1735_v11 = vld [vmem:[#allocation2 + $0x231] sm:$0xff] }
 0x33b   :  { %10009 = vst [vmem:[#allocation14_spill] sm:$0xff] %v7942_v27  ;;  %v2309_v45 = vpop.f32.mrf.mxu1  ;;  %2998 = vmatmul.mubr.f32.gmra.mxu1 %v1733_v38 }
 0x33c   :  { %v2684_v26 = vpop.f32.mrf.mxu0  ;;  %3373 = vmatmul.mubr.f32.gmra.mxu0 %v1669_v9  ;;  %3002 = vmatprep.mubr.f32.mxu1 %v1607_v59 }
 0x33d   :  { %v7944_v29 = vadd.f32 %v2684_v26, %v2299_v63  ;;  %3377 = vmatprep.mubr.f32.mxu0 %v1734_v47  ;;  %v2311_v25 = vpop.f32.mrf.mxu1  ;;  %v1671_v63 = vld [vmem:[#allocation2 + $0x230] sm:$0xff]  ;;  %v1609_v26 = vld [vmem:[#allocation2 + $0x242] sm:$0xff] }
 0x33e   :  { %v2686_v51 = vpop.f32.mrf.mxu0  ;;  %v1736_v25 = vld [vmem:[#allocation2 + $0x241] sm:$0xff] }
 0x33f   :  { %10010 = vst [vmem:[#allocation15_spill] sm:$0xff] %v7944_v29  ;;  %v2314_v52 = vpop.f32.mrf.mxu1  ;;  %3003 = vmatmul.mubr.f32.gmra.mxu1 %v1734_v47 }
 0x340   :  { %v2689_v27 = vpop.f32.mrf.mxu0  ;;  %3378 = vmatmul.mubr.f32.gmra.mxu0 %v1670_v62  ;;  %3007 = vmatprep.mubr.f32.mxu1 %v1608_v14 }
 0x341   :  { %v7946_v38 = vadd.f32 %v2689_v27, %v2304_v49  ;;  %3382 = vmatprep.mubr.f32.mxu0 %v1735_v11  ;;  %v2316_v43 = vpop.f32.mrf.mxu1  ;;  %v1672_v49 = vld [vmem:[#allocation2 + $0x240] sm:$0xff]  ;;  %v1610_v27 = vld [vmem:[#allocation2 + $0x24a] sm:$0xff] }
 0x342   :  { %v2691_v9 = vpop.f32.mrf.mxu0  ;;  %v1737_v43 = vld [vmem:[#allocation2 + $0x249] sm:$0xff] }
 0x343   :  { %10011 = vst [vmem:[#allocation16_spill] sm:$0xff] %v7946_v38  ;;  %v2319_v59 = vpop.f32.mrf.mxu1  ;;  %3008 = vmatmul.mubr.f32.gmra.mxu1 %v1735_v11 }
 0x344   :  { %v2694_v29 = vpop.f32.mrf.mxu0  ;;  %3383 = vmatmul.mubr.f32.gmra.mxu0 %v1671_v63  ;;  %3012 = vmatprep.mubr.f32.mxu1 %v1609_v26 }
 0x345   :  { %v7948_v47 = vadd.f32 %v2694_v29, %v2309_v45  ;;  %3387 = vmatprep.mubr.f32.mxu0 %v1736_v25  ;;  %v2321_v51 = vpop.f32.mrf.mxu1  ;;  %v1673_v45 = vld [vmem:[#allocation2 + $0x248] sm:$0xff]  ;;  %v1611_v29 = vld [vmem:[#allocation2 + $0x25a] sm:$0xff] }
 0x346   :  { %v2696_v62 = vpop.f32.mrf.mxu0  ;;  %v1738_v51 = vld [vmem:[#allocation2 + $0x259] sm:$0xff] }
 0x347   :  { %10012 = vst [vmem:[#allocation17_spill] sm:$0xff] %v7948_v47  ;;  %v2324_v14 = vpop.f32.mrf.mxu1  ;;  %3013 = vmatmul.mubr.f32.gmra.mxu1 %v1736_v25 }
 0x348   :  { %v2699_v38 = vpop.f32.mrf.mxu0  ;;  %3388 = vmatmul.mubr.f32.gmra.mxu0 %v1672_v49  ;;  %3017 = vmatprep.mubr.f32.mxu1 %v1610_v27 }
 0x349   :  { %v7950_v11 = vadd.f32 %v2699_v38, %v2314_v52  ;;  %3392 = vmatprep.mubr.f32.mxu0 %v1737_v43  ;;  %v2326_v9 = vpop.f32.mrf.mxu1  ;;  %v1674_v52 = vld [vmem:[#allocation2 + $0x258] sm:$0xff]  ;;  %v1612_v38 = vld [vmem:[#allocation2 + $0x262] sm:$0xff] }
 0x34a   :  { %v2701_v63 = vpop.f32.mrf.mxu0  ;;  %v1739_v9 = vld [vmem:[#allocation2 + $0x261] sm:$0xff] }
 0x34b   :  { %10013 = vst [vmem:[#allocation19_spill] sm:$0xff] %v7950_v11  ;;  %v2329_v26 = vpop.f32.mrf.mxu1  ;;  %3018 = vmatmul.mubr.f32.gmra.mxu1 %v1737_v43 }
 0x34c   :  { %v2704_v47 = vpop.f32.mrf.mxu0  ;;  %3393 = vmatmul.mubr.f32.gmra.mxu0 %v1673_v45  ;;  %3022 = vmatprep.mubr.f32.mxu1 %v1611_v29 }
 0x34d   :  { %v7952_v25 = vadd.f32 %v2704_v47, %v2319_v59  ;;  %3397 = vmatprep.mubr.f32.mxu0 %v1738_v51  ;;  %v2331_v62 = vpop.f32.mrf.mxu1  ;;  %v1675_v59 = vld [vmem:[#allocation2 + $0x260] sm:$0xff]  ;;  %v1613_v47 = vld [vmem:[#allocation2 + $0x272] sm:$0xff] }
 0x34e   :  { %v2706_v49 = vpop.f32.mrf.mxu0  ;;  %v1740_v62 = vld [vmem:[#allocation2 + $0x271] sm:$0xff] }
 0x34f   :  { %10014 = vst [vmem:[#allocation18_spill] sm:$0xff] %v7952_v25  ;;  %v2334_v27 = vpop.f32.mrf.mxu1  ;;  %3023 = vmatmul.mubr.f32.gmra.mxu1 %v1738_v51 }
 0x350   :  { %v2709_v11 = vpop.f32.mrf.mxu0  ;;  %3398 = vmatmul.mubr.f32.gmra.mxu0 %v1674_v52  ;;  %3027 = vmatprep.mubr.f32.mxu1 %v1612_v38 }
 0x351   :  { %v7954_v43 = vadd.f32 %v2709_v11, %v2324_v14  ;;  %3402 = vmatprep.mubr.f32.mxu0 %v1739_v9  ;;  %v2336_v63 = vpop.f32.mrf.mxu1  ;;  %v1676_v14 = vld [vmem:[#allocation2 + $0x270] sm:$0xff]  ;;  %v1614_v11 = vld [vmem:[#allocation2 + $0x27a] sm:$0xff] }
 0x352   :  { %v2711_v45 = vpop.f32.mrf.mxu0  ;;  %v1741_v63 = vld [vmem:[#allocation2 + $0x279] sm:$0xff] }
 0x353   :  { %10015 = vst [vmem:[#allocation21_spill] sm:$0xff] %v7954_v43  ;;  %v2339_v29 = vpop.f32.mrf.mxu1  ;;  %3028 = vmatmul.mubr.f32.gmra.mxu1 %v1739_v9 }
 0x354   :  { %v2714_v25 = vpop.f32.mrf.mxu0  ;;  %3403 = vmatmul.mubr.f32.gmra.mxu0 %v1675_v59  ;;  %3032 = vmatprep.mubr.f32.mxu1 %v1613_v47 }
 0x355   :  { %v7956_v51 = vadd.f32 %v2714_v25, %v2329_v26  ;;  %3407 = vmatprep.mubr.f32.mxu0 %v1740_v62  ;;  %v2341_v49 = vpop.f32.mrf.mxu1  ;;  %v1677_v26 = vld [vmem:[#allocation2 + $0x278] sm:$0xff]  ;;  %v1615_v25 = vld [vmem:[#allocation2 + $0x28a] sm:$0xff] }
 0x356   :  { %v2716_v52 = vpop.f32.mrf.mxu0  ;;  %v1742_v49 = vld [vmem:[#allocation2 + $0x289] sm:$0xff] }
 0x357   :  { %10016 = vst [vmem:[#allocation20_spill] sm:$0xff] %v7956_v51  ;;  %v2344_v38 = vpop.f32.mrf.mxu1  ;;  %3033 = vmatmul.mubr.f32.gmra.mxu1 %v1740_v62 }
 0x358   :  { %v2719_v43 = vpop.f32.mrf.mxu0  ;;  %3408 = vmatmul.mubr.f32.gmra.mxu0 %v1676_v14  ;;  %3037 = vmatprep.mubr.f32.mxu1 %v1614_v11  ;;  %v2420_v14 = vadd.f32 %v7786_v32, %v7673_v5  ;;  %v1678_v11 = vld [vmem:[#allocation2 + $0x288] sm:$0xff]  ;;  %v1679_v5 = vld [vmem:[#allocation2 + $0x290] sm:$0xff] }
 0x359   :  { %v7958_v9 = vadd.f32 %v2719_v43, %v2334_v27  ;;  %3412 = vmatprep.mubr.f32.mxu0 %v1741_v63  ;;  %v2346_v45 = vpop.f32.mrf.mxu1  ;;  %v1617_v32 = vld [vmem:[#allocation2 + $0x2a2] sm:$0xff] }
 0x35a   :  { %v2721_v59 = vpop.f32.mrf.mxu0  ;;  %v1616_v45 = vld [vmem:[#allocation2 + $0x292] sm:$0xff] }
 0x35b   :  { %10017 = vst [vmem:[#allocation23_spill] sm:$0xff] %v7958_v9  ;;  %v2349_v47 = vpop.f32.mrf.mxu1  ;;  %3038 = vmatmul.mubr.f32.gmra.mxu1 %v1741_v63  ;;  %v1743_v9 = vld [vmem:[#allocation2 + $0x291] sm:$0xff] }
 0x35c   :  { %v2724_v51 = vpop.f32.mrf.mxu0  ;;  %3413 = vmatmul.mubr.f32.gmra.mxu0 %v1677_v26  ;;  %3042 = vmatprep.mubr.f32.mxu1 %v1615_v25 }
 0x35d   :  { %v7960_v62 = vadd.f32 %v2724_v51, %v2339_v29  ;;  %3417 = vmatprep.mubr.f32.mxu0 %v1742_v49  ;;  %v2351_v52 = vpop.f32.mrf.mxu1  ;;  %v2425_v51 = vadd.f32 %v7788_v50, %v7679_v48 }
 0x35e   :  { %v2726_v27 = vpop.f32.mrf.mxu0 }
 0x35f   :  { %v2804_v43 = vpop.f32.mrf.mxu1  ;;  %3043 = vmatmul.mubr.f32.gmra.mxu1 %v1742_v49 }
 0x360   :  { %v2729_v59 = vpop.f32.mrf.mxu0  ;;  %v2805_v63 = vadd.f32 %v2804_v43, %v2420_v14  ;;  %3418 = vmatmul.mubr.f32.gmra.mxu0 %v1678_v11  ;;  %3047 = vmatprep.mubr.f32.mxu1 %v1616_v45  ;;  %v1744_v14 = vld [vmem:[#allocation2 + $0x2a1] sm:$0xff] }
 0x361   :  { %v7964_v26 = vadd.f32 %v2729_v59, %v2344_v38  ;;  %3422 = vmatprep.mubr.f32.mxu0 %v1743_v9  ;;  %v2806_v29 = vpop.f32.mrf.mxu1  ;;  %v1680_v59 = vld [vmem:[#allocation2 + $0x2a0] sm:$0xff] }
 0x362   :  { %v2731_v25 = vpop.f32.mrf.mxu0  ;;  %v1618_v29 = vld [vmem:[#allocation2 + $0x2aa] sm:$0xff] }
 0x363   :  { %v2809_v52 = vpop.f32.mrf.mxu1  ;;  %3048 = vmatmul.mubr.f32.gmra.mxu1 %v1743_v9  ;;  %v1745_v9 = vld [vmem:[#allocation2 + $0x2a9] sm:$0xff] }
 0x364   :  { %v2734_v49 = vpop.f32.mrf.mxu0  ;;  %v2810_v27 = vadd.f32 %v2809_v52, %v2425_v51  ;;  %3423 = vmatmul.mubr.f32.gmra.mxu0 %v1679_v5  ;;  %3052 = vmatprep.mubr.f32.mxu1 %v1617_v32  ;;  %v1681_v5 = vld [vmem:[#allocation2 + $0x2a8] sm:$0xff]  ;;  %v7973_v32 = vld [vmem:[#allocation2 + $0x2ba] sm:$0xff] }
 0x365   :  { %v7968_v43 = vadd.f32 %v2734_v49, %v2349_v47  ;;  %3427 = vmatprep.mubr.f32.mxu0 %v1744_v14  ;;  %v2811_v38 = vpop.f32.mrf.mxu1 }
 0x366   :  { %v2736_v11 = vpop.f32.mrf.mxu0 }
 0x367   :  { %v2814_v45 = vpop.f32.mrf.mxu1  ;;  %3053 = vmatmul.mubr.f32.gmra.mxu1 %v1744_v14 }
 0x368   :  { %v2815_v48 = vadd.f32 %v2814_v45, %v7790_v33  ;;  %v3189_v50 = vpop.f32.mrf.mxu0  ;;  %3428 = vmatmul.mubr.f32.gmra.mxu0 %v1680_v59  ;;  %3057 = vmatprep.mubr.f32.mxu1 %v1618_v29  ;;  %v1746_v33 = vld [vmem:[#allocation2 + $0x2b9] sm:$0xff]  ;;  %v7979_v29 = vld [vmem:[#allocation2 + $0x2c2] sm:$0xff] }
 0x369   :  { %v7971_v25 = vadd.f32 %v3189_v50, %v2805_v63  ;;  %3432 = vmatprep.mubr.f32.mxu0 %v1745_v9  ;;  %v2816_v51 = vpop.f32.mrf.mxu1  ;;  %v1682_v59 = vld [vmem:[#allocation2 + $0x2b8] sm:$0xff] }
 0x36a   :  { %v3191_v52 = vpop.f32.mrf.mxu0 }
 0x36b   :  { %v2819_v47 = vpop.f32.mrf.mxu1  ;;  %3058 = vmatmul.mubr.f32.gmra.mxu1 %v1745_v9 }
 0x36c   :  { %v2820_v49 = vadd.f32 %v2819_v47, %v7792_v2  ;;  %v3194_v14 = vpop.f32.mrf.mxu0  ;;  %3433 = vmatmul.mubr.f32.gmra.mxu0 %v1681_v5  ;;  %3062 = vmatprep.mubr.f32.mxu1 %v7973_v32  ;;  %v1747_v2 = vld [vmem:[#allocation2 + $0x2c1] sm:$0xff] }
 0x36d   :  { %v7977_v38 = vadd.f32 %v3194_v14, %v2810_v27  ;;  %3437 = vmatprep.mubr.f32.mxu0 %v1746_v33  ;;  %v2821_v63 = vpop.f32.mrf.mxu1  ;;  %v1683_v5 = vld [vmem:[#allocation2 + $0x2c0] sm:$0xff]  ;;  %v7985_v14 = vld [vmem:[#allocation2 + $0x2d2] sm:$0xff] }
 0x36e   :  { %v3196_v11 = vpop.f32.mrf.mxu0 }
 0x36f   :  { %v2824_v45 = vpop.f32.mrf.mxu1  ;;  %3063 = vmatmul.mubr.f32.gmra.mxu1 %v1746_v33 }
 0x370   :  { %v2825_v50 = vadd.f32 %v2824_v45, %v7794_v61  ;;  %v3199_v9 = vpop.f32.mrf.mxu0  ;;  %3438 = vmatmul.mubr.f32.gmra.mxu0 %v1682_v59  ;;  %3067 = vmatprep.mubr.f32.mxu1 %v7979_v29  ;;  %v1748_v61 = vld [vmem:[#allocation2 + $0x2d1] sm:$0xff] }
 0x371   :  { %v7983_v51 = vadd.f32 %v3199_v9, %v2815_v48  ;;  %3442 = vmatprep.mubr.f32.mxu0 %v1747_v2  ;;  %v2826_v27 = vpop.f32.mrf.mxu1  ;;  %v1684_v9 = vld [vmem:[#allocation2 + $0x2d0] sm:$0xff] }
 0x372   :  { %v3201_v52 = vpop.f32.mrf.mxu0  ;;  %v7991_v27 = vld [vmem:[#allocation2 + $0x2da] sm:$0xff] }
 0x373   :  { %10018 = vst [vmem:[#allocation22_spill] sm:$0xff] %v7983_v51  ;;  %v2829_v47 = vpop.f32.mrf.mxu1  ;;  %3068 = vmatmul.mubr.f32.gmra.mxu1 %v1747_v2 }
 0x374   :  { %v2830_v33 = vadd.f32 %v2829_v47, %v7796_v60  ;;  %v3204_v63 = vpop.f32.mrf.mxu0  ;;  %3443 = vmatmul.mubr.f32.gmra.mxu0 %v1683_v5  ;;  %3072 = vmatprep.mubr.f32.mxu1 %v7985_v14  ;;  %v1749_v60 = vld [vmem:[#allocation2 + $0x2d9] sm:$0xff] }
 0x375   :  { %v7989_v11 = vadd.f32 %v3204_v63, %v2820_v49  ;;  %3447 = vmatprep.mubr.f32.mxu0 %v1748_v61  ;;  %v2831_v48 = vpop.f32.mrf.mxu1 }
 0x376   :  { %v3206_v45 = vpop.f32.mrf.mxu0  ;;  %v1685_v48 = vld [vmem:[#allocation2 + $0x2d8] sm:$0xff] }
 0x377   :  { %10019 = vst [vmem:[#allocation25_spill] sm:$0xff] %v7989_v11  ;;  %v2834_v59 = vpop.f32.mrf.mxu1  ;;  %3073 = vmatmul.mubr.f32.gmra.mxu1 %v1748_v61  ;;  %v7997_v45 = vld [vmem:[#allocation2 + $0x2ea] sm:$0xff] }
 0x378   :  { %v2835_v2 = vadd.f32 %v2834_v59, %v7798_v24  ;;  %v3209_v52 = vpop.f32.mrf.mxu0  ;;  %3448 = vmatmul.mubr.f32.gmra.mxu0 %v1684_v9  ;;  %3077 = vmatprep.mubr.f32.mxu1 %v7991_v27  ;;  %v1750_v24 = vld [vmem:[#allocation2 + $0x2e9] sm:$0xff] }
 0x379   :  { %v7995_v47 = vadd.f32 %v3209_v52, %v2825_v50  ;;  %3452 = vmatprep.mubr.f32.mxu0 %v1749_v60  ;;  %v2836_v49 = vpop.f32.mrf.mxu1 }
 0x37a   :  { %v3211_v5 = vpop.f32.mrf.mxu0  ;;  %v1686_v49 = vld [vmem:[#allocation2 + $0x2e8] sm:$0xff] }
 0x37b   :  { %10020 = vst [vmem:[#allocation26_spill] sm:$0xff] %v7995_v47  ;;  %v2839_v63 = vpop.f32.mrf.mxu1  ;;  %3078 = vmatmul.mubr.f32.gmra.mxu1 %v1749_v60  ;;  %v8003_v5 = vld [vmem:[#allocation2 + $0x2f2] sm:$0xff] }
 0x37c   :  { %v2840_v61 = vadd.f32 %v2839_v63, %v7800_v6  ;;  %v3214_v51 = vpop.f32.mrf.mxu0  ;;  %3453 = vmatmul.mubr.f32.gmra.mxu0 %v1685_v48  ;;  %3082 = vmatprep.mubr.f32.mxu1 %v7997_v45  ;;  %v1751_v6 = vld [vmem:[#allocation2 + $0x2f1] sm:$0xff] }
 0x37d   :  { %v8001_v59 = vadd.f32 %v3214_v51, %v2830_v33  ;;  %3457 = vmatprep.mubr.f32.mxu0 %v1750_v24  ;;  %v2841_v50 = vpop.f32.mrf.mxu1 }
 0x37e   :  { %v3216_v9 = vpop.f32.mrf.mxu0  ;;  %v1687_v50 = vld [vmem:[#allocation2 + $0x2f0] sm:$0xff] }
 0x37f   :  { %10021 = vst [vmem:[#allocation27_spill] sm:$0xff] %v8001_v59  ;;  %v2844_v52 = vpop.f32.mrf.mxu1  ;;  %3083 = vmatmul.mubr.f32.gmra.mxu1 %v1750_v24  ;;  %v8009_v9 = vld [vmem:[#allocation2 + $0x302] sm:$0xff] }
 0x380   :  { %v2845_v60 = vadd.f32 %v2844_v52, %v7802_v34  ;;  %v3219_v47 = vpop.f32.mrf.mxu0  ;;  %3458 = vmatmul.mubr.f32.gmra.mxu0 %v1686_v49  ;;  %3087 = vmatprep.mubr.f32.mxu1 %v8003_v5  ;;  %v1752_v34 = vld [vmem:[#allocation2 + $0x301] sm:$0xff] }
 0x381   :  { %v8007_v63 = vadd.f32 %v3219_v47, %v2835_v2  ;;  %3462 = vmatprep.mubr.f32.mxu0 %v1751_v6  ;;  %v2846_v51 = vpop.f32.mrf.mxu1 }
 0x382   :  { %v3221_v33 = vpop.f32.mrf.mxu0  ;;  %v1688_v51 = vld [vmem:[#allocation2 + $0x300] sm:$0xff] }
 0x383   :  { %10022 = vst [vmem:[#allocation28_spill] sm:$0xff] %v8007_v63  ;;  %v2849_v48 = vpop.f32.mrf.mxu1  ;;  %3088 = vmatmul.mubr.f32.gmra.mxu1 %v1751_v6  ;;  %v8015_v33 = vld [vmem:[#allocation2 + $0x30a] sm:$0xff] }
 0x384   :  { %v2850_v24 = vadd.f32 %v2849_v48, %v7804_v44  ;;  %v3224_v59 = vpop.f32.mrf.mxu0  ;;  %3463 = vmatmul.mubr.f32.gmra.mxu0 %v1687_v50  ;;  %3092 = vmatprep.mubr.f32.mxu1 %v8009_v9  ;;  %v1753_v44 = vld [vmem:[#allocation2 + $0x309] sm:$0xff] }
 0x385   :  { %v8013_v52 = vadd.f32 %v3224_v59, %v2840_v61  ;;  %3467 = vmatprep.mubr.f32.mxu0 %v1752_v34  ;;  %v2851_v2 = vpop.f32.mrf.mxu1 }
 0x386   :  { %v3226_v47 = vpop.f32.mrf.mxu0  ;;  %v1689_v2 = vld [vmem:[#allocation2 + $0x308] sm:$0xff] }
 0x387   :  { %10023 = vst [vmem:[#allocation29_spill] sm:$0xff] %v8013_v52  ;;  %v2854_v49 = vpop.f32.mrf.mxu1  ;;  %3093 = vmatmul.mubr.f32.gmra.mxu1 %v1752_v34  ;;  %v8021_v47 = vld [vmem:[#allocation2 + $0x31a] sm:$0xff] }
 0x388   :  { %v2855_v6 = vadd.f32 %v2854_v49, %v7806_v19  ;;  %v3229_v63 = vpop.f32.mrf.mxu0  ;;  %3468 = vmatmul.mubr.f32.gmra.mxu0 %v1688_v51  ;;  %3097 = vmatprep.mubr.f32.mxu1 %v8015_v33  ;;  %v1754_v19 = vld [vmem:[#allocation2 + $0x319] sm:$0xff] }
 0x389   :  { %v8019_v48 = vadd.f32 %v3229_v63, %v2845_v60  ;;  %3472 = vmatprep.mubr.f32.mxu0 %v1753_v44  ;;  %v2856_v61 = vpop.f32.mrf.mxu1 }
 0x38a   :  { %v3231_v59 = vpop.f32.mrf.mxu0  ;;  %v1690_v61 = vld [vmem:[#allocation2 + $0x318] sm:$0xff] }
 0x38b   :  { %10024 = vst [vmem:[#allocation30_spill] sm:$0xff] %v8019_v48  ;;  %v2859_v50 = vpop.f32.mrf.mxu1  ;;  %3098 = vmatmul.mubr.f32.gmra.mxu1 %v1753_v44  ;;  %v8027_v59 = vld [vmem:[#allocation2 + $0x322] sm:$0xff] }
 0x38c   :  { %v2860_v34 = vadd.f32 %v2859_v50, %v7808_v56  ;;  %v3234_v52 = vpop.f32.mrf.mxu0  ;;  %3473 = vmatmul.mubr.f32.gmra.mxu0 %v1689_v2  ;;  %3102 = vmatprep.mubr.f32.mxu1 %v8021_v47  ;;  %v1755_v56 = vld [vmem:[#allocation2 + $0x321] sm:$0xff] }
 0x38d   :  { %v8025_v49 = vadd.f32 %v3234_v52, %v2850_v24  ;;  %3477 = vmatprep.mubr.f32.mxu0 %v1754_v19  ;;  %v2861_v60 = vpop.f32.mrf.mxu1 }
 0x38e   :  { %v3236_v63 = vpop.f32.mrf.mxu0  ;;  %v1691_v60 = vld [vmem:[#allocation2 + $0x320] sm:$0xff] }
 0x38f   :  { %10025 = vst [vmem:[#allocation31_spill] sm:$0xff] %v8025_v49  ;;  %v2864_v51 = vpop.f32.mrf.mxu1  ;;  %3103 = vmatmul.mubr.f32.gmra.mxu1 %v1754_v19  ;;  %v8033_v63 = vld [vmem:[#allocation2 + $0x332] sm:$0xff] }
 0x390   :  { %v2865_v44 = vadd.f32 %v2864_v51, %v7810_v21  ;;  %v3239_v48 = vpop.f32.mrf.mxu0  ;;  %3478 = vmatmul.mubr.f32.gmra.mxu0 %v1690_v61  ;;  %3107 = vmatprep.mubr.f32.mxu1 %v8027_v59  ;;  %v1756_v21 = vld [vmem:[#allocation2 + $0x331] sm:$0xff] }
 0x391   :  { %v8031_v50 = vadd.f32 %v3239_v48, %v2855_v6  ;;  %3482 = vmatprep.mubr.f32.mxu0 %v1755_v56  ;;  %v2866_v24 = vpop.f32.mrf.mxu1 }
 0x392   :  { %v3241_v52 = vpop.f32.mrf.mxu0  ;;  %v1692_v24 = vld [vmem:[#allocation2 + $0x330] sm:$0xff] }
 0x393   :  { %10026 = vst [vmem:[#allocation32_spill] sm:$0xff] %v8031_v50  ;;  %v2869_v2 = vpop.f32.mrf.mxu1  ;;  %3108 = vmatmul.mubr.f32.gmra.mxu1 %v1755_v56  ;;  %v8039_v52 = vld [vmem:[#allocation2 + $0x33a] sm:$0xff] }
 0x394   :  { %v2870_v19 = vadd.f32 %v2869_v2, %v7812_v28  ;;  %v3244_v49 = vpop.f32.mrf.mxu0  ;;  %3483 = vmatmul.mubr.f32.gmra.mxu0 %v1691_v60  ;;  %3112 = vmatprep.mubr.f32.mxu1 %v8033_v63  ;;  %v1757_v28 = vld [vmem:[#allocation2 + $0x339] sm:$0xff]  ;;  %v1758_v60 = vld [vmem:[#allocation2 + $0x349] sm:$0xff] }
 0x395   :  { %v8037_v51 = vadd.f32 %v3244_v49, %v2860_v34  ;;  %3487 = vmatprep.mubr.f32.mxu0 %v1756_v21  ;;  %v2871_v6 = vpop.f32.mrf.mxu1 }
 0x396   :  { %v3246_v48 = vpop.f32.mrf.mxu0 }
 0x397   :  { %10027 = vst [vmem:[#allocation33_spill] sm:$0xff] %v8037_v51  ;;  %v2874_v61 = vpop.f32.mrf.mxu1  ;;  %3113 = vmatmul.mubr.f32.gmra.mxu1 %v1756_v21  ;;  %v1693_v48 = vld [vmem:[#allocation2 + $0x338] sm:$0xff] }
 0x398   :  { %v2875_v56 = vadd.f32 %v2874_v61, %v7818_v37  ;;  %v3249_v50 = vpop.f32.mrf.mxu0  ;;  %3488 = vmatmul.mubr.f32.gmra.mxu0 %v1692_v24  ;;  %3117 = vmatprep.mubr.f32.mxu1 %v8039_v52  ;;  %v1760_v21 = vld [vmem:[#allocation2 + $0x32] sm:$0xff] }
 0x399   :  { %v8043_v2 = vadd.f32 %v3249_v50, %v2865_v44  ;;  %3492 = vmatprep.mubr.f32.mxu0 %v1757_v28  ;;  %v2876_v34 = vpop.f32.mrf.mxu1  ;;  %v1761_v44 = vld [vmem:[#allocation2 + $0x3a] sm:$0xff]  ;;  %v1759_v50 = vld [vmem:[#allocation2 + $0x351] sm:$0xff] }
 0x39a   :  { %v3251_v49 = vpop.f32.mrf.mxu0  ;;  %v1762_v34 = vld [vmem:[#allocation2 + $0x4a] sm:$0xff] }
 0x39b   :  { %10028 = vst [vmem:[#allocation34_spill] sm:$0xff] %v8043_v2  ;;  %v2879_v6 = vpop.f32.mrf.mxu1  ;;  %3118 = vmatmul.mubr.f32.gmra.mxu1 %v1757_v28 }
 0x39c   :  { %v2880_v51 = vadd.f32 %v2879_v6, %v7823_v57  ;;  %v3254_v11 = vpop.f32.mrf.mxu0  ;;  %3493 = vmatmul.mubr.f32.gmra.mxu0 %v1693_v48  ;;  %5590 = vmatprep.mubr.f32.mxu1 %v1760_v21  ;;  %v1764_v21 = vld [vmem:[#allocation2 + $0x62] sm:$0xff] }
 0x39d   :  { %v8046_v37 = vadd.f32 %v3254_v11, %v2870_v19  ;;  %v2881_v61 = vpop.f32.mrf.mxu1  ;;  %3497 = vmatprep.mubr.f32.mxu0 %v1758_v60  ;;  %v1763_v19 = vld [vmem:[#allocation2 + $0x52] sm:$0xff]  ;;  %v4246_v60 = vld [vmem:[%s9777_s1] sm:$0xff] }
 0x39e   :  { %v3256_v24 = vpop.f32.mrf.mxu0 }
 0x39f   :  { %v2884_v2 = vpop.f32.mrf.mxu1  ;;  %5591 = vmatmul.mubr.f32.vlgmr.msra.gmra.mxu1 %v1761_v44  ;;  %v4247_v24 = vld [vmem:[%s9777_s1 + $0x8] sm:$0xff] }
 0x3a0   :  { %v2885_v49 = vadd.f32 %v2884_v2, %v7828_v53  ;;  %v3259_v28 = vpop.f32.mrf.mxu0  ;;  %3498 = vmatmul.mubr.f32.gmra.mxu0 %v7926_v20  ;;  %5593 = vmatprep.mubr.f32.mxu1 %v1762_v34  ;;  %v4248_v34 = vld [vmem:[%s9777_s1 + $0x10] sm:$0xff] }
 0x3a1   :  { %v8050_v57 = vadd.f32 %v3259_v28, %v2875_v56  ;;  %v2886_v6 = vpop.f32.mrf.mxu1  ;;  %3502 = vmatprep.mubr.f32.mxu0 %v1759_v50  ;;  %v1765_v50 = vld [vmem:[#allocation2 + $0x6a] sm:$0xff]  ;;  %v1766_v28 = vld [vmem:[#allocation2 + $0x7a] sm:$0xff] }
 0x3a2   :  { %v3261_v11 = vpop.f32.mrf.mxu0 }
 0x3a3   :  { %v2889_v48 = vpop.f32.mrf.mxu1  ;;  %5594 = vmatmul.mubr.f32.gmra.mxu1 %v1763_v19  ;;  %v4249_v19 = vld [vmem:[%s9777_s1 + $0x18] sm:$0xff] }
 0x3a4   :  { %v2890_v53 = vadd.f32 %v2889_v48, %v7835_v12  ;;  %v3264_v2 = vpop.f32.mrf.mxu0  ;;  %3503 = vmatmul.mubr.f32.gmra.mxu0 %v7926_v20  ;;  %5596 = vmatprep.mubr.f32.mxu1 %v1764_v21  ;;  %v1767_v48 = vld [vmem:[#allocation2 + $0x82] sm:$0xff] }
 0x3a5   :  { %v8057_v56 = vadd.f32 %v3264_v2, %v2880_v51  ;;  %v2891_v61 = vpop.f32.mrf.mxu1  ;;  %5688 = vmatprep.mubr.msk.f32.mxu0 %vm4318_vm2, %v4246_v60  ;;  %v4250_v21 = vld [vmem:[%s9777_s1 + $0x20] sm:$0xff]  ;;  %v1768_v2 = vld [vmem:[#allocation2 + $0x92] sm:$0xff] }
 0x3a6   :  { %v3266_v44 = vpop.f32.mrf.mxu0 }
 0x3a7   :  { %v2894_v12 = vpop.f32.mrf.mxu1  ;;  %5597 = vmatmul.mubr.f32.gmra.mxu1 %v1765_v50  ;;  %v4251_v50 = vld [vmem:[%s9777_s1 + $0x28] sm:$0xff] }
 0x3a8   :  { %v2895_v20 = vadd.f32 %v2894_v12, %v7840_v17  ;;  %v3269_v51 = vpop.f32.mrf.mxu0  ;;  %5599 = vmatprep.mubr.f32.mxu1 %v1766_v28  ;;  %5689 = vmatmul.mubr.msk.f32.vlgmr.msra.gmra.mxu0 %vm4318_vm2, %v4247_v24  ;;  %v1769_v12 = vld [vmem:[#allocation2 + $0x9a] sm:$0xff]  ;;  %v4252_v28 = vld [vmem:[%s9777_s1 + $0x30] sm:$0xff] }
 0x3a9   :  { %v8068_v6 = vadd.f32 %v3269_v51, %v2885_v49  ;;  %v2896_v11 = vpop.f32.mrf.mxu1  ;;  %5691 = vmatprep.mubr.msk.f32.mxu0 %vm4318_vm2, %v4248_v34  ;;  %v1770_v51 = vld [vmem:[#allocation2 + $0xaa] sm:$0xff] }
 0x3aa   :  { %v3271_v60 = vpop.f32.mrf.mxu0 }
 0x3ab   :  { %v2899_v17 = vpop.f32.mrf.mxu1  ;;  %5600 = vmatmul.mubr.f32.gmra.mxu1 %v1767_v48  ;;  %v4253_v48 = vld [vmem:[%s9777_s1 + $0x38] sm:$0xff] }
 0x3ac   :  { %v2900_v61 = vadd.f32 %v2899_v17, %v7845_v36  ;;  %v3274_v49 = vpop.f32.mrf.mxu0  ;;  %5602 = vmatprep.mubr.f32.mxu1 %v1768_v2  ;;  %5692 = vmatmul.mubr.msk.f32.gmra.mxu0 %vm4318_vm2, %v4249_v19  ;;  %v1771_v17 = vld [vmem:[#allocation2 + $0xb2] sm:$0xff]  ;;  %v4254_v2 = vld [vmem:[%s9777_s1 + $0x40] sm:$0xff] }
 0x3ad   :  { %v8079_v24 = vadd.f32 %v3274_v49, %v2890_v53  ;;  %v2901_v44 = vpop.f32.mrf.mxu1  ;;  %5694 = vmatprep.mubr.msk.f32.mxu0 %vm4318_vm2, %v4250_v21  ;;  %v1772_v49 = vld [vmem:[#allocation2 + $0xc2] sm:$0xff] }
 0x3ae   :  { %v3276_v34 = vpop.f32.mrf.mxu0 }
 0x3af   :  { %v2904_v36 = vpop.f32.mrf.mxu1  ;;  %5603 = vmatmul.mubr.f32.gmra.mxu1 %v1769_v12  ;;  %v4255_v12 = vld [vmem:[%s9777_s1 + $0x48] sm:$0xff] }
 0x3b0   :  { %v2905_v11 = vadd.f32 %v2904_v36, %v7850_v35  ;;  %v3279_v53 = vpop.f32.mrf.mxu0  ;;  %5605 = vmatprep.mubr.f32.mxu1 %v1770_v51  ;;  %5695 = vmatmul.mubr.msk.f32.gmra.mxu0 %vm4318_vm2, %v4251_v50  ;;  %v1773_v36 = vld [vmem:[#allocation2 + $0xca] sm:$0xff] }
 0x3b1   :  { %v8090_v19 = vadd.f32 %v3279_v53, %v2895_v20  ;;  %v2906_v60 = vpop.f32.mrf.mxu1  ;;  %5697 = vmatprep.mubr.msk.f32.mxu0 %vm4318_vm2, %v4252_v28  ;;  %v4256_v51 = vld [vmem:[%s9777_s1 + $0x50] sm:$0xff]  ;;  %v1774_v53 = vld [vmem:[#allocation2 + $0xda] sm:$0xff] }
 0x3b2   :  { %v3281_v21 = vpop.f32.mrf.mxu0 }
 0x3b3   :  { %v2909_v35 = vpop.f32.mrf.mxu1  ;;  %5606 = vmatmul.mubr.f32.gmra.mxu1 %v1771_v17  ;;  %v4257_v17 = vld [vmem:[%s9777_s1 + $0x58] sm:$0xff] }
 0x3b4   :  { %v2910_v44 = vadd.f32 %v2909_v35, %v7855_v23  ;;  %v3284_v20 = vpop.f32.mrf.mxu0  ;;  %5608 = vmatprep.mubr.f32.mxu1 %v1772_v49  ;;  %5698 = vmatmul.mubr.msk.f32.gmra.mxu0 %vm4318_vm2, %v4253_v48  ;;  %v1775_v35 = vld [vmem:[#allocation2 + $0xe2] sm:$0xff] }
 0x3b5   :  { %v8101_v50 = vadd.f32 %v3284_v20, %v2900_v61  ;;  %v2911_v34 = vpop.f32.mrf.mxu1  ;;  %5700 = vmatprep.mubr.msk.f32.mxu0 %vm4318_vm2, %v4254_v2  ;;  %v4258_v49 = vld [vmem:[%s9777_s1 + $0x60] sm:$0xff]  ;;  %v1776_v20 = vld [vmem:[#allocation2 + $0xf2] sm:$0xff] }
 0x3b6   :  { %v3286_v28 = vpop.f32.mrf.mxu0 }
 0x3b7   :  { %v2914_v23 = vpop.f32.mrf.mxu1  ;;  %5609 = vmatmul.mubr.f32.gmra.mxu1 %v1773_v36  ;;  %v4259_v36 = vld [vmem:[%s9777_s1 + $0x68] sm:$0xff] }
 0x3b8   :  { %v2915_v60 = vadd.f32 %v2914_v23, %v7860_v54  ;;  %v3289_v61 = vpop.f32.mrf.mxu0  ;;  %5611 = vmatprep.mubr.f32.mxu1 %v1774_v53  ;;  %5701 = vmatmul.mubr.msk.f32.gmra.mxu0 %vm4318_vm2, %v4255_v12  ;;  %v1777_v23 = vld [vmem:[#allocation2 + $0xfa] sm:$0xff]  ;;  %v4260_v53 = vld [vmem:[%s9777_s1 + $0x70] sm:$0xff] }
 0x3b9   :  { %v8112_v48 = vadd.f32 %v3289_v61, %v2905_v11  ;;  %v2916_v21 = vpop.f32.mrf.mxu1  ;;  %5703 = vmatprep.mubr.msk.f32.mxu0 %vm4318_vm2, %v4256_v51  ;;  %v1778_v61 = vld [vmem:[#allocation2 + $0x10a] sm:$0xff] }
 0x3ba   :  { %v3291_v2 = vpop.f32.mrf.mxu0 }
 0x3bb   :  { %v2919_v54 = vpop.f32.mrf.mxu1  ;;  %5612 = vmatmul.mubr.f32.gmra.mxu1 %v1775_v35  ;;  %v4261_v35 = vld [vmem:[%s9777_s1 + $0x78] sm:$0xff] }
 0x3bc   :  { %v2920_v34 = vadd.f32 %v2919_v54, %v7865_v16  ;;  %v3294_v11 = vpop.f32.mrf.mxu0  ;;  %5614 = vmatprep.mubr.f32.mxu1 %v1776_v20  ;;  %5704 = vmatmul.mubr.msk.f32.gmra.mxu0 %vm4318_vm2, %v4257_v17  ;;  %v1779_v54 = vld [vmem:[#allocation2 + $0x112] sm:$0xff]  ;;  %v4262_v20 = vld [vmem:[%s9777_s1 + $0x80] sm:$0xff] }
 0x3bd   :  { %v8123_v12 = vadd.f32 %v3294_v11, %v2910_v44  ;;  %v2921_v28 = vpop.f32.mrf.mxu1  ;;  %5706 = vmatprep.mubr.msk.f32.mxu0 %vm4318_vm2, %v4258_v49  ;;  %v1780_v11 = vld [vmem:[#allocation2 + $0x122] sm:$0xff] }
 0x3be   :  { %v3296_v51 = vpop.f32.mrf.mxu0 }
 0x3bf   :  { %v2924_v16 = vpop.f32.mrf.mxu1  ;;  %5615 = vmatmul.mubr.f32.gmra.mxu1 %v1777_v23  ;;  %v4263_v23 = vld [vmem:[%s9777_s1 + $0x88] sm:$0xff] }
 0x3c0   :  { %v2925_v21 = vadd.f32 %v2924_v16, %v7867_v39  ;;  %v3299_v44 = vpop.f32.mrf.mxu0  ;;  %5617 = vmatprep.mubr.f32.mxu1 %v1778_v61  ;;  %5707 = vmatmul.mubr.msk.f32.gmra.mxu0 %vm4318_vm2, %v4259_v36  ;;  %v1781_v16 = vld [vmem:[#allocation2 + $0x12a] sm:$0xff] }
 0x3c1   :  { %v8134_v17 = vadd.f32 %v3299_v44, %v2915_v60  ;;  %v2926_v2 = vpop.f32.mrf.mxu1  ;;  %5709 = vmatprep.mubr.msk.f32.mxu0 %vm4318_vm2, %v4260_v53  ;;  %v4264_v61 = vld [vmem:[%s9777_s1 + $0x90] sm:$0xff]  ;;  %v1782_v44 = vld [vmem:[#allocation2 + $0x13a] sm:$0xff] }
 0x3c2   :  { %v3301_v49 = vpop.f32.mrf.mxu0 }
 0x3c3   :  { %v2929_v39 = vpop.f32.mrf.mxu1  ;;  %5618 = vmatmul.mubr.f32.gmra.mxu1 %v1779_v54  ;;  %v4265_v54 = vld [vmem:[%s9777_s1 + $0x98] sm:$0xff] }
 0x3c4   :  { %v2930_v28 = vadd.f32 %v2929_v39, %v7869_v31  ;;  %v3304_v60 = vpop.f32.mrf.mxu0  ;;  %5620 = vmatprep.mubr.f32.mxu1 %v1780_v11  ;;  %5710 = vmatmul.mubr.msk.f32.gmra.mxu0 %vm4318_vm2, %v4261_v35  ;;  %v1783_v39 = vld [vmem:[#allocation2 + $0x142] sm:$0xff] }
 0x3c5   :  { %v8145_v36 = vadd.f32 %v3304_v60, %v2920_v34  ;;  %v2931_v51 = vpop.f32.mrf.mxu1  ;;  %5712 = vmatprep.mubr.msk.f32.mxu0 %vm4318_vm2, %v4262_v20  ;;  %v4266_v11 = vld [vmem:[%s9777_s1 + $0xa0] sm:$0xff]  ;;  %v1784_v60 = vld [vmem:[#allocation2 + $0x152] sm:$0xff] }
 0x3c6   :  { %v3306_v53 = vpop.f32.mrf.mxu0 }
 0x3c7   :  { %v2934_v31 = vpop.f32.mrf.mxu1  ;;  %5621 = vmatmul.mubr.f32.gmra.mxu1 %v1781_v16  ;;  %v4267_v16 = vld [vmem:[%s9777_s1 + $0xa8] sm:$0xff] }
 0x3c8   :  { %v2935_v2 = vadd.f32 %v2934_v31, %v7874_v10  ;;  %v3309_v34 = vpop.f32.mrf.mxu0  ;;  %5623 = vmatprep.mubr.f32.mxu1 %v1782_v44  ;;  %5713 = vmatmul.mubr.msk.f32.gmra.mxu0 %vm4318_vm2, %v4263_v23  ;;  %v1785_v31 = vld [vmem:[#allocation2 + $0x15a] sm:$0xff]  ;;  %v4268_v44 = vld [vmem:[%s9777_s1 + $0xb0] sm:$0xff] }
 0x3c9   :  { %v8156_v35 = vadd.f32 %v3309_v34, %v2925_v21  ;;  %v2936_v49 = vpop.f32.mrf.mxu1  ;;  %5715 = vmatprep.mubr.msk.f32.mxu0 %vm4318_vm2, %v4264_v61  ;;  %v1786_v34 = vld [vmem:[#allocation2 + $0x16a] sm:$0xff] }
 0x3ca   :  { %v3311_v20 = vpop.f32.mrf.mxu0 }
 0x3cb   :  { %v2939_v10 = vpop.f32.mrf.mxu1  ;;  %5624 = vmatmul.mubr.f32.gmra.mxu1 %v1783_v39  ;;  %v4269_v39 = vld [vmem:[%s9777_s1 + $0xb8] sm:$0xff] }
 0x3cc   :  { %v2940_v51 = vadd.f32 %v2939_v10, %v7876_v40  ;;  %v3314_v21 = vpop.f32.mrf.mxu0  ;;  %5626 = vmatprep.mubr.f32.mxu1 %v1784_v60  ;;  %5716 = vmatmul.mubr.msk.f32.gmra.mxu0 %vm4318_vm2, %v4265_v54  ;;  %v1787_v10 = vld [vmem:[#allocation2 + $0x172] sm:$0xff]  ;;  %v4270_v60 = vld [vmem:[%s9777_s1 + $0xc0] sm:$0xff] }
 0x3cd   :  { %v8167_v23 = vadd.f32 %v3314_v21, %v2930_v28  ;;  %v2941_v53 = vpop.f32.mrf.mxu1  ;;  %5718 = vmatprep.mubr.msk.f32.mxu0 %vm4318_vm2, %v4266_v11  ;;  %v1788_v21 = vld [vmem:[#allocation2 + $0x182] sm:$0xff] }
 0x3ce   :  { %v3316_v61 = vpop.f32.mrf.mxu0 }
 0x3cf   :  { %v2944_v40 = vpop.f32.mrf.mxu1  ;;  %5627 = vmatmul.mubr.f32.gmra.mxu1 %v1785_v31  ;;  %v1790_v31 = vld [vmem:[#allocation2 + $0x19a] sm:$0xff] }
 0x3d0   :  { %v2945_v49 = vadd.f32 %v2944_v40, %v7878_v30  ;;  %v3319_v28 = vpop.f32.mrf.mxu0  ;;  %5629 = vmatprep.mubr.f32.mxu1 %v1786_v34  ;;  %5719 = vmatmul.mubr.msk.f32.gmra.mxu0 %vm4318_vm2, %v4267_v16  ;;  %v1789_v34 = vld [vmem:[#allocation2 + $0x18a] sm:$0xff] }
 0x3d1   :  { %v8178_v54 = vadd.f32 %v3319_v28, %v2935_v2  ;;  %v2946_v20 = vpop.f32.mrf.mxu1  ;;  %5721 = vmatprep.mubr.msk.f32.mxu0 %vm4318_vm2, %v4268_v44  ;;  %v4271_v44 = vld [vmem:[%s9777_s1 + $0xc8] sm:$0xff] }
 0x3d2   :  { %v3321_v11 = vpop.f32.mrf.mxu0 }
 0x3d3   :  { %v2949_v30 = vpop.f32.mrf.mxu1  ;;  %5630 = vmatmul.mubr.f32.gmra.mxu1 %v1787_v10 }
 0x3d4   :  { %v2950_v53 = vadd.f32 %v2949_v30, %v7880_v55  ;;  %v3324_v2 = vpop.f32.mrf.mxu0  ;;  %5632 = vmatprep.mubr.f32.mxu1 %v1788_v21  ;;  %5722 = vmatmul.mubr.msk.f32.gmra.mxu0 %vm4318_vm2, %v4269_v39  ;;  %v4272_v55 = vld [vmem:[%s9777_s1 + $0xd0] sm:$0xff]  ;;  %v1791_v39 = vld [vmem:[#allocation2 + $0x1a2] sm:$0xff] }
 0x3d5   :  { %v8189_v16 = vadd.f32 %v3324_v2, %v2940_v51  ;;  %v2951_v61 = vpop.f32.mrf.mxu1  ;;  %5724 = vmatprep.mubr.msk.f32.mxu0 %vm4318_vm2, %v4270_v60  ;;  %v4273_v60 = vld [vmem:[%s9777_s1 + $0xd8] sm:$0xff]  ;;  %v4274_v21 = vld [vmem:[%s9777_s1 + $0xe0] sm:$0xff] }
 0x3d6   :  { %v3326_v40 = vpop.f32.mrf.mxu0  ;;  %v1792_v2 = vld [vmem:[#allocation2 + $0x1e2] sm:$0xff] }
 0x3d7   :  { %v2954_v28 = vpop.f32.mrf.mxu1  ;;  %5633 = vmatmul.mubr.f32.gmra.mxu1 %v1789_v34  ;;  %v4275_v40 = vld [vmem:[%s9777_s1 + $0xe8] sm:$0xff] }
 0x3d8   :  { %v2955_v20 = vadd.f32 %v2954_v28, %v7885_v58  ;;  %v3329_v51 = vpop.f32.mrf.mxu0  ;;  %5635 = vmatprep.mubr.f32.mxu1 %v1790_v31  ;;  %5725 = vmatmul.mubr.msk.f32.gmra.mxu0 %vm4318_vm2, %v4271_v44  ;;  %v4276_v28 = vld [vmem:[%s9777_s1 + $0xf0] sm:$0xff] }
 0x3d9   :  { %v8200_v11 = vadd.f32 %v3329_v51, %v2945_v49  ;;  %v2956_v10 = vpop.f32.mrf.mxu1  ;;  %5727 = vmatprep.mubr.msk.f32.mxu0 %vm4318_vm2, %v4272_v55  ;;  %v1793_v55 = vld [vmem:[#allocation2 + $0x1ea] sm:$0xff]  ;;  %v1794_v51 = vld [vmem:[#allocation2 + $0x1fa] sm:$0xff] }
 0x3da   :  { %v3331_v30 = vpop.f32.mrf.mxu0 }
 0x3db   :  { %v2959_v58 = vpop.f32.mrf.mxu1  ;;  %5636 = vmatmul.mubr.f32.gmra.mxu1 %v1791_v39  ;;  %v4277_v30 = vld [vmem:[%s9777_s1 + $0xf8] sm:$0xff] }
 0x3dc   :  { %v2960_v61 = vadd.f32 %v2959_v58, %v7887_v41  ;;  %v3334_v31 = vpop.f32.mrf.mxu0  ;;  %5638 = vmatprep.mubr.f32.mxu1 %v1792_v2  ;;  %5728 = vmatmul.mubr.msk.f32.gmra.mxu0 %vm4318_vm2, %v4273_v60  ;;  %v1795_v58 = vld [vmem:[#allocation2 + $0x202] sm:$0xff] }
 0x3dd   :  { %v8211_v49 = vadd.f32 %v3334_v31, %v2950_v53  ;;  %v2961_v44 = vpop.f32.mrf.mxu1  ;;  %5730 = vmatprep.mubr.msk.f32.mxu0 %vm4318_vm2, %v4274_v21  ;;  %v4278_v2 = vld [vmem:[%s9777_s1 + $0x100] sm:$0xff]  ;;  %v1796_v31 = vld [vmem:[#allocation2 + $0x212] sm:$0xff] }
 0x3de   :  { %v3336_v34 = vpop.f32.mrf.mxu0 }
 0x3df   :  { %v2964_v41 = vpop.f32.mrf.mxu1  ;;  %5639 = vmatmul.mubr.f32.gmra.mxu1 %v1793_v55  ;;  %v4279_v55 = vld [vmem:[%s9777_s1 + $0x108] sm:$0xff] }
 0x3e0   :  { %v2965_v39 = vadd.f32 %v2964_v41, %v7889_v46  ;;  %v3339_v53 = vpop.f32.mrf.mxu0  ;;  %5641 = vmatprep.mubr.f32.mxu1 %v1794_v51  ;;  %5731 = vmatmul.mubr.msk.f32.gmra.mxu0 %vm4318_vm2, %v4275_v40  ;;  %v1797_v41 = vld [vmem:[#allocation2 + $0x21a] sm:$0xff]  ;;  %v4280_v51 = vld [vmem:[%s9777_s1 + $0x110] sm:$0xff] }
 0x3e1   :  { %v8222_v10 = vadd.f32 %v3339_v53, %v2955_v20  ;;  %v2966_v60 = vpop.f32.mrf.mxu1  ;;  %5733 = vmatprep.mubr.msk.f32.mxu0 %vm4318_vm2, %v4276_v28  ;;  %v1798_v53 = vld [vmem:[#allocation2 + $0x22a] sm:$0xff] }
 0x3e2   :  { %v3341_v21 = vpop.f32.mrf.mxu0 }
 0x3e3   :  { %v2969_v46 = vpop.f32.mrf.mxu1  ;;  %5642 = vmatmul.mubr.f32.gmra.mxu1 %v1795_v58  ;;  %v4281_v58 = vld [vmem:[%s9777_s1 + $0x118] sm:$0xff] }
 0x3e4   :  { %v2970_v44 = vadd.f32 %v2969_v46, %v7891_v15  ;;  %v3344_v20 = vpop.f32.mrf.mxu0  ;;  %5644 = vmatprep.mubr.f32.mxu1 %v1796_v31  ;;  %5734 = vmatmul.mubr.msk.f32.gmra.mxu0 %vm4318_vm2, %v4277_v30  ;;  %v1799_v46 = vld [vmem:[#allocation2 + $0x232] sm:$0xff]  ;;  %v4282_v31 = vld [vmem:[%s9777_s1 + $0x120] sm:$0xff] }
 0x3e5   :  { %v8233_v40 = vadd.f32 %v3344_v20, %v2960_v61  ;;  %v2971_v34 = vpop.f32.mrf.mxu1  ;;  %5736 = vmatprep.mubr.msk.f32.mxu0 %vm4318_vm2, %v4278_v2  ;;  %v1800_v20 = vld [vmem:[#allocation2 + $0x242] sm:$0xff] }
 0x3e6   :  { %v3346_v28 = vpop.f32.mrf.mxu0 }
 0x3e7   :  { %v2974_v15 = vpop.f32.mrf.mxu1  ;;  %5645 = vmatmul.mubr.f32.gmra.mxu1 %v1797_v41  ;;  %v4283_v41 = vld [vmem:[%s9777_s1 + $0x128] sm:$0xff] }
 0x3e8   :  { %v2975_v60 = vadd.f32 %v2974_v15, %v7896_v8  ;;  %v3349_v61 = vpop.f32.mrf.mxu0  ;;  %5647 = vmatprep.mubr.f32.mxu1 %v1798_v53  ;;  %5737 = vmatmul.mubr.msk.f32.gmra.mxu0 %vm4318_vm2, %v4279_v55  ;;  %v1801_v15 = vld [vmem:[#allocation2 + $0x24a] sm:$0xff] }
 0x3e9   :  { %v8244_v30 = vadd.f32 %v3349_v61, %v2965_v39  ;;  %v2976_v21 = vpop.f32.mrf.mxu1  ;;  %5739 = vmatprep.mubr.msk.f32.mxu0 %vm4318_vm2, %v4280_v51  ;;  %v4284_v53 = vld [vmem:[%s9777_s1 + $0x130] sm:$0xff]  ;;  %v1802_v61 = vld [vmem:[#allocation2 + $0x25a] sm:$0xff] }
 0x3ea   :  { %v3351_v2 = vpop.f32.mrf.mxu0 }
 0x3eb   :  { %v2979_v8 = vpop.f32.mrf.mxu1  ;;  %5648 = vmatmul.mubr.f32.gmra.mxu1 %v1799_v46  ;;  %v4285_v46 = vld [vmem:[%s9777_s1 + $0x138] sm:$0xff] }
 0x3ec   :  { %v2980_v34 = vadd.f32 %v2979_v8, %v7898_v7  ;;  %v3354_v39 = vpop.f32.mrf.mxu0  ;;  %5650 = vmatprep.mubr.f32.mxu1 %v1800_v20  ;;  %5740 = vmatmul.mubr.msk.f32.gmra.mxu0 %vm4318_vm2, %v4281_v58  ;;  %v1803_v8 = vld [vmem:[#allocation2 + $0x262] sm:$0xff] }
 0x3ed   :  { %v8255_v55 = vadd.f32 %v3354_v39, %v2970_v44  ;;  %v2981_v28 = vpop.f32.mrf.mxu1  ;;  %5742 = vmatprep.mubr.msk.f32.mxu0 %vm4318_vm2, %v4282_v31  ;;  %v4286_v20 = vld [vmem:[%s9777_s1 + $0x140] sm:$0xff]  ;;  %v1804_v39 = vld [vmem:[#allocation2 + $0x272] sm:$0xff] }
 0x3ee   :  { %v3356_v51 = vpop.f32.mrf.mxu0 }
 0x3ef   :  { %v2984_v7 = vpop.f32.mrf.mxu1  ;;  %5651 = vmatmul.mubr.f32.gmra.mxu1 %v1801_v15  ;;  %v4287_v15 = vld [vmem:[%s9777_s1 + $0x148] sm:$0xff] }
 0x3f0   :  { %v2985_v21 = vadd.f32 %v2984_v7, %v7900_v1  ;;  %v3359_v44 = vpop.f32.mrf.mxu0  ;;  %5653 = vmatprep.mubr.f32.mxu1 %v1802_v61  ;;  %5743 = vmatmul.mubr.msk.f32.gmra.mxu0 %vm4318_vm2, %v4283_v41  ;;  %v1805_v7 = vld [vmem:[#allocation2 + $0x27a] sm:$0xff]  ;;  %v4288_v61 = vld [vmem:[%s9777_s1 + $0x150] sm:$0xff] }
 0x3f1   :  { %v8266_v58 = vadd.f32 %v3359_v44, %v2975_v60  ;;  %v2986_v2 = vpop.f32.mrf.mxu1  ;;  %5745 = vmatprep.mubr.msk.f32.mxu0 %vm4318_vm2, %v4284_v53  ;;  %v1806_v44 = vld [vmem:[#allocation2 + $0x28a] sm:$0xff] }
 0x3f2   :  { %v3361_v31 = vpop.f32.mrf.mxu0 }
 0x3f3   :  { %v2989_v1 = vpop.f32.mrf.mxu1  ;;  %5654 = vmatmul.mubr.f32.gmra.mxu1 %v1803_v8  ;;  %v4289_v8 = vld [vmem:[%s9777_s1 + $0x158] sm:$0xff] }
 0x3f4   :  { %v2990_v28 = vadd.f32 %v2989_v1, %v7902_v0  ;;  %v3364_v60 = vpop.f32.mrf.mxu0  ;;  %5656 = vmatprep.mubr.f32.mxu1 %v1804_v39  ;;  %5746 = vmatmul.mubr.msk.f32.gmra.mxu0 %vm4318_vm2, %v4285_v46  ;;  %v1807_v1 = vld [vmem:[#allocation2 + $0x292] sm:$0xff]  ;;  %v4290_v39 = vld [vmem:[%s9777_s1 + $0x160] sm:$0xff] }
 0x3f5   :  { %v8277_v41 = vadd.f32 %v3364_v60, %v2980_v34  ;;  %v2991_v51 = vpop.f32.mrf.mxu1  ;;  %5748 = vmatprep.mubr.msk.f32.mxu0 %vm4318_vm2, %v4286_v20 }
 0x3f6   :  { %v3366_v53 = vpop.f32.mrf.mxu0 }
 0x3f7   :  { %v2994_v0 = vpop.f32.mrf.mxu1  ;;  %5657 = vmatmul.mubr.f32.gmra.mxu1 %v1805_v7  ;;  %v4291_v7 = vld [vmem:[%s9777_s1 + $0x168] sm:$0xff] }
 0x3f8   :  { %v2995_v2 = vadd.f32 %v2994_v0, %v7907_v18  ;;  %v3369_v34 = vpop.f32.mrf.mxu0  ;;  %5659 = vmatprep.mubr.f32.mxu1 %v1806_v44  ;;  %5749 = vmatmul.mubr.msk.f32.gmra.mxu0 %vm4318_vm2, %v4287_v15  ;;  %v4292_v0 = vld [vmem:[%s9777_s1 + $0x170] sm:$0xff] }
 0x3f9   :  { %v8288_v46 = vadd.f32 %v3369_v34, %v2985_v21  ;;  %v2996_v31 = vpop.f32.mrf.mxu1  ;;  %5751 = vmatprep.mubr.msk.f32.mxu0 %vm4318_vm2, %v4288_v61  ;;  %v5805_v21 = vld [vmem:[#allocation2 + $0x2a2] sm:$0xff]  ;;  %v5806_v44 = vld [vmem:[#allocation2 + $0x2aa] sm:$0xff] }
 0x3fa   :  { %v3371_v20 = vpop.f32.mrf.mxu0 }
 0x3fb   :  { %v2999_v18 = vpop.f32.mrf.mxu1  ;;  %5660 = vmatmul.mubr.f32.gmra.mxu1 %v1807_v1  ;;  %v4293_v20 = vld [vmem:[%s9777_s1 + $0x178] sm:$0xff] }
 0x3fc   :  { %v3000_v60 = vadd.f32 %v2999_v18, %v7909_v3  ;;  %v3374_v51 = vpop.f32.mrf.mxu0  ;;  %5662 = vmatprep.mubr.f32.mxu1 %v5805_v21  ;;  %5752 = vmatmul.mubr.msk.f32.gmra.mxu0 %vm4318_vm2, %v4289_v8  ;;  %v4295_v21 = vld [vmem:[%s9777_s1 + $0x188] sm:$0xff] }
 0x3fd   :  { %v8299_v15 = vadd.f32 %v3374_v51, %v2990_v28  ;;  %v3001_v53 = vpop.f32.mrf.mxu1  ;;  %5754 = vmatprep.mubr.msk.f32.mxu0 %vm4318_vm2, %v4290_v39  ;;  %v4294_v39 = vld [vmem:[%s9777_s1 + $0x180] sm:$0xff] }
 0x3fe   :  { %v3376_v61 = vpop.f32.mrf.mxu0 }
 0x3ff   :  { %v3004_v3 = vpop.f32.mrf.mxu1  ;;  %5663 = vmatmul.mubr.f32.gmra.mxu1 %v5806_v44 }
 0x400   :  { %v3005_v34 = vadd.f32 %v3004_v3, %v7911_v42  ;;  %v3379_v31 = vpop.f32.mrf.mxu0  ;;  %5665 = vmatprep.mubr.f32.mxu1 %v7973_v32  ;;  %5755 = vmatmul.mubr.msk.f32.gmra.mxu0 %vm4318_vm2, %v4291_v7 }
 0x401   :  { %v8311_v28 = vadd.f32 %v3379_v31, %v2995_v2  ;;  %v3006_v8 = vpop.f32.mrf.mxu1  ;;  %5757 = vmatprep.mubr.msk.f32.mxu0 %vm4318_vm2, %v4292_v0  ;;  %v4297_v0 = vld [vmem:[%s9777_s1 + $0x198] sm:$0xff] }
 0x402   :  { %v3381_v1 = vpop.f32.mrf.mxu0  ;;  %v4299_v8 = vld [vmem:[%s9777_s1 + $0x1a8] sm:$0xff] }
 0x403   :  { %v3009_v42 = vpop.f32.mrf.mxu1  ;;  %5666 = vmatmul.mubr.f32.gmra.mxu1 %v7979_v29  ;;  %v4296_v29 = vld [vmem:[%s9777_s1 + $0x190] sm:$0xff] }
 0x404   :  { %v3010_v32 = vadd.f32 %v3009_v42, %v7913_v22  ;;  %v3384_v18 = vpop.f32.mrf.mxu0  ;;  %5668 = vmatprep.mubr.f32.mxu1 %v7985_v14  ;;  %5758 = vmatmul.mubr.msk.f32.gmra.mxu0 %vm4318_vm2, %v4293_v20 }
 0x405   :  { %v8324_v2 = vadd.f32 %v3384_v18, %v3000_v60  ;;  %v3011_v51 = vpop.f32.mrf.mxu1  ;;  %5760 = vmatprep.mubr.msk.f32.mxu0 %vm4318_vm2, %v4294_v39  ;;  %v4301_v18 = vld [vmem:[%s9777_s1 + $0x1b8] sm:$0xff] }
 0x406   :  { %v3386_v53 = vpop.f32.mrf.mxu0 }
 0x407   :  { %v3014_v22 = vpop.f32.mrf.mxu1  ;;  %5669 = vmatmul.mubr.f32.gmra.mxu1 %v7991_v27  ;;  %v4298_v27 = vld [vmem:[%s9777_s1 + $0x1a0] sm:$0xff] }
 0x408   :  { %v3015_v14 = vadd.f32 %v3014_v22, %v7918_v13  ;;  %v3389_v7 = vpop.f32.mrf.mxu0  ;;  %5671 = vmatprep.mubr.f32.mxu1 %v7997_v45  ;;  %5761 = vmatmul.mubr.msk.f32.gmra.mxu0 %vm4318_vm2, %v4295_v21 }
 0x409   :  { %v8337_v60 = vadd.f32 %v3389_v7, %v3005_v34  ;;  %v3016_v61 = vpop.f32.mrf.mxu1  ;;  %5763 = vmatprep.mubr.msk.f32.mxu0 %vm4318_vm2, %v4296_v29  ;;  %v1822_v7 = vld [vmem:[#allocation2 + $0x34a] sm:$0xff] }
 0x40a   :  { %v3391_v3 = vpop.f32.mrf.mxu0  ;;  %v4303_v61 = vld [vmem:[%s9777_s1 + $0x1c8] sm:$0xff] }
 0x40b   :  { %v3019_v13 = vpop.f32.mrf.mxu1  ;;  %5672 = vmatmul.mubr.f32.gmra.mxu1 %v8003_v5  ;;  %v4300_v5 = vld [vmem:[%s9777_s1 + $0x1b0] sm:$0xff] }
 0x40c   :  { %v3020_v45 = vadd.f32 %v3019_v13, %v7920_v4  ;;  %v3394_v44 = vpop.f32.mrf.mxu0  ;;  %5674 = vmatprep.mubr.f32.mxu1 %v8009_v9  ;;  %5764 = vmatmul.mubr.msk.f32.gmra.mxu0 %vm4318_vm2, %v4297_v0  ;;  %v10029_v9 = vld [vmem:[#allocation6_spill] sm:$0xff] }
 0x40d   :  { %v8350_v34 = vadd.f32 %v3394_v44, %v3010_v32  ;;  %v3021_v31 = vpop.f32.mrf.mxu1  ;;  %5766 = vmatprep.mubr.msk.f32.mxu0 %vm4318_vm2, %v4298_v27 }
 0x40e   :  { %v3396_v20 = vpop.f32.mrf.mxu0 }
 0x40f   :  { %v3024_v4 = vpop.f32.mrf.mxu1  ;;  %5675 = vmatmul.mubr.f32.gmra.mxu1 %v8015_v33  ;;  %v4302_v33 = vld [vmem:[%s9777_s1 + $0x1c0] sm:$0xff] }
 0x410   :  { %v3025_v1 = vadd.f32 %v3024_v4, %v10029_v9  ;;  %v3399_v39 = vpop.f32.mrf.mxu0  ;;  %5677 = vmatprep.mubr.f32.mxu1 %v8021_v47  ;;  %5767 = vmatmul.mubr.msk.f32.gmra.mxu0 %vm4318_vm2, %v4299_v8  ;;  %v10030_v47 = vld [vmem:[#allocation8_spill] sm:$0xff]  ;;  %v4305_v8 = vld [vmem:[%s9777_s1 + $0x1d8] sm:$0xff] }
 0x411   :  { %v8363_v42 = vadd.f32 %v3399_v39, %v3015_v14  ;;  %v3026_v32 = vpop.f32.mrf.mxu1  ;;  %5769 = vmatprep.mubr.msk.f32.mxu0 %vm4318_vm2, %v4300_v5  ;;  %v10032_v4 = vld [vmem:[#allocation9_spill] sm:$0xff] }
 0x412   :  { %v3401_v51 = vpop.f32.mrf.mxu0 }
 0x413   :  { %v3029_v21 = vpop.f32.mrf.mxu1  ;;  %5678 = vmatmul.mubr.f32.gmra.mxu1 %v8027_v59  ;;  %v4304_v59 = vld [vmem:[%s9777_s1 + $0x1d0] sm:$0xff] }
 0x414   :  { %v3030_v53 = vadd.f32 %v3029_v21, %v10030_v47  ;;  %v3404_v29 = vpop.f32.mrf.mxu0  ;;  %5680 = vmatprep.mubr.f32.mxu1 %v8033_v63  ;;  %5770 = vmatmul.mubr.msk.f32.gmra.mxu0 %vm4318_vm2, %v4301_v18  ;;  %v10031_v63 = vld [vmem:[#allocation7_spill] sm:$0xff] }
 0x415   :  { %v8376_v22 = vadd.f32 %v3404_v29, %v3020_v45  ;;  %v3031_v14 = vpop.f32.mrf.mxu1  ;;  %5772 = vmatprep.mubr.msk.f32.mxu0 %vm4318_vm2, %v4302_v33  ;;  %v1823_v45 = vld [vmem:[#allocation2 + $0x352] sm:$0xff]  ;;  %v4307_v18 = vld [vmem:[%s9777_s1 + $0x1e8] sm:$0xff] }
 0x416   :  { %v3406_v0 = vpop.f32.mrf.mxu0  ;;  %v4308_v33 = vld [vmem:[%s9777_s1 + $0x1f0] sm:$0xff]  ;;  %v10033_v47 = vld [vmem:[#allocation11_spill] sm:$0xff] }
 0x417   :  { %v3034_v3 = vpop.f32.mrf.mxu1  ;;  %5681 = vmatmul.mubr.f32.gmra.mxu1 %v8039_v52  ;;  %v4306_v52 = vld [vmem:[%s9777_s1 + $0x1e0] sm:$0xff] }
 0x418   :  { %v3035_v27 = vadd.f32 %v3034_v3, %v10031_v63  ;;  %v3409_v13 = vpop.f32.mrf.mxu0  ;;  %5683 = vmatprep.mubr.f32.mxu1 %v1822_v7  ;;  %5773 = vmatmul.mubr.msk.f32.gmra.mxu0 %vm4318_vm2, %v4303_v61  ;;  %v4309_v61 = vld [vmem:[%s9777_s1 + $0x1f8] sm:$0xff]  ;;  %v10034_v3 = vld [vmem:[#allocation10_spill] sm:$0xff] }
 0x419   :  { %v8388_v44 = vadd.f32 %v3409_v13, %v3025_v1  ;;  %v3036_v31 = vpop.f32.mrf.mxu1  ;;  %5775 = vmatprep.mubr.msk.f32.mxu0 %vm4318_vm2, %v4304_v59 }
 0x41a   :  { %v3411_v20 = vpop.f32.mrf.mxu0 }
 0x41b   :  { %v3039_v5 = vpop.f32.mrf.mxu1  ;;  %5684 = vmatmul.mubr.f32.gmra.mxu1 %v1823_v45  ;;  %v10035_v20 = vld [vmem:[#allocation13_spill] sm:$0xff] }
 0x41c   :  { %v3040_v9 = vadd.f32 %v3039_v5, %v10032_v4  ;;  %v3414_v39 = vpop.f32.mrf.mxu0  ;;  %5776 = vmatmul.mubr.msk.f32.gmra.mxu0 %vm4318_vm2, %v4305_v8 }
 0x41d   :  { %v8399_v1 = vadd.f32 %v3414_v39, %v3030_v53  ;;  %v3041_v32 = vpop.f32.mrf.mxu1  ;;  %5778 = vmatprep.mubr.msk.f32.mxu0 %vm4318_vm2, %v4306_v52 }
 0x41e   :  { %v3416_v51 = vpop.f32.mrf.mxu0 }
 0x41f   :  { %v3044_v21 = vpop.f32.mrf.mxu1  ;;  %v10036_v51 = vld [vmem:[#allocation12_spill] sm:$0xff] }
 0x420   :  { %v3045_v29 = vadd.f32 %v3044_v21, %v10033_v47  ;;  %v3419_v14 = vpop.f32.mrf.mxu0  ;;  %5779 = vmatmul.mubr.msk.f32.gmra.mxu0 %vm4318_vm2, %v4307_v18 }
 0x421   :  { %v8410_v53 = vadd.f32 %v3419_v14, %v3035_v27  ;;  %v3046_v7 = vpop.f32.mrf.mxu1  ;;  %5781 = vmatprep.mubr.msk.f32.mxu0 %vm4318_vm2, %v4308_v33 }
 0x422   :  { %v3421_v0 = vpop.f32.mrf.mxu0 }
 0x423   :  { %v3049_v59 = vpop.f32.mrf.mxu1 }
 0x424   :  { %v3050_v63 = vadd.f32 %v3049_v59, %v10034_v3  ;;  %v3424_v13 = vpop.f32.mrf.mxu0  ;;  %5782 = vmatmul.mubr.msk.f32.gmra.mxu0 %vm4318_vm2, %v4309_v61  ;;  %v10037_v61 = vld [vmem:[#allocation14_spill] sm:$0xff] }
 0x425   :  { %v8418_v45 = vadd.f32 %v3424_v13, %v3040_v9  ;;  %v3051_v31 = vpop.f32.mrf.mxu1 }
 0x426   :  { %v3426_v8 = vpop.f32.mrf.mxu0 }
 0x427   :  { %v3054_v27 = vpop.f32.mrf.mxu1  ;;  %v10039_v8 = vld [vmem:[#allocation15_spill] sm:$0xff] }
 0x428   :  { %v3055_v52 = vadd.f32 %v3054_v27, %v10035_v20  ;;  %v3429_v5 = vpop.f32.mrf.mxu0 }
 0x429   :  { %v8421_v4 = vadd.f32 %v3429_v5, %v3045_v29  ;;  %v3056_v39 = vpop.f32.mrf.mxu1 }
 0x42a   :  { %v3431_v32 = vpop.f32.mrf.mxu0 }
 0x42b   :  { %v3059_v18 = vpop.f32.mrf.mxu1 }
 0x42c   :  { %v3060_v33 = vadd.f32 %v3059_v18, %v10036_v51  ;;  %v3434_v21 = vpop.f32.mrf.mxu0  ;;  %v10040_v18 = vld [vmem:[#allocation16_spill] sm:$0xff] }
 0x42d   :  { %v8424_v47 = vadd.f32 %v3434_v21, %v3050_v63  ;;  %v3061_v14 = vpop.f32.mrf.mxu1 }
 0x42e   :  { %v3436_v7 = vpop.f32.mrf.mxu0 }
 0x42f   :  { %v3064_v9 = vpop.f32.mrf.mxu1 }
 0x430   :  { %v3065_v0 = vadd.f32 %v3064_v9, %v10037_v61  ;;  %v3439_v59 = vpop.f32.mrf.mxu0  ;;  %v10042_v61 = vld [vmem:[#allocation17_spill] sm:$0xff] }
 0x431   :  { %v8427_v3 = vadd.f32 %v3439_v59, %v3055_v52  ;;  %v3066_v13 = vpop.f32.mrf.mxu1 }
 0x432   :  { %v3441_v31 = vpop.f32.mrf.mxu0 }
 0x433   :  { %10038 = vst [vmem:[#allocation6_spill] sm:$0xff] %v8427_v3  ;;  %v3069_v29 = vpop.f32.mrf.mxu1 }
 0x434   :  { %v3070_v27 = vadd.f32 %v3069_v29, %v10039_v8  ;;  %v3444_v20 = vpop.f32.mrf.mxu0 }
 0x435   :  { %v8430_v5 = vadd.f32 %v3444_v20, %v3060_v33  ;;  %v3071_v39 = vpop.f32.mrf.mxu1  ;;  %v10044_v20 = vld [vmem:[#allocation19_spill] sm:$0xff] }
 0x436   :  { %v3446_v32 = vpop.f32.mrf.mxu0 }
 0x437   :  { %v3074_v63 = vpop.f32.mrf.mxu1 }
 0x438   :  { %v3075_v51 = vadd.f32 %v3074_v63, %v10040_v18  ;;  %v3449_v21 = vpop.f32.mrf.mxu0 }
 0x439   :  { %v8433_v14 = vadd.f32 %v3449_v21, %v3065_v0  ;;  %v3076_v7 = vpop.f32.mrf.mxu1  ;;  %v10046_v21 = vld [vmem:[#allocation18_spill] sm:$0xff] }
 0x43a   :  { %v3451_v9 = vpop.f32.mrf.mxu0 }
 0x43b   :  { %10041 = vst [vmem:[#allocation8_spill] sm:$0xff] %v8433_v14  ;;  %v3079_v52 = vpop.f32.mrf.mxu1 }
 0x43c   :  { %v3080_v59 = vadd.f32 %v3079_v52, %v10042_v61  ;;  %v3454_v13 = vpop.f32.mrf.mxu0 }
 0x43d   :  { %v8436_v31 = vadd.f32 %v3454_v13, %v3070_v27  ;;  %v3081_v29 = vpop.f32.mrf.mxu1  ;;  %v10048_v13 = vld [vmem:[#allocation21_spill] sm:$0xff] }
 0x43e   :  { %v3456_v8 = vpop.f32.mrf.mxu0 }
 0x43f   :  { %10043 = vst [vmem:[#allocation7_spill] sm:$0xff] %v8436_v31  ;;  %v3084_v33 = vpop.f32.mrf.mxu1 }
 0x440   :  { %v3085_v39 = vadd.f32 %v3084_v33, %v10044_v20  ;;  %v3459_v32 = vpop.f32.mrf.mxu0 }
 0x441   :  { %v8439_v3 = vadd.f32 %v3459_v32, %v3075_v51  ;;  %v3086_v63 = vpop.f32.mrf.mxu1  ;;  %v10049_v32 = vld [vmem:[#allocation20_spill] sm:$0xff] }
 0x442   :  { %v3461_v18 = vpop.f32.mrf.mxu0 }
 0x443   :  { %10045 = vst [vmem:[#allocation9_spill] sm:$0xff] %v8439_v3  ;;  %v3089_v0 = vpop.f32.mrf.mxu1 }
 0x444   :  { %v3090_v7 = vadd.f32 %v3089_v0, %v10046_v21  ;;  %v3464_v9 = vpop.f32.mrf.mxu0 }
 0x445   :  { %v8442_v14 = vadd.f32 %v3464_v9, %v3080_v59  ;;  %v3091_v52 = vpop.f32.mrf.mxu1  ;;  %v10050_v9 = vld [vmem:[#allocation23_spill] sm:$0xff] }
 0x446   :  { %v3466_v61 = vpop.f32.mrf.mxu0 }
 0x447   :  { %10047 = vst [vmem:[#allocation11_spill] sm:$0xff] %v8442_v14  ;;  %v3094_v27 = vpop.f32.mrf.mxu1 }
 0x448   :  { %v3095_v29 = vadd.f32 %v3094_v27, %v10048_v13  ;;  %v3469_v8 = vpop.f32.mrf.mxu0 }
 0x449   :  { %v8445_v31 = vadd.f32 %v3469_v8, %v3085_v39  ;;  %v3096_v33 = vpop.f32.mrf.mxu1 }
 0x44a   :  { %v3471_v20 = vpop.f32.mrf.mxu0 }
 0x44b   :  { %v3099_v51 = vpop.f32.mrf.mxu1 }
 0x44c   :  { %v3100_v63 = vadd.f32 %v3099_v51, %v10049_v32  ;;  %v3474_v18 = vpop.f32.mrf.mxu0 }
 0x44d   :  { %v8448_v3 = vadd.f32 %v3474_v18, %v3090_v7  ;;  %v3101_v0 = vpop.f32.mrf.mxu1 }
 0x44e   :  { %v3476_v21 = vpop.f32.mrf.mxu0 }
 0x44f   :  { %v3104_v59 = vpop.f32.mrf.mxu1 }
 0x450   :  { %v3105_v52 = vadd.f32 %v3104_v59, %v10050_v9  ;;  %v3479_v61 = vpop.f32.mrf.mxu0 }
 0x451   :  { %v8451_v14 = vadd.f32 %v3479_v61, %v3095_v29  ;;  %v3106_v27 = vpop.f32.mrf.mxu1 }
 0x452   :  { %v3481_v13 = vpop.f32.mrf.mxu0 }
 0x453   :  { %v3109_v39 = vpop.f32.mrf.mxu1 }
 0x454   :  { %v3110_v8 = vadd.f32 %v3109_v39, %v7960_v62  ;;  %v3484_v33 = vpop.f32.mrf.mxu0 }
 0x455   :  { %v8454_v20 = vadd.f32 %v3484_v33, %v3100_v63  ;;  %v3111_v51 = vpop.f32.mrf.mxu1 }
 0x456   :  { %v3486_v32 = vpop.f32.mrf.mxu0 }
 0x457   :  { %v3114_v7 = vpop.f32.mrf.mxu1 }
 0x458   :  { %v3115_v18 = vadd.f32 %v3114_v7, %v7964_v26  ;;  %v3489_v0 = vpop.f32.mrf.mxu0 }
 0x459   :  { %v8457_v21 = vadd.f32 %v3489_v0, %v3105_v52  ;;  %v3116_v59 = vpop.f32.mrf.mxu1 }
 0x45a   :  { %v3491_v9 = vpop.f32.mrf.mxu0 }
 0x45b   :  { %v3119_v29 = vpop.f32.mrf.mxu1 }
 0x45c   :  { %v3120_v61 = vadd.f32 %v3119_v29, %v7968_v43  ;;  %v3494_v27 = vpop.f32.mrf.mxu0 }
 0x45d   :  { %v8460_v13 = vadd.f32 %v3494_v27, %v3110_v8  ;;  %v3121_v62 = vpop.f32.mrf.mxu1 }
 0x45e   :  { %v3496_v39 = vpop.f32.mrf.mxu0  ;;  %v10056_v62 = vld [vmem:[#allocation22_spill] sm:$0xff] }
 0x45f   :  { %v5592_v63 = vpop.f32.mrf.mxu1 }
 0x460   :  { %v3499_v33 = vpop.f32.mrf.mxu0  ;;  %v8465_v26 = vadd.f32 %v5592_v63, %v7977_v38  ;;  %v10054_v38 = vld [vmem:[#allocation25_spill] sm:$0xff] }
 0x461   :  { %v8462_v51 = vadd.f32 %v3499_v33, %v3115_v18  ;;  %v3574_v32 = vpop.f32.mrf.mxu1 }
 0x462   :  { %10052 = vst [vmem:[#allocation13_spill] sm:$0xff] %v8465_v26  ;;  %v3501_v52 = vpop.f32.mrf.mxu0  ;;  %v8468_v7 = vadd.f32 %v3574_v32, %v7971_v25  ;;  %v3965_v18 = vmul.f32 %v8465_v26, %v8465_v26 }
 0x463   :  { %10051 = vst [vmem:[#allocation10_spill] sm:$0xff] %v8462_v51  ;;  %v5595_v0 = vpop.f32.mrf.mxu1 }
 0x464   :  { %10053 = vst [vmem:[#allocation12_spill] sm:$0xff] %v8468_v7  ;;  %v3964_v43 = vmul.f32 %v8468_v7, %v8468_v7  ;;  %v3504_v8 = vpop.f32.mrf.mxu0  ;;  %v3895_v29 = vadd.f32 %v8465_v26, %v8468_v7  ;;  %v8479_v27 = vadd.f32 %v5595_v0, %v10054_v38 }
 0x465   :  { %v8472_v59 = vadd.f32 %v3504_v8, %v3120_v61  ;;  %v3584_v9 = vpop.f32.mrf.mxu1  ;;  %v10059_v8 = vld [vmem:[#allocation27_spill] sm:$0xff] }
 0x466   :  { %10055 = vst [vmem:[#allocation14_spill] sm:$0xff] %v8479_v27  ;;  %v8482_v25 = vadd.f32 %v3584_v9, %v10056_v62  ;;  %v3506_v39 = vpop.f32.mrf.mxu0  ;;  %v4028_v33 = vadd.f32 %v3965_v18, %v3964_v43  ;;  %v3967_v0 = vmul.f32 %v8479_v27, %v8479_v27  ;;  %v10061_v62 = vld [vmem:[#allocation26_spill] sm:$0xff] }
 0x467   :  { %v5598_v63 = vpop.f32.mrf.mxu1 }
 0x468   :  { %10057 = vst [vmem:[#allocation15_spill] sm:$0xff] %v8482_v25  ;;  %v3896_v32 = vadd.f32 %v3895_v29, %v8482_v25  ;;  %v3966_v61 = vmul.f32 %v8482_v25, %v8482_v25  ;;  %v8487_v52 = vpop.f32.mrf.mxu0  ;;  %v8490_v51 = vadd.f32 %v5598_v63, %v10059_v8 }
 0x469   :  { %10058 = vst [vmem:[#allocation16_spill] sm:$0xff] %v8487_v52  ;;  %v3594_v26 = vpop.f32.mrf.mxu1 }
 0x46a   :  { %10060 = vst [vmem:[#allocation17_spill] sm:$0xff] %v8490_v51  ;;  %v3897_v9 = vadd.f32 %v3896_v32, %v8479_v27  ;;  %v4029_v38 = vadd.f32 %v4028_v33, %v3966_v61  ;;  %v8496_v39 = vadd.f32 %v3594_v26, %v10061_v62  ;;  %v8498_v43 = vpop.f32.mrf.mxu0  ;;  %v3969_v7 = vmul.f32 %v8490_v51, %v8490_v51  ;;  %v10065_v33 = vld [vmem:[#allocation29_spill] sm:$0xff]  ;;  %v10067_v26 = vld [vmem:[#allocation28_spill] sm:$0xff] }
 0x46b   :  { %10063 = vst [vmem:[#allocation18_spill] sm:$0xff] %v8498_v43  ;;  %v5601_v18 = vpop.f32.mrf.mxu1 }
 0x46c   :  { %10062 = vst [vmem:[#allocation19_spill] sm:$0xff] %v8496_v39  ;;  %v4030_v29 = vadd.f32 %v4029_v38, %v3967_v0  ;;  %v3898_v25 = vadd.f32 %v3897_v9, %v8496_v39  ;;  %v3968_v63 = vmul.f32 %v8496_v39, %v8496_v39  ;;  %v8503_v8 = vpop.f32.mrf.mxu0  ;;  %v8508_v61 = vadd.f32 %v5601_v18, %v10065_v33 }
 0x46d   :  { %10064 = vst [vmem:[#allocation21_spill] sm:$0xff] %v8503_v8  ;;  %v3604_v52 = vpop.f32.mrf.mxu1 }
 0x46e   :  { %v4031_v32 = vadd.f32 %v4030_v29, %v3968_v63  ;;  %10066 = vst [vmem:[#allocation20_spill] sm:$0xff] %v8508_v61  ;;  %v8511_v62 = vadd.f32 %v3604_v52, %v10067_v26  ;;  %v3899_v0 = vadd.f32 %v3898_v25, %v8490_v51  ;;  %v8514_v38 = vpop.f32.mrf.mxu0  ;;  %v10071_v29 = vld [vmem:[#allocation31_spill] sm:$0xff]  ;;  %v3971_v52 = vmul.f32 %v8508_v61, %v8508_v61  ;;  %v10073_v25 = vld [vmem:[#allocation30_spill] sm:$0xff] }
 0x46f   :  { %10069 = vst [vmem:[#allocation25_spill] sm:$0xff] %v8514_v38  ;;  %v5604_v9 = vpop.f32.mrf.mxu1 }
 0x470   :  { %10068 = vst [vmem:[#allocation23_spill] sm:$0xff] %v8511_v62  ;;  %v3900_v39 = vadd.f32 %v3899_v0, %v8511_v62  ;;  %v3970_v27 = vmul.f32 %v8511_v62, %v8511_v62  ;;  %v4032_v8 = vadd.f32 %v4031_v32, %v3969_v7  ;;  %v8519_v43 = vpop.f32.mrf.mxu0  ;;  %v8522_v63 = vadd.f32 %v5604_v9, %v10071_v29 }
 0x471   :  { %10070 = vst [vmem:[#allocation22_spill] sm:$0xff] %v8519_v43  ;;  %v3614_v18 = vpop.f32.mrf.mxu1 }
 0x472   :  { %10072 = vst [vmem:[#allocation27_spill] sm:$0xff] %v8522_v63  ;;  %v4033_v33 = vadd.f32 %v4032_v8, %v3970_v27  ;;  %v8527_v26 = vadd.f32 %v3614_v18, %v10073_v25  ;;  %v3901_v51 = vadd.f32 %v3900_v39, %v8508_v61  ;;  %v8530_v0 = vpop.f32.mrf.mxu0  ;;  %v3973_v62 = vmul.f32 %v8522_v63, %v8522_v63  ;;  %v10077_v18 = vld [vmem:[#allocation33_spill] sm:$0xff]  ;;  %v10079_v39 = vld [vmem:[#allocation32_spill] sm:$0xff] }
 0x473   :  { %10075 = vst [vmem:[#allocation29_spill] sm:$0xff] %v8530_v0  ;;  %v5607_v38 = vpop.f32.mrf.mxu1 }
 0x474   :  { %10074 = vst [vmem:[#allocation26_spill] sm:$0xff] %v8527_v26  ;;  %v3902_v7 = vadd.f32 %v3901_v51, %v8527_v26  ;;  %v3972_v32 = vmul.f32 %v8527_v26, %v8527_v26  ;;  %v4034_v9 = vadd.f32 %v4033_v33, %v3971_v52  ;;  %v8535_v29 = vpop.f32.mrf.mxu0  ;;  %v8540_v25 = vadd.f32 %v5607_v38, %v10077_v18 }
 0x475   :  { %10076 = vst [vmem:[#allocation28_spill] sm:$0xff] %v8535_v29  ;;  %v3624_v27 = vpop.f32.mrf.mxu1 }
 0x476   :  { %v4035_v8 = vadd.f32 %v4034_v9, %v3972_v32  ;;  %10078 = vst [vmem:[#allocation31_spill] sm:$0xff] %v8540_v25  ;;  %v8543_v61 = vadd.f32 %v3624_v27, %v10079_v39  ;;  %v3903_v0 = vadd.f32 %v3902_v7, %v8522_v63  ;;  %v8546_v51 = vpop.f32.mrf.mxu0  ;;  %v3975_v9 = vmul.f32 %v8540_v25, %v8540_v25  ;;  %v10082_v7 = vld [vmem:[#allocation34_spill] sm:$0xff] }
 0x477   :  { %v5610_v43 = vpop.f32.mrf.mxu1 }
 0x478   :  { %10080 = vst [vmem:[#allocation30_spill] sm:$0xff] %v8543_v61  ;;  %v3904_v52 = vadd.f32 %v3903_v0, %v8543_v61  ;;  %v3974_v33 = vmul.f32 %v8543_v61, %v8543_v61  ;;  %v4036_v26 = vadd.f32 %v4035_v8, %v3973_v62  ;;  %v8551_v29 = vpop.f32.mrf.mxu0  ;;  %v8554_v32 = vadd.f32 %v5610_v43, %v8046_v37 }
 0x479   :  { %v3634_v38 = vpop.f32.mrf.mxu1 }
 0x47a   :  { %10081 = vst [vmem:[#allocation33_spill] sm:$0xff] %v8554_v32  ;;  %v4037_v27 = vadd.f32 %v4036_v26, %v3974_v33  ;;  %v8559_v18 = vadd.f32 %v3634_v38, %v10082_v7  ;;  %v3905_v39 = vadd.f32 %v3904_v52, %v8540_v25  ;;  %v8562_v0 = vpop.f32.mrf.mxu0  ;;  %v3977_v61 = vmul.f32 %v8554_v32, %v8554_v32 }
 0x47b   :  { %v5613_v63 = vpop.f32.mrf.mxu1 }
 0x47c   :  { %10083 = vst [vmem:[#allocation32_spill] sm:$0xff] %v8559_v18  ;;  %v3906_v62 = vadd.f32 %v3905_v39, %v8559_v18  ;;  %v3976_v8 = vmul.f32 %v8559_v18, %v8559_v18  ;;  %v4038_v37 = vadd.f32 %v4037_v27, %v3975_v9  ;;  %v8567_v43 = vpop.f32.mrf.mxu0  ;;  %v8572_v38 = vadd.f32 %v5613_v63, %v8057_v56 }
 0x47d   :  { %10084 = vst [vmem:[#allocation34_spill] sm:$0xff] %v8567_v43  ;;  %v3644_v26 = vpop.f32.mrf.mxu1 }
 0x47e   :  { %v4039_v33 = vadd.f32 %v4038_v37, %v3976_v8  ;;  %10085 = vst [vmem:[#allocation35_spill] sm:$0xff] %v8572_v38  ;;  %v8575_v52 = vadd.f32 %v3644_v26, %v8050_v57  ;;  %v3907_v7 = vadd.f32 %v3906_v62, %v8554_v32  ;;  %v8578_v39 = vpop.f32.mrf.mxu0  ;;  %v3979_v57 = vmul.f32 %v8572_v38, %v8572_v38 }
 0x47f   :  { %v5616_v25 = vpop.f32.mrf.mxu1 }
 0x480   :  { %10086 = vst [vmem:[#allocation36_spill] sm:$0xff] %v8575_v52  ;;  %v3908_v9 = vadd.f32 %v3907_v7, %v8575_v52  ;;  %v3978_v27 = vmul.f32 %v8575_v52, %v8575_v52  ;;  %v4040_v18 = vadd.f32 %v4039_v33, %v3977_v61  ;;  %v8583_v43 = vpop.f32.mrf.mxu0  ;;  %v8586_v8 = vadd.f32 %v5616_v25, %v8079_v24 }
 0x481   :  { %v3654_v56 = vpop.f32.mrf.mxu1 }
 0x482   :  { %10087 = vst [vmem:[#allocation37_spill] sm:$0xff] %v8586_v8  ;;  %v4041_v63 = vadd.f32 %v4040_v18, %v3978_v27  ;;  %v8591_v62 = vadd.f32 %v3654_v56, %v8068_v6  ;;  %v3909_v37 = vadd.f32 %v3908_v9, %v8572_v38  ;;  %v8594_v26 = vpop.f32.mrf.mxu0  ;;  %v3981_v52 = vmul.f32 %v8586_v8, %v8586_v8 }
 0x483   :  { %v5619_v7 = vpop.f32.mrf.mxu1 }
 0x484   :  { %10088 = vst [vmem:[#allocation38_spill] sm:$0xff] %v8591_v62  ;;  %v3910_v61 = vadd.f32 %v3909_v37, %v8591_v62  ;;  %v3980_v33 = vmul.f32 %v8591_v62, %v8591_v62  ;;  %v4042_v24 = vadd.f32 %v4041_v63, %v3979_v57  ;;  %v8599_v25 = vpop.f32.mrf.mxu0  ;;  %v8604_v6 = vadd.f32 %v5619_v7, %v8101_v50 }
 0x485   :  { %v3664_v18 = vpop.f32.mrf.mxu1 }
 0x486   :  { %v4043_v27 = vadd.f32 %v4042_v24, %v3980_v33  ;;  %10089 = vst [vmem:[#allocation39_spill] sm:$0xff] %v8604_v6  ;;  %v8607_v9 = vadd.f32 %v3664_v18, %v8090_v19  ;;  %v3911_v56 = vadd.f32 %v3910_v61, %v8586_v8  ;;  %v8610_v37 = vpop.f32.mrf.mxu0  ;;  %v3983_v19 = vmul.f32 %v8604_v6, %v8604_v6 }
 0x487   :  { %v5622_v38 = vpop.f32.mrf.mxu1 }
 0x488   :  { %10090 = vst [vmem:[#allocation40_spill] sm:$0xff] %v8607_v9  ;;  %v3912_v57 = vadd.f32 %v3911_v56, %v8607_v9  ;;  %v3982_v63 = vmul.f32 %v8607_v9, %v8607_v9  ;;  %v4044_v62 = vadd.f32 %v4043_v27, %v3981_v52  ;;  %v8615_v32 = vpop.f32.mrf.mxu0  ;;  %v8618_v33 = vadd.f32 %v5622_v38, %v8123_v12 }
 0x489   :  { %v3674_v50 = vpop.f32.mrf.mxu1 }
 0x48a   :  { %10091 = vst [vmem:[#allocation41_spill] sm:$0xff] %v8618_v33  ;;  %v4045_v7 = vadd.f32 %v4044_v62, %v3982_v63  ;;  %v8623_v61 = vadd.f32 %v3674_v50, %v8112_v48  ;;  %v3913_v24 = vadd.f32 %v3912_v57, %v8604_v6  ;;  %v8626_v18 = vpop.f32.mrf.mxu0  ;;  %v3985_v9 = vmul.f32 %v8618_v33, %v8618_v33 }
 0x48b   :  { %v5625_v56 = vpop.f32.mrf.mxu1 }
 0x48c   :  { %10092 = vst [vmem:[#allocation42_spill] sm:$0xff] %v8623_v61  ;;  %v3914_v52 = vadd.f32 %v3913_v24, %v8623_v61  ;;  %v3984_v27 = vmul.f32 %v8623_v61, %v8623_v61  ;;  %v4046_v12 = vadd.f32 %v4045_v7, %v3983_v19  ;;  %v8631_v38 = vpop.f32.mrf.mxu0  ;;  %v8636_v48 = vadd.f32 %v5625_v56, %v8145_v36 }
 0x48d   :  { %v3684_v62 = vpop.f32.mrf.mxu1 }
 0x48e   :  { %v4047_v63 = vadd.f32 %v4046_v12, %v3984_v27  ;;  %10093 = vst [vmem:[#allocation43_spill] sm:$0xff] %v8636_v48  ;;  %v8639_v57 = vadd.f32 %v3684_v62, %v8134_v17  ;;  %v3915_v50 = vadd.f32 %v3914_v52, %v8618_v33  ;;  %v8642_v24 = vpop.f32.mrf.mxu0  ;;  %v3987_v17 = vmul.f32 %v8636_v48, %v8636_v48 }
 0x48f   :  { %v5628_v6 = vpop.f32.mrf.mxu1 }
 0x490   :  { %10094 = vst [vmem:[#allocation44_spill] sm:$0xff] %v8639_v57  ;;  %v3916_v19 = vadd.f32 %v3915_v50, %v8639_v57  ;;  %v3986_v7 = vmul.f32 %v8639_v57, %v8639_v57  ;;  %v4048_v61 = vadd.f32 %v4047_v63, %v3985_v9  ;;  %v8647_v8 = vpop.f32.mrf.mxu0  ;;  %v8650_v27 = vadd.f32 %v5628_v6, %v8167_v23 }
 0x491   :  { %v3694_v36 = vpop.f32.mrf.mxu1 }
 0x492   :  { %10095 = vst [vmem:[#allocation45_spill] sm:$0xff] %v8650_v27  ;;  %v4049_v56 = vadd.f32 %v4048_v61, %v3986_v7  ;;  %v8655_v52 = vadd.f32 %v3694_v36, %v8156_v35  ;;  %v3917_v12 = vadd.f32 %v3916_v19, %v8636_v48  ;;  %v8658_v62 = vpop.f32.mrf.mxu0  ;;  %v3989_v57 = vmul.f32 %v8650_v27, %v8650_v27 }
 0x493   :  { %v5631_v50 = vpop.f32.mrf.mxu1 }
 0x494   :  { %10096 = vst [vmem:[#allocation46_spill] sm:$0xff] %v8655_v52  ;;  %v3918_v9 = vadd.f32 %v3917_v12, %v8655_v52  ;;  %v3988_v63 = vmul.f32 %v8655_v52, %v8655_v52  ;;  %v4050_v23 = vadd.f32 %v4049_v56, %v3987_v17  ;;  %v8663_v6 = vpop.f32.mrf.mxu0  ;;  %v8668_v35 = vadd.f32 %v5631_v50, %v8189_v16 }
 0x495   :  { %v3704_v61 = vpop.f32.mrf.mxu1 }
 0x496   :  { %v4051_v7 = vadd.f32 %v4050_v23, %v3988_v63  ;;  %10097 = vst [vmem:[#allocation47_spill] sm:$0xff] %v8668_v35  ;;  %v8671_v19 = vadd.f32 %v3704_v61, %v8178_v54  ;;  %v3919_v36 = vadd.f32 %v3918_v9, %v8650_v27  ;;  %v8674_v12 = vpop.f32.mrf.mxu0  ;;  %v3991_v54 = vmul.f32 %v8668_v35, %v8668_v35 }
 0x497   :  { %v5634_v48 = vpop.f32.mrf.mxu1 }
 0x498   :  { %10098 = vst [vmem:[#allocation48_spill] sm:$0xff] %v8671_v19  ;;  %v3920_v17 = vadd.f32 %v3919_v36, %v8671_v19  ;;  %v3990_v56 = vmul.f32 %v8671_v19, %v8671_v19  ;;  %v4052_v52 = vadd.f32 %v4051_v7, %v3989_v57  ;;  %v8679_v33 = vpop.f32.mrf.mxu0  ;;  %v8682_v63 = vadd.f32 %v5634_v48, %v8211_v49 }
 0x499   :  { %v3714_v16 = vpop.f32.mrf.mxu1 }
 0x49a   :  { %10099 = vst [vmem:[#allocation49_spill] sm:$0xff] %v8682_v63  ;;  %v4053_v50 = vadd.f32 %v4052_v52, %v3990_v56  ;;  %v8687_v9 = vadd.f32 %v3714_v16, %v8200_v11  ;;  %v3921_v23 = vadd.f32 %v3920_v17, %v8668_v35  ;;  %v8690_v61 = vpop.f32.mrf.mxu0  ;;  %v3993_v19 = vmul.f32 %v8682_v63, %v8682_v63 }
 0x49b   :  { %v5637_v36 = vpop.f32.mrf.mxu1 }
 0x49c   :  { %10100 = vst [vmem:[#allocation50_spill] sm:$0xff] %v8687_v9  ;;  %v3922_v57 = vadd.f32 %v3921_v23, %v8687_v9  ;;  %v3992_v7 = vmul.f32 %v8687_v9, %v8687_v9  ;;  %v4054_v49 = vadd.f32 %v4053_v50, %v3991_v54  ;;  %v8695_v48 = vpop.f32.mrf.mxu0  ;;  %v8700_v11 = vadd.f32 %v5637_v36, %v8233_v40 }
 0x49d   :  { %v3724_v52 = vpop.f32.mrf.mxu1 }
 0x49e   :  { %v4055_v56 = vadd.f32 %v4054_v49, %v3992_v7  ;;  %10101 = vst [vmem:[#allocation51_spill] sm:$0xff] %v8700_v11  ;;  %v8703_v17 = vadd.f32 %v3724_v52, %v8222_v10  ;;  %v3923_v16 = vadd.f32 %v3922_v57, %v8682_v63  ;;  %v8706_v23 = vpop.f32.mrf.mxu0  ;;  %v3995_v10 = vmul.f32 %v8700_v11, %v8700_v11 }
 0x49f   :  { %v5640_v35 = vpop.f32.mrf.mxu1 }
 0x4a0   :  { %10102 = vst [vmem:[#allocation52_spill] sm:$0xff] %v8703_v17  ;;  %v3924_v54 = vadd.f32 %v3923_v16, %v8703_v17  ;;  %v3994_v50 = vmul.f32 %v8703_v17, %v8703_v17  ;;  %v4056_v9 = vadd.f32 %v4055_v56, %v3993_v19  ;;  %v8711_v27 = vpop.f32.mrf.mxu0  ;;  %v8714_v7 = vadd.f32 %v5640_v35, %v8255_v55 }
 0x4a1   :  { %v3734_v40 = vpop.f32.mrf.mxu1 }
 0x4a2   :  { %10103 = vst [vmem:[#allocation53_spill] sm:$0xff] %v8714_v7  ;;  %v4057_v36 = vadd.f32 %v4056_v9, %v3994_v50  ;;  %v8719_v57 = vadd.f32 %v3734_v40, %v8244_v30  ;;  %v3925_v49 = vadd.f32 %v3924_v54, %v8700_v11  ;;  %v8722_v52 = vpop.f32.mrf.mxu0  ;;  %v3997_v17 = vmul.f32 %v8714_v7, %v8714_v7 }
 0x4a3   :  { %v5643_v16 = vpop.f32.mrf.mxu1 }
 0x4a4   :  { %10104 = vst [vmem:[#allocation54_spill] sm:$0xff] %v8719_v57  ;;  %v3926_v19 = vadd.f32 %v3925_v49, %v8719_v57  ;;  %v3996_v56 = vmul.f32 %v8719_v57, %v8719_v57  ;;  %v4058_v55 = vadd.f32 %v4057_v36, %v3995_v10  ;;  %v8727_v35 = vpop.f32.mrf.mxu0  ;;  %v8732_v30 = vadd.f32 %v5643_v16, %v8277_v41 }
 0x4a5   :  { %v3744_v9 = vpop.f32.mrf.mxu1 }
 0x4a6   :  { %v4059_v50 = vadd.f32 %v4058_v55, %v3996_v56  ;;  %10105 = vst [vmem:[#allocation55_spill] sm:$0xff] %v8732_v30  ;;  %v8735_v54 = vadd.f32 %v3744_v9, %v8266_v58  ;;  %v3927_v40 = vadd.f32 %v3926_v19, %v8714_v7  ;;  %v8738_v49 = vpop.f32.mrf.mxu0  ;;  %v3999_v58 = vmul.f32 %v8732_v30, %v8732_v30 }
 0x4a7   :  { %v5646_v11 = vpop.f32.mrf.mxu1 }
 0x4a8   :  { %10106 = vst [vmem:[#allocation56_spill] sm:$0xff] %v8735_v54  ;;  %v3928_v10 = vadd.f32 %v3927_v40, %v8735_v54  ;;  %v3998_v36 = vmul.f32 %v8735_v54, %v8735_v54  ;;  %v4060_v57 = vadd.f32 %v4059_v50, %v3997_v17  ;;  %v8743_v63 = vpop.f32.mrf.mxu0  ;;  %v8746_v56 = vadd.f32 %v5646_v11, %v8299_v15 }
 0x4a9   :  { %v3754_v41 = vpop.f32.mrf.mxu1 }
 0x4aa   :  { %10107 = vst [vmem:[#allocation57_spill] sm:$0xff] %v8746_v56  ;;  %v4061_v16 = vadd.f32 %v4060_v57, %v3998_v36  ;;  %v8751_v19 = vadd.f32 %v3754_v41, %v8288_v46  ;;  %v3929_v55 = vadd.f32 %v3928_v10, %v8732_v30  ;;  %v8754_v9 = vpop.f32.mrf.mxu0  ;;  %v4001_v54 = vmul.f32 %v8746_v56, %v8746_v56 }
 0x4ab   :  { %v5649_v40 = vpop.f32.mrf.mxu1 }
 0x4ac   :  { %10108 = vst [vmem:[#allocation58_spill] sm:$0xff] %v8751_v19  ;;  %v3930_v17 = vadd.f32 %v3929_v55, %v8751_v19  ;;  %v4000_v50 = vmul.f32 %v8751_v19, %v8751_v19  ;;  %v4062_v15 = vadd.f32 %v4061_v16, %v3999_v58  ;;  %v8759_v11 = vpop.f32.mrf.mxu0  ;;  %v8764_v46 = vadd.f32 %v5649_v40, %v8324_v2 }
 0x4ad   :  { %v3764_v57 = vpop.f32.mrf.mxu1 }
 0x4ae   :  { %v4063_v36 = vadd.f32 %v4062_v15, %v4000_v50  ;;  %10109 = vst [vmem:[#allocation59_spill] sm:$0xff] %v8764_v46  ;;  %v8767_v10 = vadd.f32 %v3764_v57, %v8311_v28  ;;  %v3931_v41 = vadd.f32 %v3930_v17, %v8746_v56  ;;  %v8770_v55 = vpop.f32.mrf.mxu0  ;;  %v4003_v28 = vmul.f32 %v8764_v46, %v8764_v46 }
 0x4af   :  { %v5652_v30 = vpop.f32.mrf.mxu1 }
 0x4b0   :  { %10110 = vst [vmem:[#allocation60_spill] sm:$0xff] %v8767_v10  ;;  %v3932_v58 = vadd.f32 %v3931_v41, %v8767_v10  ;;  %v4002_v16 = vmul.f32 %v8767_v10, %v8767_v10  ;;  %v4064_v19 = vadd.f32 %v4063_v36, %v4001_v54  ;;  %v8775_v7 = vpop.f32.mrf.mxu0  ;;  %v8778_v50 = vadd.f32 %v5652_v30, %v8350_v34 }
 0x4b1   :  { %v3774_v2 = vpop.f32.mrf.mxu1 }
 0x4b2   :  { %10111 = vst [vmem:[#allocation61_spill] sm:$0xff] %v8778_v50  ;;  %v4065_v40 = vadd.f32 %v4064_v19, %v4002_v16  ;;  %v8783_v17 = vadd.f32 %v3774_v2, %v8337_v60  ;;  %v3933_v15 = vadd.f32 %v3932_v58, %v8764_v46  ;;  %v8786_v57 = vpop.f32.mrf.mxu0  ;;  %v4005_v10 = vmul.f32 %v8778_v50, %v8778_v50 }
 0x4b3   :  { %v5655_v41 = vpop.f32.mrf.mxu1 }
 0x4b4   :  { %10112 = vst [vmem:[#allocation62_spill] sm:$0xff] %v8783_v17  ;;  %v3934_v54 = vadd.f32 %v3933_v15, %v8783_v17  ;;  %v4004_v36 = vmul.f32 %v8783_v17, %v8783_v17  ;;  %v4066_v34 = vadd.f32 %v4065_v40, %v4003_v28  ;;  %v8791_v30 = vpop.f32.mrf.mxu0  ;;  %v8796_v60 = vadd.f32 %v5655_v41, %v8376_v22 }
 0x4b5   :  { %v3784_v19 = vpop.f32.mrf.mxu1 }
 0x4b6   :  { %v4067_v16 = vadd.f32 %v4066_v34, %v4004_v36  ;;  %10113 = vst [vmem:[#allocation63_spill] sm:$0xff] %v8796_v60  ;;  %v8799_v58 = vadd.f32 %v3784_v19, %v8363_v42  ;;  %v3935_v2 = vadd.f32 %v3934_v54, %v8778_v50  ;;  %v8802_v15 = vpop.f32.mrf.mxu0  ;;  %v4007_v42 = vmul.f32 %v8796_v60, %v8796_v60 }
 0x4b7   :  { %v5658_v46 = vpop.f32.mrf.mxu1 }
 0x4b8   :  { %10114 = vst [vmem:[#allocation64_spill] sm:$0xff] %v8799_v58  ;;  %v3936_v28 = vadd.f32 %v3935_v2, %v8799_v58  ;;  %v4006_v40 = vmul.f32 %v8799_v58, %v8799_v58  ;;  %v4068_v17 = vadd.f32 %v4067_v16, %v4005_v10  ;;  %v8807_v56 = vpop.f32.mrf.mxu0  ;;  %v8810_v36 = vadd.f32 %v5658_v46, %v8399_v1 }
 0x4b9   :  { %v3794_v22 = vpop.f32.mrf.mxu1 }
 0x4ba   :  { %10115 = vst [vmem:[#allocation65_spill] sm:$0xff] %v8810_v36  ;;  %v4069_v41 = vadd.f32 %v4068_v17, %v4006_v40  ;;  %v8815_v54 = vadd.f32 %v3794_v22, %v8388_v44  ;;  %v3937_v34 = vadd.f32 %v3936_v28, %v8796_v60  ;;  %v8818_v19 = vpop.f32.mrf.mxu0  ;;  %v4009_v58 = vmul.f32 %v8810_v36, %v8810_v36 }
 0x4bb   :  { %v5661_v2 = vpop.f32.mrf.mxu1 }
 0x4bc   :  { %10116 = vst [vmem:[#allocation66_spill] sm:$0xff] %v8815_v54  ;;  %v3938_v10 = vadd.f32 %v3937_v34, %v8815_v54  ;;  %v4008_v16 = vmul.f32 %v8815_v54, %v8815_v54  ;;  %v4070_v1 = vadd.f32 %v4069_v41, %v4007_v42  ;;  %v8823_v46 = vpop.f32.mrf.mxu0  ;;  %v8828_v44 = vadd.f32 %v5661_v2, %v8418_v45 }
 0x4bd   :  { %v3804_v17 = vpop.f32.mrf.mxu1 }
 0x4be   :  { %v4071_v40 = vadd.f32 %v4070_v1, %v4008_v16  ;;  %10117 = vst [vmem:[#allocation67_spill] sm:$0xff] %v8828_v44  ;;  %v8831_v28 = vadd.f32 %v3804_v17, %v8410_v53  ;;  %v3939_v22 = vadd.f32 %v3938_v10, %v8810_v36  ;;  %v8837_v54 = vpop.f32.mrf.mxu0  ;;  %v4011_v45 = vmul.f32 %v8828_v44, %v8828_v44 }
 0x4bf   :  { %v5664_v34 = vpop.f32.mrf.mxu1 }
 0x4c0   :  { %10118 = vst [vmem:[#allocation68_spill] sm:$0xff] %v8831_v28  ;;  %v3940_v60 = vadd.f32 %v3939_v22, %v8831_v28  ;;  %v4010_v42 = vmul.f32 %v8831_v28, %v8831_v28  ;;  %v4072_v41 = vadd.f32 %v4071_v40, %v4009_v58  ;;  %v8840_v50 = vadd.f32 %v5664_v34, %v8424_v47  ;;  %v8848_v1 = vpop.f32.mrf.mxu0 }
 0x4c1   :  { %v3814_v16 = vpop.f32.mrf.mxu1 }
 0x4c2   :  { %10119 = vst [vmem:[#allocation69_spill] sm:$0xff] %v8840_v50  ;;  %v4073_v53 = vadd.f32 %v4072_v41, %v4010_v42  ;;  %v8845_v2 = vadd.f32 %v3814_v16, %v8421_v4  ;;  %v3941_v10 = vadd.f32 %v3940_v60, %v8828_v44  ;;  %v4013_v22 = vmul.f32 %v8840_v50, %v8840_v50  ;;  %v10122_v4 = vld [vmem:[#allocation6_spill] sm:$0xff]  ;;  %v8862_v16 = vpop.f32.mrf.mxu0 }
 0x4c3   :  { %v5667_v17 = vpop.f32.mrf.mxu1 }
 0x4c4   :  { %10120 = vst [vmem:[#allocation70_spill] sm:$0xff] %v8845_v2  ;;  %v3942_v58 = vadd.f32 %v3941_v10, %v8845_v2  ;;  %v4012_v40 = vmul.f32 %v8845_v2, %v8845_v2  ;;  %v4074_v47 = vadd.f32 %v4073_v53, %v4011_v45  ;;  %v8856_v42 = vadd.f32 %v5667_v17, %v8430_v5  ;;  %v10124_v2 = vld [vmem:[#allocation7_spill] sm:$0xff] }
 0x4c5   :  { %v3824_v34 = vpop.f32.mrf.mxu1 }
 0x4c6   :  { %v4075_v28 = vadd.f32 %v4074_v47, %v4012_v40  ;;  %10121 = vst [vmem:[#allocation71_spill] sm:$0xff] %v8856_v42  ;;  %v8859_v41 = vadd.f32 %v3824_v34, %v10122_v4  ;;  %v3943_v60 = vadd.f32 %v3942_v58, %v8840_v50  ;;  %v4015_v5 = vmul.f32 %v8856_v42, %v8856_v42  ;;  %v10126_v47 = vld [vmem:[#allocation8_spill] sm:$0xff]  ;;  %v8876_v4 = vpop.f32.mrf.mxu0 }
 0x4c7   :  { %v5670_v10 = vpop.f32.mrf.mxu1  ;;  %10128 = vst [vmem:[#allocation72_spill] sm:$0xff] %v8876_v4 }
 0x4c8   :  { %10123 = vst [vmem:[#allocation6_spill] sm:$0xff] %v8859_v41  ;;  %v3944_v44 = vadd.f32 %v3943_v60, %v8859_v41  ;;  %v4014_v45 = vmul.f32 %v8859_v41, %v8859_v41  ;;  %v4076_v53 = vadd.f32 %v4075_v28, %v4013_v22  ;;  %v8868_v36 = vadd.f32 %v5670_v10, %v10124_v2 }
 0x4c9   :  { %v3834_v40 = vpop.f32.mrf.mxu1 }
 0x4ca   :  { %10125 = vst [vmem:[#allocation7_spill] sm:$0xff] %v8868_v36  ;;  %v4077_v17 = vadd.f32 %v4076_v53, %v4014_v45  ;;  %v8873_v34 = vadd.f32 %v3834_v40, %v10126_v47  ;;  %v3945_v58 = vadd.f32 %v3944_v44, %v8856_v42  ;;  %v4017_v22 = vmul.f32 %v8868_v36, %v8868_v36  ;;  %v10129_v45 = vld [vmem:[#allocation11_spill] sm:$0xff]  ;;  %v10131_v40 = vld [vmem:[#allocation9_spill] sm:$0xff]  ;;  %v8890_v42 = vpop.f32.mrf.mxu0 }
 0x4cb   :  { %v5673_v60 = vpop.f32.mrf.mxu1 }
 0x4cc   :  { %10127 = vst [vmem:[#allocation8_spill] sm:$0xff] %v8873_v34  ;;  %v3946_v50 = vadd.f32 %v3945_v58, %v8873_v34  ;;  %v4016_v28 = vmul.f32 %v8873_v34, %v8873_v34  ;;  %v4078_v2 = vadd.f32 %v4077_v17, %v4015_v5  ;;  %v8884_v53 = vadd.f32 %v5673_v60, %v10129_v45  ;;  %v8904_v45 = vpop.f32.mrf.mxu0 }
 0x4cd   :  { %v3844_v10 = vpop.f32.mrf.mxu1 }
 0x4ce   :  { %v4079_v41 = vadd.f32 %v4078_v2, %v4016_v28  ;;  %10130 = vst [vmem:[#allocation11_spill] sm:$0xff] %v8884_v53  ;;  %v8887_v47 = vadd.f32 %v3844_v10, %v10131_v40  ;;  %v3947_v44 = vadd.f32 %v3946_v50, %v8868_v36  ;;  %v4019_v60 = vmul.f32 %v8884_v53, %v8884_v53 }
 0x4cf   :  { %v5676_v58 = vpop.f32.mrf.mxu1 }
 0x4d0   :  { %10132 = vst [vmem:[#allocation9_spill] sm:$0xff] %v8887_v47  ;;  %v3948_v4 = vadd.f32 %v3947_v44, %v8887_v47  ;;  %v4018_v5 = vmul.f32 %v8887_v47, %v8887_v47  ;;  %v4080_v17 = vadd.f32 %v4079_v41, %v4017_v22  ;;  %v8896_v34 = vadd.f32 %v5676_v58, %v8448_v3 }
 0x4d1   :  { %v3854_v28 = vpop.f32.mrf.mxu1 }
 0x4d2   :  { %10133 = vst [vmem:[#allocation73_spill] sm:$0xff] %v8896_v34  ;;  %v4081_v2 = vadd.f32 %v4080_v17, %v4018_v5  ;;  %v8901_v10 = vadd.f32 %v3854_v28, %v8445_v31  ;;  %v3949_v50 = vadd.f32 %v3948_v4, %v8884_v53  ;;  %v4021_v22 = vmul.f32 %v8896_v34, %v8896_v34  ;;  %v8918_v17 = vpop.f32.mrf.mxu0 }
 0x4d3   :  { %v5679_v40 = vpop.f32.mrf.mxu1 }
 0x4d4   :  { %10134 = vst [vmem:[#allocation74_spill] sm:$0xff] %v8901_v10  ;;  %v3950_v44 = vadd.f32 %v3949_v50, %v8901_v10  ;;  %v4020_v41 = vmul.f32 %v8901_v10, %v8901_v10  ;;  %v4082_v3 = vadd.f32 %v4081_v2, %v4019_v60  ;;  %v8912_v5 = vadd.f32 %v5679_v40, %v8454_v20 }
 0x4d5   :  { %v3864_v58 = vpop.f32.mrf.mxu1 }
 0x4d6   :  { %v4083_v47 = vadd.f32 %v4082_v3, %v4020_v41  ;;  %10135 = vst [vmem:[#allocation75_spill] sm:$0xff] %v8912_v5  ;;  %v8915_v31 = vadd.f32 %v3864_v58, %v8451_v14  ;;  %v3951_v4 = vadd.f32 %v3950_v44, %v8896_v34  ;;  %v4023_v20 = vmul.f32 %v8912_v5, %v8912_v5  ;;  %v8932_v3 = vpop.f32.mrf.mxu0 }
 0x4d7   :  { %v5682_v28 = vpop.f32.mrf.mxu1 }
 0x4d8   :  { %10136 = vst [vmem:[#allocation76_spill] sm:$0xff] %v8915_v31  ;;  %v3952_v50 = vadd.f32 %v3951_v4, %v8915_v31  ;;  %v4022_v60 = vmul.f32 %v8915_v31, %v8915_v31  ;;  %v4084_v2 = vadd.f32 %v4083_v47, %v4021_v22  ;;  %v8924_v10 = vadd.f32 %v5682_v28, %v8460_v13 }
 0x4d9   :  { %v3874_v41 = vpop.f32.mrf.mxu1 }
 0x4da   :  { %10137 = vst [vmem:[#allocation77_spill] sm:$0xff] %v8924_v10  ;;  %v4085_v14 = vadd.f32 %v4084_v2, %v4022_v60  ;;  %v8929_v40 = vadd.f32 %v3874_v41, %v8457_v21  ;;  %v3953_v44 = vadd.f32 %v3952_v50, %v8912_v5  ;;  %v4025_v22 = vmul.f32 %v8924_v10, %v8924_v10  ;;  %v10139_v21 = vld [vmem:[#allocation10_spill] sm:$0xff]  ;;  %v8946_v41 = vpop.f32.mrf.mxu0 }
 0x4db   :  { %v5685_v58 = vpop.f32.mrf.mxu1  ;;  %10141 = vst [vmem:[#allocation79_spill] sm:$0xff] %v8946_v41 }
 0x4dc   :  { %10138 = vst [vmem:[#allocation78_spill] sm:$0xff] %v8929_v40  ;;  %v3954_v4 = vadd.f32 %v3953_v44, %v8929_v40  ;;  %v4024_v47 = vmul.f32 %v8929_v40, %v8929_v40  ;;  %v4086_v13 = vadd.f32 %v4085_v14, %v4023_v20  ;;  %v8940_v60 = vadd.f32 %v5685_v58, %v8472_v59  ;;  %v8954_v58 = vpop.f32.mrf.mxu0 }
 0x4dd   :  { %v3884_v28 = vpop.f32.mrf.mxu1 }
 0x4de   :  { %v4087_v31 = vadd.f32 %v4086_v13, %v4024_v47  ;;  %v8943_v2 = vadd.f32 %v3884_v28, %v10139_v21  ;;  %v3955_v50 = vadd.f32 %v3954_v4, %v8924_v10  ;;  %v4027_v40 = vmul.f32 %v8940_v60, %v8940_v60  ;;  %v8956_v10 = vpop.f32.mrf.mxu0 }
 0x4e0   :  { %10140 = vst [vmem:[#allocation10_spill] sm:$0xff] %v8943_v2  ;;  %v3956_v44 = vadd.f32 %v3955_v50, %v8943_v2  ;;  %v4026_v20 = vmul.f32 %v8943_v2, %v8943_v2  ;;  %v4088_v14 = vadd.f32 %v4087_v31, %v4025_v22  ;;  %v8958_v36 = vpop.f32.mrf.mxu0 }
 0x4e2   :  { %v3957_v47 = vadd.f32 %v3956_v44, %v8940_v60  ;;  %v4089_v59 = vadd.f32 %v4088_v14, %v4026_v20  ;;  %v8960_v44 = vpop.f32.mrf.mxu0 }
 0x4e4   :  { %v3958_v13 = vrot.slane %v3957_v47, 4  ;;  %v4090_v28 = vadd.f32 %v4089_v59, %v4027_v40  ;;  %v8966_v59 = vpop.f32.mrf.mxu0 }
 0x4e6   :  { %v3959_v21 = vadd.f32 %v3958_v13, %v3957_v47  ;;  %v4091_v4 = vrot.slane %v4090_v28, 4 }
 0x4e8   :  { %v3960_v5 = vrot.slane %v3959_v21, 2  ;;  %v4092_v50 = vadd.f32 %v4091_v4, %v4090_v28  ;;  %v10144_v28 = vld [vmem:[#allocation18_spill] sm:$0xff]  ;;  %v10145_v4 = vld [vmem:[#allocation21_spill] sm:$0xff] }
 0x4ea   :  { %v3961_v34 = vadd.f32 %v3960_v5, %v3959_v21  ;;  %v4093_v53 = vrot.slane %v4092_v50, 2  ;;  %v8971_v5 = vld [vmem:[%s9785_s9] ss:$0 sm:$0xff] }
 0x4eb   :  { %10142 = vst [vmem:[#allocation80_spill] sm:$0xff] %v8971_v5  ;;  %v8981_v21 = vadd.f32 %v8971_v5, %v10144_v28 }
 0x4ec   :  { %v3962_v31 = vrot.slane %v3961_v34, 1  ;;  %v4094_v22 = vadd.f32 %v4093_v53, %v4092_v50  ;;  %v8985_v50 = vadd.f32 %v10145_v4, %v8971_v5  ;;  %v9007_v4 = vadd.f32 %v8971_v5, %v8546_v51 }
 0x4ed   :  { %v9027_v51 = vadd.f32 %v8583_v43, %v8971_v5  ;;  %v9047_v43 = vadd.f32 %v8971_v5, %v8626_v18  ;;  %v9067_v18 = vadd.f32 %v8663_v6, %v8971_v5  ;;  %v9087_v6 = vadd.f32 %v8971_v5, %v8706_v23 }
 0x4ee   :  { %v3963_v2 = vadd.f32 %v3962_v31, %v3961_v34  ;;  %v4095_v41 = vrot.slane %v4094_v22, 1  ;;  %v8973_v34 = vpop.f32.mrf.mxu0  ;;  %v10146_v31 = vld [vmem:[#allocation25_spill] sm:$0xff]  ;;  %v9107_v23 = vadd.f32 %v8743_v63, %v8971_v5  ;;  %v9127_v63 = vadd.f32 %v8971_v5, %v8786_v57 }
 0x4ef   :  { %10160 = vst [vmem:[#allocation82_spill] sm:$0xff] %v9047_v43  ;;  %10165 = vst [vmem:[#allocation87_spill] sm:$0xff] %v9067_v18  ;;  %v9146_v57 = vadd.f32 %v8971_v5, %v8818_v19  ;;  %v10188_v19 = vld [vmem:[#allocation72_spill] sm:$0xff]  ;;  %v10242_v18 = vld [vmem:[#allocation53_spill] sm:$0xff] }
 0x4f0   :  { %v4096_v20 = vadd.f32 %v4095_v41, %v4094_v22  ;;  %v8962_v14 = vmul.f32 0.001953125, %v3963_v2  ;;  %v10143_v41 = vld [vmem:[#allocation16_spill] sm:$0xff]  ;;  %v8989_v22 = vadd.f32 %v8971_v5, %v10146_v31  ;;  %v9011_v31 = vadd.f32 %v8551_v29, %v8971_v5  ;;  %10170 = vst [vmem:[#allocation92_spill] sm:$0xff] %v9087_v6  ;;  %10175 = vst [vmem:[#allocation97_spill] sm:$0xff] %v9107_v23  ;;  %v10233_v23 = vld [vmem:[#allocation46_spill] sm:$0xff] }
 0x4f1   :  { %v8977_v2 = vadd.f32 %v10143_v41, %v8971_v5  ;;  %v10150_v41 = vld [vmem:[#allocation28_spill] sm:$0xff]  ;;  %v9031_v29 = vadd.f32 %v8971_v5, %v8594_v26  ;;  %v9051_v26 = vadd.f32 %v8631_v38, %v8971_v5  ;;  %v9071_v38 = vadd.f32 %v8971_v5, %v8674_v12  ;;  %10180 = vst [vmem:[#allocation102_spill] sm:$0xff] %v9127_v63  ;;  %v10230_v63 = vld [vmem:[#allocation41_spill] sm:$0xff]  ;;  %v10249_v43 = vld [vmem:[#allocation62_spill] sm:$0xff] }
 0x4f2   :  { %v4098_v40 = vmul.f32 0.001953125, %v4096_v20  ;;  %v4099_v47 = vmul.f32 %v8962_v14, %v8962_v14  ;;  %v10147_v20 = vld [vmem:[#allocation22_spill] sm:$0xff]  ;;  %v9003_v28 = vadd.f32 %v10150_v41, %v8971_v5  ;;  %10151 = vst [vmem:[#allocation18_spill] sm:$0xff] %v9011_v31  ;;  %v9023_v41 = vadd.f32 %v8971_v5, %v8578_v39  ;;  %10183 = vst [vmem:[#allocation105_spill] sm:$0xff] %v9146_v57  ;;  %v10239_v6 = vld [vmem:[#allocation52_spill] sm:$0xff] }
 0x4f3   :  { %10155 = vst [vmem:[#allocation22_spill] sm:$0xff] %v9027_v51  ;;  %v9043_v39 = vadd.f32 %v8615_v32, %v8971_v5  ;;  %10161 = vst [vmem:[#allocation83_spill] sm:$0xff] %v9051_v26  ;;  %v9063_v32 = vadd.f32 %v8971_v5, %v8658_v62  ;;  %v9083_v62 = vadd.f32 %v8695_v48, %v8971_v5  ;;  %v10246_v26 = vld [vmem:[#allocation57_spill] sm:$0xff]  ;;  %v10252_v51 = vld [vmem:[#allocation64_spill] sm:$0xff] }
 0x4f4   :  { %v4100_v13 = vsub.f32 %v4098_v40, %v4099_v47  ;;  %v8993_v40 = vadd.f32 %v10147_v20, %v8971_v5  ;;  %v8995_v47 = vpop.f32.mrf.mxu0  ;;  %v9015_v20 = vadd.f32 %v8971_v5, %v8562_v0  ;;  %10154 = vst [vmem:[#allocation25_spill] sm:$0xff] %v9023_v41  ;;  %v9035_v0 = vadd.f32 %v8599_v25, %v8971_v5 }
 0x4f5   :  { %10159 = vst [vmem:[#allocation81_spill] sm:$0xff] %v9043_v39  ;;  %v9055_v25 = vadd.f32 %v8971_v5, %v8642_v24  ;;  %10164 = vst [vmem:[#allocation86_spill] sm:$0xff] %v9063_v32  ;;  %v9075_v24 = vadd.f32 %v8679_v33, %v8971_v5  ;;  %v9091_v12 = vadd.f32 %v8711_v27, %v8971_v5  ;;  %v10245_v32 = vld [vmem:[#allocation58_spill] sm:$0xff]  ;;  %v10248_v39 = vld [vmem:[#allocation59_spill] sm:$0xff] }
 0x4f6   :  { %v4101_v53 = vadd.f32 1e-05, %v4100_v13  ;;  %10148 = vst [vmem:[#allocation16_spill] sm:$0xff] %v8993_v40  ;;  %v10149_v13 = vld [vmem:[#allocation29_spill] sm:$0xff]  ;;  %v10152_v40 = vld [vmem:[#allocation34_spill] sm:$0xff]  ;;  %10157 = vst [vmem:[#allocation28_spill] sm:$0xff] %v9035_v0  ;;  %v4870_v0 = vpop.f32.mrf.mxu0  ;;  %v9095_v33 = vadd.f32 %v8971_v5, %v8722_v52  ;;  %v9103_v48 = vadd.f32 %v8971_v5, %v8738_v49  ;;  %v9111_v27 = vadd.f32 %v8971_v5, %v8754_v9 }
 0x4f7   :  { %10156 = vst [vmem:[#allocation29_spill] sm:$0xff] %v9031_v29  ;;  %10162 = vst [vmem:[#allocation84_spill] sm:$0xff] %v9055_v25  ;;  %v9115_v52 = vadd.f32 %v8759_v11, %v8971_v5  ;;  %v9123_v49 = vadd.f32 %v8775_v7, %v8971_v5  ;;  %v9131_v9 = vadd.f32 %v8791_v30, %v8971_v5  ;;  %v10247_v25 = vld [vmem:[#allocation60_spill] sm:$0xff] }
 0x4f8   :  { %5800 = vrsqrt.f32 %v4101_v53  ;;  %v8999_v53 = vadd.f32 %v8971_v5, %v10149_v13  ;;  %v9019_v13 = vadd.f32 %v10152_v40, %v8971_v5  ;;  %v9039_v40 = vadd.f32 %v8971_v5, %v8610_v37  ;;  %10166 = vst [vmem:[#allocation88_spill] sm:$0xff] %v9071_v38  ;;  %10167 = vst [vmem:[#allocation89_spill] sm:$0xff] %v9075_v24  ;;  %v10240_v24 = vld [vmem:[#allocation51_spill] sm:$0xff]  ;;  %v10243_v38 = vld [vmem:[#allocation56_spill] sm:$0xff] }
 0x4f9   :  { %v9059_v37 = vadd.f32 %v8647_v8, %v8971_v5  ;;  %v9079_v8 = vadd.f32 %v8971_v5, %v8690_v61  ;;  %10169 = vst [vmem:[#allocation91_spill] sm:$0xff] %v9083_v62  ;;  %10171 = vst [vmem:[#allocation93_spill] sm:$0xff] %v9091_v12  ;;  %v9099_v61 = vadd.f32 %v8727_v35, %v8971_v5  ;;  %v10236_v12 = vld [vmem:[#allocation47_spill] sm:$0xff]  ;;  %v10238_v62 = vld [vmem:[#allocation49_spill] sm:$0xff] }
 0x4fa   :  { %10153 = vst [vmem:[#allocation21_spill] sm:$0xff] %v9019_v13  ;;  %10158 = vst [vmem:[#allocation34_spill] sm:$0xff] %v9039_v40  ;;  %v9119_v35 = vadd.f32 %v8971_v5, %v8770_v55  ;;  %v9135_v11 = vadd.f32 %v8971_v5, %v8802_v15  ;;  %v3893_v55 = vld [vmem:[%s9782_s6] sm:$0x1]  ;;  %v9142_v7 = vadd.f32 %v8807_v56, %v8971_v5  ;;  %v10251_v40 = vld [vmem:[#allocation61_spill] sm:$0xff] }
 0x4fb   :  { %10163 = vst [vmem:[#allocation85_spill] sm:$0xff] %v9059_v37  ;;  %10168 = vst [vmem:[#allocation90_spill] sm:$0xff] %v9079_v8  ;;  %v9150_v30 = vadd.f32 %v8823_v46, %v8971_v5  ;;  %v9154_v15 = vadd.f32 %v8971_v5, %v8837_v54  ;;  %v9162_v56 = vadd.f32 %v8971_v5, %v8862_v16  ;;  %v10241_v8 = vld [vmem:[#allocation54_spill] sm:$0xff]  ;;  %v10244_v37 = vld [vmem:[#allocation55_spill] sm:$0xff] }
 0x4fc   :  { %10172 = vst [vmem:[#allocation94_spill] sm:$0xff] %v9095_v33  ;;  %10173 = vst [vmem:[#allocation95_spill] sm:$0xff] %v9099_v61  ;;  %v5780_v61 = vpop.f32.mrf.mxu0  ;;  %v9166_v57 = vadd.f32 %v10188_v19, %v8971_v5  ;;  %v9170_v46 = vadd.f32 %v8971_v5, %v8890_v42  ;;  %v9174_v54 = vadd.f32 %v8904_v45, %v8971_v5  ;;  %v3894_v42 = vld [vmem:[%s9783_s7] sm:$0x1]  ;;  %s5830_s7 = smov [#allocation3]  }
 0x4fd   :  { %10174 = vst [vmem:[#allocation96_spill] sm:$0xff] %v9103_v48  ;;  %10176 = vst [vmem:[#allocation98_spill] sm:$0xff] %v9111_v27  ;;  %v9182_v16 = vadd.f32 %v8932_v3, %v8971_v5  ;;  %v9193_v45 = vadd.f32 %v8954_v58, %v8971_v5  ;;  %v9201_v3 = vadd.f32 %v8958_v36, %v8971_v5  ;;  %v10234_v27 = vld [vmem:[#allocation45_spill] sm:$0xff]  ;;  %v10235_v48 = vld [vmem:[#allocation48_spill] sm:$0xff]  ;;  %s5096_s19 = sshll.u32 %s5830_s7, 4  ;;  %s5097_s19 = int_to_ptr.vmem [resolvable:$true] %s5096_s19 }
 0x4fe   :  { %10177 = vst [vmem:[#allocation99_spill] sm:$0xff] %v9115_v52  ;;  %10178 = vst [vmem:[#allocation100_spill] sm:$0xff] %v9119_v35  ;;  %v9213_v58 = vadd.f32 %v8966_v59, %v8971_v5  ;;  %v9221_v36 = vadd.f32 %v8995_v47, %v8971_v5  ;;  %v10207_v59 = vld [vmem:[#allocation10_spill] sm:$0xff]  ;;  %v10210_v47 = vld [vmem:[#allocation13_spill] sm:$0xff]  ;;  %s5807_s20 = scalar_lea.vmem %s5097_s19, 8192  ;;  %p5812_p1 = scmp.lt.s32.totalorder %s5097_s19, %s5097_s19 }
 0x4ff   :  { %10179 = vst [vmem:[#allocation101_spill] sm:$0xff] %v9123_v49  ;;  %10181 = vst [vmem:[#allocation103_spill] sm:$0xff] %v9131_v9  ;;  %v9158_v9 = vadd.f32 %v8848_v1, %v8971_v5  ;;  %v9178_v1 = vadd.f32 %v8971_v5, %v8918_v17  ;;  %v9197_v17 = vadd.f32 %v8971_v5, %v8956_v10  ;;  %v10229_v49 = vld [vmem:[#allocation42_spill] sm:$0xff]  ;;  %v10231_v52 = vld [vmem:[#allocation44_spill] sm:$0xff]  ;;  %p5808_p0 = scmp.ne.s32.totalorder %s5097_s19, %s5807_s20  ;;  %p5813_p2 = scmp.lt.s32.totalorder %s5807_s20, %s5807_s20 }
 0x500   :  { %10182 = vst [vmem:[#allocation104_spill] sm:$0xff] %v9135_v11  ;;  %10184 = vst [vmem:[#allocation106_spill] sm:$0xff] %v9150_v30  ;;  %v9217_v10 = vadd.f32 %v8971_v5, %v8973_v34  ;;  %v10209_v34 = vld [vmem:[#allocation12_spill] sm:$0xff]  ;;  %v10228_v30 = vld [vmem:[#allocation39_spill] sm:$0xff] }
 0x501   :  { %10185 = vst [vmem:[#allocation107_spill] sm:$0xff] %v9154_v15  ;;  %10186 = vst [vmem:[#allocation108_spill] sm:$0xff] %v9158_v9  ;;  %v10227_v9 = vld [vmem:[#allocation40_spill] sm:$0xff]  ;;  %v10232_v35 = vld [vmem:[#allocation43_spill] sm:$0xff]  ;;  %p5814_p3 = por %p5813_p2, %p5812_p1 }
 0x502   :  { %10187 = vst [vmem:[#allocation109_spill] sm:$0xff] %v9162_v56  ;;  %10189 = vst [vmem:[#allocation72_spill] sm:$0xff] %v9166_v57  ;;  %v10194_v56 = vld [vmem:[#allocation79_spill] sm:$0xff]  ;;  %v4880_v57 = vpop.f32.mrf.mxu0  ;;  %v10237_v33 = vld [vmem:[#allocation50_spill] sm:$0xff] }
 0x503   :  { %10190 = vst [vmem:[#allocation110_spill] sm:$0xff] %v9170_v46  ;;  %10191 = vst [vmem:[#allocation111_spill] sm:$0xff] %v9174_v54  ;;  %v9186_v19 = vadd.f32 %v8971_v5, %v10194_v56  ;;  %v10200_v56 = vld [vmem:[#allocation24_spill] sm:$0xff]  ;;  %v10225_v54 = vld [vmem:[#allocation38_spill] sm:$0xff]  ;;  %p5815_p4 = pnand %p5814_p3, %p5808_p0 }
 0x504   :  { %10192 = vst [vmem:[#allocation112_spill] sm:$0xff] %v9178_v1  ;;  %10193 = vst [vmem:[#allocation113_spill] sm:$0xff] %v9182_v16  ;;  %v10223_v16 = vld [vmem:[#allocation36_spill] sm:$0xff]  ;;  %v10224_v1 = vld [vmem:[#allocation35_spill] sm:$0xff] }
 0x505   :  { %v5801_v11 = vpop.eup %5800  ;;  %10195 = vst [vmem:[#allocation79_spill] sm:$0xff] %v9186_v19  ;;  %10196 = vst [vmem:[#allocation114_spill] sm:$0xff] %v9193_v45  ;;  %v10222_v45 = vld [vmem:[#allocation33_spill] sm:$0xff] }
 0x506   :  { %v4103_v15 = vmul.f32 %v5801_v11, %v3893_v55  ;;  %10197 = vst [vmem:[#allocation115_spill] sm:$0xff] %v9197_v17  ;;  %10198 = vst [vmem:[#allocation116_spill] sm:$0xff] %v9201_v3  ;;  %v9205_v11 = vadd.f32 %v8971_v5, %v8960_v44  ;;  %v9224_v44 = vadd.f32 %v8971_v5, %v4870_v0  ;;  %v10211_v0 = vld [vmem:[#allocation15_spill] sm:$0xff]  ;;  %v10221_v17 = vld [vmem:[#allocation32_spill] sm:$0xff] }
 0x507   :  { %10201 = vst [vmem:[#allocation24_spill] sm:$0xff] %v9213_v58  ;;  %10202 = vst [vmem:[#allocation118_spill] sm:$0xff] %v9217_v10  ;;  %v10226_v46 = vld [vmem:[#allocation37_spill] sm:$0xff] }
 0x508   :  { %10199 = vst [vmem:[#allocation117_spill] sm:$0xff] %v9205_v11  ;;  %v4104_v55 = vmul.f32 %v4103_v15, %v8962_v14  ;;  %v9209_v19 = vrot.slane %v4103_v15, %v10200_v56  ;;  %10203 = vst [vmem:[#allocation119_spill] sm:$0xff] %v9221_v36  ;;  %v9227_v14 = vadd.f32 %v5780_v61, %v8971_v5 }
 0x509   :  { %10204 = vst [vmem:[#allocation120_spill] sm:$0xff] %v9224_v44  ;;  %v9230_v15 = vadd.f32 %v8971_v5, %v4880_v57 }
 0x50a   :  { %10205 = vst [vmem:[#allocation121_spill] sm:$0xff] %v9227_v14  ;;  %v4105_v11 = vsub.f32 %v3894_v42, %v4104_v55  ;;  %v9234_v58 = vmul.f32 %v9209_v19, %v10207_v59  ;;  %v9238_v10 = vmul.f32 %v9209_v19, %v10209_v34  ;;  %v9242_v36 = vmul.f32 %v9209_v19, %v10210_v47  ;;  %v10212_v14 = vld [vmem:[#allocation14_spill] sm:$0xff]  ;;  %v10213_v42 = vld [vmem:[#allocation19_spill] sm:$0xff]  ;;  %v10214_v59 = vld [vmem:[#allocation17_spill] sm:$0xff] }
 0x50b   :  { %10206 = vst [vmem:[#allocation122_spill] sm:$0xff] %v9230_v15  ;;  %v9246_v61 = vmul.f32 %v9209_v19, %v10211_v0  ;;  %v9250_v57 = vmul.f32 %v9209_v19, %v10212_v14  ;;  %v9254_v55 = vmul.f32 %v9209_v19, %v10213_v42  ;;  %v9258_v34 = vmul.f32 %v9209_v19, %v10214_v59  ;;  %v10215_v47 = vld [vmem:[#allocation23_spill] sm:$0xff]  ;;  %v10216_v0 = vld [vmem:[#allocation20_spill] sm:$0xff]  ;;  %v10217_v14 = vld [vmem:[#allocation26_spill] sm:$0xff] }
 0x50c   :  { %10208 = vst [vmem:[#allocation10_spill] sm:$0xff] %v9234_v58  ;;  %v9261_v15 = vrot.slane %v4105_v11, %v10200_v56  ;;  %v9265_v44 = vmul.f32 %v9209_v19, %v10215_v47  ;;  %v9269_v58 = vmul.f32 %v9209_v19, %v10216_v0  ;;  %v9273_v5 = vmul.f32 %v9209_v19, %v10217_v14  ;;  %v10218_v42 = vld [vmem:[#allocation27_spill] sm:$0xff]  ;;  %v10219_v59 = vld [vmem:[#allocation30_spill] sm:$0xff] }
 0x50d   :  { %v9277_v3 = vmul.f32 %v9209_v19, %v10218_v42  ;;  %v9281_v11 = vmul.f32 %v9209_v19, %v10219_v59  ;;  %v10220_v56 = vld [vmem:[#allocation31_spill] sm:$0xff]  ;;  %v9289_v0 = vmul.f32 %v9209_v19, %v10221_v17  ;;  %v9293_v14 = vmul.f32 %v9209_v19, %v10222_v45 }
 0x50e   :  { %v9285_v47 = vmul.f32 %v9209_v19, %v10220_v56  ;;  %v9297_v42 = vmul.f32 %v9209_v19, %v10223_v16  ;;  %v9301_v59 = vmul.f32 %v9209_v19, %v10224_v1  ;;  %v9305_v56 = vmul.f32 %v9209_v19, %v10225_v54 }
 0x50f   :  { %v9309_v17 = vmul.f32 %v9209_v19, %v10226_v46  ;;  %v9313_v45 = vmul.f32 %v9209_v19, %v10227_v9  ;;  %v9317_v16 = vmul.f32 %v9209_v19, %v10228_v30  ;;  %v9321_v1 = vmul.f32 %v9209_v19, %v10229_v49 }
 0x510   :  { %v9325_v54 = vmul.f32 %v9209_v19, %v10230_v63  ;;  %v9329_v46 = vmul.f32 %v9209_v19, %v10231_v52  ;;  %v9333_v9 = vmul.f32 %v9209_v19, %v10232_v35  ;;  %v9337_v30 = vmul.f32 %v9209_v19, %v10233_v23 }
 0x511   :  { %v9341_v49 = vmul.f32 %v9209_v19, %v10234_v27  ;;  %v9345_v63 = vmul.f32 %v9209_v19, %v10235_v48  ;;  %v9349_v52 = vmul.f32 %v9209_v19, %v10236_v12  ;;  %v9353_v35 = vmul.f32 %v9209_v19, %v10237_v33 }
 0x512   :  { %v9357_v23 = vmul.f32 %v9209_v19, %v10238_v62  ;;  %v9361_v27 = vmul.f32 %v9209_v19, %v10239_v6  ;;  %v9365_v48 = vmul.f32 %v9209_v19, %v10240_v24  ;;  %v9369_v12 = vmul.f32 %v9209_v19, %v10241_v8 }
 0x513   :  { %v9373_v33 = vmul.f32 %v9209_v19, %v10242_v18  ;;  %v9377_v62 = vmul.f32 %v9209_v19, %v10243_v38  ;;  %v9381_v6 = vmul.f32 %v9209_v19, %v10244_v37  ;;  %v9385_v24 = vmul.f32 %v9209_v19, %v10245_v32 }
 0x514   :  { %v9389_v8 = vmul.f32 %v9209_v19, %v10246_v26  ;;  %v9393_v18 = vmul.f32 %v9209_v19, %v10247_v25  ;;  %v9397_v38 = vmul.f32 %v9209_v19, %v10248_v39  ;;  %v9401_v37 = vmul.f32 %v9209_v19, %v10249_v43  ;;  %v10254_v26 = vld [vmem:[#allocation63_spill] sm:$0xff]  ;;  %v10256_v25 = vld [vmem:[#allocation66_spill] sm:$0xff]  ;;  %v10258_v39 = vld [vmem:[#allocation65_spill] sm:$0xff] }
 0x515   :  { %v4153_v32 = vmul.f32 %v9209_v19, %v10251_v40  ;;  %v9407_v29 = vmul.f32 %v9209_v19, %v10252_v51  ;;  %v9411_v13 = vmul.f32 %v9209_v19, %v10254_v26  ;;  %v9415_v41 = vmul.f32 %v9209_v19, %v10256_v25  ;;  %v10260_v43 = vld [vmem:[#allocation68_spill] sm:$0xff]  ;;  %v10262_v40 = vld [vmem:[#allocation67_spill] sm:$0xff] }
 0x516   :  { %10250 = vst [vmem:[#allocation12_spill] sm:$0xff] %v9401_v37  ;;  %v9419_v31 = vmul.f32 %v9209_v19, %v10258_v39  ;;  %v9423_v37 = vmul.f32 %v9209_v19, %v10260_v43  ;;  %v9427_v51 = vmul.f32 %v9209_v19, %v10262_v40 }
 0x517   :  { %10253 = vst [vmem:[#allocation13_spill] sm:$0xff] %v9407_v29  ;;  %10255 = vst [vmem:[#allocation15_spill] sm:$0xff] %v9411_v13  ;;  %v10264_v29 = vld [vmem:[#allocation70_spill] sm:$0xff]  ;;  %v10266_v13 = vld [vmem:[#allocation69_spill] sm:$0xff] }
 0x518   :  { %10257 = vst [vmem:[#allocation14_spill] sm:$0xff] %v9415_v41  ;;  %10259 = vst [vmem:[#allocation19_spill] sm:$0xff] %v9419_v31  ;;  %v9431_v26 = vmul.f32 %v9209_v19, %v10264_v29  ;;  %v9435_v25 = vmul.f32 %v9209_v19, %v10266_v13  ;;  %v10268_v41 = vld [vmem:[#allocation6_spill] sm:$0xff]  ;;  %v10270_v31 = vld [vmem:[#allocation71_spill] sm:$0xff] }
 0x519   :  { %10261 = vst [vmem:[#allocation17_spill] sm:$0xff] %v9423_v37  ;;  %10263 = vst [vmem:[#allocation23_spill] sm:$0xff] %v9427_v51  ;;  %v9439_v39 = vmul.f32 %v9209_v19, %v10268_v41  ;;  %v9443_v43 = vmul.f32 %v9209_v19, %v10270_v31  ;;  %v10272_v37 = vld [vmem:[#allocation8_spill] sm:$0xff]  ;;  %v10274_v51 = vld [vmem:[#allocation7_spill] sm:$0xff] }
 0x51a   :  { %10265 = vst [vmem:[#allocation20_spill] sm:$0xff] %v9431_v26  ;;  %10267 = vst [vmem:[#allocation26_spill] sm:$0xff] %v9435_v25  ;;  %v9447_v40 = vmul.f32 %v9209_v19, %v10272_v37  ;;  %v9451_v29 = vmul.f32 %v9209_v19, %v10274_v51  ;;  %v10276_v26 = vld [vmem:[#allocation9_spill] sm:$0xff]  ;;  %v10278_v25 = vld [vmem:[#allocation11_spill] sm:$0xff] }
 0x51b   :  { %10269 = vst [vmem:[#allocation27_spill] sm:$0xff] %v9439_v39  ;;  %10271 = vst [vmem:[#allocation30_spill] sm:$0xff] %v9443_v43  ;;  %v9455_v13 = vmul.f32 %v9209_v19, %v10276_v26  ;;  %v9459_v41 = vmul.f32 %v9209_v19, %v10278_v25  ;;  %v10280_v39 = vld [vmem:[#allocation74_spill] sm:$0xff]  ;;  %v10282_v43 = vld [vmem:[#allocation73_spill] sm:$0xff] }
 0x51c   :  { %10273 = vst [vmem:[#allocation31_spill] sm:$0xff] %v9447_v40  ;;  %10275 = vst [vmem:[#allocation32_spill] sm:$0xff] %v9451_v29  ;;  %v9463_v31 = vmul.f32 %v9209_v19, %v10280_v39  ;;  %v9467_v37 = vmul.f32 %v9209_v19, %v10282_v43  ;;  %v10283_v40 = vld [vmem:[#allocation76_spill] sm:$0xff]  ;;  %v10285_v29 = vld [vmem:[#allocation75_spill] sm:$0xff]  ;;  %v9487_v43 = vmul.f32 %v9209_v19, %v8940_v60 }
 0x51d   :  { %10277 = vst [vmem:[#allocation33_spill] sm:$0xff] %v9455_v13  ;;  %10279 = vst [vmem:[#allocation36_spill] sm:$0xff] %v9459_v41  ;;  %v9471_v51 = vmul.f32 %v9209_v19, %v10283_v40  ;;  %v9475_v26 = vmul.f32 %v9209_v19, %v10285_v29  ;;  %v10287_v13 = vld [vmem:[#allocation78_spill] sm:$0xff]  ;;  %v10289_v41 = vld [vmem:[#allocation77_spill] sm:$0xff]  ;;  %v4182_v40 = vadd.f32 %v9261_v15, %v9238_v10 }
 0x51e   :  { %10281 = vst [vmem:[#allocation35_spill] sm:$0xff] %v9463_v31  ;;  %v9479_v25 = vmul.f32 %v9209_v19, %v10287_v13  ;;  %v9483_v39 = vmul.f32 %v9209_v19, %v10289_v41  ;;  %10291 = vst [vmem:[#allocation42_spill] sm:$0xff] %v9487_v43  ;;  %v4184_v29 = vadd.f32 %v9261_v15, %v9246_v61  ;;  %v10293_v31 = vld [vmem:[#allocation18_spill] sm:$0xff] }
 0x51f   :  { %10284 = vst [vmem:[#allocation38_spill] sm:$0xff] %v9471_v51  ;;  %10286 = vst [vmem:[#allocation37_spill] sm:$0xff] %v9475_v26  ;;  %v4183_v51 = vadd.f32 %v9261_v15, %v9242_v36  ;;  %v4185_v13 = vadd.f32 %v9261_v15, %v9250_v57  ;;  %v4186_v41 = vadd.f32 %v9261_v15, %v9254_v55 }
 0x520   :  { %10288 = vst [vmem:[#allocation40_spill] sm:$0xff] %v9479_v25  ;;  %10290 = vst [vmem:[#allocation39_spill] sm:$0xff] %v9483_v39  ;;  %v4187_v25 = vadd.f32 %v9261_v15, %v9258_v34  ;;  %v4188_v60 = vadd.f32 %v9261_v15, %v9265_v44  ;;  %v4189_v19 = vadd.f32 %v9261_v15, %v9269_v58  ;;  %v10292_v39 = vld [vmem:[#allocation16_spill] sm:$0xff] }
 0x521   :  { %v4190_v10 = vadd.f32 %v9261_v15, %v9273_v5  ;;  %v4191_v36 = vadd.f32 %v9261_v15, %v9277_v3  ;;  %v4192_v61 = vadd.f32 %v9261_v15, %v9281_v11  ;;  %v4193_v57 = vadd.f32 %v9261_v15, %v9285_v47 }
 0x522   :  { %v4194_v55 = vadd.f32 %v9261_v15, %v9289_v0  ;;  %v4195_v44 = vadd.f32 %v9261_v15, %v9293_v14  ;;  %v4196_v58 = vadd.f32 %v9261_v15, %v9297_v42  ;;  %v4197_v5 = vadd.f32 %v9261_v15, %v9301_v59 }
 0x523   :  { %v4198_v3 = vadd.f32 %v9261_v15, %v9305_v56  ;;  %v4199_v34 = vadd.f32 %v9261_v15, %v9309_v17  ;;  %v4200_v11 = vadd.f32 %v9261_v15, %v9313_v45  ;;  %v4201_v47 = vadd.f32 %v9261_v15, %v9317_v16 }
 0x524   :  { %v4202_v0 = vadd.f32 %v9261_v15, %v9321_v1  ;;  %v4203_v14 = vadd.f32 %v9261_v15, %v9325_v54  ;;  %v4204_v42 = vadd.f32 %v9261_v15, %v9329_v46  ;;  %v4205_v59 = vadd.f32 %v9261_v15, %v9333_v9 }
 0x525   :  { %v4206_v56 = vadd.f32 %v9261_v15, %v9337_v30  ;;  %v4207_v17 = vadd.f32 %v9261_v15, %v9341_v49  ;;  %v4208_v45 = vadd.f32 %v9261_v15, %v9345_v63  ;;  %v4209_v16 = vadd.f32 %v9261_v15, %v9349_v52 }
 0x526   :  { %v4210_v1 = vadd.f32 %v9261_v15, %v9353_v35  ;;  %v4211_v54 = vadd.f32 %v9261_v15, %v9357_v23  ;;  %v4212_v46 = vadd.f32 %v9261_v15, %v9361_v27  ;;  %v4213_v9 = vadd.f32 %v9261_v15, %v9365_v48 }
 0x527   :  { %v4214_v30 = vadd.f32 %v9261_v15, %v9369_v12  ;;  %v4215_v49 = vadd.f32 %v9261_v15, %v9373_v33  ;;  %v4216_v63 = vadd.f32 %v9261_v15, %v9377_v62  ;;  %v4217_v52 = vadd.f32 %v9261_v15, %v9381_v6 }
 0x528   :  { %v4218_v35 = vadd.f32 %v9261_v15, %v9385_v24  ;;  %v4219_v23 = vadd.f32 %v9261_v15, %v9389_v8  ;;  %v4220_v27 = vadd.f32 %v9261_v15, %v9393_v18  ;;  %v4221_v48 = vadd.f32 %v9261_v15, %v9397_v38 }
 0x529   :  { %v4223_v12 = vadd.f32 %v9261_v15, %v4153_v32  ;;  %v4899_v33 = vadd.f32 %v8981_v21, %v4182_v40  ;;  %v4900_v62 = vadd.f32 %v8977_v2, %v4183_v51  ;;  %v4901_v6 = vadd.f32 %v8989_v22, %v4184_v29  ;;  %v10294_v2 = vld [vmem:[#allocation25_spill] sm:$0xff] }
 0x52a   :  { %v4902_v43 = vadd.f32 %v8985_v50, %v4185_v13  ;;  %v4903_v24 = vadd.f32 %v8999_v53, %v4186_v41  ;;  %v4904_v26 = vadd.f32 %v10292_v39, %v4187_v25  ;;  %v4905_v18 = vadd.f32 %v9007_v4, %v4188_v60  ;;  %v10295_v22 = vld [vmem:[#allocation21_spill] sm:$0xff]  ;;  %v10297_v25 = vld [vmem:[#allocation22_spill] sm:$0xff] }
 0x52b   :  { %v4940_v8 = vadd.f32 %v9142_v7, %v4223_v12  ;;  %v4906_v38 = vadd.f32 %v9003_v28, %v4189_v19  ;;  %v4907_v32 = vadd.f32 %v9015_v20, %v4190_v10  ;;  %v9581_v21 = vadd.f32 %v10293_v31, %v4191_v36  ;;  %v10296_v40 = vld [vmem:[#allocation29_spill] sm:$0xff]  ;;  %v10298_v4 = vld [vmem:[#allocation34_spill] sm:$0xff]  ;;  %v10299_v20 = vld [vmem:[#allocation28_spill] sm:$0xff] }
 0x52c   :  { %v9584_v51 = vadd.f32 %v10294_v2, %v4192_v61  ;;  %v9587_v50 = vadd.f32 %v10295_v22, %v4193_v57  ;;  %v9590_v7 = vadd.f32 %v10296_v40, %v4194_v55  ;;  %v9593_v39 = vadd.f32 %v10297_v25, %v4195_v44  ;;  %v10300_v31 = vld [vmem:[#allocation82_spill] sm:$0xff]  ;;  %v10301_v41 = vld [vmem:[#allocation81_spill] sm:$0xff]  ;;  %v10302_v19 = vld [vmem:[#allocation84_spill] sm:$0xff] }
 0x52d   :  { %v5004_v53 = vmax.f32 %v4940_v8, 0.0  ;;  %v9596_v28 = vadd.f32 %v10298_v4, %v4196_v58  ;;  %v9599_v29 = vadd.f32 %v10299_v20, %v4197_v5  ;;  %v9602_v13 = vadd.f32 %v10300_v31, %v4198_v3  ;;  %v10303_v36 = vld [vmem:[#allocation83_spill] sm:$0xff]  ;;  %v10304_v57 = vld [vmem:[#allocation86_spill] sm:$0xff]  ;;  %v10305_v44 = vld [vmem:[#allocation85_spill] sm:$0xff] }
 0x52e   :  { %v9605_v60 = vadd.f32 %v10301_v41, %v4199_v34  ;;  %v9608_v10 = vadd.f32 %v10302_v19, %v4200_v11  ;;  %v9611_v61 = vadd.f32 %v10303_v36, %v4201_v47  ;;  %v9614_v55 = vadd.f32 %v10304_v57, %v4202_v0  ;;  %v10306_v5 = vld [vmem:[#allocation88_spill] sm:$0xff]  ;;  %v10307_v3 = vld [vmem:[#allocation87_spill] sm:$0xff]  ;;  %v10308_v34 = vld [vmem:[#allocation90_spill] sm:$0xff] }
 0x52f   :  { %5068 = vst [vmem:[#allocation3 + $0x148] sm:$0xff] %v5004_v53  ;;  %v9617_v58 = vadd.f32 %v10305_v44, %v4203_v14  ;;  %v9620_v12 = vadd.f32 %v10306_v5, %v4204_v42  ;;  %v9623_v8 = vadd.f32 %v10307_v3, %v4205_v59  ;;  %v9626_v2 = vadd.f32 %v10308_v34, %v4206_v56  ;;  %v10309_v11 = vld [vmem:[#allocation89_spill] sm:$0xff]  ;;  %v10310_v47 = vld [vmem:[#allocation92_spill] sm:$0xff]  ;;  %v10311_v0 = vld [vmem:[#allocation91_spill] sm:$0xff] }
 0x530   :  { %v9629_v22 = vadd.f32 %v10309_v11, %v4207_v17  ;;  %v9632_v53 = vadd.f32 %v10310_v47, %v4208_v45  ;;  %v9635_v40 = vadd.f32 %v10311_v0, %v4209_v16  ;;  %v10312_v14 = vld [vmem:[#allocation94_spill] sm:$0xff]  ;;  %v10313_v42 = vld [vmem:[#allocation93_spill] sm:$0xff]  ;;  %v10314_v59 = vld [vmem:[#allocation96_spill] sm:$0xff]  ;;  %v4964_v47 = vmax.f32 %v4900_v62, 0.0 }
 0x531   :  { %v9638_v25 = vadd.f32 %v10312_v14, %v4210_v1  ;;  %v9641_v4 = vadd.f32 %v10313_v42, %v4211_v54  ;;  %v9644_v20 = vadd.f32 %v10314_v59, %v4212_v46  ;;  %v10315_v56 = vld [vmem:[#allocation95_spill] sm:$0xff]  ;;  %v10316_v17 = vld [vmem:[#allocation98_spill] sm:$0xff]  ;;  %v10317_v45 = vld [vmem:[#allocation97_spill] sm:$0xff]  ;;  %v4965_v0 = vmax.f32 %v4901_v6, 0.0 }
 0x532   :  { %v9647_v31 = vadd.f32 %v10315_v56, %v4213_v9  ;;  %v9650_v41 = vadd.f32 %v10316_v17, %v4214_v30  ;;  %v9653_v19 = vadd.f32 %v10317_v45, %v4215_v49  ;;  %v10318_v16 = vld [vmem:[#allocation100_spill] sm:$0xff]  ;;  %v10319_v1 = vld [vmem:[#allocation99_spill] sm:$0xff]  ;;  %v10320_v54 = vld [vmem:[#allocation102_spill] sm:$0xff]  ;;  %v4967_v14 = vmax.f32 %v4903_v24, 0.0  ;;  %5028 = vst [vmem:[#allocation3 + $0x8] sm:$0xff] %v4964_v47 }
 0x533   :  { %v9656_v36 = vadd.f32 %v10318_v16, %v4216_v63  ;;  %v9659_v57 = vadd.f32 %v10319_v1, %v4217_v52  ;;  %v9662_v44 = vadd.f32 %v10320_v54, %v4218_v35  ;;  %v10321_v46 = vld [vmem:[#allocation101_spill] sm:$0xff]  ;;  %v10322_v9 = vld [vmem:[#allocation104_spill] sm:$0xff]  ;;  %v10323_v30 = vld [vmem:[#allocation103_spill] sm:$0xff]  ;;  %v4963_v63 = vmax.f32 %v4899_v33, 0.0  ;;  %5029 = vst [vmem:[#allocation3 + $0x10] sm:$0xff] %v4965_v0 }
 0x534   :  { %v9665_v5 = vadd.f32 %v10321_v46, %v4219_v23  ;;  %v9668_v3 = vadd.f32 %v10322_v9, %v4220_v27  ;;  %v9671_v34 = vadd.f32 %v10323_v30, %v4221_v48  ;;  %v10324_v49 = vld [vmem:[#allocation12_spill] sm:$0xff]  ;;  %v4966_v52 = vmax.f32 %v4902_v43, 0.0  ;;  %v10325_v35 = vld [vmem:[#allocation105_spill] sm:$0xff]  ;;  %5031 = vst [vmem:[#allocation3 + $0x20] sm:$0xff] %v4967_v14 }
 0x535   :  { %v4222_v11 = vadd.f32 %v9261_v15, %v10324_v49  ;;  %v4968_v42 = vmax.f32 %v4904_v26, 0.0  ;;  %v4969_v56 = vmax.f32 %v4905_v18, 0.0  ;;  %v4970_v23 = vmax.f32 %v4906_v38, 0.0  ;;  %5027 = vst [vmem:[#allocation3] sm:$0xff] %v4963_v63  ;;  %v10336_v47 = vld [vmem:[#allocation108_spill] sm:$0xff] }
 0x536   :  { %v4971_v17 = vmax.f32 %v4907_v32, 0.0  ;;  %v4972_v27 = vmax.f32 %v9581_v21, 0.0  ;;  %v4973_v48 = vmax.f32 %v9584_v51, 0.0  ;;  %v4974_v45 = vmax.f32 %v9587_v50, 0.0  ;;  %5030 = vst [vmem:[#allocation3 + $0x18] sm:$0xff] %v4966_v52  ;;  %v10337_v52 = vld [vmem:[#allocation109_spill] sm:$0xff] }
 0x537   :  { %v4939_v59 = vadd.f32 %v10325_v35, %v4222_v11  ;;  %v4975_v33 = vmax.f32 %v9590_v7, 0.0  ;;  %5032 = vst [vmem:[#allocation3 + $0x28] sm:$0xff] %v4968_v42  ;;  %v4976_v43 = vmax.f32 %v9593_v39, 0.0  ;;  %v4977_v62 = vmax.f32 %v9596_v28, 0.0  ;;  %5033 = vst [vmem:[#allocation3 + $0x30] sm:$0xff] %v4969_v56  ;;  %v10335_v11 = vld [vmem:[#allocation107_spill] sm:$0xff] }
 0x538   :  { %v4978_v6 = vmax.f32 %v9599_v29, 0.0  ;;  %5034 = vst [vmem:[#allocation3 + $0x38] sm:$0xff] %v4970_v23  ;;  %5035 = vst [vmem:[#allocation3 + $0x40] sm:$0xff] %v4971_v17  ;;  %v4979_v24 = vmax.f32 %v9602_v13, 0.0  ;;  %v4980_v18 = vmax.f32 %v9605_v60, 0.0  ;;  %v4981_v38 = vmax.f32 %v9608_v10, 0.0 }
 0x539   :  { %v5003_v26 = vmax.f32 %v4939_v59, 0.0  ;;  %v4982_v32 = vmax.f32 %v9611_v61, 0.0  ;;  %5036 = vst [vmem:[#allocation3 + $0x48] sm:$0xff] %v4972_v27  ;;  %5037 = vst [vmem:[#allocation3 + $0x50] sm:$0xff] %v4973_v48  ;;  %v4983_v21 = vmax.f32 %v9614_v55, 0.0  ;;  %v4984_v51 = vmax.f32 %v9617_v58, 0.0 }
 0x53a   :  { %5038 = vst [vmem:[#allocation3 + $0x58] sm:$0xff] %v4974_v45  ;;  %5039 = vst [vmem:[#allocation3 + $0x60] sm:$0xff] %v4975_v33  ;;  %v4985_v50 = vmax.f32 %v9620_v12, 0.0  ;;  %v4986_v7 = vmax.f32 %v9623_v8, 0.0  ;;  %v4987_v39 = vmax.f32 %v9626_v2, 0.0  ;;  %v4988_v28 = vmax.f32 %v9629_v22, 0.0 }
 0x53b   :  { %5067 = vst [vmem:[#allocation3 + $0x140] sm:$0xff] %v5003_v26  ;;  %5040 = vst [vmem:[#allocation3 + $0x68] sm:$0xff] %v4976_v43  ;;  %v4989_v29 = vmax.f32 %v9632_v53, 0.0  ;;  %v4990_v13 = vmax.f32 %v9635_v40, 0.0  ;;  %v4991_v60 = vmax.f32 %v9638_v25, 0.0  ;;  %v4992_v10 = vmax.f32 %v9641_v4, 0.0 }
 0x53c   :  { %5041 = vst [vmem:[#allocation3 + $0x70] sm:$0xff] %v4977_v62  ;;  %5042 = vst [vmem:[#allocation3 + $0x78] sm:$0xff] %v4978_v6  ;;  %v4993_v61 = vmax.f32 %v9644_v20, 0.0  ;;  %v4994_v55 = vmax.f32 %v9647_v31, 0.0  ;;  %v4995_v58 = vmax.f32 %v9650_v41, 0.0  ;;  %v4996_v12 = vmax.f32 %v9653_v19, 0.0 }
 0x53d   :  { %5043 = vst [vmem:[#allocation3 + $0x80] sm:$0xff] %v4979_v24  ;;  %5044 = vst [vmem:[#allocation3 + $0x88] sm:$0xff] %v4980_v18  ;;  %v4997_v8 = vmax.f32 %v9656_v36, 0.0  ;;  %v4998_v2 = vmax.f32 %v9659_v57, 0.0  ;;  %v4999_v22 = vmax.f32 %v9662_v44, 0.0  ;;  %v5000_v53 = vmax.f32 %v9665_v5, 0.0 }
 0x53e   :  { %5045 = vst [vmem:[#allocation3 + $0x90] sm:$0xff] %v4981_v38  ;;  %5046 = vst [vmem:[#allocation3 + $0x98] sm:$0xff] %v4982_v32  ;;  %v5001_v40 = vmax.f32 %v9668_v3, 0.0  ;;  %v5002_v25 = vmax.f32 %v9671_v34, 0.0  ;;  %v10326_v4 = vld [vmem:[#allocation15_spill] sm:$0xff]  ;;  %v10327_v31 = vld [vmem:[#allocation13_spill] sm:$0xff] }
 0x53f   :  { %5047 = vst [vmem:[#allocation3 + $0xa0] sm:$0xff] %v4983_v21  ;;  %5048 = vst [vmem:[#allocation3 + $0xa8] sm:$0xff] %v4984_v51  ;;  %v4225_v20 = vadd.f32 %v9261_v15, %v10326_v4  ;;  %v4224_v41 = vadd.f32 %v9261_v15, %v10327_v31  ;;  %v10328_v19 = vld [vmem:[#allocation19_spill] sm:$0xff]  ;;  %v10329_v36 = vld [vmem:[#allocation14_spill] sm:$0xff] }
 0x540   :  { %5049 = vst [vmem:[#allocation3 + $0xb0] sm:$0xff] %v4985_v50  ;;  %5050 = vst [vmem:[#allocation3 + $0xb8] sm:$0xff] %v4986_v7  ;;  %v4227_v16 = vadd.f32 %v9261_v15, %v10328_v19  ;;  %v4226_v1 = vadd.f32 %v9261_v15, %v10329_v36  ;;  %v10330_v57 = vld [vmem:[#allocation23_spill] sm:$0xff]  ;;  %v10331_v44 = vld [vmem:[#allocation17_spill] sm:$0xff] }
 0x541   :  { %5051 = vst [vmem:[#allocation3 + $0xc0] sm:$0xff] %v4987_v39  ;;  %5052 = vst [vmem:[#allocation3 + $0xc8] sm:$0xff] %v4988_v28  ;;  %v4229_v54 = vadd.f32 %v9261_v15, %v10330_v57  ;;  %v4228_v46 = vadd.f32 %v9261_v15, %v10331_v44  ;;  %v10332_v5 = vld [vmem:[#allocation26_spill] sm:$0xff]  ;;  %v10333_v3 = vld [vmem:[#allocation20_spill] sm:$0xff]  ;;  %v4941_v63 = vadd.f32 %v10335_v11, %v4224_v41 }
 0x542   :  { %5053 = vst [vmem:[#allocation3 + $0xd0] sm:$0xff] %v4989_v29  ;;  %5054 = vst [vmem:[#allocation3 + $0xd8] sm:$0xff] %v4990_v13  ;;  %v4231_v9 = vadd.f32 %v9261_v15, %v10332_v5  ;;  %v4230_v30 = vadd.f32 %v9261_v15, %v10333_v3  ;;  %v10334_v34 = vld [vmem:[#allocation106_spill] sm:$0xff]  ;;  %v4944_v0 = vadd.f32 %v10336_v47, %v4227_v16  ;;  %v10338_v42 = vld [vmem:[#allocation72_spill] sm:$0xff]  ;;  %v5783_v29 = vpop.f32.mrf.mxu0 }
 0x543   :  { %5055 = vst [vmem:[#allocation3 + $0xe0] sm:$0xff] %v4991_v60  ;;  %5056 = vst [vmem:[#allocation3 + $0xe8] sm:$0xff] %v4992_v10  ;;  %v4942_v49 = vadd.f32 %v10334_v34, %v4225_v20  ;;  %v4943_v14 = vadd.f32 %v10337_v52, %v4226_v1  ;;  %v4946_v35 = vadd.f32 %v10338_v42, %v4229_v54  ;;  %v10339_v59 = vld [vmem:[#allocation110_spill] sm:$0xff]  ;;  %v10340_v23 = vld [vmem:[#allocation111_spill] sm:$0xff]  ;;  %v5005_v33 = vmax.f32 %v4941_v63, 0.0 }
 0x544   :  { %5057 = vst [vmem:[#allocation3 + $0xf0] sm:$0xff] %v4993_v61  ;;  %5058 = vst [vmem:[#allocation3 + $0xf8] sm:$0xff] %v4994_v55  ;;  %v4945_v56 = vadd.f32 %v10339_v59, %v4228_v46  ;;  %v4948_v17 = vadd.f32 %v10340_v23, %v4231_v9  ;;  %v10341_v27 = vld [vmem:[#allocation112_spill] sm:$0xff]  ;;  %v5008_v26 = vmax.f32 %v4944_v0, 0.0  ;;  %v10342_v38 = vld [vmem:[#allocation30_spill] sm:$0xff]  ;;  %v4239_v55 = vadd.f32 %v9261_v15, %v9467_v37  ;;  %v4890_v9 = vpop.f32.mrf.mxu0 }
 0x545   :  { %5059 = vst [vmem:[#allocation3 + $0x100] sm:$0xff] %v4995_v58  ;;  %5060 = vst [vmem:[#allocation3 + $0x108] sm:$0xff] %v4996_v12  ;;  %v4947_v48 = vadd.f32 %v10341_v27, %v4230_v30  ;;  %v5006_v45 = vmax.f32 %v4942_v49, 0.0  ;;  %v5007_v43 = vmax.f32 %v4943_v14, 0.0  ;;  %v5010_v62 = vmax.f32 %v4946_v35, 0.0  ;;  %v10343_v21 = vld [vmem:[#allocation27_spill] sm:$0xff] }
 0x546   :  { %5061 = vst [vmem:[#allocation3 + $0x110] sm:$0xff] %v4997_v8  ;;  %5062 = vst [vmem:[#allocation3 + $0x118] sm:$0xff] %v4998_v2  ;;  %v5009_v6 = vmax.f32 %v4945_v56, 0.0  ;;  %v5012_v24 = vmax.f32 %v4948_v17, 0.0  ;;  %v4233_v32 = vadd.f32 %v9261_v15, %v10342_v38  ;;  %v4232_v51 = vadd.f32 %v9261_v15, %v10343_v21  ;;  %v10344_v50 = vld [vmem:[#allocation32_spill] sm:$0xff]  ;;  %v10345_v39 = vld [vmem:[#allocation31_spill] sm:$0xff] }
 0x547   :  { %5063 = vst [vmem:[#allocation3 + $0x120] sm:$0xff] %v4999_v22  ;;  %5064 = vst [vmem:[#allocation3 + $0x128] sm:$0xff] %v5000_v53  ;;  %v5011_v18 = vmax.f32 %v4947_v48, 0.0  ;;  %v4235_v7 = vadd.f32 %v9261_v15, %v10344_v50  ;;  %v4234_v28 = vadd.f32 %v9261_v15, %v10345_v39  ;;  %v10346_v13 = vld [vmem:[#allocation36_spill] sm:$0xff]  ;;  %v10347_v10 = vld [vmem:[#allocation33_spill] sm:$0xff] }
 0x548   :  { %5065 = vst [vmem:[#allocation3 + $0x130] sm:$0xff] %v5001_v40  ;;  %5066 = vst [vmem:[#allocation3 + $0x138] sm:$0xff] %v5002_v25  ;;  %v4237_v60 = vadd.f32 %v9261_v15, %v10346_v13  ;;  %v4236_v61 = vadd.f32 %v9261_v15, %v10347_v10  ;;  %v10348_v58 = vld [vmem:[#allocation35_spill] sm:$0xff]  ;;  %v10349_v8 = vld [vmem:[#allocation113_spill] sm:$0xff] }
 0x549   :  { %5070 = vst [vmem:[#allocation3 + $0x158] sm:$0xff] %v5006_v45  ;;  %5069 = vst [vmem:[#allocation3 + $0x150] sm:$0xff] %v5005_v33  ;;  %v4238_v12 = vadd.f32 %v9261_v15, %v10348_v58  ;;  %v4950_v2 = vadd.f32 %v10349_v8, %v4233_v32  ;;  %v10350_v22 = vld [vmem:[#allocation79_spill] sm:$0xff]  ;;  %v10351_v40 = vld [vmem:[#allocation114_spill] sm:$0xff] }
 0x54a   :  { %5072 = vst [vmem:[#allocation3 + $0x168] sm:$0xff] %v5008_v26  ;;  %5071 = vst [vmem:[#allocation3 + $0x160] sm:$0xff] %v5007_v43  ;;  %v4949_v53 = vadd.f32 %v10350_v22, %v4232_v51  ;;  %v4952_v25 = vadd.f32 %v10351_v40, %v4235_v7  ;;  %v10352_v4 = vld [vmem:[#allocation115_spill] sm:$0xff]  ;;  %v10353_v31 = vld [vmem:[#allocation116_spill] sm:$0xff] }
 0x54b   :  { %5074 = vst [vmem:[#allocation3 + $0x178] sm:$0xff] %v5010_v62  ;;  %5073 = vst [vmem:[#allocation3 + $0x170] sm:$0xff] %v5009_v6  ;;  %v4951_v20 = vadd.f32 %v10352_v4, %v4234_v28  ;;  %v4954_v41 = vadd.f32 %v10353_v31, %v4237_v60  ;;  %v10354_v19 = vld [vmem:[#allocation117_spill] sm:$0xff]  ;;  %v10355_v36 = vld [vmem:[#allocation24_spill] sm:$0xff]  ;;  %v5014_v37 = vmax.f32 %v4950_v2, 0.0 }
 0x54c   :  { %5076 = vst [vmem:[#allocation3 + $0x188] sm:$0xff] %v5012_v24  ;;  %5075 = vst [vmem:[#allocation3 + $0x180] sm:$0xff] %v5011_v18  ;;  %v4953_v16 = vadd.f32 %v10354_v19, %v4236_v61  ;;  %v4956_v1 = vadd.f32 %v10355_v36, %v4239_v55  ;;  %v10356_v57 = vld [vmem:[#allocation118_spill] sm:$0xff]  ;;  %v5013_v44 = vmax.f32 %v4949_v53, 0.0  ;;  %v5016_v46 = vmax.f32 %v4952_v25, 0.0  ;;  %v10357_v11 = vld [vmem:[#allocation37_spill] sm:$0xff] }
 0x54d   :  { %v4955_v54 = vadd.f32 %v10356_v57, %v4238_v12  ;;  %v5015_v5 = vmax.f32 %v4951_v20, 0.0  ;;  %v5018_v3 = vmax.f32 %v4954_v41, 0.0  ;;  %5078 = vst [vmem:[#allocation3 + $0x198] sm:$0xff] %v5014_v37  ;;  %v4241_v63 = vadd.f32 %v9261_v15, %v10357_v11  ;;  %v10358_v47 = vld [vmem:[#allocation38_spill] sm:$0xff]  ;;  %v10359_v52 = vld [vmem:[#allocation39_spill] sm:$0xff]  ;;  %v10360_v42 = vld [vmem:[#allocation40_spill] sm:$0xff] }
 0x54e   :  { %v5017_v30 = vmax.f32 %v4953_v16, 0.0  ;;  %v5020_v34 = vmax.f32 %v4956_v1, 0.0  ;;  %5077 = vst [vmem:[#allocation3 + $0x190] sm:$0xff] %v5013_v44  ;;  %5080 = vst [vmem:[#allocation3 + $0x1a8] sm:$0xff] %v5016_v46  ;;  %v4240_v0 = vadd.f32 %v9261_v15, %v10358_v47  ;;  %v4243_v14 = vadd.f32 %v9261_v15, %v10359_v52  ;;  %v10361_v59 = vld [vmem:[#allocation42_spill] sm:$0xff]  ;;  %v10362_v23 = vld [vmem:[#allocation80_spill] sm:$0xff] }
 0x54f   :  { %v5019_v49 = vmax.f32 %v4955_v54, 0.0  ;;  %5079 = vst [vmem:[#allocation3 + $0x1a0] sm:$0xff] %v5015_v5  ;;  %v4242_v35 = vadd.f32 %v9261_v15, %v10360_v42  ;;  %5082 = vst [vmem:[#allocation3 + $0x1b8] sm:$0xff] %v5018_v3  ;;  %v4245_v56 = vadd.f32 %v9261_v15, %v10361_v59  ;;  %v4896_v17 = vadd.f32 %v5783_v29, %v10362_v23  ;;  %v10363_v27 = vld [vmem:[#allocation10_spill] sm:$0xff]  ;;  %v10364_v33 = vld [vmem:[#allocation119_spill] sm:$0xff] }
 0x550   :  { %5081 = vst [vmem:[#allocation3 + $0x1b0] sm:$0xff] %v5017_v30  ;;  %5084 = vst [vmem:[#allocation3 + $0x1c8] sm:$0xff] %v5020_v34  ;;  %v4244_v48 = vadd.f32 %v9261_v15, %v10363_v27  ;;  %v4891_v45 = vadd.f32 %v10362_v23, %v4890_v9  ;;  %v4958_v26 = vadd.f32 %v10364_v33, %v4241_v63  ;;  %v10365_v43 = vld [vmem:[#allocation120_spill] sm:$0xff]  ;;  %v10366_v6 = vld [vmem:[#allocation121_spill] sm:$0xff] }
 0x551   :  { %5083 = vst [vmem:[#allocation3 + $0x1c0] sm:$0xff] %v5019_v49  ;;  %v4957_v62 = vadd.f32 %v10365_v43, %v4240_v0  ;;  %v4960_v24 = vadd.f32 %v10366_v6, %v4243_v14  ;;  %v10367_v18 = vld [vmem:[#allocation122_spill] sm:$0xff]  ;;  %v4962_v32 = vadd.f32 %v4896_v17, %v4245_v56 }
 0x552   :  { %v4959_v38 = vadd.f32 %v10367_v18, %v4242_v35  ;;  %v4961_v21 = vadd.f32 %v4891_v45, %v4244_v48  ;;  %v5022_v51 = vmax.f32 %v4958_v26, 0.0 }
 0x553   :  { %v5021_v50 = vmax.f32 %v4957_v62, 0.0  ;;  %v5024_v7 = vmax.f32 %v4960_v24, 0.0  ;;  %v5026_v28 = vmax.f32 %v4962_v32, 0.0 }
 0x554   :  { %v5023_v39 = vmax.f32 %v4959_v38, 0.0  ;;  %v5025_v15 = vmax.f32 %v4961_v21, 0.0  ;;  %5086 = vst [vmem:[#allocation3 + $0x1d8] sm:$0xff] %v5022_v51 }
 0x555   :  { %5085 = vst [vmem:[#allocation3 + $0x1d0] sm:$0xff] %v5021_v50  ;;  %5088 = vst [vmem:[#allocation3 + $0x1e8] sm:$0xff] %v5024_v7 }
 0x556   :  { %5087 = vst [vmem:[#allocation3 + $0x1e0] sm:$0xff] %v5023_v39  ;;  %5090 = vst [vmem:[#allocation3 + $0x1f8] sm:$0xff] %v5026_v28 }
 0x557   :  { %5089 = vst [vmem:[#allocation3 + $0x1f0] sm:$0xff] %v5025_v15 }
 0x558   :  { %5818 = shalt.err (!%p5815_p4)
}
 0x559   :  { %s5831_s21 = smov 128   ;;  %s5832_s22 = smov 8  }
 0x55a   :  { %5102 = dma.vmem_to_hbm [thread:$0]  %s5097_s19, 8192, %s9786_s10, [#allocation4], %s5831_s21, %s5831_s21, %s5832_s22  }
 0x55b   :  { %5827 = dma.done.wait [#allocation4], 8192  }
 0x55c   :  { %5828 = vsyncadd [#allocation4], 4294959104 }
 0x55d   :  { %5106 = vsyncpa [#allocation4], 1 }

</bundles_post_ra>
